<compile_context>
chip_gen: v6e
topology: v6e:2x2x1
jax: 0.10.0
libtpu: 0.0.40
codegen_flags: <defaults>
</compile_context>

<pallas_src>
import jax
import jax.numpy as jnp
from jax import lax
from jax.experimental import pallas as pl
from jax.experimental.pallas import tpu as pltpu

_CompilerParams = getattr(pltpu, "CompilerParams", None)
if _CompilerParams is None:
    _CompilerParams = getattr(pltpu, "TPUCompilerParams", None)


def _compiler_params(**kw):
    return _CompilerParams(**kw) if _CompilerParams is not None else None


# Fixed DQN hyper-parameters (from the PyTorch module).
_CIN, _C1, _C2 = 2, 24, 36
_KS, _PAD = 5, 10            # both convs: kernel 5, padding 10
_S1, _S2 = 1, 2              # strides


def conv2d_size_out(size, kernel_size, stride, padding):
    return (size - kernel_size + 2 * padding) // stride + 1


def _derived_sizes(h, w):
    oh1 = conv2d_size_out(h, _KS, _S1, _PAD)
    ow1 = conv2d_size_out(w, _KS, _S1, _PAD)
    assert oh1 % 2 == 0 and ow1 % 2 == 0, "conv1 output must be even (parity split)"
    u, v = oh1 // 2, ow1 // 2
    oh2 = conv2d_size_out(oh1, _KS, _S2, _PAD)
    ow2 = conv2d_size_out(ow1, _KS, _S2, _PAD)
    wp = v + 10                    # column-padded parity-plane width
    assert ow2 + 2 <= wp
    rows = u * wp                  # parity-plane rows per sample
    acc_rows = oh2 * wp            # flattened padded conv2 output rows
    return oh1, ow1, u, v, oh2, ow2, wp, rows, acc_rows


# ----------------------------- Pallas kernels ------------------------------ #

def conv_stage(p1, w1aug, w2g, b2, *, n, rows, acc_rows, wp):
    """Fused conv1+BN1+ReLU -> conv2+BN2+ReLU.  One grid step per sample."""
    k1 = p1.shape[1]
    c1 = w1aug.shape[1]
    c2 = w2g.shape[1]
    qc = w2g.shape[0] // 9         # rows per conv2 offset-group (= 4 parities * 24)

    def kernel(p_ref, w1_ref, w2_ref, b2_ref, o_ref, acc_ref):
        # conv1 (+folded BN1; bias enters via the indicator column so padded
        # patch rows stay exactly zero) + ReLU, emitted as 4 parity planes.
        y1 = jnp.dot(p_ref[...], w1_ref[...], preferred_element_type=jnp.float32)
        y1 = jnp.maximum(y1, 0.0).astype(jnp.bfloat16)        # (rows, 4*24)

        acc_ref[...] = jnp.zeros_like(acc_ref)
        # conv2: the 25 taps are grouped into 9 kernel-offset groups (ih, jh);
        # each group is ONE matmul whose (rows, 36) result lands at a constant
        # row offset d inside the flattened, column-padded (acc_rows, 36)
        # output (padding rows of y1 are zero, so out-of-window adds are 0).
        gi = 0
        for ih in range(3):
            for jh in range(3):
                d = (5 - ih) * wp + (2 - jh)
                r = jnp.dot(y1, w2_ref[qc * gi:qc * (gi + 1), :],
                            preferred_element_type=jnp.float32)
                acc_ref[d:d + rows, :] += r
                gi += 1
        o_ref[0] = jnp.maximum(acc_ref[...] + b2_ref[...], 0.0).astype(o_ref.dtype)

    return pl.pallas_call(
        kernel,
        out_shape=jax.ShapeDtypeStruct((n, acc_rows, c2), jnp.bfloat16),
        grid=(n,),
        in_specs=[
            pl.BlockSpec((rows, k1), lambda i: (i, 0)),
            pl.BlockSpec((k1, c1), lambda i: (0, 0)),
            pl.BlockSpec(w2g.shape, lambda i: (0, 0)),
            pl.BlockSpec((1, c2), lambda i: (0, 0)),
        ],
        out_specs=pl.BlockSpec((1, acc_rows, c2), lambda i: (i, 0, 0)),
        scratch_shapes=[pltpu.VMEM((acc_rows, c2), jnp.float32)],
        compiler_params=_compiler_params(dimension_semantics=("parallel",)),
    )(p1, w1aug, w2g, b2)


def fc_stage(flat, w1, b1, w2, b2):
    """Fused fc1 + ReLU + fc2 in a single step (no K tiling: at batch 2 extra
    grid steps cannot hide the weight DMA and only add fixed overhead)."""
    m, k = flat.shape
    hdim = w1.shape[1]
    o = w2.shape[1]

    def kernel(x_ref, w1_ref, b1_ref, w2_ref, b2_ref, o_ref):
        hh = jnp.dot(x_ref[...], w1_ref[...], preferred_element_type=jnp.float32)
        hh = jnp.maximum(hh + b1_ref[...], 0.0)
        y = jnp.dot(hh.astype(w2_ref.dtype), w2_ref[...],
                    preferred_element_type=jnp.float32) + b2_ref[...]
        o_ref[...] = y

    return pl.pallas_call(
        kernel,
        out_shape=jax.ShapeDtypeStruct((m, o), jnp.float32),
        grid=(1,),
        in_specs=[
            pl.BlockSpec((m, k), lambda i: (0, 0)),
            pl.BlockSpec((k, hdim), lambda i: (0, 0)),
            pl.BlockSpec((1, hdim), lambda i: (0, 0)),
            pl.BlockSpec((hdim, o), lambda i: (0, 0)),
            pl.BlockSpec((1, o), lambda i: (0, 0)),
        ],
        out_specs=pl.BlockSpec((m, o), lambda i: (0, 0)),
        compiler_params=_compiler_params(dimension_semantics=("arbitrary",)),
    )(flat, w1, b1, w2, b2)


# ------------------------------ JAX glue ---------------------------------- #

def build_conv1_parity_patches(x_nhwc, u, v):
    """Conv1 im2col whose rows are ordered (parity-pair q, half-row u, padded
    half-col w), so the conv1 matmul output is directly conv2's stride-2
    parity-plane input.  Columns: 4 groups of (25 taps * Cin + 1 indicator).
    Rows with w outside [5, 5+v) are all-zero (incl. indicator)."""
    n = x_nhwc.shape[0]
    cin = x_nhwc.shape[3]
    oh1, ow1 = 2 * u, 2 * v
    xp = jnp.pad(x_nhwc, ((0, 0), (_PAD, _PAD), (_PAD, _PAD), (0, 0)))
    taps = [xp[:, i:i + oh1, j:j + ow1, :] for i in range(_KS) for j in range(_KS)]
    p = jnp.stack(taps, axis=3).reshape(n, oh1, ow1, _KS * _KS * cin)
    p = p.reshape(n, u, 2, v, 2, _KS * _KS * cin)            # rows (u, ip), cols (v, jp)
    p = p.transpose(0, 1, 3, 2, 4, 5).reshape(n, u, v, 4, _KS * _KS * cin)
    ones = jnp.ones((n, u, v, 4, 1), p.dtype)
    p = jnp.concatenate([p, ones], axis=-1)                  # + bias indicator column
    p = jnp.pad(p, ((0, 0), (0, 0), (5, 5), (0, 0), (0, 0)))  # column pad -> width v+10
    return p.reshape(n * u * (v + 10), 4 * (_KS * _KS * cin + 1))


def _fold_bn(gamma, beta, mean, var, conv_b, eps=1e-5):
    scale = gamma / jnp.sqrt(var + eps)
    bias = (conv_b - mean) * scale + beta
    return scale, bias


def prepare_inference_params(params, h, w, eps=1e-5):
    """Fold BN into conv weights and reorder everything into the layouts the
    two kernels expect; pre-cast MXU operands to bf16."""
    f32, bf16 = jnp.float32, jnp.bfloat16
    _, _, u, v, oh2, ow2, wp, _, acc_rows = _derived_sizes(h, w)

    # conv1 weight block (taps+bias row), replicated block-diagonally for the
    # 4 parity column groups of the patch matrix.
    s1, b1 = _fold_bn(params["bn1_gamma"], params["bn1_beta"],
                      params["bn1_mean"], params["bn1_var"], params["conv1_b"], eps)
    w1t = params["conv1_w"].transpose(2, 3, 1, 0).reshape(-1, _C1) * s1[None, :]
    blk = jnp.concatenate([w1t, b1[None, :]], axis=0)         # (51, 24)
    kb, cb = blk.shape
    w1aug = jnp.zeros((4 * kb, 4 * cb), f32)
    for q in range(4):
        w1aug = w1aug.at[q * kb:(q + 1) * kb, q * cb:(q + 1) * cb].set(blk)

    # conv2: 25 taps -> 9 offset groups of (4*24, 36); parity taps with kernel
    # index 5 do not exist and get zero blocks.
    s2, b2 = _fold_bn(params["bn2_gamma"], params["bn2_beta"],
                      params["bn2_mean"], params["bn2_var"], params["conv2_b"], eps)
    w2t = params["conv2_w"].transpose(2, 3, 1, 0) * s2[None, None, None, :]
    groups = []
    for ih in range(3):
        for jh in range(3):
            parts = []
            for ip in range(2):
                for jp in range(2):
                    i, j = 2 * ih + ip, 2 * jh + jp
                    if i < _KS and j < _KS:
                        parts.append(w2t[i, j])
                    else:
                        parts.append(jnp.zeros((_C1, _C2), f32))
            groups.append(jnp.concatenate(parts, axis=0))
    w2g = jnp.concatenate(groups, axis=0)                     # (9*96, 36)

    # fc1 weight pre-scattered onto the padded conv-stage output layout:
    # conv-stage row alpha holds (oh = alpha//wp, ow = alpha%wp - 2); junk
    # columns (alpha%wp < 2) get zero weight rows.
    fc1t = params["fc1_w"].T                                  # (lin_in, 128)
    alpha = jnp.arange(acc_rows)
    oh = alpha // wp
    owp = alpha % wp
    valid = (owp >= 2) & (owp < 2 + ow2)
    ow = jnp.clip(owp - 2, 0, ow2 - 1)
    cc = jnp.arange(_C2)
    lam = cc[None, :] * (oh2 * ow2) + oh[:, None] * ow2 + ow[:, None]
    wf1 = jnp.where(valid[:, None, None], fc1t[lam], 0.0)     # (acc_rows, 36, 128)
    wf1 = wf1.reshape(acc_rows * _C2, fc1t.shape[1])

    return {
        "w1aug": w1aug.astype(bf16),
        "w2g": w2g.astype(bf16),
        "b2": b2.reshape(1, -1).astype(f32),
        "wf1": wf1.astype(bf16),
        "bf1": params["fc1_b"].reshape(1, -1).astype(f32),
        "wf2": params["fc2_w"].T.astype(bf16),
        "bf2": params["fc2_b"].reshape(1, -1).astype(f32),
    }


def dqn_forward(x_nchw, prep, h, w):
    n = x_nchw.shape[0]
    _, _, u, v, _, _, wp, rows, acc_rows = _derived_sizes(h, w)
    x = x_nchw.transpose(0, 2, 3, 1).astype(jnp.bfloat16)     # NHWC bf16

    p1 = build_conv1_parity_patches(x, u, v)
    conv_out = conv_stage(p1, prep["w1aug"], prep["w2g"], prep["b2"],
                          n=n, rows=rows, acc_rows=acc_rows, wp=wp)

    # Row-major (n, alpha, c) -> (n, alpha*c) is a free reshape; junk positions
    # are matched by the zero rows of the pre-scattered fc1 weight.
    flat = conv_out.reshape(n, acc_rows * _C2)
    return fc_stage(flat, prep["wf1"], prep["bf1"], prep["wf2"], prep["bf2"])


# --------------------------- parameter init -------------------------------- #

def init_params(key, outputs, lin_in):
    ks = jax.random.split(key, 16)

    def u(k, shape, fan_in):
        bound = 1.0 / jnp.sqrt(jnp.float32(fan_in))
        return jax.random.uniform(k, shape, jnp.float32, -bound, bound)

    return {
        "conv1_w": u(ks[0], (_C1, _CIN, _KS, _KS), _CIN * _KS * _KS),
        "conv1_b": u(ks[1], (_C1,), _CIN * _KS * _KS),
        "bn1_gamma": jax.random.uniform(ks[2], (_C1,), jnp.float32, 0.5, 1.5),
        "bn1_beta": 0.1 * jax.random.normal(ks[3], (_C1,), jnp.float32),
        "bn1_mean": 0.1 * jax.random.normal(ks[4], (_C1,), jnp.float32),
        "bn1_var": jax.random.uniform(ks[5], (_C1,), jnp.float32, 0.5, 1.5),
        "conv2_w": u(ks[6], (_C2, _C1, _KS, _KS), _C1 * _KS * _KS),
        "conv2_b": u(ks[7], (_C2,), _C1 * _KS * _KS),
        "bn2_gamma": jax.random.uniform(ks[8], (_C2,), jnp.float32, 0.5, 1.5),
        "bn2_beta": 0.1 * jax.random.normal(ks[9], (_C2,), jnp.float32),
        "bn2_mean": 0.1 * jax.random.normal(ks[10], (_C2,), jnp.float32),
        "bn2_var": jax.random.uniform(ks[11], (_C2,), jnp.float32, 0.5, 1.5),
        "fc1_w": u(ks[12], (128, lin_in), lin_in),
        "fc1_b": u(ks[13], (128,), lin_in),
        "fc2_w": u(ks[14], (outputs, 128), 128),
        "fc2_b": u(ks[15], (outputs,), 128),
    }


# --------------------------- reference (plain JAX) ------------------------- #

def reference_forward(x, params, eps=1e-5):
    def bn(y, g, b, m, v):
        return (y - m[None, :, None, None]) / jnp.sqrt(v + eps)[None, :, None, None] \
            * g[None, :, None, None] + b[None, :, None, None]

    y = lax.conv_general_dilated(x, params["conv1_w"], (1, 1), [(10, 10), (10, 10)],
                                 dimension_numbers=("NCHW", "OIHW", "NCHW"))
    y = y + params["conv1_b"][None, :, None, None]
    y = jnp.maximum(bn(y, params["bn1_gamma"], params["bn1_beta"],
                       params["bn1_mean"], params["bn1_var"]), 0.0)

    y = lax.conv_general_dilated(y, params["conv2_w"], (2, 2), [(10, 10), (10, 10)],
                                 dimension_numbers=("NCHW", "OIHW", "NCHW"))
    y = y + params["conv2_b"][None, :, None, None]
    y = jnp.maximum(bn(y, params["bn2_gamma"], params["bn2_beta"],
                       params["bn2_mean"], params["bn2_var"]), 0.0)

    flat = y.reshape(x.shape[0], -1)
    h = jnp.maximum(flat @ params["fc1_w"].T + params["fc1_b"], 0.0)
    return h @ params["fc2_w"].T + params["fc2_b"]


# ---------------------------------- main ----------------------------------- #

if __name__ == "__main__":
    batch, H, W, outputs = 2, 8, 8, 4
    convw = conv2d_size_out(conv2d_size_out(W, _KS, _S1, _PAD), _KS, _S2, _PAD)
    convh = conv2d_size_out(conv2d_size_out(H, _KS, _S1, _PAD), _KS, _S2, _PAD)
    lin_in = _C2 * convw * convh                               # 14400

    key = jax.random.PRNGKey(0)
    kx, kp = jax.random.split(key)
    x = jax.random.normal(kx, (batch, _CIN, H, W), jnp.float32)
    params = init_params(kp, outputs, lin_in)
    prep = prepare_inference_params(params, H, W)

    fwd = jax.jit(lambda xx, pp: dqn_forward(xx, pp, H, W))
    out = jax.block_until_ready(fwd(x, prep))
    assert out.shape == (batch, outputs), out.shape

    ref = reference_forward(x, params)
    max_err = float(jnp.max(jnp.abs(out - ref)))
    tol = 5e-2 * (1.0 + float(jnp.max(jnp.abs(ref))))
    assert max_err < tol, f"mismatch: max_err={max_err}, tol={tol}"

    # Action (argmax) agreement, guarded against genuine near-ties in the
    # reference logits (which bf16 cannot be expected to resolve).
    ref_sorted = jnp.sort(ref, axis=1)
    gap = ref_sorted[:, -1] - ref_sorted[:, -2]
    agree = (jnp.argmax(out, axis=1) == jnp.argmax(ref, axis=1)) | (gap < tol)
    assert bool(jnp.all(agree)), "argmax(action) mismatch beyond tolerance"

    print("KERNEL_OK")
</pallas_src>

<mosaic_0001>
module attributes {stable_mosaic.version = 11 : i64} {
  func.func @kernel(%arg0: i32, %arg1: memref<264x204xbf16, #tpu.memory_space<vmem>>, %arg2: memref<204x96xbf16, #tpu.memory_space<vmem>>, %arg3: memref<864x36xbf16, #tpu.memory_space<vmem>>, %arg4: memref<1x36xf32, #tpu.memory_space<vmem>>, %arg5: memref<1x440x36xbf16, #tpu.memory_space<vmem>>, %arg6: memref<440x36xf32, #tpu.memory_space<vmem>>) attributes {dimension_semantics = [#tpu.dimension_semantics<parallel>], iteration_bounds = array<i64: 2>, scalar_prefetch = 0 : i64, scratch_operands = 1 : i64, tpu.core_type = #tpu.core_type<tc>, window_params = [{transform_indices = @transform_0, window_bounds = array<i64: 264, 204>}, {pipeline_mode = #tpu.pipeline_mode<synchronous>, transform_indices = @transform_1, window_bounds = array<i64: 204, 96>}, {pipeline_mode = #tpu.pipeline_mode<synchronous>, transform_indices = @transform_2, window_bounds = array<i64: 864, 36>}, {pipeline_mode = #tpu.pipeline_mode<synchronous>, transform_indices = @transform_3, window_bounds = array<i64: 1, 36>}, {transform_indices = @transform_4, window_bounds = array<i64: 1, 440, 36>}]} {
    %c0 = arith.constant 0 : index
    %c0_0 = arith.constant 0 : index
    %0 = vector.load %arg1[%c0, %c0_0] : memref<264x204xbf16, #tpu.memory_space<vmem>>, vector<264x204xbf16>
    %c0_1 = arith.constant 0 : index
    %c0_2 = arith.constant 0 : index
    %1 = vector.load %arg2[%c0_1, %c0_2] : memref<204x96xbf16, #tpu.memory_space<vmem>>, vector<204x96xbf16>
    %cst = arith.constant dense<0.000000e+00> : vector<264x96xf32>
    %2 = tpu.matmul %0, %1, %cst {dimension_numbers = #tpu.dot_dimension_numbers<[1], [0], [0], [1], [0, 0, 1, 1], [], []>} : vector<264x204xbf16>, vector<204x96xbf16>, vector<264x96xf32> -> vector<264x96xf32>
    %cst_3 = arith.constant 0.000000e+00 : f32
    %3 = vector.broadcast %cst_3 : f32 to vector<264x96xf32>
    %4 = arith.maximumf %2, %3 : vector<264x96xf32>
    %5 = arith.truncf %4 : vector<264x96xf32> to vector<264x96xbf16>
    %cst_4 = arith.constant 0.000000e+00 : f32
    %6 = vector.broadcast %cst_4 : f32 to vector<440x36xf32>
    %c0_5 = arith.constant 0 : index
    %c0_6 = arith.constant 0 : index
    %7 = vector.load %arg6[%c0_5, %c0_6] : memref<440x36xf32, #tpu.memory_space<vmem>>, vector<440x36xf32>
    tpu.vector_store %arg6[%c0_5, %c0_6], %6 {strides = array<i32>} : memref<440x36xf32, #tpu.memory_space<vmem>>, vector<440x36xf32>,
    %c0_7 = arith.constant 0 : index
    %c0_8 = arith.constant 0 : index
    %8 = vector.load %arg3[%c0_7, %c0_8] : memref<864x36xbf16, #tpu.memory_space<vmem>>, vector<96x36xbf16>
    %cst_9 = arith.constant dense<0.000000e+00> : vector<264x36xf32>
    %9 = tpu.matmul %5, %8, %cst_9 {dimension_numbers = #tpu.dot_dimension_numbers<[1], [0], [0], [1], [0, 0, 1, 1], [], []>} : vector<264x96xbf16>, vector<96x36xbf16>, vector<264x36xf32> -> vector<264x36xf32>
    %c112 = arith.constant 112 : index
    %c0_10 = arith.constant 0 : index
    %10 = vector.load %arg6[%c112, %c0_10] : memref<440x36xf32, #tpu.memory_space<vmem>>, vector<264x36xf32>
    %11 = arith.addf %10, %9 : vector<264x36xf32>
    %c112_11 = arith.constant 112 : index
    %c0_12 = arith.constant 0 : index
    %12 = vector.load %arg6[%c112_11, %c0_12] : memref<440x36xf32, #tpu.memory_space<vmem>>, vector<264x36xf32>
    tpu.vector_store %arg6[%c112_11, %c0_12], %11 {strides = array<i32>} : memref<440x36xf32, #tpu.memory_space<vmem>>, vector<264x36xf32>,
    %c96 = arith.constant 96 : index
    %c0_13 = arith.constant 0 : index
    %13 = vector.load %arg3[%c96, %c0_13] : memref<864x36xbf16, #tpu.memory_space<vmem>>, vector<96x36xbf16>
    %cst_14 = arith.constant dense<0.000000e+00> : vector<264x36xf32>
    %14 = tpu.matmul %5, %13, %cst_14 {dimension_numbers = #tpu.dot_dimension_numbers<[1], [0], [0], [1], [0, 0, 1, 1], [], []>} : vector<264x96xbf16>, vector<96x36xbf16>, vector<264x36xf32> -> vector<264x36xf32>
    %c111 = arith.constant 111 : index
    %c0_15 = arith.constant 0 : index
    %15 = vector.load %arg6[%c111, %c0_15] : memref<440x36xf32, #tpu.memory_space<vmem>>, vector<264x36xf32>
    %16 = arith.addf %15, %14 : vector<264x36xf32>
    %c111_16 = arith.constant 111 : index
    %c0_17 = arith.constant 0 : index
    %17 = vector.load %arg6[%c111_16, %c0_17] : memref<440x36xf32, #tpu.memory_space<vmem>>, vector<264x36xf32>
    tpu.vector_store %arg6[%c111_16, %c0_17], %16 {strides = array<i32>} : memref<440x36xf32, #tpu.memory_space<vmem>>, vector<264x36xf32>,
    %c192 = arith.constant 192 : index
    %c0_18 = arith.constant 0 : index
    %18 = vector.load %arg3[%c192, %c0_18] : memref<864x36xbf16, #tpu.memory_space<vmem>>, vector<96x36xbf16>
    %cst_19 = arith.constant dense<0.000000e+00> : vector<264x36xf32>
    %19 = tpu.matmul %5, %18, %cst_19 {dimension_numbers = #tpu.dot_dimension_numbers<[1], [0], [0], [1], [0, 0, 1, 1], [], []>} : vector<264x96xbf16>, vector<96x36xbf16>, vector<264x36xf32> -> vector<264x36xf32>
    %c110 = arith.constant 110 : index
    %c0_20 = arith.constant 0 : index
    %20 = vector.load %arg6[%c110, %c0_20] : memref<440x36xf32, #tpu.memory_space<vmem>>, vector<264x36xf32>
    %21 = arith.addf %20, %19 : vector<264x36xf32>
    %c110_21 = arith.constant 110 : index
    %c0_22 = arith.constant 0 : index
    %22 = vector.load %arg6[%c110_21, %c0_22] : memref<440x36xf32, #tpu.memory_space<vmem>>, vector<264x36xf32>
    tpu.vector_store %arg6[%c110_21, %c0_22], %21 {strides = array<i32>} : memref<440x36xf32, #tpu.memory_space<vmem>>, vector<264x36xf32>,
    %c288 = arith.constant 288 : index
    %c0_23 = arith.constant 0 : index
    %23 = vector.load %arg3[%c288, %c0_23] : memref<864x36xbf16, #tpu.memory_space<vmem>>, vector<96x36xbf16>
    %cst_24 = arith.constant dense<0.000000e+00> : vector<264x36xf32>
    %24 = tpu.matmul %5, %23, %cst_24 {dimension_numbers = #tpu.dot_dimension_numbers<[1], [0], [0], [1], [0, 0, 1, 1], [], []>} : vector<264x96xbf16>, vector<96x36xbf16>, vector<264x36xf32> -> vector<264x36xf32>
    %c90 = arith.constant 90 : index
    %c0_25 = arith.constant 0 : index
    %25 = vector.load %arg6[%c90, %c0_25] : memref<440x36xf32, #tpu.memory_space<vmem>>, vector<264x36xf32>
    %26 = arith.addf %25, %24 : vector<264x36xf32>
    %c90_26 = arith.constant 90 : index
    %c0_27 = arith.constant 0 : index
    %27 = vector.load %arg6[%c90_26, %c0_27] : memref<440x36xf32, #tpu.memory_space<vmem>>, vector<264x36xf32>
    tpu.vector_store %arg6[%c90_26, %c0_27], %26 {strides = array<i32>} : memref<440x36xf32, #tpu.memory_space<vmem>>, vector<264x36xf32>,
    %c384 = arith.constant 384 : index
    %c0_28 = arith.constant 0 : index
    %28 = vector.load %arg3[%c384, %c0_28] : memref<864x36xbf16, #tpu.memory_space<vmem>>, vector<96x36xbf16>
    %cst_29 = arith.constant dense<0.000000e+00> : vector<264x36xf32>
    %29 = tpu.matmul %5, %28, %cst_29 {dimension_numbers = #tpu.dot_dimension_numbers<[1], [0], [0], [1], [0, 0, 1, 1], [], []>} : vector<264x96xbf16>, vector<96x36xbf16>, vector<264x36xf32> -> vector<264x36xf32>
    %c89 = arith.constant 89 : index
    %c0_30 = arith.constant 0 : index
    %30 = vector.load %arg6[%c89, %c0_30] : memref<440x36xf32, #tpu.memory_space<vmem>>, vector<264x36xf32>
    %31 = arith.addf %30, %29 : vector<264x36xf32>
    %c89_31 = arith.constant 89 : index
    %c0_32 = arith.constant 0 : index
    %32 = vector.load %arg6[%c89_31, %c0_32] : memref<440x36xf32, #tpu.memory_space<vmem>>, vector<264x36xf32>
    tpu.vector_store %arg6[%c89_31, %c0_32], %31 {strides = array<i32>} : memref<440x36xf32, #tpu.memory_space<vmem>>, vector<264x36xf32>,
    %c480 = arith.constant 480 : index
    %c0_33 = arith.constant 0 : index
    %33 = vector.load %arg3[%c480, %c0_33] : memref<864x36xbf16, #tpu.memory_space<vmem>>, vector<96x36xbf16>
    %cst_34 = arith.constant dense<0.000000e+00> : vector<264x36xf32>
    %34 = tpu.matmul %5, %33, %cst_34 {dimension_numbers = #tpu.dot_dimension_numbers<[1], [0], [0], [1], [0, 0, 1, 1], [], []>} : vector<264x96xbf16>, vector<96x36xbf16>, vector<264x36xf32> -> vector<264x36xf32>
    %c88 = arith.constant 88 : index
    %c0_35 = arith.constant 0 : index
    %35 = vector.load %arg6[%c88, %c0_35] : memref<440x36xf32, #tpu.memory_space<vmem>>, vector<264x36xf32>
    %36 = arith.addf %35, %34 : vector<264x36xf32>
    %c88_36 = arith.constant 88 : index
    %c0_37 = arith.constant 0 : index
    %37 = vector.load %arg6[%c88_36, %c0_37] : memref<440x36xf32, #tpu.memory_space<vmem>>, vector<264x36xf32>
    tpu.vector_store %arg6[%c88_36, %c0_37], %36 {strides = array<i32>} : memref<440x36xf32, #tpu.memory_space<vmem>>, vector<264x36xf32>,
    %c576 = arith.constant 576 : index
    %c0_38 = arith.constant 0 : index
    %38 = vector.load %arg3[%c576, %c0_38] : memref<864x36xbf16, #tpu.memory_space<vmem>>, vector<96x36xbf16>
    %cst_39 = arith.constant dense<0.000000e+00> : vector<264x36xf32>
    %39 = tpu.matmul %5, %38, %cst_39 {dimension_numbers = #tpu.dot_dimension_numbers<[1], [0], [0], [1], [0, 0, 1, 1], [], []>} : vector<264x96xbf16>, vector<96x36xbf16>, vector<264x36xf32> -> vector<264x36xf32>
    %c68 = arith.constant 68 : index
    %c0_40 = arith.constant 0 : index
    %40 = vector.load %arg6[%c68, %c0_40] : memref<440x36xf32, #tpu.memory_space<vmem>>, vector<264x36xf32>
    %41 = arith.addf %40, %39 : vector<264x36xf32>
    %c68_41 = arith.constant 68 : index
    %c0_42 = arith.constant 0 : index
    %42 = vector.load %arg6[%c68_41, %c0_42] : memref<440x36xf32, #tpu.memory_space<vmem>>, vector<264x36xf32>
    tpu.vector_store %arg6[%c68_41, %c0_42], %41 {strides = array<i32>} : memref<440x36xf32, #tpu.memory_space<vmem>>, vector<264x36xf32>,
    %c672 = arith.constant 672 : index
    %c0_43 = arith.constant 0 : index
    %43 = vector.load %arg3[%c672, %c0_43] : memref<864x36xbf16, #tpu.memory_space<vmem>>, vector<96x36xbf16>
    %cst_44 = arith.constant dense<0.000000e+00> : vector<264x36xf32>
    %44 = tpu.matmul %5, %43, %cst_44 {dimension_numbers = #tpu.dot_dimension_numbers<[1], [0], [0], [1], [0, 0, 1, 1], [], []>} : vector<264x96xbf16>, vector<96x36xbf16>, vector<264x36xf32> -> vector<264x36xf32>
    %c67 = arith.constant 67 : index
    %c0_45 = arith.constant 0 : index
    %45 = vector.load %arg6[%c67, %c0_45] : memref<440x36xf32, #tpu.memory_space<vmem>>, vector<264x36xf32>
    %46 = arith.addf %45, %44 : vector<264x36xf32>
    %c67_46 = arith.constant 67 : index
    %c0_47 = arith.constant 0 : index
    %47 = vector.load %arg6[%c67_46, %c0_47] : memref<440x36xf32, #tpu.memory_space<vmem>>, vector<264x36xf32>
    tpu.vector_store %arg6[%c67_46, %c0_47], %46 {strides = array<i32>} : memref<440x36xf32, #tpu.memory_space<vmem>>, vector<264x36xf32>,
    %c768 = arith.constant 768 : index
    %c0_48 = arith.constant 0 : index
    %48 = vector.load %arg3[%c768, %c0_48] : memref<864x36xbf16, #tpu.memory_space<vmem>>, vector<96x36xbf16>
    %cst_49 = arith.constant dense<0.000000e+00> : vector<264x36xf32>
    %49 = tpu.matmul %5, %48, %cst_49 {dimension_numbers = #tpu.dot_dimension_numbers<[1], [0], [0], [1], [0, 0, 1, 1], [], []>} : vector<264x96xbf16>, vector<96x36xbf16>, vector<264x36xf32> -> vector<264x36xf32>
    %c66 = arith.constant 66 : index
    %c0_50 = arith.constant 0 : index
    %50 = vector.load %arg6[%c66, %c0_50] : memref<440x36xf32, #tpu.memory_space<vmem>>, vector<264x36xf32>
    %51 = arith.addf %50, %49 : vector<264x36xf32>
    %c66_51 = arith.constant 66 : index
    %c0_52 = arith.constant 0 : index
    %52 = vector.load %arg6[%c66_51, %c0_52] : memref<440x36xf32, #tpu.memory_space<vmem>>, vector<264x36xf32>
    tpu.vector_store %arg6[%c66_51, %c0_52], %51 {strides = array<i32>} : memref<440x36xf32, #tpu.memory_space<vmem>>, vector<264x36xf32>,
    %c0_53 = arith.constant 0 : index
    %c0_54 = arith.constant 0 : index
    %53 = vector.load %arg6[%c0_53, %c0_54] : memref<440x36xf32, #tpu.memory_space<vmem>>, vector<440x36xf32>
    %c0_55 = arith.constant 0 : index
    %c0_56 = arith.constant 0 : index
    %54 = vector.load %arg4[%c0_55, %c0_56] : memref<1x36xf32, #tpu.memory_space<vmem>>, vector<1x36xf32>
    %55 = vector.broadcast %54 : vector<1x36xf32> to vector<440x36xf32>
    %56 = arith.addf %53, %55 : vector<440x36xf32>
    %cst_57 = arith.constant 0.000000e+00 : f32
    %57 = vector.broadcast %cst_57 : f32 to vector<440x36xf32>
    %58 = arith.maximumf %56, %57 : vector<440x36xf32>
    %59 = arith.truncf %58 : vector<440x36xf32> to vector<440x36xbf16>
    %c0_58 = arith.constant 0 : index
    %c0_59 = arith.constant 0 : index
    %c0_60 = arith.constant 0 : index
    %60 = vector.load %arg5[%c0_58, %c0_59, %c0_60] : memref<1x440x36xbf16, #tpu.memory_space<vmem>>, vector<1x440x36xbf16>
    %61 = vector.shape_cast %60 : vector<1x440x36xbf16> to vector<440x36xbf16>
    %62 = vector.shape_cast %59 : vector<440x36xbf16> to vector<1x440x36xbf16>
    tpu.vector_store %arg5[%c0_58, %c0_59, %c0_60], %62 {strides = array<i32>} : memref<1x440x36xbf16, #tpu.memory_space<vmem>>, vector<1x440x36xbf16>,
    return
  }
  func.func @transform_0(%arg0: i32) -> (i32, i32) {
    %c0_i32 = arith.constant 0 : i32
    %c0_i32_0 = arith.constant 0 : i32
    return %arg0, %c0_i32 : i32, i32
  }
  func.func @transform_1(%arg0: i32) -> (i32, i32) {
    %c0_i32 = arith.constant 0 : i32
    %c0_i32_0 = arith.constant 0 : i32
    %c0_i32_1 = arith.constant 0 : i32
    return %c0_i32, %c0_i32_0 : i32, i32
  }
  func.func @transform_2(%arg0: i32) -> (i32, i32) {
    %c0_i32 = arith.constant 0 : i32
    %c0_i32_0 = arith.constant 0 : i32
    %c0_i32_1 = arith.constant 0 : i32
    return %c0_i32, %c0_i32_0 : i32, i32
  }
  func.func @transform_3(%arg0: i32) -> (i32, i32) {
    %c0_i32 = arith.constant 0 : i32
    %c0_i32_0 = arith.constant 0 : i32
    %c0_i32_1 = arith.constant 0 : i32
    return %c0_i32, %c0_i32_0 : i32, i32
  }
  func.func @transform_4(%arg0: i32) -> (i32, i32, i32) {
    %c0_i32 = arith.constant 0 : i32
    %c0_i32_0 = arith.constant 0 : i32
    %c0_i32_1 = arith.constant 0 : i32
    return %arg0, %c0_i32, %c0_i32_0 : i32, i32, i32
  }
}

module attributes {stable_mosaic.version = 11 : i64} {
  func.func @kernel(%arg0: i32, %arg1: memref<2x15840xbf16, #tpu.memory_space<vmem>>, %arg2: memref<15840x128xbf16, #tpu.memory_space<vmem>>, %arg3: memref<1x128xf32, #tpu.memory_space<vmem>>, %arg4: memref<128x4xbf16, #tpu.memory_space<vmem>>, %arg5: memref<1x4xf32, #tpu.memory_space<vmem>>, %arg6: memref<2x4xf32, #tpu.memory_space<vmem>>) attributes {dimension_semantics = [#tpu.dimension_semantics<arbitrary>], iteration_bounds = array<i64: 1>, scalar_prefetch = 0 : i64, scratch_operands = 0 : i64, tpu.core_type = #tpu.core_type<tc>, window_params = [{pipeline_mode = #tpu.pipeline_mode<synchronous>, transform_indices = @transform_0, window_bounds = array<i64: 2, 15840>}, {pipeline_mode = #tpu.pipeline_mode<synchronous>, transform_indices = @transform_1, window_bounds = array<i64: 15840, 128>}, {pipeline_mode = #tpu.pipeline_mode<synchronous>, transform_indices = @transform_2, window_bounds = array<i64: 1, 128>}, {pipeline_mode = #tpu.pipeline_mode<synchronous>, transform_indices = @transform_3, window_bounds = array<i64: 128, 4>}, {pipeline_mode = #tpu.pipeline_mode<synchronous>, transform_indices = @transform_4, window_bounds = array<i64: 1, 4>}, {pipeline_mode = #tpu.pipeline_mode<synchronous>, transform_indices = @transform_5, window_bounds = array<i64: 2, 4>}]} {
    %c0 = arith.constant 0 : index
    %c0_0 = arith.constant 0 : index
    %0 = vector.load %arg1[%c0, %c0_0] : memref<2x15840xbf16, #tpu.memory_space<vmem>>, vector<2x15840xbf16>
    %c0_1 = arith.constant 0 : index
    %c0_2 = arith.constant 0 : index
    %1 = vector.load %arg2[%c0_1, %c0_2] : memref<15840x128xbf16, #tpu.memory_space<vmem>>, vector<15840x128xbf16>
    %cst = arith.constant dense<0.000000e+00> : vector<2x128xf32>
    %2 = tpu.matmul %0, %1, %cst {dimension_numbers = #tpu.dot_dimension_numbers<[1], [0], [0], [1], [0, 0, 1, 1], [], []>} : vector<2x15840xbf16>, vector<15840x128xbf16>, vector<2x128xf32> -> vector<2x128xf32>
    %c0_3 = arith.constant 0 : index
    %c0_4 = arith.constant 0 : index
    %3 = vector.load %arg3[%c0_3, %c0_4] : memref<1x128xf32, #tpu.memory_space<vmem>>, vector<1x128xf32>
    %4 = vector.broadcast %3 : vector<1x128xf32> to vector<2x128xf32>
    %5 = arith.addf %2, %4 : vector<2x128xf32>
    %cst_5 = arith.constant 0.000000e+00 : f32
    %6 = vector.broadcast %cst_5 : f32 to vector<2x128xf32>
    %7 = arith.maximumf %5, %6 : vector<2x128xf32>
    %8 = arith.truncf %7 : vector<2x128xf32> to vector<2x128xbf16>
    %c0_6 = arith.constant 0 : index
    %c0_7 = arith.constant 0 : index
    %9 = vector.load %arg4[%c0_6, %c0_7] : memref<128x4xbf16, #tpu.memory_space<vmem>>, vector<128x4xbf16>
    %cst_8 = arith.constant dense<0.000000e+00> : vector<2x4xf32>
    %10 = tpu.matmul %8, %9, %cst_8 {dimension_numbers = #tpu.dot_dimension_numbers<[1], [0], [0], [1], [0, 0, 1, 1], [], []>} : vector<2x128xbf16>, vector<128x4xbf16>, vector<2x4xf32> -> vector<2x4xf32>
    %c0_9 = arith.constant 0 : index
    %c0_10 = arith.constant 0 : index
    %11 = vector.load %arg5[%c0_9, %c0_10] : memref<1x4xf32, #tpu.memory_space<vmem>>, vector<1x4xf32>
    %12 = vector.broadcast %11 : vector<1x4xf32> to vector<2x4xf32>
    %13 = arith.addf %10, %12 : vector<2x4xf32>
    %c0_11 = arith.constant 0 : index
    %c0_12 = arith.constant 0 : index
    %14 = vector.load %arg6[%c0_11, %c0_12] : memref<2x4xf32, #tpu.memory_space<vmem>>, vector<2x4xf32>
    tpu.vector_store %arg6[%c0_11, %c0_12], %13 {strides = array<i32>} : memref<2x4xf32, #tpu.memory_space<vmem>>, vector<2x4xf32>,
    return
  }
  func.func @transform_0(%arg0: i32) -> (i32, i32) {
    %c0_i32 = arith.constant 0 : i32
    %c0_i32_0 = arith.constant 0 : i32
    %c0_i32_1 = arith.constant 0 : i32
    return %c0_i32, %c0_i32_0 : i32, i32
  }
  func.func @transform_1(%arg0: i32) -> (i32, i32) {
    %c0_i32 = arith.constant 0 : i32
    %c0_i32_0 = arith.constant 0 : i32
    %c0_i32_1 = arith.constant 0 : i32
    return %c0_i32, %c0_i32_0 : i32, i32
  }
  func.func @transform_2(%arg0: i32) -> (i32, i32) {
    %c0_i32 = arith.constant 0 : i32
    %c0_i32_0 = arith.constant 0 : i32
    %c0_i32_1 = arith.constant 0 : i32
    return %c0_i32, %c0_i32_0 : i32, i32
  }
  func.func @transform_3(%arg0: i32) -> (i32, i32) {
    %c0_i32 = arith.constant 0 : i32
    %c0_i32_0 = arith.constant 0 : i32
    %c0_i32_1 = arith.constant 0 : i32
    return %c0_i32, %c0_i32_0 : i32, i32
  }
  func.func @transform_4(%arg0: i32) -> (i32, i32) {
    %c0_i32 = arith.constant 0 : i32
    %c0_i32_0 = arith.constant 0 : i32
    %c0_i32_1 = arith.constant 0 : i32
    return %c0_i32, %c0_i32_0 : i32, i32
  }
  func.func @transform_5(%arg0: i32) -> (i32, i32) {
    %c0_i32 = arith.constant 0 : i32
    %c0_i32_0 = arith.constant 0 : i32
    %c0_i32_1 = arith.constant 0 : i32
    return %c0_i32, %c0_i32_0 : i32, i32
  }
}

</mosaic_0001>

<bundles_post_ra>
// kernel: _lambda_.2
= control target key start
LH: loop header
LB: loop body
LE: loop exit
PB: predicated region body
PF: predicated region fallthrough
CT: control target
= control target key end

     0   :  { %s5716_s15 = smov 0   ;;  %s7740_s0 = inlined_call_operand.vmem [shape: bf16[528,204], index: 0, kind: input, shape index: {}]   ;;  %s7741_s1 = inlined_call_operand.vmem [shape: bf16[204,96], index: 1, kind: input, shape index: {}]   ;;  %s7742_s2 = inlined_call_operand.vmem [shape: bf16[864,36], index: 2, kind: input, shape index: {}]   ;;  %s7743_s3 = inlined_call_operand.vmem [shape: f32[1,36], index: 3, kind: input, shape index: {}]   ;;  %s7744_s4 = inlined_call_operand.vmem [shape: bf16[2,440,36], index: 4, kind: output, shape index: {}]  }
   0x1 LB: > { %s5722_s16 = sadd.s32 4294967295, %s5686_s15   ;;  %p4215_p0 = scmp.ge.s32.totalorder %s5686_s15, 1  ;;  %s5686_s15 = sphi %s5716_s15, %s14_s15  }
   0x2   : > { %p164_p1 = scmp.lt.s32.totalorder %s5686_s15, 3 }
   0x4   : > { %p165_p2 = pnand %p4215_p0, %p164_p1 }
   0x6   : > { %168 = sbr.rel (%p165_p2) target bundleno = 1157 (0x485), region = 36 }
   0xb   : > { %v5555_v0 = vld [vmem:[%s7741_s1 + $0x38] sm:$0xff]   ;;  %v5688_v1 = vmov 0   ;;  %v5556_v2 = vld [vmem:[%s7741_s1 + $0x30] sm:$0xff]   ;;  %s191_s21 = smul.u32 33, %s5722_s16  ;;  %v5557_v3 = vld [vmem:[%s7741_s1 + $0x28] sm:$0xff]   ;;  %vm490_vm0 = vcmask 621568  }
   0xc   : > { %546 = vmatprep.subr.bf16.mxu0 %v5688_v1  ;;  %v5558_v4 = vld [vmem:[%s7741_s1 + $0x20] sm:$0xff]   ;;  %v5559_v5 = vld [vmem:[%s7741_s1 + $0x18] sm:$0xff]   ;;  %v5560_v7 = vld [vmem:[%s7741_s1 + $0x10] sm:$0xff]   ;;  %vm542_vm1 = vcmask 1045504   ;;  %v7745_v20 = vmov 0.0   ;;  %vm5690_vm2 = vmmov 0  }
   0xd   : > { %547 = vmatpush1.bf16.msra.mxu0 %v5555_v0  ;;  %p192_p3 = scmp.lt.s32.totalorder %s191_s21, 65  ;;  %v5561_v8 = vld [vmem:[%s7741_s1 + $0x8] sm:$0xff]   ;;  %v5562_v9 = vld [vmem:[%s7741_s1] sm:$0xff]   ;;  %v5564_v12 = vld [vmem:[%s7741_s1 + $0x58] sm:$0xff]   ;;  %4811 = vmatprep.subr.bf16.mxu1 %v7745_v20  ;;  %vm868_vm3 = vcmask 785408   ;;  %vm764_vm4 = vcmask 293888  }
   0xe   : > { %548 = vmatprep.subr.bf16.mxu0 %v5688_v1  ;;  %v5563_v10 = vld [vmem:[%s7741_s1 + $0x60] sm:$0x3f]   ;;  %v5565_v13 = vld [vmem:[%s7741_s1 + $0x50] sm:$0xff]   ;;  %v5566_v14 = vld [vmem:[%s7741_s1 + $0x48] sm:$0xff]   ;;  %4823 = vmatprep.mubr.msk.bf16.mxu1 %vm5690_vm2, %v7745_v20  ;;  %765 = vst.msk [vmem:[#allocation2] sm:$0xff] %vm764_vm4, %v7745_v20  ;;  %p198_p4 = scmp.lt.s32.totalorder %s5722_s16, 1 }
   0xf   : > { %s7761_s21 = smov (!%p192_p3, %s191_s21), 65  ;;  %v544_v11 = vsel %vm542_vm1, %v5563_v10, 0  ;;  %v5567_v15 = vld [vmem:[%s7741_s1 + $0x40] sm:$0xff]   ;;  %v5618_v18 = vld [vmem:[%s7742_s2 + $0x28] sm:$0xff]   ;;  %v5622_v25 = vld [vmem:[%s7742_s2 + $0x18] sm:$0xff]   ;;  %766 = vst.msk [vmem:[#allocation2 + $0x8] sm:$0xff] %vm764_vm4, %v7745_v20 }
  0x10   : > { %s4548_s24 = sshll.u32 %s7761_s21, 3  ;;  %v5619_v19 = vld [vmem:[%s7742_s2 + $0x88] sm:$0xff]   ;;  %4812 = vmatpush3.bf16.msra.mxu1 %v5618_v18  ;;  %v5620_v22 = vld [vmem:[%s7742_s2 + $0x20] sm:$0xff]   ;;  %v5623_v26 = vld [vmem:[%s7742_s2 + $0x78] sm:$0xff]   ;;  %767 = vst.msk [vmem:[#allocation2 + $0x10] sm:$0xff] %vm764_vm4, %v7745_v20  ;;  %s7763_s16 = smov (!%p198_p4, %s5722_s16), 1 }
  0x11   : > { %549 = vmatpush1.bf16.msra.mxu0 %v5556_v2  ;;  %s5742_s29 = scalar_lea.vmem %s7740_s0, %s4548_s24  ;;  %v5621_v23 = vld [vmem:[%s7742_s2 + $0x80] sm:$0xff]   ;;  %4813 = vmatprep.subr.bf16.mxu1 %v7745_v20  ;;  %v5624_v27 = vld [vmem:[%s7742_s2 + $0x10] sm:$0xff]   ;;  %v5626_v43 = vld [vmem:[%s7742_s2 + $0x8] sm:$0xff]   ;;  %768 = vst.msk [vmem:[#allocation2 + $0x18] sm:$0xff] %vm764_vm4, %v7745_v20  ;;  %s5543_s13 = smul.u32 220, %s7763_s16  ;;  %vm4100_vm5 = vcmask 289792  }
  0x12   : > { %550 = vmatprep.subr.bf16.mxu0 %v5688_v1  ;;  %v5570_v6 = vld [vmem:[%s5742_s29 + $0x4] ss:$8 sps:$4 sm:$0xff]   ;;  %v5568_v16 = vld [vmem:[%s5742_s29] ss:$8 sps:$4 sm:$0xff]   ;;  %v5571_v17 = vld [vmem:[%s5742_s29 + $0x14] ss:$8 sps:$4 sm:$0xff]  }
  0x13   : > { %4266 = vmatprep.mubr.msk.bf16.mxu0 %vm490_vm0, %v5570_v6  ;;  %v5573_v21 = vld [vmem:[%s5742_s29 + $0x10] ss:$8 sps:$4 sm:$0xff]   ;;  %v5574_v24 = vld [vmem:[%s5742_s29 + $0x24] ss:$8 sps:$4 sm:$0xff]   ;;  %v5576_v29 = vld [vmem:[%s5742_s29 + $0x20] ss:$8 sps:$4 sm:$0xff]   ;;  %s6961_s17 = scalar_lea.vmem %s7744_s4, %s5543_s13 }
  0x14   : > { %4814 = vmatpush3.bf16.msra.mxu1 %v5620_v22  ;;  %v5625_v28 = vld [vmem:[%s7742_s2 + $0x70] sm:$0xff]   ;;  %v5580_v32 = vld [vmem:[%s5742_s29 + $0x44] ss:$8 sps:$4 sm:$0xff]   ;;  %v5582_v33 = vld [vmem:[%s5742_s29 + $0x40] ss:$8 sps:$4 sm:$0xff]   ;;  %769 = vst.msk [vmem:[#allocation2 + $0x20] sm:$0xff] %vm764_vm4, %v7745_v20 }
  0x15   : > { %551 = vmatpush1.bf16.msra.mxu0 %v5557_v3  ;;  %4815 = vmatprep.subr.bf16.mxu1 %v7745_v20  ;;  %v5577_v30 = vld [vmem:[%s5742_s29 + $0x34] ss:$8 sps:$4 sm:$0xff]   ;;  %v5579_v31 = vld [vmem:[%s5742_s29 + $0x30] ss:$8 sps:$4 sm:$0xff]   ;;  %v5586_v36 = vld [vmem:[%s5742_s29 + $0x64] ss:$8 sps:$4 sm:$0xff]  }
  0x16   : > { %552 = vmatprep.subr.bf16.mxu0 %v5688_v1  ;;  %v5583_v34 = vld [vmem:[%s5742_s29 + $0x54] ss:$8 sps:$4 sm:$0xff]   ;;  %v5585_v35 = vld [vmem:[%s5742_s29 + $0x50] ss:$8 sps:$4 sm:$0xff]   ;;  %v5588_v37 = vld [vmem:[%s5742_s29 + $0x60] ss:$8 sps:$4 sm:$0xff]  }
  0x17   : > { %v5589_v38 = vld [vmem:[%s5742_s29 + $0x74] ss:$8 sps:$4 sm:$0xff]   ;;  %v5591_v39 = vld [vmem:[%s5742_s29 + $0x70] ss:$8 sps:$4 sm:$0xff]   ;;  %v5592_v40 = vld [vmem:[%s5742_s29 + $0x84] ss:$8 sps:$4 sm:$0xff]  }
  0x18   : > { %4816 = vmatpush3.bf16.msra.mxu1 %v5622_v25  ;;  %v5594_v41 = vld [vmem:[%s5742_s29 + $0x80] ss:$8 sps:$4 sm:$0xff]   ;;  %v5595_v42 = vld [vmem:[%s5742_s29 + $0x94] ss:$8 sps:$4 sm:$0xff]   ;;  %v5597_v45 = vld [vmem:[%s5742_s29 + $0x90] ss:$8 sps:$4 sm:$0xff]  }
  0x19   : > { %553 = vmatpush1.bf16.msra.mxu0 %v5558_v4  ;;  %4817 = vmatprep.subr.bf16.mxu1 %v7745_v20  ;;  %v5627_v44 = vld [vmem:[%s7742_s2 + $0x68] sm:$0xff]   ;;  %v5628_v46 = vld [vmem:[%s7742_s2] sm:$0xff]   ;;  %v5601_v50 = vld [vmem:[%s5742_s29 + $0xb4] ss:$8 sps:$4 sm:$0xff]   ;;  %770 = vst.msk [vmem:[#allocation2 + $0x28] sm:$0xff] %vm764_vm4, %v7745_v20 }
  0x1a   : > { %554 = vmatprep.subr.bf16.mxu0 %v5688_v1  ;;  %v5629_v47 = vld [vmem:[%s7742_s2 + $0x60] sm:$0xff]   ;;  %v5603_v51 = vld [vmem:[%s5742_s29 + $0xb0] ss:$8 sps:$4 sm:$0xff]   ;;  %v5607_v54 = vld [vmem:[%s5742_s29 + $0xd4] ss:$8 sps:$4 sm:$0xff]   ;;  %771 = vst.msk [vmem:[#allocation2 + $0x30] sm:$0xff] %vm764_vm4, %v7745_v20 }
  0x1b   : > { %v5598_v48 = vld [vmem:[%s5742_s29 + $0xa4] ss:$8 sps:$4 sm:$0xff]   ;;  %v5600_v49 = vld [vmem:[%s5742_s29 + $0xa0] ss:$8 sps:$4 sm:$0xff]   ;;  %v5609_v55 = vld [vmem:[%s5742_s29 + $0xd0] ss:$8 sps:$4 sm:$0xff]  }
  0x1c   : > { %4818 = vmatpush3.bf16.msra.mxu1 %v5624_v27  ;;  %v5604_v52 = vld [vmem:[%s5742_s29 + $0xc4] ss:$8 sps:$4 sm:$0xff]   ;;  %v5606_v53 = vld [vmem:[%s5742_s29 + $0xc0] ss:$8 sps:$4 sm:$0xff]   ;;  %v5613_v58 = vld [vmem:[%s5742_s29 + $0xf4] ss:$8 sps:$4 sm:$0xff]  }
  0x1d   : > { %555 = vmatpush1.bf16.msra.mxu0 %v5559_v5  ;;  %4819 = vmatprep.subr.bf16.mxu1 %v7745_v20  ;;  %v5610_v56 = vld [vmem:[%s5742_s29 + $0xe4] ss:$8 sps:$4 sm:$0xff]   ;;  %v5612_v57 = vld [vmem:[%s5742_s29 + $0xe0] ss:$8 sps:$4 sm:$0xff]   ;;  %v5615_v60 = vld [vmem:[%s5742_s29 + $0xf0] ss:$8 sps:$4 sm:$0xff]  }
  0x1e   : > { %556 = vmatprep.subr.bf16.mxu0 %v5688_v1  ;;  %v236_v59 = vld [vmem:[%s5742_s29 + $0x100] sm:$0xff]  ;;  %v5630_v5 = vld [vmem:[%s7742_s2 + $0x58] sm:$0xff]   ;;  %v5631_v10 = vld [vmem:[%s7742_s2 + $0x50] sm:$0xff]   ;;  %772 = vst.msk [vmem:[#allocation2 + $0x38] sm:$0xff] %vm764_vm4, %v7745_v20 }
  0x1f   : > { %v4252_v61 = vcombine.high %v236_v59, %v236_v59  ;;  %v4251_v62 = vcombine.low %v236_v59, %v236_v59  ;;  %v5633_v22 = vld [vmem:[%s7742_s2 + $0x40] sm:$0xff]   ;;  %779 = vst.msk [vmem:[#allocation2 + $0x70] sm:$0xff] %vm764_vm4, %v7745_v20  ;;  %812 = vst.msk [vmem:[#allocation2 + $0x178] sm:$0xff] %vm764_vm4, %v7745_v20 }
  0x20   : > { %4820 = vmatpush3.bf16.msra.mxu1 %v5626_v43  ;;  %813 = vst.msk [vmem:[#allocation2 + $0x180] sm:$0xff] %vm764_vm4, %v7745_v20  ;;  %814 = vst.msk [vmem:[#allocation2 + $0x188] sm:$0xff] %vm764_vm4, %v7745_v20 }
  0x21   : > { %557 = vmatpush1.bf16.msra.mxu0 %v5560_v7  ;;  %4821 = vmatprep.subr.bf16.mxu1 %v7745_v20  ;;  %815 = vst.msk [vmem:[#allocation2 + $0x190] sm:$0xff] %vm764_vm4, %v7745_v20  ;;  %816 = vst.msk [vmem:[#allocation2 + $0x198] sm:$0xff] %vm764_vm4, %v7745_v20 }
  0x22   : > { %558 = vmatprep.subr.bf16.mxu0 %v5688_v1  ;;  %817 = vst.msk [vmem:[#allocation2 + $0x1a0] sm:$0xff] %vm764_vm4, %v7745_v20  ;;  %818 = vst.msk [vmem:[#allocation2 + $0x1a8] sm:$0xff] %vm764_vm4, %v7745_v20 }
  0x23   : > { %819 = vst.msk [vmem:[#allocation2 + $0x1b0] sm:$0xff] %vm764_vm4, %v7745_v20  ;;  %773 = vst.msk [vmem:[#allocation2 + $0x40] sm:$0xff] %vm764_vm4, %v7745_v20 }
  0x24   : > { %4822 = vmatpush3.bf16.msra.mxu1 %v5628_v46  ;;  %774 = vst.msk [vmem:[#allocation2 + $0x48] sm:$0xff] %vm764_vm4, %v7745_v20  ;;  %775 = vst.msk [vmem:[#allocation2 + $0x50] sm:$0xff] %vm764_vm4, %v7745_v20 }
  0x25   : > { %559 = vmatpush1.bf16.msra.mxu0 %v5561_v8  ;;  %4891 = vmatprep.subr.bf16.mxu1 %v7745_v20  ;;  %v5635_v8 = vld [vmem:[%s7742_s2 + $0xe8] sm:$0xff]   ;;  %776 = vst.msk [vmem:[#allocation2 + $0x58] sm:$0xff] %vm764_vm4, %v7745_v20  ;;  %777 = vst.msk [vmem:[#allocation2 + $0x60] sm:$0xff] %vm764_vm4, %v7745_v20 }
  0x26   : > { %560 = vmatprep.subr.bf16.mxu0 %v5688_v1  ;;  %778 = vst.msk [vmem:[#allocation2 + $0x68] sm:$0xff] %vm764_vm4, %v7745_v20  ;;  %780 = vst.msk [vmem:[#allocation2 + $0x78] sm:$0xff] %vm764_vm4, %v7745_v20 }
  0x27   : > { %781 = vst.msk [vmem:[#allocation2 + $0x80] sm:$0xff] %vm764_vm4, %v7745_v20  ;;  %782 = vst.msk [vmem:[#allocation2 + $0x88] sm:$0xff] %vm764_vm4, %v7745_v20 }
  0x28   : > { %783 = vst.msk [vmem:[#allocation2 + $0x90] sm:$0xff] %vm764_vm4, %v7745_v20  ;;  %784 = vst.msk [vmem:[#allocation2 + $0x98] sm:$0xff] %vm764_vm4, %v7745_v20 }
  0x29   : > { %561 = vmatpush1.bf16.msra.mxu0 %v5562_v9  ;;  %785 = vst.msk [vmem:[#allocation2 + $0xa0] sm:$0xff] %vm764_vm4, %v7745_v20  ;;  %786 = vst.msk [vmem:[#allocation2 + $0xa8] sm:$0xff] %vm764_vm4, %v7745_v20 }
  0x2a   : > { %568 = vmatprep.subr.bf16.mxu0 %v5688_v1  ;;  %787 = vst.msk [vmem:[#allocation2 + $0xb0] sm:$0xff] %vm764_vm4, %v7745_v20  ;;  %788 = vst.msk [vmem:[#allocation2 + $0xb8] sm:$0xff] %vm764_vm4, %v7745_v20 }
  0x2b   : > { %789 = vst.msk [vmem:[#allocation2 + $0xc0] sm:$0xff] %vm764_vm4, %v7745_v20  ;;  %790 = vst.msk [vmem:[#allocation2 + $0xc8] sm:$0xff] %vm764_vm4, %v7745_v20 }
  0x2c   : > { %791 = vst.msk [vmem:[#allocation2 + $0xd0] sm:$0xff] %vm764_vm4, %v7745_v20  ;;  %792 = vst.msk [vmem:[#allocation2 + $0xd8] sm:$0xff] %vm764_vm4, %v7745_v20 }
  0x2d   : > { %569 = vmatpush2.bf16.msra.mxu0 %v544_v11  ;;  %793 = vst.msk [vmem:[#allocation2 + $0xe0] sm:$0xff] %vm764_vm4, %v7745_v20  ;;  %794 = vst.msk [vmem:[#allocation2 + $0xe8] sm:$0xff] %vm764_vm4, %v7745_v20 }
  0x2e   : > { %570 = vmatprep.subr.bf16.mxu0 %v5688_v1  ;;  %795 = vst.msk [vmem:[#allocation2 + $0xf0] sm:$0xff] %vm764_vm4, %v7745_v20  ;;  %796 = vst.msk [vmem:[#allocation2 + $0xf8] sm:$0xff] %vm764_vm4, %v7745_v20 }
  0x2f   : > { %797 = vst.msk [vmem:[#allocation2 + $0x100] sm:$0xff] %vm764_vm4, %v7745_v20  ;;  %798 = vst.msk [vmem:[#allocation2 + $0x108] sm:$0xff] %vm764_vm4, %v7745_v20 }
  0x30   : > { %799 = vst.msk [vmem:[#allocation2 + $0x110] sm:$0xff] %vm764_vm4, %v7745_v20  ;;  %800 = vst.msk [vmem:[#allocation2 + $0x118] sm:$0xff] %vm764_vm4, %v7745_v20 }
  0x31   : > { %571 = vmatpush2.bf16.msra.mxu0 %v5564_v12  ;;  %v5637_v12 = vld [vmem:[%s7742_s2 + $0xe0] sm:$0xff]   ;;  %801 = vst.msk [vmem:[#allocation2 + $0x120] sm:$0xff] %vm764_vm4, %v7745_v20  ;;  %802 = vst.msk [vmem:[#allocation2 + $0x128] sm:$0xff] %vm764_vm4, %v7745_v20 }
  0x32   : > { %572 = vmatprep.subr.bf16.mxu0 %v5688_v1  ;;  %803 = vst.msk [vmem:[#allocation2 + $0x130] sm:$0xff] %vm764_vm4, %v7745_v20  ;;  %804 = vst.msk [vmem:[#allocation2 + $0x138] sm:$0xff] %vm764_vm4, %v7745_v20 }
  0x33   : > { %805 = vst.msk [vmem:[#allocation2 + $0x140] sm:$0xff] %vm764_vm4, %v7745_v20  ;;  %806 = vst.msk [vmem:[#allocation2 + $0x148] sm:$0xff] %vm764_vm4, %v7745_v20 }
  0x34   : > { %807 = vst.msk [vmem:[#allocation2 + $0x150] sm:$0xff] %vm764_vm4, %v7745_v20  ;;  %808 = vst.msk [vmem:[#allocation2 + $0x158] sm:$0xff] %vm764_vm4, %v7745_v20 }
  0x35   : > { %573 = vmatpush2.bf16.msra.mxu0 %v5565_v13  ;;  %809 = vst.msk [vmem:[#allocation2 + $0x160] sm:$0xff] %vm764_vm4, %v7745_v20  ;;  %810 = vst.msk [vmem:[#allocation2 + $0x168] sm:$0xff] %vm764_vm4, %v7745_v20 }
  0x36   : > { %574 = vmatprep.subr.bf16.mxu0 %v5688_v1  ;;  %811 = vst.msk [vmem:[#allocation2 + $0x170] sm:$0xff] %vm764_vm4, %v7745_v20 }
  0x39   : > { %575 = vmatpush2.bf16.msra.mxu0 %v5566_v14 }
  0x3a   : > { %576 = vmatprep.subr.bf16.mxu0 %v5688_v1 }
  0x3d   : > { %577 = vmatpush2.bf16.msra.mxu0 %v5567_v15 }
  0x3e   : > { %4971 = vmatprep.subr.bf16.mxu0 %v7745_v20 }
  0x40   : > { %579 = vmatmul.mubr.bf16.vlgmr.msra.gmra.mxu0 %v5568_v16 }
  0x41   : > { %4267 = vmatprep.mubr.msk.bf16.mxu0 %vm490_vm0, %v5571_v17  ;;  %4972 = vmatpush3.bf16.msra.mxu0 %v5619_v19  ;;  %v5632_v17 = vld [vmem:[%s7742_s2 + $0x48] sm:$0xff]   ;;  %v5638_v19 = vld [vmem:[%s7742_s2 + $0xd8] sm:$0xff]  }
  0x42   : > { %4973 = vmatprep.subr.bf16.mxu0 %v7745_v20 }
  0x45   : > { %4974 = vmatpush3.bf16.msra.mxu0 %v5621_v23 }
  0x46   : > { %4975 = vmatprep.subr.bf16.mxu0 %v7745_v20 }
  0x48   : > { %587 = vmatmul.mubr.bf16.gmra.mxu0 %v5573_v21 }
  0x49   : > { %4268 = vmatprep.mubr.msk.bf16.mxu0 %vm490_vm0, %v5574_v24  ;;  %4976 = vmatpush3.bf16.msra.mxu0 %v5623_v26  ;;  %v5639_v24 = vld [vmem:[%s7742_s2 + $0xd0] sm:$0xff]  }
  0x4a   : > { %4977 = vmatprep.subr.bf16.mxu0 %v7745_v20 }
  0x4d   : > { %4978 = vmatpush3.bf16.msra.mxu0 %v5625_v28 }
  0x4e   : > { %4979 = vmatprep.subr.bf16.mxu0 %v7745_v20 }
  0x50   : > { %595 = vmatmul.mubr.bf16.gmra.mxu0 %v5576_v29  ;;  %v5634_v29 = vld [vmem:[%s7742_s2 + $0x38] sm:$0xff]  }
  0x51   : > { %4269 = vmatprep.mubr.msk.bf16.mxu0 %vm490_vm0, %v5577_v30  ;;  %4980 = vmatpush3.bf16.msra.mxu0 %v5627_v44 }
  0x52   : > { %4981 = vmatprep.subr.bf16.mxu0 %v7745_v20 }
  0x55   : > { %4982 = vmatpush3.bf16.msra.mxu0 %v5629_v47 }
  0x56   : > { %5131 = vmatprep.subr.bf16.mxu0 %v7745_v20 }
  0x58   : > { %603 = vmatmul.mubr.bf16.gmra.mxu0 %v5579_v31  ;;  %v5640_v31 = vld [vmem:[%s7742_s2 + $0xc8] sm:$0xff]  }
  0x59   : > { %4270 = vmatprep.mubr.msk.bf16.mxu0 %vm490_vm0, %v5580_v32 }
  0x60   : > { %611 = vmatmul.mubr.bf16.gmra.mxu0 %v5582_v33  ;;  %v5636_v33 = vld [vmem:[%s7742_s2 + $0x30] sm:$0xff]  }
  0x61   : > { %4271 = vmatprep.mubr.msk.bf16.mxu0 %vm490_vm0, %v5583_v34 }
  0x68   : > { %619 = vmatmul.mubr.bf16.gmra.mxu0 %v5585_v35  ;;  %v5641_v35 = vld [vmem:[%s7742_s2 + $0xc0] sm:$0xff]  }
  0x69   : > { %4272 = vmatprep.mubr.msk.bf16.mxu0 %vm490_vm0, %v5586_v36 }
  0x70   : > { %627 = vmatmul.mubr.bf16.gmra.mxu0 %v5588_v37 }
  0x71   : > { %4273 = vmatprep.mubr.msk.bf16.mxu0 %vm490_vm0, %v5589_v38 }
  0x78   : > { %635 = vmatmul.mubr.bf16.gmra.mxu0 %v5591_v39 }
  0x79   : > { %4274 = vmatprep.mubr.msk.bf16.mxu0 %vm490_vm0, %v5592_v40 }
  0x80   : > { %643 = vmatmul.mubr.bf16.gmra.mxu0 %v5594_v41 }
  0x81   : > { %4275 = vmatprep.mubr.msk.bf16.mxu0 %vm490_vm0, %v5595_v42 }
  0x88   : > { %651 = vmatmul.mubr.bf16.gmra.mxu0 %v5597_v45 }
  0x89   : > { %4276 = vmatprep.mubr.msk.bf16.mxu0 %vm490_vm0, %v5598_v48 }
  0x90   : > { %659 = vmatmul.mubr.bf16.gmra.mxu0 %v5600_v49 }
  0x91   : > { %4277 = vmatprep.mubr.msk.bf16.mxu0 %vm490_vm0, %v5601_v50 }
  0x98   : > { %667 = vmatmul.mubr.bf16.gmra.mxu0 %v5603_v51 }
  0x99   : > { %4278 = vmatprep.mubr.msk.bf16.mxu0 %vm490_vm0, %v5604_v52 }
  0xa0   : > { %675 = vmatmul.mubr.bf16.gmra.mxu0 %v5606_v53 }
  0xa1   : > { %4279 = vmatprep.mubr.msk.bf16.mxu0 %vm490_vm0, %v5607_v54 }
  0xa8   : > { %683 = vmatmul.mubr.bf16.gmra.mxu0 %v5609_v55 }
  0xa9   : > { %4280 = vmatprep.mubr.msk.bf16.mxu0 %vm490_vm0, %v5610_v56 }
  0xb0   : > { %691 = vmatmul.mubr.bf16.gmra.mxu0 %v5612_v57 }
  0xb1   : > { %4281 = vmatprep.mubr.msk.bf16.mxu0 %vm490_vm0, %v5613_v58 }
  0xb8   : > { %699 = vmatmul.mubr.bf16.gmra.mxu0 %v5615_v60 }
  0xb9   : > { %4282 = vmatprep.mubr.msk.bf16.mxu0 %vm490_vm0, %v4252_v61 }
  0xc0   : > { %707 = vmatmul.mubr.bf16.gmra.mxu0 %v4251_v62 }
  0xc1   : > { %4983 = vmatprep.mubr.msk.bf16.mxu0 %vm5690_vm2, %v7745_v20 }
 0x100   : > { %v580_v63 = vpop.f32.mrf.mxu0 }
 0x101   : > { %v714_v2 = vmax.f32 %v580_v63, 0.0 }
 0x102   : > { %v582_v0 = vpop.f32.mrf.mxu0 }
 0x104   : > { %v583_v1 = vpop.f32.mrf.mxu0 }
 0x105   : > { %v715_v3 = vmax.f32 %v583_v1, 0.0 }
 0x106   : > { %v585_v4 = vpop.f32.mrf.mxu0 }
 0x107   : > { %v5878_v6 = vpack.c.bf16 %v715_v3, %v714_v2 }
 0x108   : > { %v588_v7 = vpop.f32.mrf.mxu0 }
 0x109   : > { %4824 = vmatmul.mubr.msk.bf16.vlgmr.msra.gmra.mxu1 %vm868_vm3, %v5878_v6  ;;  %4984 = vmatmul.mubr.msk.bf16.vlgmr.msra.gmra.mxu0 %vm868_vm3, %v5878_v6  ;;  %v716_v13 = vmax.f32 %v588_v7, 0.0 }
 0x10a   : > { %4892 = vmatpush3.bf16.msra.mxu1 %v5630_v5  ;;  %v590_v9 = vpop.f32.mrf.mxu0  ;;  %4827 = vmatprep.mubr.msk.bf16.mxu1 %vm5690_vm2, %v7745_v20 }
 0x10b   : > { %4987 = vmatprep.mubr.msk.bf16.mxu0 %vm5690_vm2, %v7745_v20  ;;  %4893 = vmatprep.subr.bf16.mxu1 %v7745_v20 }
 0x10c   : > { %v591_v11 = vpop.f32.mrf.mxu0  ;;  %5132 = vmatpush3.bf16.msra.mxu0 %v5635_v8 }
 0x10d   : > { %v717_v14 = vmax.f32 %v591_v11, 0.0  ;;  %5133 = vmatprep.subr.bf16.mxu0 %v7745_v20 }
 0x10e   : > { %v593_v15 = vpop.f32.mrf.mxu0  ;;  %4894 = vmatpush3.bf16.msra.mxu1 %v5631_v10 }
 0x10f   : > { %v5899_v16 = vpack.c.bf16 %v717_v14, %v716_v13  ;;  %4895 = vmatprep.subr.bf16.mxu1 %v7745_v20 }
 0x110   : > { %v596_v18 = vpop.f32.mrf.mxu0  ;;  %5134 = vmatpush3.bf16.msra.mxu0 %v5637_v12 }
 0x111   : > { %4828 = vmatmul.mubr.msk.bf16.gmra.mxu1 %vm868_vm3, %v5899_v16  ;;  %4988 = vmatmul.mubr.msk.bf16.gmra.mxu0 %vm868_vm3, %v5899_v16  ;;  %v718_v25 = vmax.f32 %v596_v18, 0.0 }
 0x112   : > { %v598_v21 = vpop.f32.mrf.mxu0  ;;  %4831 = vmatprep.mubr.msk.bf16.mxu1 %vm5690_vm2, %v7745_v20  ;;  %4991 = vmatprep.mubr.msk.bf16.mxu0 %vm5690_vm2, %v7745_v20 }
 0x113   : > { %4896 = vmatpush3.bf16.msra.mxu1 %v5632_v17  ;;  %5135 = vmatprep.subr.bf16.mxu0 %v7745_v20 }
 0x114   : > { %v599_v23 = vpop.f32.mrf.mxu0  ;;  %4897 = vmatprep.subr.bf16.mxu1 %v7745_v20  ;;  %5136 = vmatpush3.bf16.msra.mxu0 %v5638_v19 }
 0x115   : > { %v719_v26 = vmax.f32 %v599_v23, 0.0  ;;  %5137 = vmatprep.subr.bf16.mxu0 %v7745_v20 }
 0x116   : > { %v601_v27 = vpop.f32.mrf.mxu0 }
 0x117   : > { %v5925_v28 = vpack.c.bf16 %v719_v26, %v718_v25  ;;  %4898 = vmatpush3.bf16.msra.mxu1 %v5633_v22 }
 0x118   : > { %v604_v30 = vpop.f32.mrf.mxu0  ;;  %4899 = vmatprep.subr.bf16.mxu1 %v7745_v20  ;;  %5138 = vmatpush3.bf16.msra.mxu0 %v5639_v24 }
 0x119   : > { %4832 = vmatmul.mubr.msk.bf16.gmra.mxu1 %vm868_vm3, %v5925_v28  ;;  %4992 = vmatmul.mubr.msk.bf16.gmra.mxu0 %vm868_vm3, %v5925_v28  ;;  %v720_v36 = vmax.f32 %v604_v30, 0.0 }
 0x11a   : > { %v606_v32 = vpop.f32.mrf.mxu0  ;;  %4835 = vmatprep.mubr.msk.bf16.mxu1 %vm5690_vm2, %v7745_v20  ;;  %4995 = vmatprep.mubr.msk.bf16.mxu0 %vm5690_vm2, %v7745_v20 }
 0x11b   : > { %4900 = vmatpush3.bf16.msra.mxu1 %v5634_v29  ;;  %5139 = vmatprep.subr.bf16.mxu0 %v7745_v20 }
 0x11c   : > { %v607_v34 = vpop.f32.mrf.mxu0  ;;  %4901 = vmatprep.subr.bf16.mxu1 %v7745_v20  ;;  %5140 = vmatpush3.bf16.msra.mxu0 %v5640_v31 }
 0x11d   : > { %v721_v37 = vmax.f32 %v607_v34, 0.0  ;;  %5141 = vmatprep.subr.bf16.mxu0 %v7745_v20 }
 0x11e   : > { %v609_v38 = vpop.f32.mrf.mxu0 }
 0x11f   : > { %v5951_v39 = vpack.c.bf16 %v721_v37, %v720_v36  ;;  %4902 = vmatpush3.bf16.msra.mxu1 %v5636_v33 }
 0x120   : > { %v612_v40 = vpop.f32.mrf.mxu0  ;;  %5142 = vmatpush3.bf16.msra.mxu0 %v5641_v35  ;;  %5051 = vmatprep.subr.bf16.mxu1 %v7745_v20 }
 0x121   : > { %4836 = vmatmul.mubr.msk.bf16.gmra.mxu1 %vm868_vm3, %v5951_v39  ;;  %4996 = vmatmul.mubr.msk.bf16.gmra.mxu0 %vm868_vm3, %v5951_v39  ;;  %v722_v43 = vmax.f32 %v612_v40, 0.0 }
 0x122   : > { %v614_v41 = vpop.f32.mrf.mxu0  ;;  %4839 = vmatprep.mubr.msk.bf16.mxu1 %vm5690_vm2, %v7745_v20  ;;  %4999 = vmatprep.mubr.msk.bf16.mxu0 %vm5690_vm2, %v7745_v20 }
 0x123   : > { %5291 = vmatprep.subr.bf16.mxu0 %v7745_v20 }
 0x124   : > { %v615_v42 = vpop.f32.mrf.mxu0 }
 0x125   : > { %v723_v44 = vmax.f32 %v615_v42, 0.0 }
 0x126   : > { %v617_v45 = vpop.f32.mrf.mxu0 }
 0x127   : > { %v5963_v46 = vpack.c.bf16 %v723_v44, %v722_v43 }
 0x128   : > { %v620_v47 = vpop.f32.mrf.mxu0 }
 0x129   : > { %4840 = vmatmul.mubr.msk.bf16.gmra.mxu1 %vm868_vm3, %v5963_v46  ;;  %5000 = vmatmul.mubr.msk.bf16.gmra.mxu0 %vm868_vm3, %v5963_v46  ;;  %v724_v50 = vmax.f32 %v620_v47, 0.0 }
 0x12a   : > { %v622_v48 = vpop.f32.mrf.mxu0  ;;  %4843 = vmatprep.mubr.msk.bf16.mxu1 %vm5690_vm2, %v7745_v20  ;;  %5003 = vmatprep.mubr.msk.bf16.mxu0 %vm5690_vm2, %v7745_v20 }
 0x12c   : > { %v623_v49 = vpop.f32.mrf.mxu0 }
 0x12d   : > { %v725_v51 = vmax.f32 %v623_v49, 0.0 }
 0x12e   : > { %v625_v52 = vpop.f32.mrf.mxu0 }
 0x12f   : > { %v5973_v53 = vpack.c.bf16 %v725_v51, %v724_v50 }
 0x130   : > { %v628_v54 = vpop.f32.mrf.mxu0 }
 0x131   : > { %4844 = vmatmul.mubr.msk.bf16.gmra.mxu1 %vm868_vm3, %v5973_v53  ;;  %5004 = vmatmul.mubr.msk.bf16.gmra.mxu0 %vm868_vm3, %v5973_v53  ;;  %v726_v57 = vmax.f32 %v628_v54, 0.0 }
 0x132   : > { %v630_v55 = vpop.f32.mrf.mxu0  ;;  %4847 = vmatprep.mubr.msk.bf16.mxu1 %vm5690_vm2, %v7745_v20  ;;  %5007 = vmatprep.mubr.msk.bf16.mxu0 %vm5690_vm2, %v7745_v20 }
 0x134   : > { %v631_v56 = vpop.f32.mrf.mxu0 }
 0x135   : > { %v727_v58 = vmax.f32 %v631_v56, 0.0 }
 0x136   : > { %v633_v59 = vpop.f32.mrf.mxu0 }
 0x137   : > { %v5983_v60 = vpack.c.bf16 %v727_v58, %v726_v57 }
 0x138   : > { %v636_v61 = vpop.f32.mrf.mxu0 }
 0x139   : > { %4848 = vmatmul.mubr.msk.bf16.gmra.mxu1 %vm868_vm3, %v5983_v60  ;;  %5008 = vmatmul.mubr.msk.bf16.gmra.mxu0 %vm868_vm3, %v5983_v60  ;;  %v728_v0 = vmax.f32 %v636_v61, 0.0 }
 0x13a   : > { %v638_v62 = vpop.f32.mrf.mxu0  ;;  %4851 = vmatprep.mubr.msk.bf16.mxu1 %vm5690_vm2, %v7745_v20  ;;  %5011 = vmatprep.mubr.msk.bf16.mxu0 %vm5690_vm2, %v7745_v20 }
 0x13c   : > { %v639_v63 = vpop.f32.mrf.mxu0 }
 0x13d   : > { %v729_v1 = vmax.f32 %v639_v63, 0.0 }
 0x13e   : > { %v641_v2 = vpop.f32.mrf.mxu0 }
 0x13f   : > { %v5993_v3 = vpack.c.bf16 %v729_v1, %v728_v0 }
 0x140   : > { %v5995_v4 = vpop.f32.mrf.mxu0 }
 0x141   : > { %4852 = vmatmul.mubr.msk.bf16.gmra.mxu1 %vm868_vm3, %v5993_v3  ;;  %5012 = vmatmul.mubr.msk.bf16.gmra.mxu0 %vm868_vm3, %v5993_v3  ;;  %v730_v8 = vmax.f32 %v5995_v4, 0.0 }
 0x142   : > { %v646_v5 = vpop.f32.mrf.mxu0  ;;  %4855 = vmatprep.mubr.msk.bf16.mxu1 %vm5690_vm2, %v7745_v20  ;;  %5015 = vmatprep.mubr.msk.bf16.mxu0 %vm5690_vm2, %v7745_v20 }
 0x144   : > { %v647_v7 = vpop.f32.mrf.mxu0 }
 0x145   : > { %v731_v9 = vmax.f32 %v647_v7, 0.0 }
 0x146   : > { %v649_v10 = vpop.f32.mrf.mxu0 }
 0x147   : > { %v6116_v11 = vpack.c.bf16 %v731_v9, %v730_v8 }
 0x148   : > { %v652_v12 = vpop.f32.mrf.mxu0 }
 0x149   : > { %4856 = vmatmul.mubr.msk.bf16.gmra.mxu1 %vm868_vm3, %v6116_v11  ;;  %5016 = vmatmul.mubr.msk.bf16.gmra.mxu0 %vm868_vm3, %v6116_v11  ;;  %v732_v15 = vmax.f32 %v652_v12, 0.0 }
 0x14a   : > { %v654_v13 = vpop.f32.mrf.mxu0  ;;  %4859 = vmatprep.mubr.msk.bf16.mxu1 %vm5690_vm2, %v7745_v20  ;;  %5019 = vmatprep.mubr.msk.bf16.mxu0 %vm5690_vm2, %v7745_v20 }
 0x14b   : > { %v5642_v13 = vld [vmem:[%s7742_s2 + $0xb8] sm:$0xff]  }
 0x14c   : > { %v655_v14 = vpop.f32.mrf.mxu0 }
 0x14d   : > { %v733_v17 = vmax.f32 %v655_v14, 0.0  ;;  %v5647_v14 = vld [vmem:[%s7742_s2 + $0x148] sm:$0xff]  }
 0x14e   : > { %v657_v18 = vpop.f32.mrf.mxu0 }
 0x14f   : > { %v6126_v19 = vpack.c.bf16 %v733_v17, %v732_v15  ;;  %v5643_v15 = vld [vmem:[%s7742_s2 + $0xb0] sm:$0xff]   ;;  %v5649_v17 = vld [vmem:[%s7742_s2 + $0x140] sm:$0xff]   ;;  %v5644_v18 = vld [vmem:[%s7742_s2 + $0xa8] sm:$0xff]  }
 0x150   : > { %v660_v21 = vpop.f32.mrf.mxu0 }
 0x151   : > { %4860 = vmatmul.mubr.msk.bf16.gmra.mxu1 %vm868_vm3, %v6126_v19  ;;  %5020 = vmatmul.mubr.msk.bf16.gmra.mxu0 %vm868_vm3, %v6126_v19  ;;  %v734_v24 = vmax.f32 %v660_v21, 0.0  ;;  %v5650_v21 = vld [vmem:[%s7742_s2 + $0x138] sm:$0xff]  }
 0x152   : > { %v662_v22 = vpop.f32.mrf.mxu0  ;;  %4863 = vmatprep.mubr.msk.bf16.mxu1 %vm5690_vm2, %v7745_v20  ;;  %5023 = vmatprep.mubr.msk.bf16.mxu0 %vm5690_vm2, %v7745_v20 }
 0x153   : > { %v5645_v22 = vld [vmem:[%s7742_s2 + $0xa0] sm:$0xff]  }
 0x154   : > { %v663_v23 = vpop.f32.mrf.mxu0 }
 0x155   : > { %v735_v25 = vmax.f32 %v663_v23, 0.0  ;;  %v5651_v23 = vld [vmem:[%s7742_s2 + $0x130] sm:$0xff]  }
 0x156   : > { %v665_v26 = vpop.f32.mrf.mxu0 }
 0x157   : > { %v6136_v27 = vpack.c.bf16 %v735_v25, %v734_v24  ;;  %v5646_v24 = vld [vmem:[%s7742_s2 + $0x98] sm:$0xff]   ;;  %v5652_v25 = vld [vmem:[%s7742_s2 + $0x128] sm:$0xff]   ;;  %v5648_v26 = vld [vmem:[%s7742_s2 + $0x90] sm:$0xff]  }
 0x158   : > { %v668_v29 = vpop.f32.mrf.mxu0 }
 0x159   : > { %4864 = vmatmul.mubr.msk.bf16.gmra.mxu1 %vm868_vm3, %v6136_v27  ;;  %5024 = vmatmul.mubr.msk.bf16.gmra.mxu0 %vm868_vm3, %v6136_v27  ;;  %v736_v32 = vmax.f32 %v668_v29, 0.0  ;;  %v5653_v29 = vld [vmem:[%s7742_s2 + $0x120] sm:$0xff]  }
 0x15a   : > { %v670_v30 = vpop.f32.mrf.mxu0  ;;  %4867 = vmatprep.mubr.msk.bf16.mxu1 %vm5690_vm2, %v7745_v20  ;;  %5027 = vmatprep.mubr.msk.bf16.mxu0 %vm5690_vm2, %v7745_v20 }
 0x15b   : > { %v1088_v30 = vld [vmem:[#allocation2 + $0x70] sm:$0xff] }
 0x15c   : > { %v671_v31 = vpop.f32.mrf.mxu0 }
 0x15d   : > { %v737_v33 = vmax.f32 %v671_v31, 0.0 }
 0x15e   : > { %v673_v34 = vpop.f32.mrf.mxu0 }
 0x15f   : > { %v6146_v35 = vpack.c.bf16 %v737_v33, %v736_v32 }
 0x160   : > { %v676_v36 = vpop.f32.mrf.mxu0 }
 0x161   : > { %4868 = vmatmul.mubr.msk.bf16.gmra.mxu1 %vm868_vm3, %v6146_v35  ;;  %5028 = vmatmul.mubr.msk.bf16.gmra.mxu0 %vm868_vm3, %v6146_v35  ;;  %v738_v40 = vmax.f32 %v676_v36, 0.0 }
 0x162   : > { %v678_v37 = vpop.f32.mrf.mxu0  ;;  %4871 = vmatprep.mubr.msk.bf16.mxu1 %vm5690_vm2, %v7745_v20  ;;  %5031 = vmatprep.mubr.msk.bf16.mxu0 %vm5690_vm2, %v7745_v20 }
 0x163   : > { %v1089_v37 = vld [vmem:[#allocation2 + $0x78] sm:$0xff] }
 0x164   : > { %v679_v38 = vpop.f32.mrf.mxu0 }
 0x165   : > { %v739_v41 = vmax.f32 %v679_v38, 0.0 }
 0x166   : > { %v681_v42 = vpop.f32.mrf.mxu0 }
 0x167   : > { %v6156_v43 = vpack.c.bf16 %v739_v41, %v738_v40 }
 0x168   : > { %v684_v44 = vpop.f32.mrf.mxu0 }
 0x169   : > { %4872 = vmatmul.mubr.msk.bf16.gmra.mxu1 %vm868_vm3, %v6156_v43  ;;  %5032 = vmatmul.mubr.msk.bf16.gmra.mxu0 %vm868_vm3, %v6156_v43  ;;  %v740_v48 = vmax.f32 %v684_v44, 0.0 }
 0x16a   : > { %v686_v45 = vpop.f32.mrf.mxu0  ;;  %4875 = vmatprep.mubr.msk.bf16.mxu1 %vm5690_vm2, %v7745_v20  ;;  %5035 = vmatprep.mubr.msk.bf16.mxu0 %vm5690_vm2, %v7745_v20 }
 0x16b   : > { %v1090_v45 = vld [vmem:[#allocation2 + $0x80] sm:$0xff] }
 0x16c   : > { %v687_v47 = vpop.f32.mrf.mxu0 }
 0x16d   : > { %v741_v49 = vmax.f32 %v687_v47, 0.0 }
 0x16e   : > { %v689_v50 = vpop.f32.mrf.mxu0 }
 0x16f   : > { %v6166_v51 = vpack.c.bf16 %v741_v49, %v740_v48 }
 0x170   : > { %v692_v52 = vpop.f32.mrf.mxu0 }
 0x171   : > { %4876 = vmatmul.mubr.msk.bf16.gmra.mxu1 %vm868_vm3, %v6166_v51  ;;  %5036 = vmatmul.mubr.msk.bf16.gmra.mxu0 %vm868_vm3, %v6166_v51  ;;  %v742_v56 = vmax.f32 %v692_v52, 0.0 }
 0x172   : > { %v694_v54 = vpop.f32.mrf.mxu0  ;;  %4879 = vmatprep.mubr.msk.bf16.mxu1 %vm5690_vm2, %v7745_v20  ;;  %5039 = vmatprep.mubr.msk.bf16.mxu0 %vm5690_vm2, %v7745_v20 }
 0x173   : > { %v1091_v54 = vld [vmem:[#allocation2 + $0x88] sm:$0xff] }
 0x174   : > { %v695_v55 = vpop.f32.mrf.mxu0 }
 0x175   : > { %v743_v57 = vmax.f32 %v695_v55, 0.0 }
 0x176   : > { %v697_v58 = vpop.f32.mrf.mxu0 }
 0x177   : > { %v6176_v59 = vpack.c.bf16 %v743_v57, %v742_v56 }
 0x178   : > { %v700_v61 = vpop.f32.mrf.mxu0 }
 0x179   : > { %4880 = vmatmul.mubr.msk.bf16.gmra.mxu1 %vm868_vm3, %v6176_v59  ;;  %5040 = vmatmul.mubr.msk.bf16.gmra.mxu0 %vm868_vm3, %v6176_v59  ;;  %v744_v0 = vmax.f32 %v700_v61, 0.0 }
 0x17a   : > { %v702_v62 = vpop.f32.mrf.mxu0  ;;  %4883 = vmatprep.mubr.msk.bf16.mxu1 %vm5690_vm2, %v7745_v20  ;;  %5043 = vmatprep.mubr.msk.bf16.mxu0 %vm5690_vm2, %v7745_v20 }
 0x17b   : > { %v1092_v62 = vld [vmem:[#allocation2 + $0x90] sm:$0xff] }
 0x17c   : > { %v703_v63 = vpop.f32.mrf.mxu0 }
 0x17d   : > { %v745_v1 = vmax.f32 %v703_v63, 0.0 }
 0x17e   : > { %v705_v2 = vpop.f32.mrf.mxu0 }
 0x17f   : > { %v6186_v4 = vpack.c.bf16 %v745_v1, %v744_v0 }
 0x180   : > { %v708_v5 = vpop.f32.mrf.mxu0 }
 0x181   : > { %v746_v7 = vmax.f32 %v708_v5, 0.0  ;;  %4884 = vmatmul.mubr.msk.bf16.gmra.mxu1 %vm868_vm3, %v6186_v4  ;;  %5044 = vmatmul.mubr.msk.bf16.gmra.mxu0 %vm868_vm3, %v6186_v4 }
 0x182   : > { %v710_v8 = vpop.f32.mrf.mxu0  ;;  %4887 = vmatprep.mubr.msk.bf16.mxu1 %vm5690_vm2, %v7745_v20  ;;  %5047 = vmatprep.mubr.msk.bf16.mxu0 %vm5690_vm2, %v7745_v20 }
 0x183   : > { %v6196_v10 = vpack.c.bf16 %v746_v7, %v746_v7  ;;  %v1093_v7 = vld [vmem:[#allocation2 + $0x98] sm:$0xff] }
 0x184   : > { %v711_v9 = vpop.f32.mrf.mxu0 }
 0x186   : > { %v712_v12 = vpop.f32.mrf.mxu0 }
 0x189   : > { %4888 = vmatmul.mubr.msk.bf16.gmra.mxu1 %vm868_vm3, %v6196_v10  ;;  %5048 = vmatmul.mubr.msk.bf16.gmra.mxu0 %vm868_vm3, %v6196_v10 }
 0x18a   : > { %4903 = vmatprep.mubr.msk.bf16.mxu1 %vm5690_vm2, %v7745_v20  ;;  %5143 = vmatprep.mubr.msk.bf16.mxu0 %vm5690_vm2, %v7745_v20 }
 0x191   : > { %4904 = vmatmul.mubr.msk.bf16.vlgmr.msra.gmra.mxu1 %vm868_vm3, %v5878_v6  ;;  %5144 = vmatmul.mubr.msk.bf16.vlgmr.msra.gmra.mxu0 %vm868_vm3, %v5878_v6 }
 0x192   : > { %5052 = vmatpush3.bf16.msra.mxu1 %v5642_v13  ;;  %4907 = vmatprep.mubr.msk.bf16.mxu1 %vm5690_vm2, %v7745_v20 }
 0x193   : > { %5147 = vmatprep.mubr.msk.bf16.mxu0 %vm5690_vm2, %v7745_v20  ;;  %5053 = vmatprep.subr.bf16.mxu1 %v7745_v20 }
 0x194   : > { %5292 = vmatpush3.bf16.msra.mxu0 %v5647_v14 }
 0x195   : > { %5293 = vmatprep.subr.bf16.mxu0 %v7745_v20 }
 0x196   : > { %5054 = vmatpush3.bf16.msra.mxu1 %v5643_v15  ;;  %v1094_v15 = vld [vmem:[#allocation2 + $0xa0] sm:$0xff] }
 0x197   : > { %5055 = vmatprep.subr.bf16.mxu1 %v7745_v20 }
 0x198   : > { %5294 = vmatpush3.bf16.msra.mxu0 %v5649_v17 }
 0x199   : > { %4908 = vmatmul.mubr.msk.bf16.gmra.mxu1 %vm868_vm3, %v5899_v16  ;;  %5148 = vmatmul.mubr.msk.bf16.gmra.mxu0 %vm868_vm3, %v5899_v16 }
 0x19a   : > { %4911 = vmatprep.mubr.msk.bf16.mxu1 %vm5690_vm2, %v7745_v20  ;;  %5151 = vmatprep.mubr.msk.bf16.mxu0 %vm5690_vm2, %v7745_v20 }
 0x19b   : > { %5056 = vmatpush3.bf16.msra.mxu1 %v5644_v18  ;;  %5295 = vmatprep.subr.bf16.mxu0 %v7745_v20 }
 0x19c   : > { %5057 = vmatprep.subr.bf16.mxu1 %v7745_v20  ;;  %5296 = vmatpush3.bf16.msra.mxu0 %v5650_v21 }
 0x19d   : > { %5297 = vmatprep.subr.bf16.mxu0 %v7745_v20 }
 0x19f   : > { %5058 = vmatpush3.bf16.msra.mxu1 %v5645_v22 }
 0x1a0   : > { %5059 = vmatprep.subr.bf16.mxu1 %v7745_v20  ;;  %5298 = vmatpush3.bf16.msra.mxu0 %v5651_v23 }
 0x1a1   : > { %4912 = vmatmul.mubr.msk.bf16.gmra.mxu1 %vm868_vm3, %v5925_v28  ;;  %5152 = vmatmul.mubr.msk.bf16.gmra.mxu0 %vm868_vm3, %v5925_v28 }
 0x1a2   : > { %4915 = vmatprep.mubr.msk.bf16.mxu1 %vm5690_vm2, %v7745_v20  ;;  %5155 = vmatprep.mubr.msk.bf16.mxu0 %vm5690_vm2, %v7745_v20 }
 0x1a3   : > { %5060 = vmatpush3.bf16.msra.mxu1 %v5646_v24  ;;  %5299 = vmatprep.subr.bf16.mxu0 %v7745_v20  ;;  %v1095_v24 = vld [vmem:[#allocation2 + $0xa8] sm:$0xff] }
 0x1a4   : > { %5061 = vmatprep.subr.bf16.mxu1 %v7745_v20  ;;  %5300 = vmatpush3.bf16.msra.mxu0 %v5652_v25 }
 0x1a5   : > { %5301 = vmatprep.subr.bf16.mxu0 %v7745_v20 }
 0x1a7   : > { %5062 = vmatpush3.bf16.msra.mxu1 %v5648_v26 }
 0x1a8   : > { %5302 = vmatpush3.bf16.msra.mxu0 %v5653_v29  ;;  %5211 = vmatprep.subr.bf16.mxu1 %v7745_v20 }
 0x1a9   : > { %4916 = vmatmul.mubr.msk.bf16.gmra.mxu1 %vm868_vm3, %v5951_v39  ;;  %5156 = vmatmul.mubr.msk.bf16.gmra.mxu0 %vm868_vm3, %v5951_v39 }
 0x1aa   : > { %4919 = vmatprep.mubr.msk.bf16.mxu1 %vm5690_vm2, %v7745_v20  ;;  %5159 = vmatprep.mubr.msk.bf16.mxu0 %vm5690_vm2, %v7745_v20 }
 0x1ab   : > { %5451 = vmatprep.subr.bf16.mxu0 %v7745_v20 }
 0x1b1   : > { %4920 = vmatmul.mubr.msk.bf16.gmra.mxu1 %vm868_vm3, %v5963_v46  ;;  %5160 = vmatmul.mubr.msk.bf16.gmra.mxu0 %vm868_vm3, %v5963_v46 }
 0x1b2   : > { %4923 = vmatprep.mubr.msk.bf16.mxu1 %vm5690_vm2, %v7745_v20  ;;  %5163 = vmatprep.mubr.msk.bf16.mxu0 %vm5690_vm2, %v7745_v20 }
 0x1b9   : > { %4924 = vmatmul.mubr.msk.bf16.gmra.mxu1 %vm868_vm3, %v5973_v53  ;;  %5164 = vmatmul.mubr.msk.bf16.gmra.mxu0 %vm868_vm3, %v5973_v53 }
 0x1ba   : > { %4927 = vmatprep.mubr.msk.bf16.mxu1 %vm5690_vm2, %v7745_v20  ;;  %5167 = vmatprep.mubr.msk.bf16.mxu0 %vm5690_vm2, %v7745_v20 }
 0x1c1   : > { %4928 = vmatmul.mubr.msk.bf16.gmra.mxu1 %vm868_vm3, %v5983_v60  ;;  %5168 = vmatmul.mubr.msk.bf16.gmra.mxu0 %vm868_vm3, %v5983_v60 }
 0x1c2   : > { %4931 = vmatprep.mubr.msk.bf16.mxu1 %vm5690_vm2, %v7745_v20  ;;  %5171 = vmatprep.mubr.msk.bf16.mxu0 %vm5690_vm2, %v7745_v20 }
 0x1c9   : > { %v954_v31 = vpop.f32.mrf.mxu1  ;;  %4932 = vmatmul.mubr.msk.bf16.gmra.mxu1 %vm868_vm3, %v5993_v3  ;;  %v6312_v32 = vpop.f32.mrf.mxu0  ;;  %5172 = vmatmul.mubr.msk.bf16.gmra.mxu0 %vm868_vm3, %v5993_v3 }
 0x1ca   : > { %v1121_v33 = vadd.f32 %v1088_v30, %v954_v31  ;;  %4935 = vmatprep.mubr.msk.bf16.mxu1 %vm5690_vm2, %v7745_v20  ;;  %5175 = vmatprep.mubr.msk.bf16.mxu0 %vm5690_vm2, %v7745_v20 }
 0x1cb   : > { %v4825_v34 = vpop.f32.mrf.mxu1  ;;  %v4985_v36 = vpop.f32.mrf.mxu0 }
 0x1cc   : > { %1154 = vst.msk [vmem:[#allocation2 + $0x70] sm:$0xff] %vm764_vm4, %v1121_v33  ;;  %v1096_v33 = vld [vmem:[#allocation2 + $0xb0] sm:$0xff] }
 0x1cd   : > { %v957_v38 = vpop.f32.mrf.mxu1  ;;  %v6321_v40 = vpop.f32.mrf.mxu0 }
 0x1ce   : > { %v1122_v41 = vadd.f32 %v1089_v37, %v957_v38 }
 0x1cf   : > { %v4826_v42 = vpop.f32.mrf.mxu1  ;;  %v4986_v44 = vpop.f32.mrf.mxu0 }
 0x1d0   : > { %1155 = vst.msk [vmem:[#allocation2 + $0x78] sm:$0xff] %vm764_vm4, %v1122_v41  ;;  %v1097_v42 = vld [vmem:[#allocation2 + $0xb8] sm:$0xff] }
 0x1d1   : > { %v962_v47 = vpop.f32.mrf.mxu1  ;;  %4936 = vmatmul.mubr.msk.bf16.gmra.mxu1 %vm868_vm3, %v6116_v11  ;;  %v6326_v48 = vpop.f32.mrf.mxu0  ;;  %5176 = vmatmul.mubr.msk.bf16.gmra.mxu0 %vm868_vm3, %v6116_v11 }
 0x1d2   : > { %v1123_v49 = vadd.f32 %v1090_v45, %v962_v47  ;;  %4939 = vmatprep.mubr.msk.bf16.mxu1 %vm5690_vm2, %v7745_v20  ;;  %5179 = vmatprep.mubr.msk.bf16.mxu0 %vm5690_vm2, %v7745_v20 }
 0x1d3   : > { %v4829_v50 = vpop.f32.mrf.mxu1  ;;  %v4989_v52 = vpop.f32.mrf.mxu0 }
 0x1d4   : > { %1156 = vst.msk [vmem:[#allocation2 + $0x80] sm:$0xff] %vm764_vm4, %v1123_v49  ;;  %v1098_v52 = vld [vmem:[#allocation2 + $0xc0] sm:$0xff] }
 0x1d5   : > { %v965_v55 = vpop.f32.mrf.mxu1  ;;  %v6335_v56 = vpop.f32.mrf.mxu0 }
 0x1d6   : > { %v1124_v57 = vadd.f32 %v1091_v54, %v965_v55 }
 0x1d7   : > { %v4830_v58 = vpop.f32.mrf.mxu1  ;;  %v4990_v61 = vpop.f32.mrf.mxu0 }
 0x1d8   : > { %1157 = vst.msk [vmem:[#allocation2 + $0x88] sm:$0xff] %vm764_vm4, %v1124_v57 }
 0x1d9   : > { %v970_v63 = vpop.f32.mrf.mxu1  ;;  %4940 = vmatmul.mubr.msk.bf16.gmra.mxu1 %vm868_vm3, %v6126_v19  ;;  %v6340_v0 = vpop.f32.mrf.mxu0  ;;  %5180 = vmatmul.mubr.msk.bf16.gmra.mxu0 %vm868_vm3, %v6126_v19 }
 0x1da   : > { %v1125_v1 = vadd.f32 %v1092_v62, %v970_v63  ;;  %4943 = vmatprep.mubr.msk.bf16.mxu1 %vm5690_vm2, %v7745_v20  ;;  %5183 = vmatprep.mubr.msk.bf16.mxu0 %vm5690_vm2, %v7745_v20  ;;  %v1099_v62 = vld [vmem:[#allocation2 + $0xc8] sm:$0xff] }
 0x1db   : > { %v4833_v2 = vpop.f32.mrf.mxu1  ;;  %v4993_v5 = vpop.f32.mrf.mxu0 }
 0x1dc   : > { %1158 = vst.msk [vmem:[#allocation2 + $0x90] sm:$0xff] %vm764_vm4, %v1125_v1 }
 0x1dd   : > { %v973_v8 = vpop.f32.mrf.mxu1  ;;  %v6349_v9 = vpop.f32.mrf.mxu0 }
 0x1de   : > { %v1126_v12 = vadd.f32 %v1093_v7, %v973_v8  ;;  %v1100_v8 = vld [vmem:[#allocation2 + $0xd0] sm:$0xff] }
 0x1df   : > { %v4834_v13 = vpop.f32.mrf.mxu1  ;;  %v4994_v14 = vpop.f32.mrf.mxu0 }
 0x1e0   : > { %1159 = vst.msk [vmem:[#allocation2 + $0x98] sm:$0xff] %vm764_vm4, %v1126_v12 }
 0x1e1   : > { %v978_v17 = vpop.f32.mrf.mxu1  ;;  %4944 = vmatmul.mubr.msk.bf16.gmra.mxu1 %vm868_vm3, %v6136_v27  ;;  %v6354_v18 = vpop.f32.mrf.mxu0  ;;  %5184 = vmatmul.mubr.msk.bf16.gmra.mxu0 %vm868_vm3, %v6136_v27 }
 0x1e2   : > { %v1127_v21 = vadd.f32 %v1094_v15, %v978_v17  ;;  %4947 = vmatprep.mubr.msk.bf16.mxu1 %vm5690_vm2, %v7745_v20  ;;  %5187 = vmatprep.mubr.msk.bf16.mxu0 %vm5690_vm2, %v7745_v20 }
 0x1e3   : > { %v4837_v22 = vpop.f32.mrf.mxu1  ;;  %v4997_v23 = vpop.f32.mrf.mxu0 }
 0x1e4   : > { %1160 = vst.msk [vmem:[#allocation2 + $0xa0] sm:$0xff] %vm764_vm4, %v1127_v21  ;;  %v1101_v21 = vld [vmem:[#allocation2 + $0xd8] sm:$0xff] }
 0x1e5   : > { %v981_v25 = vpop.f32.mrf.mxu1  ;;  %v6363_v26 = vpop.f32.mrf.mxu0 }
 0x1e6   : > { %v1128_v29 = vadd.f32 %v1095_v24, %v981_v25 }
 0x1e7   : > { %v4838_v30 = vpop.f32.mrf.mxu1  ;;  %v4998_v31 = vpop.f32.mrf.mxu0 }
 0x1e8   : > { %1161 = vst.msk [vmem:[#allocation2 + $0xa8] sm:$0xff] %vm764_vm4, %v1128_v29  ;;  %v1102_v30 = vld [vmem:[#allocation2 + $0xe0] sm:$0xff] }
 0x1e9   : > { %v986_v34 = vpop.f32.mrf.mxu1  ;;  %4948 = vmatmul.mubr.msk.bf16.gmra.mxu1 %vm868_vm3, %v6146_v35  ;;  %v6368_v36 = vpop.f32.mrf.mxu0  ;;  %5188 = vmatmul.mubr.msk.bf16.gmra.mxu0 %vm868_vm3, %v6146_v35 }
 0x1ea   : > { %v1129_v37 = vadd.f32 %v1096_v33, %v986_v34  ;;  %4951 = vmatprep.mubr.msk.bf16.mxu1 %vm5690_vm2, %v7745_v20  ;;  %5191 = vmatprep.mubr.msk.bf16.mxu0 %vm5690_vm2, %v7745_v20 }
 0x1eb   : > { %v4841_v38 = vpop.f32.mrf.mxu1  ;;  %v5001_v41 = vpop.f32.mrf.mxu0 }
 0x1ec   : > { %1162 = vst.msk [vmem:[#allocation2 + $0xb0] sm:$0xff] %vm764_vm4, %v1129_v37  ;;  %v1103_v41 = vld [vmem:[#allocation2 + $0xe8] sm:$0xff] }
 0x1ed   : > { %v989_v44 = vpop.f32.mrf.mxu1  ;;  %v6377_v45 = vpop.f32.mrf.mxu0 }
 0x1ee   : > { %v1130_v47 = vadd.f32 %v1097_v42, %v989_v44 }
 0x1ef   : > { %v4842_v49 = vpop.f32.mrf.mxu1  ;;  %v5002_v50 = vpop.f32.mrf.mxu0 }
 0x1f0   : > { %1163 = vst.msk [vmem:[#allocation2 + $0xb8] sm:$0xff] %vm764_vm4, %v1130_v47 }
 0x1f1   : > { %v994_v54 = vpop.f32.mrf.mxu1  ;;  %4952 = vmatmul.mubr.msk.bf16.gmra.mxu1 %vm868_vm3, %v6156_v43  ;;  %v6382_v55 = vpop.f32.mrf.mxu0  ;;  %5192 = vmatmul.mubr.msk.bf16.gmra.mxu0 %vm868_vm3, %v6156_v43 }
 0x1f2   : > { %v1131_v57 = vadd.f32 %v1098_v52, %v994_v54  ;;  %4955 = vmatprep.mubr.msk.bf16.mxu1 %vm5690_vm2, %v7745_v20  ;;  %5195 = vmatprep.mubr.msk.bf16.mxu0 %vm5690_vm2, %v7745_v20  ;;  %v1104_v52 = vld [vmem:[#allocation2 + $0xf0] sm:$0xff] }
 0x1f3   : > { %v4845_v58 = vpop.f32.mrf.mxu1  ;;  %v5005_v61 = vpop.f32.mrf.mxu0 }
 0x1f4   : > { %1164 = vst.msk [vmem:[#allocation2 + $0xc0] sm:$0xff] %vm764_vm4, %v1131_v57 }
 0x1f5   : > { %v997_v63 = vpop.f32.mrf.mxu1  ;;  %v6391_v1 = vpop.f32.mrf.mxu0 }
 0x1f6   : > { %v1132_v2 = vadd.f32 %v1099_v62, %v997_v63  ;;  %v1105_v63 = vld [vmem:[#allocation2 + $0xf8] sm:$0xff] }
 0x1f7   : > { %v4846_v5 = vpop.f32.mrf.mxu1  ;;  %v5006_v7 = vpop.f32.mrf.mxu0 }
 0x1f8   : > { %1165 = vst.msk [vmem:[#allocation2 + $0xc8] sm:$0xff] %vm764_vm4, %v1132_v2 }
 0x1f9   : > { %v1002_v12 = vpop.f32.mrf.mxu1  ;;  %4956 = vmatmul.mubr.msk.bf16.gmra.mxu1 %vm868_vm3, %v6166_v51  ;;  %v6396_v13 = vpop.f32.mrf.mxu0  ;;  %5196 = vmatmul.mubr.msk.bf16.gmra.mxu0 %vm868_vm3, %v6166_v51 }
 0x1fa   : > { %v1133_v14 = vadd.f32 %v1100_v8, %v1002_v12  ;;  %4959 = vmatprep.mubr.msk.bf16.mxu1 %vm5690_vm2, %v7745_v20  ;;  %5199 = vmatprep.mubr.msk.bf16.mxu0 %vm5690_vm2, %v7745_v20 }
 0x1fb   : > { %v4849_v15 = vpop.f32.mrf.mxu1  ;;  %v5009_v17 = vpop.f32.mrf.mxu0 }
 0x1fc   : > { %1166 = vst.msk [vmem:[#allocation2 + $0xd0] sm:$0xff] %vm764_vm4, %v1133_v14  ;;  %v1106_v14 = vld [vmem:[#allocation2 + $0x100] sm:$0xff] }
 0x1fd   : > { %v1005_v22 = vpop.f32.mrf.mxu1  ;;  %v6405_v23 = vpop.f32.mrf.mxu0 }
 0x1fe   : > { %v1134_v24 = vadd.f32 %v1101_v21, %v1005_v22 }
 0x1ff   : > { %v4850_v25 = vpop.f32.mrf.mxu1  ;;  %v5010_v29 = vpop.f32.mrf.mxu0 }
 0x200   : > { %1167 = vst.msk [vmem:[#allocation2 + $0xd8] sm:$0xff] %vm764_vm4, %v1134_v24  ;;  %v1107_v25 = vld [vmem:[#allocation2 + $0x108] sm:$0xff] }
 0x201   : > { %v1010_v31 = vpop.f32.mrf.mxu1  ;;  %4960 = vmatmul.mubr.msk.bf16.gmra.mxu1 %vm868_vm3, %v6176_v59  ;;  %v6410_v33 = vpop.f32.mrf.mxu0  ;;  %5200 = vmatmul.mubr.msk.bf16.gmra.mxu0 %vm868_vm3, %v6176_v59 }
 0x202   : > { %v1135_v34 = vadd.f32 %v1102_v30, %v1010_v31  ;;  %4963 = vmatprep.mubr.msk.bf16.mxu1 %vm5690_vm2, %v7745_v20  ;;  %5203 = vmatprep.mubr.msk.bf16.mxu0 %vm5690_vm2, %v7745_v20 }
 0x203   : > { %v4853_v37 = vpop.f32.mrf.mxu1  ;;  %v5013_v38 = vpop.f32.mrf.mxu0 }
 0x204   : > { %1168 = vst.msk [vmem:[#allocation2 + $0xe0] sm:$0xff] %vm764_vm4, %v1135_v34  ;;  %v5654_v34 = vld [vmem:[%s7742_s2 + $0x118] sm:$0xff]  }
 0x205   : > { %v1013_v42 = vpop.f32.mrf.mxu1  ;;  %v6419_v44 = vpop.f32.mrf.mxu0 }
 0x206   : > { %v1136_v47 = vadd.f32 %v1103_v41, %v1013_v42  ;;  %v1108_v41 = vld [vmem:[#allocation2 + $0x110] sm:$0xff]  ;;  %v5659_v42 = vld [vmem:[%s7742_s2 + $0x1a8] sm:$0xff]  }
 0x207   : > { %v4854_v49 = vpop.f32.mrf.mxu1  ;;  %v5014_v50 = vpop.f32.mrf.mxu0 }
 0x208   : > { %1169 = vst.msk [vmem:[#allocation2 + $0xe8] sm:$0xff] %vm764_vm4, %v1136_v47 }
 0x209   : > { %v1018_v54 = vpop.f32.mrf.mxu1  ;;  %4964 = vmatmul.mubr.msk.bf16.gmra.mxu1 %vm868_vm3, %v6186_v4  ;;  %v6424_v57 = vpop.f32.mrf.mxu0  ;;  %5204 = vmatmul.mubr.msk.bf16.gmra.mxu0 %vm868_vm3, %v6186_v4 }
 0x20a   : > { %v1137_v58 = vadd.f32 %v1104_v52, %v1018_v54  ;;  %4967 = vmatprep.mubr.msk.bf16.mxu1 %vm5690_vm2, %v7745_v20  ;;  %5207 = vmatprep.mubr.msk.bf16.mxu0 %vm5690_vm2, %v7745_v20  ;;  %v5655_v52 = vld [vmem:[%s7742_s2 + $0x110] sm:$0xff]  }
 0x20b   : > { %v4857_v61 = vpop.f32.mrf.mxu1  ;;  %v5017_v62 = vpop.f32.mrf.mxu0 }
 0x20c   : > { %1170 = vst.msk [vmem:[#allocation2 + $0xf0] sm:$0xff] %vm764_vm4, %v1137_v58  ;;  %v1109_v61 = vld [vmem:[#allocation2 + $0x118] sm:$0xff]  ;;  %v5661_v62 = vld [vmem:[%s7742_s2 + $0x1a0] sm:$0xff]  }
 0x20d   : > { %v1021_v2 = vpop.f32.mrf.mxu1  ;;  %v6433_v5 = vpop.f32.mrf.mxu0 }
 0x20e   : > { %v1138_v7 = vadd.f32 %v1105_v63, %v1021_v2 }
 0x20f   : > { %v4858_v8 = vpop.f32.mrf.mxu1  ;;  %v5018_v12 = vpop.f32.mrf.mxu0 }
 0x210   : > { %1171 = vst.msk [vmem:[#allocation2 + $0xf8] sm:$0xff] %vm764_vm4, %v1138_v7 }
 0x211   : > { %v1026_v15 = vpop.f32.mrf.mxu1  ;;  %4968 = vmatmul.mubr.msk.bf16.gmra.mxu1 %vm868_vm3, %v6196_v10  ;;  %v6438_v17 = vpop.f32.mrf.mxu0  ;;  %5208 = vmatmul.mubr.msk.bf16.gmra.mxu0 %vm868_vm3, %v6196_v10 }
 0x212   : > { %v1139_v21 = vadd.f32 %v1106_v14, %v1026_v15  ;;  %5063 = vmatprep.mubr.msk.bf16.mxu1 %vm5690_vm2, %v7745_v20  ;;  %5303 = vmatprep.mubr.msk.bf16.mxu0 %vm5690_vm2, %v7745_v20  ;;  %v1110_v14 = vld [vmem:[#allocation2 + $0x120] sm:$0xff]  ;;  %v5656_v15 = vld [vmem:[%s7742_s2 + $0x108] sm:$0xff]  }
 0x213   : > { %v4861_v22 = vpop.f32.mrf.mxu1  ;;  %v5021_v24 = vpop.f32.mrf.mxu0 }
 0x214   : > { %1172 = vst.msk [vmem:[#allocation2 + $0x100] sm:$0xff] %vm764_vm4, %v1139_v21  ;;  %v5662_v21 = vld [vmem:[%s7742_s2 + $0x198] sm:$0xff]  }
 0x215   : > { %v1029_v29 = vpop.f32.mrf.mxu1  ;;  %v6447_v30 = vpop.f32.mrf.mxu0 }
 0x216   : > { %v1140_v31 = vadd.f32 %v1107_v25, %v1029_v29 }
 0x217   : > { %v4862_v37 = vpop.f32.mrf.mxu1  ;;  %v5022_v38 = vpop.f32.mrf.mxu0 }
 0x218   : > { %1173 = vst.msk [vmem:[#allocation2 + $0x108] sm:$0xff] %vm764_vm4, %v1140_v31  ;;  %v5657_v37 = vld [vmem:[%s7742_s2 + $0x100] sm:$0xff]   ;;  %v5663_v38 = vld [vmem:[%s7742_s2 + $0x190] sm:$0xff]  }
 0x219   : > { %v1034_v47 = vpop.f32.mrf.mxu1  ;;  %v6456_v49 = vpop.f32.mrf.mxu0  ;;  %5064 = vmatmul.mubr.msk.bf16.vlgmr.msra.gmra.mxu1 %vm868_vm3, %v5878_v6  ;;  %5304 = vmatmul.mubr.msk.bf16.vlgmr.msra.gmra.mxu0 %vm868_vm3, %v5878_v6 }
 0x21a   : > { %v1141_v50 = vadd.f32 %v1108_v41, %v1034_v47  ;;  %5212 = vmatpush3.bf16.msra.mxu1 %v5654_v34  ;;  %5067 = vmatprep.mubr.msk.bf16.mxu1 %vm5690_vm2, %v7745_v20  ;;  %v1111_v34 = vld [vmem:[#allocation2 + $0x128] sm:$0xff] }
 0x21b   : > { %v4865_v54 = vpop.f32.mrf.mxu1  ;;  %v5025_v58 = vpop.f32.mrf.mxu0  ;;  %5307 = vmatprep.mubr.msk.bf16.mxu0 %vm5690_vm2, %v7745_v20  ;;  %5213 = vmatprep.subr.bf16.mxu1 %v7745_v20 }
 0x21c   : > { %1174 = vst.msk [vmem:[#allocation2 + $0x110] sm:$0xff] %vm764_vm4, %v1141_v50  ;;  %5452 = vmatpush3.bf16.msra.mxu0 %v5659_v42  ;;  %v1112_v54 = vld [vmem:[#allocation2 + $0x130] sm:$0xff]  ;;  %v5658_v58 = vld [vmem:[%s7742_s2 + $0xf8] sm:$0xff]  }
 0x21d   : > { %v1037_v63 = vpop.f32.mrf.mxu1  ;;  %v6474_v2 = vpop.f32.mrf.mxu0  ;;  %5453 = vmatprep.subr.bf16.mxu0 %v7745_v20 }
 0x21e   : > { %v1142_v7 = vadd.f32 %v1109_v61, %v1037_v63  ;;  %5214 = vmatpush3.bf16.msra.mxu1 %v5655_v52  ;;  %v5664_v61 = vld [vmem:[%s7742_s2 + $0x188] sm:$0xff]  }
 0x21f   : > { %v4866_v8 = vpop.f32.mrf.mxu1  ;;  %v5026_v12 = vpop.f32.mrf.mxu0  ;;  %5215 = vmatprep.subr.bf16.mxu1 %v7745_v20 }
 0x220   : > { %1175 = vst.msk [vmem:[#allocation2 + $0x118] sm:$0xff] %vm764_vm4, %v1142_v7  ;;  %5454 = vmatpush3.bf16.msra.mxu0 %v5661_v62 }
 0x221   : > { %v1042_v22 = vpop.f32.mrf.mxu1  ;;  %v6485_v24 = vpop.f32.mrf.mxu0  ;;  %5068 = vmatmul.mubr.msk.bf16.gmra.mxu1 %vm868_vm3, %v5899_v16  ;;  %5308 = vmatmul.mubr.msk.bf16.gmra.mxu0 %vm868_vm3, %v5899_v16 }
 0x222   : > { %v1143_v25 = vadd.f32 %v1110_v14, %v1042_v22  ;;  %5071 = vmatprep.mubr.msk.bf16.mxu1 %vm5690_vm2, %v7745_v20  ;;  %5311 = vmatprep.mubr.msk.bf16.mxu0 %vm5690_vm2, %v7745_v20  ;;  %v1113_v14 = vld [vmem:[#allocation2 + $0x138] sm:$0xff] }
 0x223   : > { %v4869_v29 = vpop.f32.mrf.mxu1  ;;  %v5029_v31 = vpop.f32.mrf.mxu0  ;;  %5216 = vmatpush3.bf16.msra.mxu1 %v5656_v15  ;;  %5455 = vmatprep.subr.bf16.mxu0 %v7745_v20  ;;  %v5660_v15 = vld [vmem:[%s7742_s2 + $0xf0] sm:$0xff]  }
 0x224   : > { %1176 = vst.msk [vmem:[#allocation2 + $0x120] sm:$0xff] %vm764_vm4, %v1143_v25  ;;  %5217 = vmatprep.subr.bf16.mxu1 %v7745_v20  ;;  %5456 = vmatpush3.bf16.msra.mxu0 %v5662_v21  ;;  %v5665_v21 = vld [vmem:[%s7742_s2 + $0x180] sm:$0xff]  }
 0x225   : > { %v1045_v41 = vpop.f32.mrf.mxu1  ;;  %v6504_v42 = vpop.f32.mrf.mxu0  ;;  %5457 = vmatprep.subr.bf16.mxu0 %v7745_v20 }
 0x226   : > { %v1144_v47 = vadd.f32 %v1111_v34, %v1045_v41 }
 0x227   : > { %v4870_v50 = vpop.f32.mrf.mxu1  ;;  %v5030_v52 = vpop.f32.mrf.mxu0  ;;  %5218 = vmatpush3.bf16.msra.mxu1 %v5657_v37  ;;  %v1114_v37 = vld [vmem:[#allocation2 + $0x140] sm:$0xff] }
 0x228   : > { %1177 = vst.msk [vmem:[#allocation2 + $0x128] sm:$0xff] %vm764_vm4, %v1144_v47  ;;  %5219 = vmatprep.subr.bf16.mxu1 %v7745_v20  ;;  %5458 = vmatpush3.bf16.msra.mxu0 %v5663_v38 }
 0x229   : > { %v1050_v62 = vpop.f32.mrf.mxu1  ;;  %v6515_v63 = vpop.f32.mrf.mxu0  ;;  %5072 = vmatmul.mubr.msk.bf16.gmra.mxu1 %vm868_vm3, %v5925_v28  ;;  %5312 = vmatmul.mubr.msk.bf16.gmra.mxu0 %vm868_vm3, %v5925_v28 }
 0x22a   : > { %v1145_v7 = vadd.f32 %v1112_v54, %v1050_v62  ;;  %5075 = vmatprep.mubr.msk.bf16.mxu1 %vm5690_vm2, %v7745_v20  ;;  %5315 = vmatprep.mubr.msk.bf16.mxu0 %vm5690_vm2, %v7745_v20  ;;  %v1115_v54 = vld [vmem:[#allocation2 + $0x148] sm:$0xff] }
 0x22b   : > { %v4873_v8 = vpop.f32.mrf.mxu1  ;;  %v5033_v12 = vpop.f32.mrf.mxu0  ;;  %5220 = vmatpush3.bf16.msra.mxu1 %v5658_v58  ;;  %5459 = vmatprep.subr.bf16.mxu0 %v7745_v20 }
 0x22c   : > { %1178 = vst.msk [vmem:[#allocation2 + $0x130] sm:$0xff] %vm764_vm4, %v1145_v7  ;;  %5221 = vmatprep.subr.bf16.mxu1 %v7745_v20  ;;  %5460 = vmatpush3.bf16.msra.mxu0 %v5664_v61  ;;  %v1116_v12 = vld [vmem:[#allocation2 + $0x150] sm:$0xff] }
 0x22d   : > { %v1053_v22 = vpop.f32.mrf.mxu1  ;;  %v6534_v25 = vpop.f32.mrf.mxu0  ;;  %5461 = vmatprep.subr.bf16.mxu0 %v7745_v20 }
 0x22e   : > { %v1146_v29 = vadd.f32 %v1113_v14, %v1053_v22 }
 0x22f   : > { %v4874_v31 = vpop.f32.mrf.mxu1  ;;  %v5034_v34 = vpop.f32.mrf.mxu0  ;;  %5222 = vmatpush3.bf16.msra.mxu1 %v5660_v15 }
 0x230   : > { %1179 = vst.msk [vmem:[#allocation2 + $0x138] sm:$0xff] %vm764_vm4, %v1146_v29  ;;  %5462 = vmatpush3.bf16.msra.mxu0 %v5665_v21  ;;  %5371 = vmatprep.subr.bf16.mxu1 %v7745_v20  ;;  %v1117_v31 = vld [vmem:[#allocation2 + $0x158] sm:$0xff] }
 0x231   : > { %v1058_v38 = vpop.f32.mrf.mxu1  ;;  %v6539_v41 = vpop.f32.mrf.mxu0  ;;  %5076 = vmatmul.mubr.msk.bf16.gmra.mxu1 %vm868_vm3, %v5951_v39  ;;  %5316 = vmatmul.mubr.msk.bf16.gmra.mxu0 %vm868_vm3, %v5951_v39 }
 0x232   : > { %v1147_v47 = vadd.f32 %v1114_v37, %v1058_v38  ;;  %5079 = vmatprep.mubr.msk.bf16.mxu1 %vm5690_vm2, %v7745_v20  ;;  %5319 = vmatprep.mubr.msk.bf16.mxu0 %vm5690_vm2, %v7745_v20 }
 0x233   : > { %v4877_v50 = vpop.f32.mrf.mxu1  ;;  %v5037_v52 = vpop.f32.mrf.mxu0 }
 0x234   : > { %1180 = vst.msk [vmem:[#allocation2 + $0x140] sm:$0xff] %vm764_vm4, %v1147_v47  ;;  %v1118_v52 = vld [vmem:[#allocation2 + $0x160] sm:$0xff] }
 0x235   : > { %v1061_v58 = vpop.f32.mrf.mxu1  ;;  %v6550_v61 = vpop.f32.mrf.mxu0 }
 0x236   : > { %v1148_v62 = vadd.f32 %v1115_v54, %v1061_v58 }
 0x237   : > { %v4878_v7 = vpop.f32.mrf.mxu1  ;;  %v5038_v8 = vpop.f32.mrf.mxu0 }
 0x238   : > { %1181 = vst.msk [vmem:[#allocation2 + $0x148] sm:$0xff] %vm764_vm4, %v1148_v62 }
 0x239   : > { %v1066_v14 = vpop.f32.mrf.mxu1  ;;  %v6553_v15 = vpop.f32.mrf.mxu0  ;;  %5080 = vmatmul.mubr.msk.bf16.gmra.mxu1 %vm868_vm3, %v5963_v46  ;;  %5320 = vmatmul.mubr.msk.bf16.gmra.mxu0 %vm868_vm3, %v5963_v46 }
 0x23a   : > { %v1149_v21 = vadd.f32 %v1116_v12, %v1066_v14  ;;  %5083 = vmatprep.mubr.msk.bf16.mxu1 %vm5690_vm2, %v7745_v20  ;;  %5323 = vmatprep.mubr.msk.bf16.mxu0 %vm5690_vm2, %v7745_v20  ;;  %v1119_v12 = vld [vmem:[#allocation2 + $0x168] sm:$0xff] }
 0x23b   : > { %v4881_v22 = vpop.f32.mrf.mxu1  ;;  %v5041_v29 = vpop.f32.mrf.mxu0 }
 0x23c   : > { %1182 = vst.msk [vmem:[#allocation2 + $0x150] sm:$0xff] %vm764_vm4, %v1149_v21 }
 0x23d   : > { %v1069_v34 = vpop.f32.mrf.mxu1  ;;  %v6564_v37 = vpop.f32.mrf.mxu0 }
 0x23e   : > { %v1150_v38 = vadd.f32 %v1117_v31, %v1069_v34  ;;  %v1120_v34 = vld [vmem:[#allocation2 + $0x170] sm:$0xff] }
 0x23f   : > { %v4882_v47 = vpop.f32.mrf.mxu1  ;;  %v5042_v50 = vpop.f32.mrf.mxu0 }
 0x240   : > { %1183 = vst.msk [vmem:[#allocation2 + $0x158] sm:$0xff] %vm764_vm4, %v1150_v38 }
 0x241   : > { %v1074_v54 = vpop.f32.mrf.mxu1  ;;  %v6567_v58 = vpop.f32.mrf.mxu0  ;;  %5084 = vmatmul.mubr.msk.bf16.gmra.mxu1 %vm868_vm3, %v5973_v53  ;;  %5324 = vmatmul.mubr.msk.bf16.gmra.mxu0 %vm868_vm3, %v5973_v53 }
 0x242   : > { %v1151_v62 = vadd.f32 %v1118_v52, %v1074_v54  ;;  %5087 = vmatprep.mubr.msk.bf16.mxu1 %vm5690_vm2, %v7745_v20  ;;  %5327 = vmatprep.mubr.msk.bf16.mxu0 %vm5690_vm2, %v7745_v20 }
 0x243   : > { %v4885_v7 = vpop.f32.mrf.mxu1  ;;  %v5045_v8 = vpop.f32.mrf.mxu0 }
 0x244   : > { %1184 = vst.msk [vmem:[#allocation2 + $0x160] sm:$0xff] %vm764_vm4, %v1151_v62 }
 0x245   : > { %v1077_v14 = vpop.f32.mrf.mxu1  ;;  %v6578_v21 = vpop.f32.mrf.mxu0 }
 0x246   : > { %v1152_v22 = vadd.f32 %v1119_v12, %v1077_v14 }
 0x247   : > { %v4886_v29 = vpop.f32.mrf.mxu1  ;;  %v5046_v31 = vpop.f32.mrf.mxu0 }
 0x248   : > { %1185 = vst.msk [vmem:[#allocation2 + $0x168] sm:$0xff] %vm764_vm4, %v1152_v22  ;;  %v1403_v22 = vld [vmem:[#allocation2 + $0x6f] sm:$0xff] }
 0x249   : > { %v1082_v38 = vpop.f32.mrf.mxu1  ;;  %v6581_v47 = vpop.f32.mrf.mxu0  ;;  %5088 = vmatmul.mubr.msk.bf16.gmra.mxu1 %vm868_vm3, %v5983_v60  ;;  %5328 = vmatmul.mubr.msk.bf16.gmra.mxu0 %vm868_vm3, %v5983_v60 }
 0x24a   : > { %v1153_v50 = vadd.f32 %v1120_v34, %v1082_v38  ;;  %5091 = vmatprep.mubr.msk.bf16.mxu1 %vm5690_vm2, %v7745_v20  ;;  %5331 = vmatprep.mubr.msk.bf16.mxu0 %vm5690_vm2, %v7745_v20 }
 0x24b   : > { %v4889_v52 = vpop.f32.mrf.mxu1  ;;  %v5049_v54 = vpop.f32.mrf.mxu0 }
 0x24c   : > { %1186 = vst.msk [vmem:[#allocation2 + $0x170] sm:$0xff] %vm764_vm4, %v1153_v50  ;;  %v1404_v52 = vld [vmem:[#allocation2 + $0x77] sm:$0xff] }
 0x24d   : > { %v1085_v62 = vpop.f32.mrf.mxu1  ;;  %v1715_v7 = vpop.f32.mrf.mxu0 }
 0x24f   : > { %v4890_v8 = vpop.f32.mrf.mxu1  ;;  %v5050_v12 = vpop.f32.mrf.mxu0 }
 0x251   : > { %v1269_v14 = vpop.f32.mrf.mxu1  ;;  %5092 = vmatmul.mubr.msk.bf16.gmra.mxu1 %vm868_vm3, %v5993_v3  ;;  %v6594_v29 = vpop.f32.mrf.mxu0  ;;  %5332 = vmatmul.mubr.msk.bf16.gmra.mxu0 %vm868_vm3, %v5993_v3 }
 0x252   : > { %7747 = vst [vmem:[#allocation3_spill] sm:$0xff] %v6594_v29  ;;  %v1436_v31 = vadd.f32 %v1403_v22, %v1269_v14  ;;  %5095 = vmatprep.mubr.msk.bf16.mxu1 %vm5690_vm2, %v7745_v20  ;;  %5335 = vmatprep.mubr.msk.bf16.mxu0 %vm5690_vm2, %v7745_v20  ;;  %v1405_v14 = vld [vmem:[#allocation2 + $0x7f] sm:$0xff] }
 0x253   : > { %v4905_v34 = vpop.f32.mrf.mxu1  ;;  %v5145_v38 = vpop.f32.mrf.mxu0 }
 0x254   : > { %1469 = vst.msk [vmem:[#allocation2 + $0x6f] sm:$0xff] %vm764_vm4, %v1436_v31 }
 0x255   : > { %v1272_v50 = vpop.f32.mrf.mxu1  ;;  %v6603_v54 = vpop.f32.mrf.mxu0 }
 0x256   : > { %7748 = vst [vmem:[#allocation4_spill] sm:$0xff] %v6603_v54  ;;  %v1437_v62 = vadd.f32 %v1404_v52, %v1272_v50 }
 0x257   : > { %v4906_v7 = vpop.f32.mrf.mxu1  ;;  %v5146_v8 = vpop.f32.mrf.mxu0 }
 0x258   : > { %1470 = vst.msk [vmem:[#allocation2 + $0x77] sm:$0xff] %vm764_vm4, %v1437_v62  ;;  %v1406_v7 = vld [vmem:[#allocation2 + $0x87] sm:$0xff] }
 0x259   : > { %v1277_v12 = vpop.f32.mrf.mxu1  ;;  %5096 = vmatmul.mubr.msk.bf16.gmra.mxu1 %vm868_vm3, %v6116_v11  ;;  %v6608_v22 = vpop.f32.mrf.mxu0  ;;  %5336 = vmatmul.mubr.msk.bf16.gmra.mxu0 %vm868_vm3, %v6116_v11 }
 0x25a   : > { %7749 = vst [vmem:[#allocation5_spill] sm:$0xff] %v6608_v22  ;;  %v1438_v31 = vadd.f32 %v1405_v14, %v1277_v12  ;;  %5099 = vmatprep.mubr.msk.bf16.mxu1 %vm5690_vm2, %v7745_v20  ;;  %5339 = vmatprep.mubr.msk.bf16.mxu0 %vm5690_vm2, %v7745_v20 }
 0x25b   : > { %v1718_v34 = vld [vmem:[#allocation2 + $0x6e] sm:$0xff]  ;;  %v4909_v38 = vpop.f32.mrf.mxu1  ;;  %v5149_v50 = vpop.f32.mrf.mxu0 }
 0x25c   : > { %v1751_v52 = vadd.f32 %v1718_v34, %v6312_v32  ;;  %1471 = vst.msk [vmem:[#allocation2 + $0x7f] sm:$0xff] %vm764_vm4, %v1438_v31  ;;  %v1407_v50 = vld [vmem:[#allocation2 + $0x8f] sm:$0xff] }
 0x25d   : > { %v1280_v62 = vpop.f32.mrf.mxu1  ;;  %v6618_v8 = vpop.f32.mrf.mxu0 }
 0x25e   : > { %1784 = vst.msk [vmem:[#allocation2 + $0x6e] sm:$0xff] %vm764_vm4, %v1751_v52  ;;  %v1439_v12 = vadd.f32 %v1406_v7, %v1280_v62  ;;  %v1408_v62 = vld [vmem:[#allocation2 + $0x97] sm:$0xff] }
 0x25f   : > { %v1719_v14 = vld [vmem:[#allocation2 + $0x76] sm:$0xff]  ;;  %v4910_v22 = vpop.f32.mrf.mxu1  ;;  %v5150_v54 = vpop.f32.mrf.mxu0 }
 0x260   : > { %v1752_v29 = vadd.f32 %v1719_v14, %v6321_v40  ;;  %1472 = vst.msk [vmem:[#allocation2 + $0x87] sm:$0xff] %vm764_vm4, %v1439_v12 }
 0x261   : > { %v1285_v38 = vpop.f32.mrf.mxu1  ;;  %5100 = vmatmul.mubr.msk.bf16.gmra.mxu1 %vm868_vm3, %v6126_v19  ;;  %v6625_v32 = vpop.f32.mrf.mxu0  ;;  %5340 = vmatmul.mubr.msk.bf16.gmra.mxu0 %vm868_vm3, %v6126_v19 }
 0x262   : > { %1785 = vst.msk [vmem:[#allocation2 + $0x76] sm:$0xff] %vm764_vm4, %v1752_v29  ;;  %v1440_v31 = vadd.f32 %v1407_v50, %v1285_v38  ;;  %5103 = vmatprep.mubr.msk.bf16.mxu1 %vm5690_vm2, %v7745_v20  ;;  %5343 = vmatprep.mubr.msk.bf16.mxu0 %vm5690_vm2, %v7745_v20 }
 0x263   : > { %v1720_v40 = vld [vmem:[#allocation2 + $0x7e] sm:$0xff]  ;;  %v4913_v54 = vpop.f32.mrf.mxu1  ;;  %v5153_v22 = vpop.f32.mrf.mxu0 }
 0x264   : > { %v1753_v34 = vadd.f32 %v1720_v40, %v6326_v48  ;;  %1473 = vst.msk [vmem:[#allocation2 + $0x8f] sm:$0xff] %vm764_vm4, %v1440_v31  ;;  %v1409_v22 = vld [vmem:[#allocation2 + $0x9f] sm:$0xff] }
 0x265   : > { %v1288_v52 = vpop.f32.mrf.mxu1  ;;  %v6636_v7 = vpop.f32.mrf.mxu0 }
 0x266   : > { %1786 = vst.msk [vmem:[#allocation2 + $0x7e] sm:$0xff] %vm764_vm4, %v1753_v34  ;;  %v1441_v29 = vadd.f32 %v1408_v62, %v1288_v52 }
 0x267   : > { %v1721_v12 = vld [vmem:[#allocation2 + $0x86] sm:$0xff]  ;;  %v4914_v14 = vpop.f32.mrf.mxu1  ;;  %v5154_v38 = vpop.f32.mrf.mxu0 }
 0x268   : > { %v1754_v50 = vadd.f32 %v1721_v12, %v6335_v56  ;;  %1474 = vst.msk [vmem:[#allocation2 + $0x97] sm:$0xff] %vm764_vm4, %v1441_v29  ;;  %v1410_v29 = vld [vmem:[#allocation2 + $0xa7] sm:$0xff] }
 0x269   : > { %v1293_v54 = vpop.f32.mrf.mxu1  ;;  %5104 = vmatmul.mubr.msk.bf16.gmra.mxu1 %vm868_vm3, %v6136_v27  ;;  %v6643_v48 = vpop.f32.mrf.mxu0  ;;  %5344 = vmatmul.mubr.msk.bf16.gmra.mxu0 %vm868_vm3, %v6136_v27 }
 0x26a   : > { %1787 = vst.msk [vmem:[#allocation2 + $0x86] sm:$0xff] %vm764_vm4, %v1754_v50  ;;  %v1442_v31 = vadd.f32 %v1409_v22, %v1293_v54  ;;  %5107 = vmatprep.mubr.msk.bf16.mxu1 %vm5690_vm2, %v7745_v20  ;;  %5347 = vmatprep.mubr.msk.bf16.mxu0 %vm5690_vm2, %v7745_v20 }
 0x26b   : > { %v1722_v56 = vld [vmem:[#allocation2 + $0x8e] sm:$0xff]  ;;  %v4917_v40 = vpop.f32.mrf.mxu1  ;;  %v5157_v34 = vpop.f32.mrf.mxu0 }
 0x26c   : > { %v1755_v52 = vadd.f32 %v1722_v56, %v6340_v0  ;;  %1475 = vst.msk [vmem:[#allocation2 + $0x9f] sm:$0xff] %vm764_vm4, %v1442_v31  ;;  %v1411_v34 = vld [vmem:[#allocation2 + $0xaf] sm:$0xff] }
 0x26d   : > { %v1296_v62 = vpop.f32.mrf.mxu1  ;;  %v6654_v12 = vpop.f32.mrf.mxu0 }
 0x26e   : > { %1788 = vst.msk [vmem:[#allocation2 + $0x8e] sm:$0xff] %vm764_vm4, %v1755_v52  ;;  %v1443_v14 = vadd.f32 %v1410_v29, %v1296_v62 }
 0x26f   : > { %v1723_v38 = vld [vmem:[#allocation2 + $0x96] sm:$0xff]  ;;  %v4918_v50 = vpop.f32.mrf.mxu1  ;;  %v5158_v54 = vpop.f32.mrf.mxu0 }
 0x270   : > { %v1756_v22 = vadd.f32 %v1723_v38, %v6349_v9  ;;  %1476 = vst.msk [vmem:[#allocation2 + $0xa7] sm:$0xff] %vm764_vm4, %v1443_v14  ;;  %v1412_v14 = vld [vmem:[#allocation2 + $0xb7] sm:$0xff] }
 0x271   : > { %v1301_v40 = vpop.f32.mrf.mxu1  ;;  %5108 = vmatmul.mubr.msk.bf16.gmra.mxu1 %vm868_vm3, %v6146_v35  ;;  %v6661_v0 = vpop.f32.mrf.mxu0  ;;  %5348 = vmatmul.mubr.msk.bf16.gmra.mxu0 %vm868_vm3, %v6146_v35 }
 0x272   : > { %1789 = vst.msk [vmem:[#allocation2 + $0x96] sm:$0xff] %vm764_vm4, %v1756_v22  ;;  %v1444_v31 = vadd.f32 %v1411_v34, %v1301_v40  ;;  %5111 = vmatprep.mubr.msk.bf16.mxu1 %vm5690_vm2, %v7745_v20  ;;  %5351 = vmatprep.mubr.msk.bf16.mxu0 %vm5690_vm2, %v7745_v20 }
 0x273   : > { %v1724_v9 = vld [vmem:[#allocation2 + $0x9e] sm:$0xff]  ;;  %v4921_v56 = vpop.f32.mrf.mxu1  ;;  %v5161_v52 = vpop.f32.mrf.mxu0 }
 0x274   : > { %v1757_v62 = vadd.f32 %v1724_v9, %v6354_v18  ;;  %1477 = vst.msk [vmem:[#allocation2 + $0xaf] sm:$0xff] %vm764_vm4, %v1444_v31  ;;  %v1413_v52 = vld [vmem:[#allocation2 + $0xbf] sm:$0xff] }
 0x275   : > { %v1304_v29 = vpop.f32.mrf.mxu1  ;;  %v6672_v38 = vpop.f32.mrf.mxu0 }
 0x276   : > { %1790 = vst.msk [vmem:[#allocation2 + $0x9e] sm:$0xff] %vm764_vm4, %v1757_v62  ;;  %v1445_v50 = vadd.f32 %v1412_v14, %v1304_v29 }
 0x277   : > { %v1725_v54 = vld [vmem:[#allocation2 + $0xa6] sm:$0xff]  ;;  %v4922_v22 = vpop.f32.mrf.mxu1  ;;  %v5162_v40 = vpop.f32.mrf.mxu0 }
 0x278   : > { %v1758_v34 = vadd.f32 %v1725_v54, %v6363_v26  ;;  %1478 = vst.msk [vmem:[#allocation2 + $0xb7] sm:$0xff] %vm764_vm4, %v1445_v50  ;;  %v1414_v50 = vld [vmem:[#allocation2 + $0xc7] sm:$0xff] }
 0x279   : > { %v1309_v56 = vpop.f32.mrf.mxu1  ;;  %5112 = vmatmul.mubr.msk.bf16.gmra.mxu1 %vm868_vm3, %v6156_v43  ;;  %v6679_v18 = vpop.f32.mrf.mxu0  ;;  %5352 = vmatmul.mubr.msk.bf16.gmra.mxu0 %vm868_vm3, %v6156_v43 }
 0x27a   : > { %1791 = vst.msk [vmem:[#allocation2 + $0xa6] sm:$0xff] %vm764_vm4, %v1758_v34  ;;  %v1446_v31 = vadd.f32 %v1413_v52, %v1309_v56  ;;  %5115 = vmatprep.mubr.msk.bf16.mxu1 %vm5690_vm2, %v7745_v20  ;;  %5355 = vmatprep.mubr.msk.bf16.mxu0 %vm5690_vm2, %v7745_v20 }
 0x27b   : > { %v1726_v26 = vld [vmem:[#allocation2 + $0xae] sm:$0xff]  ;;  %v4925_v9 = vpop.f32.mrf.mxu1  ;;  %v5165_v62 = vpop.f32.mrf.mxu0 }
 0x27c   : > { %v1759_v29 = vadd.f32 %v1726_v26, %v6368_v36  ;;  %1479 = vst.msk [vmem:[#allocation2 + $0xbf] sm:$0xff] %vm764_vm4, %v1446_v31  ;;  %v1415_v62 = vld [vmem:[#allocation2 + $0xcf] sm:$0xff] }
 0x27d   : > { %v1312_v14 = vpop.f32.mrf.mxu1  ;;  %v6690_v54 = vpop.f32.mrf.mxu0 }
 0x27e   : > { %1792 = vst.msk [vmem:[#allocation2 + $0xae] sm:$0xff] %vm764_vm4, %v1759_v29  ;;  %v1447_v22 = vadd.f32 %v1414_v50, %v1312_v14 }
 0x27f   : > { %v1727_v40 = vld [vmem:[#allocation2 + $0xb6] sm:$0xff]  ;;  %v4926_v34 = vpop.f32.mrf.mxu1  ;;  %v5166_v56 = vpop.f32.mrf.mxu0 }
 0x280   : > { %v1760_v52 = vadd.f32 %v1727_v40, %v6377_v45  ;;  %1480 = vst.msk [vmem:[#allocation2 + $0xc7] sm:$0xff] %vm764_vm4, %v1447_v22  ;;  %v1416_v22 = vld [vmem:[#allocation2 + $0xd7] sm:$0xff] }
 0x281   : > { %v1317_v9 = vpop.f32.mrf.mxu1  ;;  %5116 = vmatmul.mubr.msk.bf16.gmra.mxu1 %vm868_vm3, %v6166_v51  ;;  %v6697_v36 = vpop.f32.mrf.mxu0  ;;  %5356 = vmatmul.mubr.msk.bf16.gmra.mxu0 %vm868_vm3, %v6166_v51 }
 0x282   : > { %1793 = vst.msk [vmem:[#allocation2 + $0xb6] sm:$0xff] %vm764_vm4, %v1760_v52  ;;  %v1448_v31 = vadd.f32 %v1415_v62, %v1317_v9  ;;  %5119 = vmatprep.mubr.msk.bf16.mxu1 %vm5690_vm2, %v7745_v20  ;;  %5359 = vmatprep.mubr.msk.bf16.mxu0 %vm5690_vm2, %v7745_v20 }
 0x283   : > { %v1728_v45 = vld [vmem:[#allocation2 + $0xbe] sm:$0xff]  ;;  %v4929_v26 = vpop.f32.mrf.mxu1  ;;  %v5169_v29 = vpop.f32.mrf.mxu0 }
 0x284   : > { %v1761_v14 = vadd.f32 %v1728_v45, %v6382_v55  ;;  %1481 = vst.msk [vmem:[#allocation2 + $0xcf] sm:$0xff] %vm764_vm4, %v1448_v31  ;;  %v1417_v29 = vld [vmem:[#allocation2 + $0xdf] sm:$0xff] }
 0x285   : > { %v1320_v50 = vpop.f32.mrf.mxu1  ;;  %v6708_v40 = vpop.f32.mrf.mxu0 }
 0x286   : > { %1794 = vst.msk [vmem:[#allocation2 + $0xbe] sm:$0xff] %vm764_vm4, %v1761_v14  ;;  %v1449_v34 = vadd.f32 %v1416_v22, %v1320_v50 }
 0x287   : > { %v1729_v56 = vld [vmem:[#allocation2 + $0xc6] sm:$0xff]  ;;  %v4930_v52 = vpop.f32.mrf.mxu1  ;;  %v5170_v9 = vpop.f32.mrf.mxu0 }
 0x288   : > { %v1762_v62 = vadd.f32 %v1729_v56, %v6391_v1  ;;  %1482 = vst.msk [vmem:[#allocation2 + $0xd7] sm:$0xff] %vm764_vm4, %v1449_v34  ;;  %v1418_v34 = vld [vmem:[#allocation2 + $0xe7] sm:$0xff] }
 0x289   : > { %v1325_v26 = vpop.f32.mrf.mxu1  ;;  %5120 = vmatmul.mubr.msk.bf16.gmra.mxu1 %vm868_vm3, %v6176_v59  ;;  %v6715_v55 = vpop.f32.mrf.mxu0  ;;  %5360 = vmatmul.mubr.msk.bf16.gmra.mxu0 %vm868_vm3, %v6176_v59 }
 0x28a   : > { %1795 = vst.msk [vmem:[#allocation2 + $0xc6] sm:$0xff] %vm764_vm4, %v1762_v62  ;;  %v1450_v31 = vadd.f32 %v1417_v29, %v1325_v26  ;;  %5123 = vmatprep.mubr.msk.bf16.mxu1 %vm5690_vm2, %v7745_v20  ;;  %5363 = vmatprep.mubr.msk.bf16.mxu0 %vm5690_vm2, %v7745_v20 }
 0x28b   : > { %v1730_v1 = vld [vmem:[#allocation2 + $0xce] sm:$0xff]  ;;  %v4933_v45 = vpop.f32.mrf.mxu1  ;;  %v5173_v14 = vpop.f32.mrf.mxu0 }
 0x28c   : > { %v1763_v50 = vadd.f32 %v1730_v1, %v6396_v13  ;;  %1483 = vst.msk [vmem:[#allocation2 + $0xdf] sm:$0xff] %vm764_vm4, %v1450_v31  ;;  %v1419_v14 = vld [vmem:[#allocation2 + $0xef] sm:$0xff] }
 0x28d   : > { %v1328_v22 = vpop.f32.mrf.mxu1  ;;  %v6726_v56 = vpop.f32.mrf.mxu0 }
 0x28e   : > { %1796 = vst.msk [vmem:[#allocation2 + $0xce] sm:$0xff] %vm764_vm4, %v1763_v50  ;;  %v1451_v52 = vadd.f32 %v1418_v34, %v1328_v22 }
 0x28f   : > { %v1731_v9 = vld [vmem:[#allocation2 + $0xd6] sm:$0xff]  ;;  %v4934_v62 = vpop.f32.mrf.mxu1  ;;  %v5174_v26 = vpop.f32.mrf.mxu0 }
 0x290   : > { %v1764_v29 = vadd.f32 %v1731_v9, %v6405_v23  ;;  %1484 = vst.msk [vmem:[#allocation2 + $0xe7] sm:$0xff] %vm764_vm4, %v1451_v52  ;;  %v1420_v52 = vld [vmem:[#allocation2 + $0xf7] sm:$0xff] }
 0x291   : > { %v1333_v45 = vpop.f32.mrf.mxu1  ;;  %5124 = vmatmul.mubr.msk.bf16.gmra.mxu1 %vm868_vm3, %v6186_v4  ;;  %v6733_v13 = vpop.f32.mrf.mxu0  ;;  %5364 = vmatmul.mubr.msk.bf16.gmra.mxu0 %vm868_vm3, %v6186_v4 }
 0x292   : > { %1797 = vst.msk [vmem:[#allocation2 + $0xd6] sm:$0xff] %vm764_vm4, %v1764_v29  ;;  %v1452_v31 = vadd.f32 %v1419_v14, %v1333_v45  ;;  %5127 = vmatprep.mubr.msk.bf16.mxu1 %vm5690_vm2, %v7745_v20  ;;  %5367 = vmatprep.mubr.msk.bf16.mxu0 %vm5690_vm2, %v7745_v20 }
 0x293   : > { %v1732_v23 = vld [vmem:[#allocation2 + $0xde] sm:$0xff]  ;;  %v4937_v1 = vpop.f32.mrf.mxu1  ;;  %v5177_v50 = vpop.f32.mrf.mxu0 }
 0x294   : > { %v1765_v22 = vadd.f32 %v1732_v23, %v6410_v33  ;;  %1485 = vst.msk [vmem:[#allocation2 + $0xef] sm:$0xff] %vm764_vm4, %v1452_v31  ;;  %v1421_v50 = vld [vmem:[#allocation2 + $0xff] sm:$0xff] }
 0x295   : > { %v1336_v34 = vpop.f32.mrf.mxu1  ;;  %v6744_v9 = vpop.f32.mrf.mxu0 }
 0x296   : > { %1798 = vst.msk [vmem:[#allocation2 + $0xde] sm:$0xff] %vm764_vm4, %v1765_v22  ;;  %v1453_v62 = vadd.f32 %v1420_v52, %v1336_v34 }
 0x297   : > { %v1733_v26 = vld [vmem:[#allocation2 + $0xe6] sm:$0xff]  ;;  %v4938_v29 = vpop.f32.mrf.mxu1  ;;  %v5178_v45 = vpop.f32.mrf.mxu0 }
 0x298   : > { %v1766_v14 = vadd.f32 %v1733_v26, %v6419_v44  ;;  %1486 = vst.msk [vmem:[#allocation2 + $0xf7] sm:$0xff] %vm764_vm4, %v1453_v62  ;;  %v1422_v62 = vld [vmem:[#allocation2 + $0x107] sm:$0xff]  ;;  %v5666_v45 = vld [vmem:[%s7742_s2 + $0x178] sm:$0xff]  }
 0x299   : > { %v1341_v1 = vpop.f32.mrf.mxu1  ;;  %5128 = vmatmul.mubr.msk.bf16.gmra.mxu1 %vm868_vm3, %v6196_v10  ;;  %v6751_v33 = vpop.f32.mrf.mxu0  ;;  %5368 = vmatmul.mubr.msk.bf16.gmra.mxu0 %vm868_vm3, %v6196_v10 }
 0x29a   : > { %1799 = vst.msk [vmem:[#allocation2 + $0xe6] sm:$0xff] %vm764_vm4, %v1766_v14  ;;  %v1454_v31 = vadd.f32 %v1421_v50, %v1341_v1  ;;  %5223 = vmatprep.mubr.msk.bf16.mxu1 %vm5690_vm2, %v7745_v20  ;;  %5463 = vmatprep.mubr.msk.bf16.mxu0 %vm5690_vm2, %v7745_v20 }
 0x29b   : > { %v1734_v44 = vld [vmem:[#allocation2 + $0xee] sm:$0xff]  ;;  %v4941_v23 = vpop.f32.mrf.mxu1  ;;  %v5181_v22 = vpop.f32.mrf.mxu0 }
 0x29c   : > { %v1767_v34 = vadd.f32 %v1734_v44, %v6424_v57  ;;  %1487 = vst.msk [vmem:[#allocation2 + $0xff] sm:$0xff] %vm764_vm4, %v1454_v31  ;;  %v1423_v31 = vld [vmem:[#allocation2 + $0x10f] sm:$0xff] }
 0x29d   : > { %v1344_v52 = vpop.f32.mrf.mxu1  ;;  %v6762_v26 = vpop.f32.mrf.mxu0 }
 0x29e   : > { %1800 = vst.msk [vmem:[#allocation2 + $0xee] sm:$0xff] %vm764_vm4, %v1767_v34  ;;  %v1455_v29 = vadd.f32 %v1422_v62, %v1344_v52 }
 0x29f   : > { %v1735_v14 = vld [vmem:[#allocation2 + $0xf6] sm:$0xff]  ;;  %v4942_v1 = vpop.f32.mrf.mxu1  ;;  %v5182_v50 = vpop.f32.mrf.mxu0 }
 0x2a0   : > { %v1768_v23 = vadd.f32 %v1735_v14, %v6433_v5  ;;  %1488 = vst.msk [vmem:[#allocation2 + $0x107] sm:$0xff] %vm764_vm4, %v1455_v29  ;;  %v5667_v5 = vld [vmem:[%s7742_s2 + $0x170] sm:$0xff]  }
 0x2a1   : > { %v1349_v57 = vpop.f32.mrf.mxu1  ;;  %v6770_v44 = vpop.f32.mrf.mxu0  ;;  %5224 = vmatmul.mubr.msk.bf16.vlgmr.msra.gmra.mxu1 %vm868_vm3, %v5878_v6  ;;  %5464 = vmatmul.mubr.msk.bf16.vlgmr.msra.gmra.mxu0 %vm868_vm3, %v5878_v6  ;;  %v1424_v14 = vld [vmem:[#allocation2 + $0x117] sm:$0xff] }
 0x2a2   : > { %1801 = vst.msk [vmem:[#allocation2 + $0xf6] sm:$0xff] %vm764_vm4, %v1768_v23  ;;  %v1456_v22 = vadd.f32 %v1423_v31, %v1349_v57  ;;  %5372 = vmatpush3.bf16.msra.mxu1 %v5666_v45  ;;  %5227 = vmatprep.mubr.msk.bf16.mxu1 %vm5690_vm2, %v7745_v20 }
 0x2a3   : > { %v1736_v34 = vld [vmem:[#allocation2 + $0xfe] sm:$0xff]  ;;  %v4945_v52 = vpop.f32.mrf.mxu1  ;;  %v5185_v62 = vpop.f32.mrf.mxu0  ;;  %5467 = vmatprep.mubr.msk.bf16.mxu0 %vm5690_vm2, %v7745_v20  ;;  %5373 = vmatprep.subr.bf16.mxu1 %v7745_v20 }
 0x2a4   : > { %v1769_v29 = vadd.f32 %v1736_v34, %v6438_v17  ;;  %1489 = vst.msk [vmem:[#allocation2 + $0x10f] sm:$0xff] %vm764_vm4, %v1456_v22  ;;  %v5668_v52 = vld [vmem:[%s7742_s2 + $0x168] sm:$0xff]   ;;  %v1425_v34 = vld [vmem:[#allocation2 + $0x11f] sm:$0xff] }
 0x2a5   : > { %v1352_v45 = vpop.f32.mrf.mxu1  ;;  %v6787_v1 = vpop.f32.mrf.mxu0 }
 0x2a6   : > { %1802 = vst.msk [vmem:[#allocation2 + $0xfe] sm:$0xff] %vm764_vm4, %v1769_v29  ;;  %v1457_v50 = vadd.f32 %v1424_v14, %v1352_v45  ;;  %5374 = vmatpush3.bf16.msra.mxu1 %v5667_v5  ;;  %v5669_v14 = vld [vmem:[%s7742_s2 + $0x160] sm:$0xff]  }
 0x2a7   : > { %v1737_v23 = vld [vmem:[#allocation2 + $0x106] sm:$0xff]  ;;  %v4946_v57 = vpop.f32.mrf.mxu1  ;;  %v5186_v31 = vpop.f32.mrf.mxu0  ;;  %5375 = vmatprep.subr.bf16.mxu1 %v7745_v20 }
 0x2a8   : > { %v1770_v17 = vadd.f32 %v1737_v23, %v6447_v30  ;;  %1490 = vst.msk [vmem:[#allocation2 + $0x117] sm:$0xff] %vm764_vm4, %v1457_v50  ;;  %v1426_v57 = vld [vmem:[#allocation2 + $0x127] sm:$0xff] }
 0x2a9   : > { %v1357_v22 = vpop.f32.mrf.mxu1  ;;  %v6796_v62 = vpop.f32.mrf.mxu0  ;;  %5228 = vmatmul.mubr.msk.bf16.gmra.mxu1 %vm868_vm3, %v5899_v16  ;;  %5468 = vmatmul.mubr.msk.bf16.gmra.mxu0 %vm868_vm3, %v5899_v16 }
 0x2aa   : > { %1803 = vst.msk [vmem:[#allocation2 + $0x106] sm:$0xff] %vm764_vm4, %v1770_v17  ;;  %v1458_v5 = vadd.f32 %v1425_v34, %v1357_v22  ;;  %5231 = vmatprep.mubr.msk.bf16.mxu1 %vm5690_vm2, %v7745_v20  ;;  %5471 = vmatprep.mubr.msk.bf16.mxu0 %vm5690_vm2, %v7745_v20 }
 0x2ab   : > { %v1738_v30 = vld [vmem:[#allocation2 + $0x10e] sm:$0xff]  ;;  %v4949_v29 = vpop.f32.mrf.mxu1  ;;  %v5189_v45 = vpop.f32.mrf.mxu0  ;;  %5376 = vmatpush3.bf16.msra.mxu1 %v5668_v52 }
 0x2ac   : > { %v1771_v50 = vadd.f32 %v1738_v30, %v6456_v49  ;;  %1491 = vst.msk [vmem:[#allocation2 + $0x11f] sm:$0xff] %vm764_vm4, %v1458_v5  ;;  %5377 = vmatprep.subr.bf16.mxu1 %v7745_v20  ;;  %v5670_v29 = vld [vmem:[%s7742_s2 + $0x158] sm:$0xff]   ;;  %v1427_v30 = vld [vmem:[#allocation2 + $0x12f] sm:$0xff] }
 0x2ad   : > { %v1360_v23 = vpop.f32.mrf.mxu1  ;;  %v6813_v31 = vpop.f32.mrf.mxu0 }
 0x2ae   : > { %1804 = vst.msk [vmem:[#allocation2 + $0x10e] sm:$0xff] %vm764_vm4, %v1771_v50  ;;  %v1459_v17 = vadd.f32 %v1426_v57, %v1360_v23  ;;  %v5671_v57 = vld [vmem:[%s7742_s2 + $0x150] sm:$0xff]  }
 0x2af   : > { %v1739_v22 = vld [vmem:[#allocation2 + $0x116] sm:$0xff]  ;;  %v4950_v34 = vpop.f32.mrf.mxu1  ;;  %v5190_v52 = vpop.f32.mrf.mxu0  ;;  %5378 = vmatpush3.bf16.msra.mxu1 %v5669_v14 }
 0x2b0   : > { %v1772_v49 = vadd.f32 %v1739_v22, %v6474_v2  ;;  %1492 = vst.msk [vmem:[#allocation2 + $0x127] sm:$0xff] %vm764_vm4, %v1459_v17  ;;  %5379 = vmatprep.subr.bf16.mxu1 %v7745_v20  ;;  %v1428_v34 = vld [vmem:[#allocation2 + $0x137] sm:$0xff] }
 0x2b1   : > { %v1365_v5 = vpop.f32.mrf.mxu1  ;;  %v6822_v45 = vpop.f32.mrf.mxu0  ;;  %5232 = vmatmul.mubr.msk.bf16.gmra.mxu1 %vm868_vm3, %v5925_v28  ;;  %5472 = vmatmul.mubr.msk.bf16.gmra.mxu0 %vm868_vm3, %v5925_v28 }
 0x2b2   : > { %1805 = vst.msk [vmem:[#allocation2 + $0x116] sm:$0xff] %vm764_vm4, %v1772_v49  ;;  %v1460_v14 = vadd.f32 %v1427_v30, %v1365_v5  ;;  %5235 = vmatprep.mubr.msk.bf16.mxu1 %vm5690_vm2, %v7745_v20  ;;  %5475 = vmatprep.mubr.msk.bf16.mxu0 %vm5690_vm2, %v7745_v20 }
 0x2b3   : > { %v1740_v2 = vld [vmem:[#allocation2 + $0x11e] sm:$0xff]  ;;  %v4953_v50 = vpop.f32.mrf.mxu1  ;;  %v5193_v23 = vpop.f32.mrf.mxu0  ;;  %5380 = vmatpush3.bf16.msra.mxu1 %v5670_v29 }
 0x2b4   : > { %v1773_v17 = vadd.f32 %v1740_v2, %v6485_v24  ;;  %1493 = vst.msk [vmem:[#allocation2 + $0x12f] sm:$0xff] %vm764_vm4, %v1460_v14  ;;  %5381 = vmatprep.subr.bf16.mxu1 %v7745_v20  ;;  %v1429_v14 = vld [vmem:[#allocation2 + $0x13f] sm:$0xff] }
 0x2b5   : > { %v1368_v22 = vpop.f32.mrf.mxu1  ;;  %v6839_v52 = vpop.f32.mrf.mxu0 }
 0x2b6   : > { %1806 = vst.msk [vmem:[#allocation2 + $0x11e] sm:$0xff] %vm764_vm4, %v1773_v17  ;;  %v1461_v49 = vadd.f32 %v1428_v34, %v1368_v22 }
 0x2b7   : > { %v1741_v5 = vld [vmem:[#allocation2 + $0x126] sm:$0xff]  ;;  %v4954_v30 = vpop.f32.mrf.mxu1  ;;  %v5194_v29 = vpop.f32.mrf.mxu0  ;;  %5382 = vmatpush3.bf16.msra.mxu1 %v5671_v57 }
 0x2b8   : > { %v1774_v50 = vadd.f32 %v1741_v5, %v6504_v42  ;;  %1494 = vst.msk [vmem:[#allocation2 + $0x137] sm:$0xff] %vm764_vm4, %v1461_v49  ;;  %5531 = vmatprep.subr.bf16.mxu1 %v7745_v20  ;;  %v1430_v49 = vld [vmem:[#allocation2 + $0x147] sm:$0xff] }
 0x2b9   : > { %v1373_v24 = vpop.f32.mrf.mxu1  ;;  %v6845_v2 = vpop.f32.mrf.mxu0  ;;  %5236 = vmatmul.mubr.msk.bf16.gmra.mxu1 %vm868_vm3, %v5951_v39  ;;  %5476 = vmatmul.mubr.msk.bf16.gmra.mxu0 %vm868_vm3, %v5951_v39 }
 0x2ba   : > { %1807 = vst.msk [vmem:[#allocation2 + $0x126] sm:$0xff] %vm764_vm4, %v1774_v50  ;;  %v1462_v23 = vadd.f32 %v1429_v14, %v1373_v24  ;;  %5239 = vmatprep.mubr.msk.bf16.mxu1 %vm5690_vm2, %v7745_v20  ;;  %5479 = vmatprep.mubr.msk.bf16.mxu0 %vm5690_vm2, %v7745_v20 }
 0x2bb   : > { %v1742_v42 = vld [vmem:[#allocation2 + $0x12e] sm:$0xff]  ;;  %v4957_v57 = vpop.f32.mrf.mxu1  ;;  %v5197_v17 = vpop.f32.mrf.mxu0 }
 0x2bc   : > { %v1775_v22 = vadd.f32 %v1742_v42, %v6515_v63  ;;  %1495 = vst.msk [vmem:[#allocation2 + $0x13f] sm:$0xff] %vm764_vm4, %v1462_v23  ;;  %v1431_v17 = vld [vmem:[#allocation2 + $0x14f] sm:$0xff]  ;;  %v7751_v23 = vmov 0.0  }
 0x2bd   : > { %v1376_v34 = vpop.f32.mrf.mxu1  ;;  %v6858_v5 = vpop.f32.mrf.mxu0 }
 0x2be   : > { %1808 = vst.msk [vmem:[#allocation2 + $0x12e] sm:$0xff] %vm764_vm4, %v1775_v22  ;;  %v1463_v30 = vadd.f32 %v1430_v49, %v1376_v34 }
 0x2bf   : > { %v1743_v29 = vld [vmem:[#allocation2 + $0x136] sm:$0xff]  ;;  %v4958_v50 = vpop.f32.mrf.mxu1  ;;  %v5198_v24 = vpop.f32.mrf.mxu0 }
 0x2c0   : > { %v1776_v14 = vadd.f32 %v1743_v29, %v6534_v25  ;;  %1496 = vst.msk [vmem:[#allocation2 + $0x147] sm:$0xff] %vm764_vm4, %v1463_v30  ;;  %v1432_v30 = vld [vmem:[#allocation2 + $0x157] sm:$0xff] }
 0x2c1   : > { %v1381_v57 = vpop.f32.mrf.mxu1  ;;  %v6863_v20 = vpop.f32.mrf.mxu0  ;;  %5240 = vmatmul.mubr.msk.bf16.gmra.mxu1 %vm868_vm3, %v5963_v46  ;;  %5480 = vmatmul.mubr.msk.bf16.gmra.mxu0 %vm868_vm3, %v5963_v46 }
 0x2c2   : > { %7750 = vst [vmem:[#allocation6_spill] sm:$0xff] %v6863_v20  ;;  %1809 = vst.msk [vmem:[#allocation2 + $0x136] sm:$0xff] %vm764_vm4, %v1776_v14  ;;  %v1464_v63 = vadd.f32 %v1431_v17, %v1381_v57  ;;  %5243 = vmatprep.mubr.msk.bf16.mxu1 %vm5690_vm2, %v7751_v23  ;;  %5483 = vmatprep.mubr.msk.bf16.mxu0 %vm5690_vm2, %v7751_v23 }
 0x2c3   : > { %v4961_v25 = vpop.f32.mrf.mxu1  ;;  %v5201_v42 = vpop.f32.mrf.mxu0  ;;  %v1744_v22 = vld [vmem:[#allocation2 + $0x13e] sm:$0xff] }
 0x2c4   : > { %1497 = vst.msk [vmem:[#allocation2 + $0x14f] sm:$0xff] %vm764_vm4, %v1464_v63  ;;  %v1777_v34 = vadd.f32 %v1744_v22, %v6539_v41  ;;  %v1433_v42 = vld [vmem:[#allocation2 + $0x15f] sm:$0xff] }
 0x2c5   : > { %v1384_v49 = vpop.f32.mrf.mxu1  ;;  %v6876_v29 = vpop.f32.mrf.mxu0 }
 0x2c6   : > { %v1465_v50 = vadd.f32 %v1432_v30, %v1384_v49  ;;  %1810 = vst.msk [vmem:[#allocation2 + $0x13e] sm:$0xff] %vm764_vm4, %v1777_v34  ;;  %v1434_v30 = vld [vmem:[#allocation2 + $0x167] sm:$0xff] }
 0x2c7   : > { %v4962_v24 = vpop.f32.mrf.mxu1  ;;  %v5202_v14 = vpop.f32.mrf.mxu0  ;;  %v1745_v57 = vld [vmem:[#allocation2 + $0x146] sm:$0xff] }
 0x2c8   : > { %1498 = vst.msk [vmem:[#allocation2 + $0x157] sm:$0xff] %vm764_vm4, %v1465_v50  ;;  %v1778_v17 = vadd.f32 %v1745_v57, %v6550_v61 }
 0x2c9   : > { %v1389_v25 = vpop.f32.mrf.mxu1  ;;  %v6881_v20 = vpop.f32.mrf.mxu0  ;;  %5244 = vmatmul.mubr.msk.bf16.gmra.mxu1 %vm868_vm3, %v5973_v53  ;;  %5484 = vmatmul.mubr.msk.bf16.gmra.mxu0 %vm868_vm3, %v5973_v53 }
 0x2ca   : > { %v1466_v41 = vadd.f32 %v1433_v42, %v1389_v25  ;;  %5247 = vmatprep.mubr.msk.bf16.mxu1 %vm5690_vm2, %v7751_v23  ;;  %5487 = vmatprep.mubr.msk.bf16.mxu0 %vm5690_vm2, %v7751_v23  ;;  %1811 = vst.msk [vmem:[#allocation2 + $0x146] sm:$0xff] %vm764_vm4, %v1778_v17 }
 0x2cb   : > { %v4965_v61 = vpop.f32.mrf.mxu1  ;;  %v5205_v63 = vpop.f32.mrf.mxu0  ;;  %v1746_v22 = vld [vmem:[#allocation2 + $0x14e] sm:$0xff] }
 0x2cc   : > { %1499 = vst.msk [vmem:[#allocation2 + $0x15f] sm:$0xff] %vm764_vm4, %v1466_v41  ;;  %v1779_v34 = vadd.f32 %v1746_v22, %v6553_v15  ;;  %v1435_v61 = vld [vmem:[#allocation2 + $0x16f] sm:$0xff] }
 0x2cd   : > { %v1392_v49 = vpop.f32.mrf.mxu1  ;;  %v6894_v50 = vpop.f32.mrf.mxu0 }
 0x2ce   : > { %v1467_v24 = vadd.f32 %v1434_v30, %v1392_v49  ;;  %1812 = vst.msk [vmem:[#allocation2 + $0x14e] sm:$0xff] %vm764_vm4, %v1779_v34 }
 0x2cf   : > { %v4966_v14 = vpop.f32.mrf.mxu1  ;;  %v5206_v57 = vpop.f32.mrf.mxu0  ;;  %v1747_v25 = vld [vmem:[#allocation2 + $0x156] sm:$0xff] }
 0x2d0   : > { %1500 = vst.msk [vmem:[#allocation2 + $0x167] sm:$0xff] %vm764_vm4, %v1467_v24  ;;  %v1780_v17 = vadd.f32 %v1747_v25, %v6564_v37  ;;  %v2033_v25 = vld [vmem:[#allocation2 + $0x5a] sm:$0xff] }
 0x2d1   : > { %v1397_v42 = vpop.f32.mrf.mxu1  ;;  %v6899_v63 = vpop.f32.mrf.mxu0  ;;  %5248 = vmatmul.mubr.msk.bf16.gmra.mxu1 %vm868_vm3, %v5983_v60  ;;  %5488 = vmatmul.mubr.msk.bf16.gmra.mxu0 %vm868_vm3, %v5983_v60 }
 0x2d2   : > { %7752 = vst [vmem:[#allocation7_spill] sm:$0xff] %v6899_v63  ;;  %v1468_v15 = vadd.f32 %v1435_v61, %v1397_v42  ;;  %5251 = vmatprep.mubr.msk.bf16.mxu1 %vm5690_vm2, %v7751_v23  ;;  %5491 = vmatprep.mubr.msk.bf16.mxu0 %vm5690_vm2, %v7751_v23  ;;  %1813 = vst.msk [vmem:[#allocation2 + $0x156] sm:$0xff] %vm764_vm4, %v1780_v17  ;;  %v2978_v42 = vld [vmem:[#allocation2 + $0x44] sm:$0xff] }
 0x2d3   : > { %v4969_v37 = vpop.f32.mrf.mxu1  ;;  %v5209_v41 = vpop.f32.mrf.mxu0  ;;  %v1748_v22 = vld [vmem:[#allocation2 + $0x15e] sm:$0xff] }
 0x2d4   : > { %1501 = vst.msk [vmem:[#allocation2 + $0x16f] sm:$0xff] %vm764_vm4, %v1468_v15  ;;  %v1781_v34 = vadd.f32 %v1748_v22, %v6567_v58  ;;  %v2034_v22 = vld [vmem:[#allocation2 + $0x62] sm:$0xff] }
 0x2d5   : > { %v1400_v49 = vpop.f32.mrf.mxu1  ;;  %v2345_v30 = vpop.f32.mrf.mxu0 }
 0x2d6   : > { %1814 = vst.msk [vmem:[#allocation2 + $0x15e] sm:$0xff] %vm764_vm4, %v1781_v34  ;;  %v2979_v34 = vld [vmem:[#allocation2 + $0x4c] sm:$0xff] }
 0x2d7   : > { %v1749_v24 = vld [vmem:[#allocation2 + $0x166] sm:$0xff]  ;;  %v4970_v14 = vpop.f32.mrf.mxu1  ;;  %v5210_v57 = vpop.f32.mrf.mxu0 }
 0x2d8   : > { %v1782_v61 = vadd.f32 %v1749_v24, %v6578_v21 }
 0x2d9   : > { %v1899_v63 = vpop.f32.mrf.mxu1  ;;  %5252 = vmatmul.mubr.msk.bf16.gmra.mxu1 %vm868_vm3, %v5993_v3  ;;  %v2844_v17 = vpop.f32.mrf.mxu0  ;;  %5492 = vmatmul.mubr.msk.bf16.gmra.mxu0 %vm868_vm3, %v5993_v3 }
 0x2da   : > { %1815 = vst.msk [vmem:[#allocation2 + $0x166] sm:$0xff] %vm764_vm4, %v1782_v61  ;;  %v2066_v58 = vadd.f32 %v2033_v25, %v1899_v63  ;;  %v3011_v15 = vadd.f32 %v2978_v42, %v2844_v17  ;;  %5255 = vmatprep.mubr.msk.bf16.mxu1 %vm5690_vm2, %v7751_v23  ;;  %5495 = vmatprep.mubr.msk.bf16.mxu0 %vm5690_vm2, %v7751_v23  ;;  %v2035_v42 = vld [vmem:[#allocation2 + $0x6a] sm:$0xff] }
 0x2db   : > { %v1750_v21 = vld [vmem:[#allocation2 + $0x16e] sm:$0xff]  ;;  %v5065_v37 = vpop.f32.mrf.mxu1  ;;  %v5305_v41 = vpop.f32.mrf.mxu0 }
 0x2dc   : > { %v1783_v49 = vadd.f32 %v1750_v21, %v6581_v47  ;;  %2099 = vst.msk [vmem:[#allocation2 + $0x5a] sm:$0xff] %vm764_vm4, %v2066_v58  ;;  %3044 = vst.msk [vmem:[#allocation2 + $0x44] sm:$0xff] %vm764_vm4, %v3011_v15  ;;  %v6946_v58 = vld [vmem:[%s7743_s3] ss:$0 sm:$0xff]  ;;  %v7753_v41 = vld [vmem:[#allocation3_spill] sm:$0xff] }
 0x2dd   : > { %v1902_v63 = vpop.f32.mrf.mxu1  ;;  %v2847_v30 = vpop.f32.mrf.mxu0 }
 0x2de   : > { %1816 = vst.msk [vmem:[#allocation2 + $0x16e] sm:$0xff] %vm764_vm4, %v1783_v49  ;;  %v2067_v24 = vadd.f32 %v2034_v22, %v1902_v63  ;;  %v3012_v14 = vadd.f32 %v2979_v34, %v2847_v30  ;;  %v2036_v30 = vld [vmem:[#allocation2 + $0x72] sm:$0xff] }
 0x2df   : > { %v5066_v57 = vpop.f32.mrf.mxu1  ;;  %v5306_v25 = vpop.f32.mrf.mxu0 }
 0x2e0   : > { %2100 = vst.msk [vmem:[#allocation2 + $0x62] sm:$0xff] %vm764_vm4, %v2067_v24  ;;  %3045 = vst.msk [vmem:[#allocation2 + $0x4c] sm:$0xff] %vm764_vm4, %v3012_v14 }
 0x2e1   : > { %v1907_v47 = vpop.f32.mrf.mxu1  ;;  %5256 = vmatmul.mubr.msk.bf16.gmra.mxu1 %vm868_vm3, %v6116_v11  ;;  %v6935_v61 = vpop.f32.mrf.mxu0  ;;  %5496 = vmatmul.mubr.msk.bf16.gmra.mxu0 %vm868_vm3, %v6116_v11 }
 0x2e2   : > { %v2068_v17 = vadd.f32 %v2035_v42, %v1907_v47  ;;  %5259 = vmatprep.mubr.msk.bf16.mxu1 %vm5690_vm2, %v7751_v23  ;;  %5499 = vmatprep.mubr.msk.bf16.mxu0 %vm5690_vm2, %v7751_v23 }
 0x2e3   : > { %v5069_v15 = vpop.f32.mrf.mxu1  ;;  %v5309_v21 = vpop.f32.mrf.mxu0  ;;  %v2348_v37 = vld [vmem:[#allocation2 + $0x59] sm:$0xff] }
 0x2e4   : > { %2101 = vst.msk [vmem:[#allocation2 + $0x6a] sm:$0xff] %vm764_vm4, %v2068_v17  ;;  %v2381_v22 = vadd.f32 %v2348_v37, %v7753_v41  ;;  %v7754_v37 = vld [vmem:[#allocation4_spill] sm:$0xff] }
 0x2e5   : > { %v3752_v34 = vld [vmem:[#allocation2 + $0x168] sm:$0xff]  ;;  %v3753_v49 = vld [vmem:[#allocation2 + $0x170] sm:$0xff]  ;;  %v1910_v63 = vpop.f32.mrf.mxu1  ;;  %v6951_v24 = vpop.f32.mrf.mxu0 }
 0x2e6   : > { %v3814_v14 = vadd.f32 %v6946_v58, %v3752_v34  ;;  %v3815_v57 = vadd.f32 %v6946_v58, %v3753_v49  ;;  %v2069_v25 = vadd.f32 %v2036_v30, %v1910_v63  ;;  %2414 = vst.msk [vmem:[#allocation2 + $0x59] sm:$0xff] %vm764_vm4, %v2381_v22  ;;  %v2037_v49 = vld [vmem:[#allocation2 + $0x7a] sm:$0xff] }
 0x2e7   : > { %v5070_v47 = vpop.f32.mrf.mxu1  ;;  %v5310_v42 = vpop.f32.mrf.mxu0  ;;  %v2349_v15 = vld [vmem:[#allocation2 + $0x61] sm:$0xff] }
 0x2e8   : > { %v3869_v17 = vmax.f32 %v3814_v14, 0.0  ;;  %v3870_v21 = vmax.f32 %v3815_v57, 0.0  ;;  %2102 = vst.msk [vmem:[#allocation2 + $0x72] sm:$0xff] %vm764_vm4, %v2069_v25  ;;  %v2382_v41 = vadd.f32 %v2349_v15, %v7754_v37  ;;  %v7755_v42 = vld [vmem:[#allocation5_spill] sm:$0xff] }
 0x2e9   : > { %v1915_v34 = vpop.f32.mrf.mxu1  ;;  %5260 = vmatmul.mubr.msk.bf16.gmra.mxu1 %vm868_vm3, %v6126_v19  ;;  %v6965_v22 = vpop.f32.mrf.mxu0  ;;  %5500 = vmatmul.mubr.msk.bf16.gmra.mxu0 %vm868_vm3, %v6126_v19 }
 0x2ea   : > { %v4594_v63 = vpack.c.bf16 %v3869_v17, %v3869_v17  ;;  %v4595_v30 = vpack.c.bf16 %v3870_v21, %v3870_v21  ;;  %v2070_v14 = vadd.f32 %v2037_v49, %v1915_v34  ;;  %5263 = vmatprep.mubr.msk.bf16.mxu1 %vm5690_vm2, %v7751_v23  ;;  %5503 = vmatprep.mubr.msk.bf16.mxu0 %vm5690_vm2, %v7751_v23  ;;  %v2038_v21 = vld [vmem:[#allocation2 + $0x82] sm:$0xff] }
 0x2eb   : > { %2415 = vst.msk [vmem:[#allocation2 + $0x61] sm:$0xff] %vm764_vm4, %v2382_v41  ;;  %v5073_v57 = vpop.f32.mrf.mxu1  ;;  %v5313_v25 = vpop.f32.mrf.mxu0  ;;  %v2350_v47 = vld [vmem:[#allocation2 + $0x69] sm:$0xff] }
 0x2ec   : > { %4146 = vst.msk [vmem:[%s6961_s17 + $0xb4] sm:$0xf] %vm4100_vm5, %v4594_v63  ;;  %4147 = vst.msk [vmem:[%s6961_s17 + $0xb8] sm:$0xf] %vm4100_vm5, %v4595_v30  ;;  %v2383_v15 = vadd.f32 %v2350_v47, %v7755_v42  ;;  %v2039_v30 = vld [vmem:[#allocation2 + $0x8a] sm:$0xff] }
 0x2ed   : > { %2103 = vst.msk [vmem:[#allocation2 + $0x7a] sm:$0xff] %vm764_vm4, %v2070_v14  ;;  %v1918_v17 = vpop.f32.mrf.mxu1  ;;  %v6980_v37 = vpop.f32.mrf.mxu0 }
 0x2ee   : > { %v2071_v34 = vadd.f32 %v2038_v21, %v1918_v17  ;;  %2416 = vst.msk [vmem:[#allocation2 + $0x69] sm:$0xff] %vm764_vm4, %v2383_v15 }
 0x2ef   : > { %v5074_v49 = vpop.f32.mrf.mxu1  ;;  %v5314_v41 = vpop.f32.mrf.mxu0  ;;  %v2351_v57 = vld [vmem:[#allocation2 + $0x71] sm:$0xff] }
 0x2f0   : > { %2104 = vst.msk [vmem:[#allocation2 + $0x82] sm:$0xff] %vm764_vm4, %v2071_v34  ;;  %v2384_v63 = vadd.f32 %v2351_v57, %v6618_v8  ;;  %v2040_v34 = vld [vmem:[#allocation2 + $0x92] sm:$0xff] }
 0x2f1   : > { %v1923_v25 = vpop.f32.mrf.mxu1  ;;  %5264 = vmatmul.mubr.msk.bf16.gmra.mxu1 %vm868_vm3, %v6136_v27  ;;  %v6987_v14 = vpop.f32.mrf.mxu0  ;;  %5504 = vmatmul.mubr.msk.bf16.gmra.mxu0 %vm868_vm3, %v6136_v27 }
 0x2f2   : > { %v2072_v47 = vadd.f32 %v2039_v30, %v1923_v25  ;;  %5267 = vmatprep.mubr.msk.bf16.mxu1 %vm5690_vm2, %v7751_v23  ;;  %5507 = vmatprep.mubr.msk.bf16.mxu0 %vm5690_vm2, %v7751_v23  ;;  %2417 = vst.msk [vmem:[#allocation2 + $0x71] sm:$0xff] %vm764_vm4, %v2384_v63 }
 0x2f3   : > { %v5077_v8 = vpop.f32.mrf.mxu1  ;;  %v5317_v42 = vpop.f32.mrf.mxu0 }
 0x2f4   : > { %v2352_v15 = vld [vmem:[#allocation2 + $0x79] sm:$0xff]  ;;  %2105 = vst.msk [vmem:[#allocation2 + $0x8a] sm:$0xff] %vm764_vm4, %v2072_v47 }
 0x2f5   : > { %v2385_v17 = vadd.f32 %v2352_v15, %v6625_v32  ;;  %v1926_v21 = vpop.f32.mrf.mxu1  ;;  %v6998_v49 = vpop.f32.mrf.mxu0  ;;  %v2041_v42 = vld [vmem:[#allocation2 + $0x9a] sm:$0xff] }
 0x2f6   : > { %v2073_v41 = vadd.f32 %v2040_v34, %v1926_v21 }
 0x2f7   : > { %2418 = vst.msk [vmem:[#allocation2 + $0x79] sm:$0xff] %vm764_vm4, %v2385_v17  ;;  %v5078_v57 = vpop.f32.mrf.mxu1  ;;  %v5318_v25 = vpop.f32.mrf.mxu0  ;;  %v2353_v30 = vld [vmem:[#allocation2 + $0x81] sm:$0xff] }
 0x2f8   : > { %2106 = vst.msk [vmem:[#allocation2 + $0x92] sm:$0xff] %vm764_vm4, %v2073_v41  ;;  %v2386_v63 = vadd.f32 %v2353_v30, %v6636_v7  ;;  %v2042_v41 = vld [vmem:[#allocation2 + $0xa2] sm:$0xff] }
 0x2f9   : > { %v1931_v8 = vpop.f32.mrf.mxu1  ;;  %5268 = vmatmul.mubr.msk.bf16.gmra.mxu1 %vm868_vm3, %v6146_v35  ;;  %v7005_v32 = vpop.f32.mrf.mxu0  ;;  %5508 = vmatmul.mubr.msk.bf16.gmra.mxu0 %vm868_vm3, %v6146_v35 }
 0x2fa   : > { %v2074_v47 = vadd.f32 %v2041_v42, %v1931_v8  ;;  %5271 = vmatprep.mubr.msk.bf16.mxu1 %vm5690_vm2, %v7751_v23  ;;  %5511 = vmatprep.mubr.msk.bf16.mxu0 %vm5690_vm2, %v7751_v23  ;;  %2419 = vst.msk [vmem:[#allocation2 + $0x81] sm:$0xff] %vm764_vm4, %v2386_v63 }
 0x2fb   : > { %v5081_v7 = vpop.f32.mrf.mxu1  ;;  %v5321_v15 = vpop.f32.mrf.mxu0  ;;  %v2354_v17 = vld [vmem:[#allocation2 + $0x89] sm:$0xff] }
 0x2fc   : > { %2107 = vst.msk [vmem:[#allocation2 + $0x9a] sm:$0xff] %vm764_vm4, %v2074_v47  ;;  %v2387_v21 = vadd.f32 %v2354_v17, %v6643_v48  ;;  %v2043_v15 = vld [vmem:[#allocation2 + $0xaa] sm:$0xff] }
 0x2fd   : > { %v1934_v34 = vpop.f32.mrf.mxu1  ;;  %v7016_v57 = vpop.f32.mrf.mxu0 }
 0x2fe   : > { %v2075_v25 = vadd.f32 %v2042_v41, %v1934_v34  ;;  %2420 = vst.msk [vmem:[#allocation2 + $0x89] sm:$0xff] %vm764_vm4, %v2387_v21 }
 0x2ff   : > { %v5082_v30 = vpop.f32.mrf.mxu1  ;;  %v5322_v8 = vpop.f32.mrf.mxu0  ;;  %v2355_v42 = vld [vmem:[#allocation2 + $0x91] sm:$0xff] }
 0x300   : > { %2108 = vst.msk [vmem:[#allocation2 + $0xa2] sm:$0xff] %vm764_vm4, %v2075_v25  ;;  %v2388_v63 = vadd.f32 %v2355_v42, %v6654_v12  ;;  %v2044_v25 = vld [vmem:[#allocation2 + $0xb2] sm:$0xff] }
 0x301   : > { %v1939_v7 = vpop.f32.mrf.mxu1  ;;  %5272 = vmatmul.mubr.msk.bf16.gmra.mxu1 %vm868_vm3, %v6156_v43  ;;  %v7023_v48 = vpop.f32.mrf.mxu0  ;;  %5512 = vmatmul.mubr.msk.bf16.gmra.mxu0 %vm868_vm3, %v6156_v43 }
 0x302   : > { %v2076_v47 = vadd.f32 %v2043_v15, %v1939_v7  ;;  %5275 = vmatprep.mubr.msk.bf16.mxu1 %vm5690_vm2, %v7751_v23  ;;  %5515 = vmatprep.mubr.msk.bf16.mxu0 %vm5690_vm2, %v7751_v23  ;;  %2421 = vst.msk [vmem:[#allocation2 + $0x91] sm:$0xff] %vm764_vm4, %v2388_v63 }
 0x303   : > { %v5085_v12 = vpop.f32.mrf.mxu1  ;;  %v5325_v17 = vpop.f32.mrf.mxu0  ;;  %v2356_v21 = vld [vmem:[#allocation2 + $0x99] sm:$0xff] }
 0x304   : > { %2109 = vst.msk [vmem:[#allocation2 + $0xaa] sm:$0xff] %vm764_vm4, %v2076_v47  ;;  %v2389_v34 = vadd.f32 %v2356_v21, %v6661_v0  ;;  %v2045_v17 = vld [vmem:[#allocation2 + $0xba] sm:$0xff] }
 0x305   : > { %v1942_v41 = vpop.f32.mrf.mxu1  ;;  %v7034_v30 = vpop.f32.mrf.mxu0 }
 0x306   : > { %v2077_v8 = vadd.f32 %v2044_v25, %v1942_v41  ;;  %2422 = vst.msk [vmem:[#allocation2 + $0x99] sm:$0xff] %vm764_vm4, %v2389_v34 }
 0x307   : > { %v5086_v42 = vpop.f32.mrf.mxu1  ;;  %v5326_v7 = vpop.f32.mrf.mxu0  ;;  %v2357_v15 = vld [vmem:[#allocation2 + $0xa1] sm:$0xff] }
 0x308   : > { %2110 = vst.msk [vmem:[#allocation2 + $0xb2] sm:$0xff] %vm764_vm4, %v2077_v8  ;;  %v2390_v63 = vadd.f32 %v2357_v15, %v6672_v38  ;;  %v2046_v8 = vld [vmem:[#allocation2 + $0xc2] sm:$0xff] }
 0x309   : > { %v1947_v12 = vpop.f32.mrf.mxu1  ;;  %5276 = vmatmul.mubr.msk.bf16.gmra.mxu1 %vm868_vm3, %v6166_v51  ;;  %v7041_v0 = vpop.f32.mrf.mxu0  ;;  %5516 = vmatmul.mubr.msk.bf16.gmra.mxu0 %vm868_vm3, %v6166_v51 }
 0x30a   : > { %v2078_v47 = vadd.f32 %v2045_v17, %v1947_v12  ;;  %5279 = vmatprep.mubr.msk.bf16.mxu1 %vm5690_vm2, %v7751_v23  ;;  %5519 = vmatprep.mubr.msk.bf16.mxu0 %vm5690_vm2, %v7751_v23  ;;  %2423 = vst.msk [vmem:[#allocation2 + $0xa1] sm:$0xff] %vm764_vm4, %v2390_v63 }
 0x30b   : > { %v5089_v38 = vpop.f32.mrf.mxu1  ;;  %v5329_v21 = vpop.f32.mrf.mxu0  ;;  %v2358_v34 = vld [vmem:[#allocation2 + $0xa9] sm:$0xff] }
 0x30c   : > { %2111 = vst.msk [vmem:[#allocation2 + $0xba] sm:$0xff] %vm764_vm4, %v2078_v47  ;;  %v2391_v41 = vadd.f32 %v2358_v34, %v6679_v18  ;;  %v2047_v21 = vld [vmem:[#allocation2 + $0xca] sm:$0xff] }
 0x30d   : > { %v1950_v25 = vpop.f32.mrf.mxu1  ;;  %v7052_v42 = vpop.f32.mrf.mxu0 }
 0x30e   : > { %v2079_v7 = vadd.f32 %v2046_v8, %v1950_v25  ;;  %2424 = vst.msk [vmem:[#allocation2 + $0xa9] sm:$0xff] %vm764_vm4, %v2391_v41 }
 0x30f   : > { %v5090_v15 = vpop.f32.mrf.mxu1  ;;  %v5330_v12 = vpop.f32.mrf.mxu0  ;;  %v2359_v17 = vld [vmem:[#allocation2 + $0xb1] sm:$0xff] }
 0x310   : > { %2112 = vst.msk [vmem:[#allocation2 + $0xc2] sm:$0xff] %vm764_vm4, %v2079_v7  ;;  %v2392_v63 = vadd.f32 %v2359_v17, %v6690_v54  ;;  %v2048_v7 = vld [vmem:[#allocation2 + $0xd2] sm:$0xff] }
 0x311   : > { %v1955_v38 = vpop.f32.mrf.mxu1  ;;  %5280 = vmatmul.mubr.msk.bf16.gmra.mxu1 %vm868_vm3, %v6176_v59  ;;  %v7059_v18 = vpop.f32.mrf.mxu0  ;;  %5520 = vmatmul.mubr.msk.bf16.gmra.mxu0 %vm868_vm3, %v6176_v59 }
 0x312   : > { %v2080_v47 = vadd.f32 %v2047_v21, %v1955_v38  ;;  %5283 = vmatprep.mubr.msk.bf16.mxu1 %vm5690_vm2, %v7751_v23  ;;  %5523 = vmatprep.mubr.msk.bf16.mxu0 %vm5690_vm2, %v7751_v23  ;;  %2425 = vst.msk [vmem:[#allocation2 + $0xb1] sm:$0xff] %vm764_vm4, %v2392_v63 }
 0x313   : > { %v5093_v54 = vpop.f32.mrf.mxu1  ;;  %v5333_v34 = vpop.f32.mrf.mxu0  ;;  %v2360_v41 = vld [vmem:[#allocation2 + $0xb9] sm:$0xff] }
 0x314   : > { %2113 = vst.msk [vmem:[#allocation2 + $0xca] sm:$0xff] %vm764_vm4, %v2080_v47  ;;  %v2393_v25 = vadd.f32 %v2360_v41, %v6697_v36  ;;  %v2049_v34 = vld [vmem:[#allocation2 + $0xda] sm:$0xff] }
 0x315   : > { %v1958_v8 = vpop.f32.mrf.mxu1  ;;  %v7070_v15 = vpop.f32.mrf.mxu0 }
 0x316   : > { %v2081_v12 = vadd.f32 %v2048_v7, %v1958_v8  ;;  %2426 = vst.msk [vmem:[#allocation2 + $0xb9] sm:$0xff] %vm764_vm4, %v2393_v25 }
 0x317   : > { %v5094_v17 = vpop.f32.mrf.mxu1  ;;  %v5334_v38 = vpop.f32.mrf.mxu0  ;;  %v2361_v21 = vld [vmem:[#allocation2 + $0xc1] sm:$0xff] }
 0x318   : > { %2114 = vst.msk [vmem:[#allocation2 + $0xd2] sm:$0xff] %vm764_vm4, %v2081_v12  ;;  %v2394_v63 = vadd.f32 %v2361_v21, %v6708_v40  ;;  %v2050_v12 = vld [vmem:[#allocation2 + $0xe2] sm:$0xff] }
 0x319   : > { %v1963_v54 = vpop.f32.mrf.mxu1  ;;  %5284 = vmatmul.mubr.msk.bf16.gmra.mxu1 %vm868_vm3, %v6186_v4  ;;  %v7077_v36 = vpop.f32.mrf.mxu0  ;;  %5524 = vmatmul.mubr.msk.bf16.gmra.mxu0 %vm868_vm3, %v6186_v4 }
 0x31a   : > { %v2082_v47 = vadd.f32 %v2049_v34, %v1963_v54  ;;  %5287 = vmatprep.mubr.msk.bf16.mxu1 %vm5690_vm2, %v7751_v23  ;;  %2427 = vst.msk [vmem:[#allocation2 + $0xc1] sm:$0xff] %vm764_vm4, %v2394_v63 }
 0x31b   : > { %v5097_v41 = vpop.f32.mrf.mxu1  ;;  %v5337_v25 = vpop.f32.mrf.mxu0  ;;  %v2362_v8 = vld [vmem:[#allocation2 + $0xc9] sm:$0xff] }
 0x31c   : > { %2115 = vst.msk [vmem:[#allocation2 + $0xda] sm:$0xff] %vm764_vm4, %v2082_v47  ;;  %v2395_v40 = vadd.f32 %v2362_v8, %v6715_v55  ;;  %v2051_v25 = vld [vmem:[#allocation2 + $0xea] sm:$0xff] }
 0x31d   : > { %v1966_v7 = vpop.f32.mrf.mxu1  ;;  %v7086_v17 = vpop.f32.mrf.mxu0 }
 0x31e   : > { %v2083_v38 = vadd.f32 %v2050_v12, %v1966_v7  ;;  %2428 = vst.msk [vmem:[#allocation2 + $0xc9] sm:$0xff] %vm764_vm4, %v2395_v40 }
 0x31f   : > { %v5098_v21 = vpop.f32.mrf.mxu1  ;;  %v5338_v54 = vpop.f32.mrf.mxu0  ;;  %v2363_v34 = vld [vmem:[#allocation2 + $0xd1] sm:$0xff] }
 0x320   : > { %2116 = vst.msk [vmem:[#allocation2 + $0xe2] sm:$0xff] %vm764_vm4, %v2083_v38  ;;  %v2396_v63 = vadd.f32 %v2363_v34, %v6726_v56  ;;  %v2052_v38 = vld [vmem:[#allocation2 + $0xf2] sm:$0xff] }
 0x321   : > { %v1971_v41 = vpop.f32.mrf.mxu1  ;;  %5288 = vmatmul.mubr.msk.bf16.gmra.mxu1 %vm868_vm3, %v6196_v10  ;;  %v7093_v55 = vpop.f32.mrf.mxu0 }
 0x322   : > { %7756 = vst [vmem:[#allocation3_spill] sm:$0xff] %v7093_v55  ;;  %v2084_v47 = vadd.f32 %v2051_v25, %v1971_v41  ;;  %5383 = vmatprep.mubr.msk.bf16.mxu1 %vm5690_vm2, %v7751_v23  ;;  %2429 = vst.msk [vmem:[#allocation2 + $0xd1] sm:$0xff] %vm764_vm4, %v2396_v63 }
 0x323   : > { %v5101_v8 = vpop.f32.mrf.mxu1  ;;  %v5341_v40 = vpop.f32.mrf.mxu0  ;;  %v2364_v7 = vld [vmem:[#allocation2 + $0xd9] sm:$0xff] }
 0x324   : > { %2117 = vst.msk [vmem:[#allocation2 + $0xea] sm:$0xff] %vm764_vm4, %v2084_v47  ;;  %v2397_v56 = vadd.f32 %v2364_v7, %v6733_v13  ;;  %v2053_v40 = vld [vmem:[#allocation2 + $0xfa] sm:$0xff]  ;;  %v5672_v47 = vld [vmem:[%s7742_s2 + $0x1a8] sm:$0xff]  }
 0x325   : > { %v1974_v12 = vpop.f32.mrf.mxu1  ;;  %v7100_v21 = vpop.f32.mrf.mxu0 }
 0x326   : > { %v2085_v54 = vadd.f32 %v2052_v38, %v1974_v12  ;;  %2430 = vst.msk [vmem:[#allocation2 + $0xd9] sm:$0xff] %vm764_vm4, %v2397_v56  ;;  %v2054_v38 = vld [vmem:[#allocation2 + $0x102] sm:$0xff] }
 0x327   : > { %v5102_v34 = vpop.f32.mrf.mxu1  ;;  %v5342_v41 = vpop.f32.mrf.mxu0  ;;  %v2365_v25 = vld [vmem:[#allocation2 + $0xe1] sm:$0xff] }
 0x328   : > { %2118 = vst.msk [vmem:[#allocation2 + $0xf2] sm:$0xff] %vm764_vm4, %v2085_v54  ;;  %v2398_v63 = vadd.f32 %v2365_v25, %v6744_v9  ;;  %v5673_v41 = vld [vmem:[%s7742_s2 + $0x1a0] sm:$0xff]  }
 0x329   : > { %v1979_v8 = vpop.f32.mrf.mxu1  ;;  %v7105_v55 = vpop.f32.mrf.mxu0  ;;  %5384 = vmatmul.mubr.msk.bf16.vlgmr.msra.gmra.mxu1 %vm868_vm3, %v5878_v6 }
 0x32a   : > { %v2086_v13 = vadd.f32 %v2053_v40, %v1979_v8  ;;  %5537 = vmatpush3.bf16.msra.mxu1 %v5672_v47  ;;  %5387 = vmatprep.mubr.msk.bf16.mxu1 %vm5690_vm2, %v7751_v23  ;;  %2431 = vst.msk [vmem:[#allocation2 + $0xe1] sm:$0xff] %vm764_vm4, %v2398_v63 }
 0x32b   : > { %v5105_v7 = vpop.f32.mrf.mxu1  ;;  %v5345_v9 = vpop.f32.mrf.mxu0  ;;  %5532 = vmatprep.subr.bf16.mxu1 %v7751_v23  ;;  %v2366_v56 = vld [vmem:[#allocation2 + $0xe9] sm:$0xff] }
 0x32c   : > { %2119 = vst.msk [vmem:[#allocation2 + $0xfa] sm:$0xff] %vm764_vm4, %v2086_v13  ;;  %v2399_v6 = vadd.f32 %v2366_v56, %v6751_v33  ;;  %v2055_v13 = vld [vmem:[#allocation2 + $0x10a] sm:$0xff]  ;;  %v5674_v9 = vld [vmem:[%s7742_s2 + $0x198] sm:$0xff]  }
 0x32d   : > { %v1982_v12 = vpop.f32.mrf.mxu1  ;;  %v7118_v54 = vpop.f32.mrf.mxu0 }
 0x32e   : > { %v2087_v34 = vadd.f32 %v2054_v38, %v1982_v12  ;;  %5538 = vmatpush3.bf16.msra.mxu1 %v5673_v41  ;;  %2432 = vst.msk [vmem:[#allocation2 + $0xe9] sm:$0xff] %vm764_vm4, %v2399_v6  ;;  %v2056_v38 = vld [vmem:[#allocation2 + $0x112] sm:$0xff] }
 0x32f   : > { %v5106_v25 = vpop.f32.mrf.mxu1  ;;  %v5346_v63 = vpop.f32.mrf.mxu0  ;;  %5533 = vmatprep.subr.bf16.mxu1 %v7751_v23  ;;  %v2367_v8 = vld [vmem:[#allocation2 + $0xf1] sm:$0xff] }
 0x330   : > { %2120 = vst.msk [vmem:[#allocation2 + $0x102] sm:$0xff] %vm764_vm4, %v2087_v34  ;;  %v2400_v33 = vadd.f32 %v2367_v8, %v6762_v26  ;;  %v5675_v25 = vld [vmem:[%s7742_s2 + $0x190] sm:$0xff]  }
 0x331   : > { %v1987_v40 = vpop.f32.mrf.mxu1  ;;  %v7127_v47 = vpop.f32.mrf.mxu0  ;;  %5388 = vmatmul.mubr.msk.bf16.gmra.mxu1 %vm868_vm3, %v5899_v16 }
 0x332   : > { %v2088_v7 = vadd.f32 %v2055_v13, %v1987_v40  ;;  %5391 = vmatprep.mubr.msk.bf16.mxu1 %vm5690_vm2, %v7751_v23  ;;  %5539 = vmatpush3.bf16.msra.mxu1 %v5674_v9  ;;  %2433 = vst.msk [vmem:[#allocation2 + $0xf1] sm:$0xff] %vm764_vm4, %v2400_v33  ;;  %v2057_v13 = vld [vmem:[#allocation2 + $0x11a] sm:$0xff] }
 0x333   : > { %v5109_v56 = vpop.f32.mrf.mxu1  ;;  %v5349_v26 = vpop.f32.mrf.mxu0  ;;  %5534 = vmatprep.subr.bf16.mxu1 %v7751_v23  ;;  %v2368_v6 = vld [vmem:[#allocation2 + $0xf9] sm:$0xff] }
 0x334   : > { %2121 = vst.msk [vmem:[#allocation2 + $0x10a] sm:$0xff] %vm764_vm4, %v2088_v7  ;;  %v2401_v16 = vadd.f32 %v2368_v6, %v6770_v44  ;;  %v5676_v56 = vld [vmem:[%s7742_s2 + $0x188] sm:$0xff]  }
 0x335   : > { %v1990_v12 = vpop.f32.mrf.mxu1  ;;  %v7140_v34 = vpop.f32.mrf.mxu0 }
 0x336   : > { %v2089_v41 = vadd.f32 %v2056_v38, %v1990_v12  ;;  %5540 = vmatpush3.bf16.msra.mxu1 %v5675_v25  ;;  %2434 = vst.msk [vmem:[#allocation2 + $0xf9] sm:$0xff] %vm764_vm4, %v2401_v16  ;;  %v2058_v12 = vld [vmem:[#allocation2 + $0x122] sm:$0xff] }
 0x337   : > { %v5110_v63 = vpop.f32.mrf.mxu1  ;;  %v5350_v8 = vpop.f32.mrf.mxu0  ;;  %5535 = vmatprep.subr.bf16.mxu1 %v7751_v23  ;;  %v2369_v33 = vld [vmem:[#allocation2 + $0x101] sm:$0xff] }
 0x338   : > { %2122 = vst.msk [vmem:[#allocation2 + $0x112] sm:$0xff] %vm764_vm4, %v2089_v41  ;;  %v2402_v44 = vadd.f32 %v2369_v33, %v6787_v1  ;;  %v5677_v25 = vld [vmem:[%s7742_s2 + $0x180] sm:$0xff]  }
 0x339   : > { %v1995_v40 = vpop.f32.mrf.mxu1  ;;  %v7149_v7 = vpop.f32.mrf.mxu0  ;;  %5392 = vmatmul.mubr.msk.bf16.gmra.mxu1 %vm868_vm3, %v5925_v28 }
 0x33a   : > { %v2090_v9 = vadd.f32 %v2057_v13, %v1995_v40  ;;  %5395 = vmatprep.mubr.msk.bf16.mxu1 %vm5690_vm2, %v7751_v23  ;;  %5541 = vmatpush3.bf16.msra.mxu1 %v5676_v56  ;;  %2435 = vst.msk [vmem:[#allocation2 + $0x101] sm:$0xff] %vm764_vm4, %v2402_v44  ;;  %v2059_v40 = vld [vmem:[#allocation2 + $0x12a] sm:$0xff] }
 0x33b   : > { %v5113_v26 = vpop.f32.mrf.mxu1  ;;  %v5353_v1 = vpop.f32.mrf.mxu0  ;;  %5536 = vmatprep.subr.bf16.mxu1 %v7751_v23  ;;  %v2370_v6 = vld [vmem:[#allocation2 + $0x109] sm:$0xff] }
 0x33c   : > { %2123 = vst.msk [vmem:[#allocation2 + $0x11a] sm:$0xff] %vm764_vm4, %v2090_v9  ;;  %v2403_v28 = vadd.f32 %v2370_v6, %v6796_v62 }
 0x33d   : > { %v1998_v16 = vpop.f32.mrf.mxu1  ;;  %v7162_v38 = vpop.f32.mrf.mxu0 }
 0x33e   : > { %v2091_v41 = vadd.f32 %v2058_v12, %v1998_v16  ;;  %5542 = vmatpush3.bf16.msra.mxu1 %v5677_v25  ;;  %2436 = vst.msk [vmem:[#allocation2 + $0x109] sm:$0xff] %vm764_vm4, %v2403_v28  ;;  %v2060_v28 = vld [vmem:[#allocation2 + $0x132] sm:$0xff] }
 0x33f   : > { %v5114_v63 = vpop.f32.mrf.mxu1  ;;  %v5354_v8 = vpop.f32.mrf.mxu0  ;;  %v2371_v33 = vld [vmem:[#allocation2 + $0x111] sm:$0xff] }
 0x340   : > { %2124 = vst.msk [vmem:[#allocation2 + $0x122] sm:$0xff] %vm764_vm4, %v2091_v41  ;;  %v2404_v44 = vadd.f32 %v2371_v33, %v6813_v31  ;;  %v2061_v33 = vld [vmem:[#allocation2 + $0x13a] sm:$0xff] }
 0x341   : > { %v2003_v62 = vpop.f32.mrf.mxu1  ;;  %v7170_v13 = vpop.f32.mrf.mxu0  ;;  %5396 = vmatmul.mubr.msk.bf16.gmra.mxu1 %vm868_vm3, %v5951_v39 }
 0x342   : > { %v2092_v9 = vadd.f32 %v2059_v40, %v2003_v62  ;;  %5399 = vmatprep.mubr.msk.bf16.mxu1 %vm5690_vm2, %v7751_v23  ;;  %2437 = vst.msk [vmem:[#allocation2 + $0x111] sm:$0xff] %vm764_vm4, %v2404_v44 }
 0x343   : > { %v5117_v56 = vpop.f32.mrf.mxu1  ;;  %v5357_v26 = vpop.f32.mrf.mxu0  ;;  %v2372_v1 = vld [vmem:[#allocation2 + $0x119] sm:$0xff] }
 0x344   : > { %2125 = vst.msk [vmem:[#allocation2 + $0x12a] sm:$0xff] %vm764_vm4, %v2092_v9  ;;  %v2405_v31 = vadd.f32 %v2372_v1, %v6822_v45  ;;  %v2062_v26 = vld [vmem:[#allocation2 + $0x142] sm:$0xff] }
 0x345   : > { %v2006_v6 = vpop.f32.mrf.mxu1  ;;  %v7179_v16 = vpop.f32.mrf.mxu0 }
 0x346   : > { %v2093_v12 = vadd.f32 %v2060_v28, %v2006_v6  ;;  %2438 = vst.msk [vmem:[#allocation2 + $0x119] sm:$0xff] %vm764_vm4, %v2405_v31 }
 0x347   : > { %v5118_v39 = vpop.f32.mrf.mxu1  ;;  %v5358_v41 = vpop.f32.mrf.mxu0  ;;  %v2373_v25 = vld [vmem:[#allocation2 + $0x121] sm:$0xff] }
 0x348   : > { %2126 = vst.msk [vmem:[#allocation2 + $0x132] sm:$0xff] %vm764_vm4, %v2093_v12  ;;  %v2406_v63 = vadd.f32 %v2373_v25, %v6839_v52  ;;  %v2063_v41 = vld [vmem:[#allocation2 + $0x14a] sm:$0xff] }
 0x349   : > { %v2011_v8 = vpop.f32.mrf.mxu1  ;;  %v7184_v44 = vpop.f32.mrf.mxu0  ;;  %5400 = vmatmul.mubr.msk.bf16.gmra.mxu1 %vm868_vm3, %v5963_v46 }
 0x34a   : > { %v2094_v45 = vadd.f32 %v2061_v33, %v2011_v8  ;;  %5403 = vmatprep.mubr.msk.bf16.mxu1 %vm5690_vm2, %v7751_v23  ;;  %2439 = vst.msk [vmem:[#allocation2 + $0x121] sm:$0xff] %vm764_vm4, %v2406_v63 }
 0x34b   : > { %v5121_v62 = vpop.f32.mrf.mxu1  ;;  %v5361_v40 = vpop.f32.mrf.mxu0  ;;  %v2374_v9 = vld [vmem:[#allocation2 + $0x129] sm:$0xff] }
 0x34c   : > { %2127 = vst.msk [vmem:[#allocation2 + $0x13a] sm:$0xff] %vm764_vm4, %v2094_v45  ;;  %v2407_v52 = vadd.f32 %v2374_v9, %v6845_v2  ;;  %v7757_v45 = vld [vmem:[#allocation6_spill] sm:$0xff] }
 0x34d   : > { %v2014_v56 = vpop.f32.mrf.mxu1  ;;  %v7193_v1 = vpop.f32.mrf.mxu0  ;;  %v2064_v40 = vld [vmem:[#allocation2 + $0x152] sm:$0xff] }
 0x34e   : > { %v2095_v31 = vadd.f32 %v2062_v26, %v2014_v56  ;;  %2440 = vst.msk [vmem:[#allocation2 + $0x129] sm:$0xff] %vm764_vm4, %v2407_v52 }
 0x34f   : > { %v5122_v46 = vpop.f32.mrf.mxu1  ;;  %v5362_v6 = vpop.f32.mrf.mxu0  ;;  %v2375_v28 = vld [vmem:[#allocation2 + $0x131] sm:$0xff] }
 0x350   : > { %2128 = vst.msk [vmem:[#allocation2 + $0x142] sm:$0xff] %vm764_vm4, %v2095_v31  ;;  %v2408_v12 = vadd.f32 %v2375_v28, %v6858_v5  ;;  %v2065_v6 = vld [vmem:[#allocation2 + $0x15a] sm:$0xff] }
 0x351   : > { %v2019_v39 = vpop.f32.mrf.mxu1  ;;  %v7198_v25 = vpop.f32.mrf.mxu0  ;;  %5404 = vmatmul.mubr.msk.bf16.gmra.mxu1 %vm868_vm3, %v5973_v53 }
 0x352   : > { %v2096_v2 = vadd.f32 %v2063_v41, %v2019_v39  ;;  %5407 = vmatprep.mubr.msk.bf16.mxu1 %vm5690_vm2, %v7751_v23  ;;  %2441 = vst.msk [vmem:[#allocation2 + $0x131] sm:$0xff] %vm764_vm4, %v2408_v12 }
 0x353   : > { %v5125_v63 = vpop.f32.mrf.mxu1  ;;  %v5365_v8 = vpop.f32.mrf.mxu0  ;;  %v2376_v33 = vld [vmem:[#allocation2 + $0x139] sm:$0xff] }
 0x354   : > { %2129 = vst.msk [vmem:[#allocation2 + $0x14a] sm:$0xff] %vm764_vm4, %v2096_v2  ;;  %v2409_v5 = vadd.f32 %v2376_v33, %v7757_v45 }
 0x355   : > { %v2022_v62 = vpop.f32.mrf.mxu1  ;;  %v7207_v9 = vpop.f32.mrf.mxu0 }
 0x356   : > { %v2097_v52 = vadd.f32 %v2064_v40, %v2022_v62  ;;  %2442 = vst.msk [vmem:[#allocation2 + $0x139] sm:$0xff] %vm764_vm4, %v2409_v5  ;;  %v2663_v40 = vld [vmem:[#allocation2 + $0x58] sm:$0xff] }
 0x357   : > { %v5126_v53 = vpop.f32.mrf.mxu1  ;;  %v5366_v56 = vpop.f32.mrf.mxu0  ;;  %v2377_v26 = vld [vmem:[#allocation2 + $0x141] sm:$0xff] }
 0x358   : > { %2130 = vst.msk [vmem:[#allocation2 + $0x152] sm:$0xff] %vm764_vm4, %v2097_v52  ;;  %v2410_v31 = vadd.f32 %v2377_v26, %v6876_v29 }
 0x359   : > { %v2027_v46 = vpop.f32.mrf.mxu1  ;;  %v7212_v28 = vpop.f32.mrf.mxu0  ;;  %5408 = vmatmul.mubr.msk.bf16.gmra.mxu1 %vm868_vm3, %v5983_v60 }
 0x35a   : > { %v2098_v12 = vadd.f32 %v2065_v6, %v2027_v46  ;;  %5411 = vmatprep.mubr.msk.bf16.mxu1 %vm5690_vm2, %v7751_v23  ;;  %2443 = vst.msk [vmem:[#allocation2 + $0x141] sm:$0xff] %vm764_vm4, %v2410_v31  ;;  %v7758_v31 = vld [vmem:[#allocation7_spill] sm:$0xff]  ;;  %v2664_v6 = vld [vmem:[#allocation2 + $0x60] sm:$0xff] }
 0x35b   : > { %v5129_v39 = vpop.f32.mrf.mxu1  ;;  %v5369_v41 = vpop.f32.mrf.mxu0  ;;  %v2378_v2 = vld [vmem:[#allocation2 + $0x149] sm:$0xff] }
 0x35c   : > { %2131 = vst.msk [vmem:[#allocation2 + $0x15a] sm:$0xff] %vm764_vm4, %v2098_v12  ;;  %v2411_v29 = vadd.f32 %v2378_v2, %v6881_v20 }
 0x35d   : > { %v2030_v63 = vpop.f32.mrf.mxu1  ;;  %v2975_v8 = vpop.f32.mrf.mxu0 }
 0x35e   : > { %2444 = vst.msk [vmem:[#allocation2 + $0x149] sm:$0xff] %vm764_vm4, %v2411_v29  ;;  %v2665_v29 = vld [vmem:[#allocation2 + $0x68] sm:$0xff] }
 0x35f   : > { %v5130_v33 = vpop.f32.mrf.mxu1  ;;  %v5370_v45 = vpop.f32.mrf.mxu0  ;;  %v2379_v60 = vld [vmem:[#allocation2 + $0x151] sm:$0xff] }
 0x360   : > { %v2412_v5 = vadd.f32 %v2379_v60, %v6894_v50 }
 0x361   : > { %v2529_v62 = vpop.f32.mrf.mxu1  ;;  %5412 = vmatmul.mubr.msk.bf16.gmra.mxu1 %vm868_vm3, %v5993_v3  ;;  %v7225_v52 = vpop.f32.mrf.mxu0 }
 0x362   : > { %v2696_v53 = vadd.f32 %v2663_v40, %v2529_v62  ;;  %5415 = vmatprep.mubr.msk.bf16.mxu1 %vm5690_vm2, %v7751_v23  ;;  %2445 = vst.msk [vmem:[#allocation2 + $0x151] sm:$0xff] %vm764_vm4, %v2412_v5  ;;  %v2666_v40 = vld [vmem:[#allocation2 + $0x70] sm:$0xff] }
 0x363   : > { %v5225_v20 = vpop.f32.mrf.mxu1  ;;  %v5465_v56 = vpop.f32.mrf.mxu0  ;;  %v2380_v26 = vld [vmem:[#allocation2 + $0x159] sm:$0xff] }
 0x364   : > { %2729 = vst.msk [vmem:[#allocation2 + $0x58] sm:$0xff] %vm764_vm4, %v2696_v53  ;;  %v2413_v50 = vadd.f32 %v2380_v26, %v7758_v31 }
 0x365   : > { %v2532_v46 = vpop.f32.mrf.mxu1  ;;  %v7232_v12 = vpop.f32.mrf.mxu0 }
 0x366   : > { %v2697_v3 = vadd.f32 %v2664_v6, %v2532_v46  ;;  %2446 = vst.msk [vmem:[#allocation2 + $0x159] sm:$0xff] %vm764_vm4, %v2413_v50 }
 0x367   : > { %v5226_v39 = vpop.f32.mrf.mxu1  ;;  %v5466_v41 = vpop.f32.mrf.mxu0 }
 0x368   : > { %2730 = vst.msk [vmem:[#allocation2 + $0x60] sm:$0xff] %vm764_vm4, %v2697_v3  ;;  %v2667_v3 = vld [vmem:[#allocation2 + $0x78] sm:$0xff] }
 0x369   : > { %v2537_v2 = vpop.f32.mrf.mxu1  ;;  %5416 = vmatmul.mubr.msk.bf16.gmra.mxu1 %vm868_vm3, %v6116_v11  ;;  %v7238_v63 = vpop.f32.mrf.mxu0 }
 0x36a   : > { %v2698_v8 = vadd.f32 %v2665_v29, %v2537_v2  ;;  %5419 = vmatprep.mubr.msk.bf16.mxu1 %vm5690_vm2, %v7751_v23 }
 0x36b   : > { %v5229_v33 = vpop.f32.mrf.mxu1  ;;  %v5469_v45 = vpop.f32.mrf.mxu0  ;;  %v2980_v60 = vld [vmem:[#allocation2 + $0x54] sm:$0xff] }
 0x36c   : > { %2731 = vst.msk [vmem:[#allocation2 + $0x68] sm:$0xff] %vm764_vm4, %v2698_v8  ;;  %v3013_v5 = vadd.f32 %v2980_v60, %v6935_v61 }
 0x36d   : > { %v2540_v62 = vpop.f32.mrf.mxu1  ;;  %v7244_v53 = vpop.f32.mrf.mxu0  ;;  %v3751_v20 = vld [vmem:[#allocation2 + $0x160] sm:$0xff] }
 0x36e   : > { %v2699_v56 = vadd.f32 %v2666_v40, %v2540_v62  ;;  %v3813_v11 = vadd.f32 %v6946_v58, %v3751_v20  ;;  %3046 = vst.msk [vmem:[#allocation2 + $0x54] sm:$0xff] %vm764_vm4, %v3013_v5 }
 0x36f   : > { %v5230_v26 = vpop.f32.mrf.mxu1  ;;  %v5470_v31 = vpop.f32.mrf.mxu0  ;;  %v2981_v50 = vld [vmem:[#allocation2 + $0x5c] sm:$0xff] }
 0x370   : > { %2732 = vst.msk [vmem:[#allocation2 + $0x70] sm:$0xff] %vm764_vm4, %v2699_v56  ;;  %v3868_v46 = vmax.f32 %v3813_v11, 0.0  ;;  %v3014_v6 = vadd.f32 %v2981_v50, %v6951_v24  ;;  %v2669_v11 = vld [vmem:[#allocation2 + $0x88] sm:$0xff] }
 0x371   : > { %v2545_v61 = vpop.f32.mrf.mxu1  ;;  %5420 = vmatmul.mubr.msk.bf16.gmra.mxu1 %vm868_vm3, %v6126_v19  ;;  %v7252_v39 = vpop.f32.mrf.mxu0  ;;  %v2668_v19 = vld [vmem:[#allocation2 + $0x80] sm:$0xff] }
 0x372   : > { %v2700_v41 = vadd.f32 %v2667_v3, %v2545_v61  ;;  %5423 = vmatprep.mubr.msk.bf16.mxu1 %vm5690_vm2, %v7751_v23  ;;  %v4593_v58 = vpack.c.bf16 %v3868_v46, %v3868_v46  ;;  %3047 = vst.msk [vmem:[#allocation2 + $0x5c] sm:$0xff] %vm764_vm4, %v3014_v6  ;;  %v2670_v61 = vld [vmem:[#allocation2 + $0x90] sm:$0xff] }
 0x373   : > { %v5233_v2 = vpop.f32.mrf.mxu1  ;;  %v5473_v29 = vpop.f32.mrf.mxu0  ;;  %v2982_v8 = vld [vmem:[#allocation2 + $0x64] sm:$0xff] }
 0x374   : > { %2733 = vst.msk [vmem:[#allocation2 + $0x78] sm:$0xff] %vm764_vm4, %v2700_v41  ;;  %v3015_v24 = vadd.f32 %v2982_v8, %v6965_v22 }
 0x375   : > { %4145 = vst.msk [vmem:[%s6961_s17 + $0xb0] sm:$0xf] %vm4100_vm5, %v4593_v58  ;;  %v2548_v33 = vpop.f32.mrf.mxu1  ;;  %v7261_v45 = vpop.f32.mrf.mxu0 }
 0x376   : > { %v2701_v60 = vadd.f32 %v2668_v19, %v2548_v33  ;;  %3048 = vst.msk [vmem:[#allocation2 + $0x64] sm:$0xff] %vm764_vm4, %v3015_v24  ;;  %v2671_v24 = vld [vmem:[#allocation2 + $0x98] sm:$0xff] }
 0x377   : > { %v5234_v5 = vpop.f32.mrf.mxu1  ;;  %v5474_v62 = vpop.f32.mrf.mxu0  ;;  %v2983_v40 = vld [vmem:[#allocation2 + $0x6c] sm:$0xff] }
 0x378   : > { %2734 = vst.msk [vmem:[#allocation2 + $0x80] sm:$0xff] %vm764_vm4, %v2701_v60  ;;  %v3016_v20 = vadd.f32 %v2983_v40, %v6980_v37  ;;  %v2672_v40 = vld [vmem:[#allocation2 + $0xa0] sm:$0xff] }
 0x379   : > { %v2553_v56 = vpop.f32.mrf.mxu1  ;;  %5424 = vmatmul.mubr.msk.bf16.gmra.mxu1 %vm868_vm3, %v6136_v27  ;;  %v7268_v22 = vpop.f32.mrf.mxu0 }
 0x37a   : > { %v2702_v26 = vadd.f32 %v2669_v11, %v2553_v56  ;;  %5427 = vmatprep.mubr.msk.bf16.mxu1 %vm5690_vm2, %v7751_v23  ;;  %3049 = vst.msk [vmem:[#allocation2 + $0x6c] sm:$0xff] %vm764_vm4, %v3016_v20 }
 0x37b   : > { %v5237_v31 = vpop.f32.mrf.mxu1  ;;  %v5477_v50 = vpop.f32.mrf.mxu0  ;;  %v2984_v46 = vld [vmem:[#allocation2 + $0x74] sm:$0xff] }
 0x37c   : > { %2735 = vst.msk [vmem:[#allocation2 + $0x88] sm:$0xff] %vm764_vm4, %v2702_v26  ;;  %v3017_v37 = vadd.f32 %v2984_v46, %v6987_v14  ;;  %v2673_v46 = vld [vmem:[#allocation2 + $0xa8] sm:$0xff] }
 0x37d   : > { %v2556_v6 = vpop.f32.mrf.mxu1  ;;  %v7275_v3 = vpop.f32.mrf.mxu0 }
 0x37e   : > { %v2703_v27 = vadd.f32 %v2670_v61, %v2556_v6  ;;  %3050 = vst.msk [vmem:[#allocation2 + $0x74] sm:$0xff] %vm764_vm4, %v3017_v37 }
 0x37f   : > { %v5238_v41 = vpop.f32.mrf.mxu1  ;;  %v5478_v58 = vpop.f32.mrf.mxu0  ;;  %v2985_v2 = vld [vmem:[#allocation2 + $0x7c] sm:$0xff] }
 0x380   : > { %2736 = vst.msk [vmem:[#allocation2 + $0x90] sm:$0xff] %vm764_vm4, %v2703_v27  ;;  %v3018_v29 = vadd.f32 %v2985_v2, %v6998_v49  ;;  %v2674_v58 = vld [vmem:[#allocation2 + $0xb0] sm:$0xff] }
 0x381   : > { %v2561_v8 = vpop.f32.mrf.mxu1  ;;  %5428 = vmatmul.mubr.msk.bf16.gmra.mxu1 %vm868_vm3, %v6146_v35  ;;  %v7282_v14 = vpop.f32.mrf.mxu0 }
 0x382   : > { %v2704_v33 = vadd.f32 %v2671_v24, %v2561_v8  ;;  %5431 = vmatprep.mubr.msk.bf16.mxu1 %vm5690_vm2, %v7751_v23  ;;  %3051 = vst.msk [vmem:[#allocation2 + $0x7c] sm:$0xff] %vm764_vm4, %v3018_v29 }
 0x383   : > { %v5241_v19 = vpop.f32.mrf.mxu1  ;;  %v5481_v60 = vpop.f32.mrf.mxu0  ;;  %v2986_v5 = vld [vmem:[#allocation2 + $0x84] sm:$0xff] }
 0x384   : > { %2737 = vst.msk [vmem:[#allocation2 + $0x98] sm:$0xff] %vm764_vm4, %v2704_v33  ;;  %v3019_v49 = vadd.f32 %v2986_v5, %v7005_v32  ;;  %v2675_v60 = vld [vmem:[#allocation2 + $0xb8] sm:$0xff] }
 0x385   : > { %v2564_v62 = vpop.f32.mrf.mxu1  ;;  %v7289_v20 = vpop.f32.mrf.mxu0 }
 0x386   : > { %v2705_v35 = vadd.f32 %v2672_v40, %v2564_v62  ;;  %3052 = vst.msk [vmem:[#allocation2 + $0x84] sm:$0xff] %vm764_vm4, %v3019_v49 }
 0x387   : > { %v5242_v56 = vpop.f32.mrf.mxu1  ;;  %v5482_v11 = vpop.f32.mrf.mxu0  ;;  %v2987_v26 = vld [vmem:[#allocation2 + $0x8c] sm:$0xff] }
 0x388   : > { %2738 = vst.msk [vmem:[#allocation2 + $0xa0] sm:$0xff] %vm764_vm4, %v2705_v35  ;;  %v3020_v31 = vadd.f32 %v2987_v26, %v7016_v57  ;;  %v2676_v56 = vld [vmem:[#allocation2 + $0xc0] sm:$0xff] }
 0x389   : > { %v2569_v50 = vpop.f32.mrf.mxu1  ;;  %5432 = vmatmul.mubr.msk.bf16.gmra.mxu1 %vm868_vm3, %v6156_v43  ;;  %v7296_v32 = vpop.f32.mrf.mxu0 }
 0x38a   : > { %v2706_v37 = vadd.f32 %v2673_v46, %v2569_v50  ;;  %5435 = vmatprep.mubr.msk.bf16.mxu1 %vm5690_vm2, %v7751_v23  ;;  %3053 = vst.msk [vmem:[#allocation2 + $0x8c] sm:$0xff] %vm764_vm4, %v3020_v31 }
 0x38b   : > { %v5245_v6 = vpop.f32.mrf.mxu1  ;;  %v5485_v61 = vpop.f32.mrf.mxu0  ;;  %v2988_v27 = vld [vmem:[#allocation2 + $0x94] sm:$0xff] }
 0x38c   : > { %2739 = vst.msk [vmem:[#allocation2 + $0xa8] sm:$0xff] %vm764_vm4, %v2706_v37  ;;  %v3021_v57 = vadd.f32 %v2988_v27, %v7023_v48  ;;  %v2677_v6 = vld [vmem:[#allocation2 + $0xc8] sm:$0xff] }
 0x38d   : > { %v2572_v41 = vpop.f32.mrf.mxu1  ;;  %v7303_v2 = vpop.f32.mrf.mxu0 }
 0x38e   : > { %v2707_v43 = vadd.f32 %v2674_v58, %v2572_v41  ;;  %3054 = vst.msk [vmem:[#allocation2 + $0x94] sm:$0xff] %vm764_vm4, %v3021_v57 }
 0x38f   : > { %v5246_v29 = vpop.f32.mrf.mxu1  ;;  %v5486_v8 = vpop.f32.mrf.mxu0  ;;  %v2989_v24 = vld [vmem:[#allocation2 + $0x9c] sm:$0xff] }
 0x390   : > { %2740 = vst.msk [vmem:[#allocation2 + $0xb0] sm:$0xff] %vm764_vm4, %v2707_v43  ;;  %v3022_v33 = vadd.f32 %v2989_v24, %v7034_v30  ;;  %v2678_v43 = vld [vmem:[#allocation2 + $0xd0] sm:$0xff] }
 0x391   : > { %v2577_v19 = vpop.f32.mrf.mxu1  ;;  %5436 = vmatmul.mubr.msk.bf16.gmra.mxu1 %vm868_vm3, %v6166_v51  ;;  %v7310_v48 = vpop.f32.mrf.mxu0 }
 0x392   : > { %v2708_v5 = vadd.f32 %v2675_v60, %v2577_v19  ;;  %5439 = vmatprep.mubr.msk.bf16.mxu1 %vm5690_vm2, %v7751_v23  ;;  %3055 = vst.msk [vmem:[#allocation2 + $0x9c] sm:$0xff] %vm764_vm4, %v3022_v33 }
 0x393   : > { %v5249_v49 = vpop.f32.mrf.mxu1  ;;  %v5489_v62 = vpop.f32.mrf.mxu0  ;;  %v2990_v40 = vld [vmem:[#allocation2 + $0xa4] sm:$0xff] }
 0x394   : > { %2741 = vst.msk [vmem:[#allocation2 + $0xb8] sm:$0xff] %vm764_vm4, %v2708_v5  ;;  %v3023_v30 = vadd.f32 %v2990_v40, %v7041_v0  ;;  %v2679_v5 = vld [vmem:[#allocation2 + $0xd8] sm:$0xff] }
 0x395   : > { %v2580_v35 = vpop.f32.mrf.mxu1  ;;  %v7317_v11 = vpop.f32.mrf.mxu0 }
 0x396   : > { %v2709_v51 = vadd.f32 %v2676_v56, %v2580_v35  ;;  %3056 = vst.msk [vmem:[#allocation2 + $0xa4] sm:$0xff] %vm764_vm4, %v3023_v30  ;;  %v2680_v56 = vld [vmem:[#allocation2 + $0xe0] sm:$0xff] }
 0x397   : > { %v5250_v26 = vpop.f32.mrf.mxu1  ;;  %v5490_v31 = vpop.f32.mrf.mxu0  ;;  %v2991_v50 = vld [vmem:[#allocation2 + $0xac] sm:$0xff] }
 0x398   : > { %2742 = vst.msk [vmem:[#allocation2 + $0xc0] sm:$0xff] %vm764_vm4, %v2709_v51  ;;  %v3024_v46 = vadd.f32 %v2991_v50, %v7052_v42 }
 0x399   : > { %v2585_v37 = vpop.f32.mrf.mxu1  ;;  %5440 = vmatmul.mubr.msk.bf16.gmra.mxu1 %vm868_vm3, %v6176_v59  ;;  %v7324_v0 = vpop.f32.mrf.mxu0 }
 0x39a   : > { %v2710_v61 = vadd.f32 %v2677_v6, %v2585_v37  ;;  %5443 = vmatprep.mubr.msk.bf16.mxu1 %vm5690_vm2, %v7751_v23  ;;  %3057 = vst.msk [vmem:[#allocation2 + $0xac] sm:$0xff] %vm764_vm4, %v3024_v46  ;;  %v2681_v6 = vld [vmem:[#allocation2 + $0xe8] sm:$0xff] }
 0x39b   : > { %v5253_v27 = vpop.f32.mrf.mxu1  ;;  %v5493_v57 = vpop.f32.mrf.mxu0  ;;  %v2992_v41 = vld [vmem:[#allocation2 + $0xb4] sm:$0xff] }
 0x39c   : > { %2743 = vst.msk [vmem:[#allocation2 + $0xc8] sm:$0xff] %vm764_vm4, %v2710_v61  ;;  %v3025_v42 = vadd.f32 %v2992_v41, %v7059_v18 }
 0x39d   : > { %v2588_v58 = vpop.f32.mrf.mxu1  ;;  %v7331_v29 = vpop.f32.mrf.mxu0 }
 0x39e   : > { %v2711_v59 = vadd.f32 %v2678_v43, %v2588_v58  ;;  %3058 = vst.msk [vmem:[#allocation2 + $0xb4] sm:$0xff] %vm764_vm4, %v3025_v42  ;;  %v7759_v42 = vld [vmem:[#allocation3_spill] sm:$0xff]  ;;  %v2682_v43 = vld [vmem:[#allocation2 + $0xf0] sm:$0xff] }
 0x39f   : > { %v5254_v8 = vpop.f32.mrf.mxu1  ;;  %v5494_v24 = vpop.f32.mrf.mxu0  ;;  %v2993_v33 = vld [vmem:[#allocation2 + $0xbc] sm:$0xff] }
 0x3a0   : > { %2744 = vst.msk [vmem:[#allocation2 + $0xd0] sm:$0xff] %vm764_vm4, %v2711_v59  ;;  %v3026_v19 = vadd.f32 %v2993_v33, %v7070_v15 }
 0x3a1   : > { %v2593_v60 = vpop.f32.mrf.mxu1  ;;  %5444 = vmatmul.mubr.msk.bf16.gmra.mxu1 %vm868_vm3, %v6186_v4  ;;  %v7338_v18 = vpop.f32.mrf.mxu0 }
 0x3a2   : > { %v2712_v49 = vadd.f32 %v2679_v5, %v2593_v60  ;;  %5447 = vmatprep.mubr.msk.bf16.mxu1 %vm5690_vm2, %v7751_v23  ;;  %3059 = vst.msk [vmem:[#allocation2 + $0xbc] sm:$0xff] %vm764_vm4, %v3026_v19  ;;  %v2683_v5 = vld [vmem:[#allocation2 + $0xf8] sm:$0xff] }
 0x3a3   : > { %v5257_v62 = vpop.f32.mrf.mxu1  ;;  %v5497_v40 = vpop.f32.mrf.mxu0  ;;  %v2994_v30 = vld [vmem:[#allocation2 + $0xc4] sm:$0xff] }
 0x3a4   : > { %2745 = vst.msk [vmem:[#allocation2 + $0xd8] sm:$0xff] %vm764_vm4, %v2712_v49  ;;  %v3027_v15 = vadd.f32 %v2994_v30, %v7077_v36 }
 0x3a5   : > { %v2596_v35 = vpop.f32.mrf.mxu1  ;;  %v7345_v51 = vpop.f32.mrf.mxu0 }
 0x3a6   : > { %v2713_v4 = vadd.f32 %v2680_v56, %v2596_v35  ;;  %3060 = vst.msk [vmem:[#allocation2 + $0xc4] sm:$0xff] %vm764_vm4, %v3027_v15 }
 0x3a7   : > { %v5258_v26 = vpop.f32.mrf.mxu1  ;;  %v5498_v31 = vpop.f32.mrf.mxu0  ;;  %v2995_v50 = vld [vmem:[#allocation2 + $0xcc] sm:$0xff] }
 0x3a8   : > { %2746 = vst.msk [vmem:[#allocation2 + $0xe0] sm:$0xff] %vm764_vm4, %v2713_v4  ;;  %v3028_v46 = vadd.f32 %v2995_v50, %v7086_v17  ;;  %v2684_v4 = vld [vmem:[#allocation2 + $0x100] sm:$0xff] }
 0x3a9   : > { %v2601_v37 = vpop.f32.mrf.mxu1  ;;  %5448 = vmatmul.mubr.msk.bf16.gmra.mxu1 %vm868_vm3, %v6196_v10  ;;  %v7352_v36 = vpop.f32.mrf.mxu0 }
 0x3aa   : > { %v2714_v61 = vadd.f32 %v2681_v6, %v2601_v37  ;;  %5527 = vmatprep.mubr.msk.bf16.mxu1 %vm5690_vm2, %v7751_v23  ;;  %3061 = vst.msk [vmem:[#allocation2 + $0xcc] sm:$0xff] %vm764_vm4, %v3028_v46  ;;  %v2685_v6 = vld [vmem:[#allocation2 + $0x108] sm:$0xff] }
 0x3ab   : > { %v5261_v27 = vpop.f32.mrf.mxu1  ;;  %v5501_v57 = vpop.f32.mrf.mxu0  ;;  %v2996_v41 = vld [vmem:[#allocation2 + $0xd4] sm:$0xff] }
 0x3ac   : > { %2747 = vst.msk [vmem:[#allocation2 + $0xe8] sm:$0xff] %vm764_vm4, %v2714_v61  ;;  %v3029_v17 = vadd.f32 %v2996_v41, %v7759_v42 }
 0x3ad   : > { %v2604_v58 = vpop.f32.mrf.mxu1  ;;  %v7359_v59 = vpop.f32.mrf.mxu0 }
 0x3ae   : > { %v2715_v8 = vadd.f32 %v2682_v43, %v2604_v58  ;;  %3062 = vst.msk [vmem:[#allocation2 + $0xd4] sm:$0xff] %vm764_vm4, %v3029_v17  ;;  %v2686_v58 = vld [vmem:[#allocation2 + $0x110] sm:$0xff] }
 0x3af   : > { %v5262_v24 = vpop.f32.mrf.mxu1  ;;  %v5502_v33 = vpop.f32.mrf.mxu0  ;;  %v2997_v19 = vld [vmem:[#allocation2 + $0xdc] sm:$0xff] }
 0x3b0   : > { %2748 = vst.msk [vmem:[#allocation2 + $0xf0] sm:$0xff] %vm764_vm4, %v2715_v8  ;;  %v3030_v23 = vadd.f32 %v2997_v19, %v7100_v21 }
 0x3b1   : > { %v2609_v60 = vpop.f32.mrf.mxu1  ;;  %v7364_v49 = vpop.f32.mrf.mxu0  ;;  %5528 = vmatmul.mubr.msk.bf16.vlgmr.msra.gmra.mxu1 %vm868_vm3, %v6196_v10 }
 0x3b2   : > { %v2716_v62 = vadd.f32 %v2683_v5, %v2609_v60  ;;  %3063 = vst.msk [vmem:[#allocation2 + $0xdc] sm:$0xff] %vm764_vm4, %v3030_v23  ;;  %v2687_v60 = vld [vmem:[#allocation2 + $0x118] sm:$0xff] }
 0x3b3   : > { %v5265_v40 = vpop.f32.mrf.mxu1  ;;  %v5505_v30 = vpop.f32.mrf.mxu0  ;;  %v2998_v15 = vld [vmem:[#allocation2 + $0xe4] sm:$0xff] }
 0x3b4   : > { %2749 = vst.msk [vmem:[#allocation2 + $0xf8] sm:$0xff] %vm764_vm4, %v2716_v62  ;;  %v3031_v35 = vadd.f32 %v2998_v15, %v7105_v55 }
 0x3b5   : > { %v2612_v56 = vpop.f32.mrf.mxu1  ;;  %v7371_v21 = vpop.f32.mrf.mxu0 }
 0x3b6   : > { %v2717_v26 = vadd.f32 %v2684_v4, %v2612_v56  ;;  %3064 = vst.msk [vmem:[#allocation2 + $0xe4] sm:$0xff] %vm764_vm4, %v3031_v35  ;;  %v2688_v56 = vld [vmem:[#allocation2 + $0x120] sm:$0xff] }
 0x3b7   : > { %v5266_v31 = vpop.f32.mrf.mxu1  ;;  %v5506_v50 = vpop.f32.mrf.mxu0  ;;  %v2999_v10 = vld [vmem:[#allocation2 + $0xec] sm:$0xff] }
 0x3b8   : > { %2750 = vst.msk [vmem:[#allocation2 + $0x100] sm:$0xff] %vm764_vm4, %v2717_v26  ;;  %v3032_v46 = vadd.f32 %v2999_v10, %v7118_v54 }
 0x3b9   : > { %v2617_v37 = vpop.f32.mrf.mxu1  ;;  %v7376_v61 = vpop.f32.mrf.mxu0 }
 0x3ba   : > { %v2718_v27 = vadd.f32 %v2685_v6, %v2617_v37  ;;  %3065 = vst.msk [vmem:[#allocation2 + $0xec] sm:$0xff] %vm764_vm4, %v3032_v46  ;;  %v2689_v37 = vld [vmem:[#allocation2 + $0x128] sm:$0xff] }
 0x3bb   : > { %v5269_v55 = vpop.f32.mrf.mxu1  ;;  %v5509_v57 = vpop.f32.mrf.mxu0  ;;  %v3000_v41 = vld [vmem:[#allocation2 + $0xf4] sm:$0xff] }
 0x3bc   : > { %2751 = vst.msk [vmem:[#allocation2 + $0x108] sm:$0xff] %vm764_vm4, %v2718_v27  ;;  %v3033_v42 = vadd.f32 %v3000_v41, %v7127_v47 }
 0x3bd   : > { %v2620_v17 = vpop.f32.mrf.mxu1  ;;  %v7381_v43 = vpop.f32.mrf.mxu0 }
 0x3be   : > { %v2719_v8 = vadd.f32 %v2686_v58, %v2620_v17  ;;  %3066 = vst.msk [vmem:[#allocation2 + $0xf4] sm:$0xff] %vm764_vm4, %v3033_v42  ;;  %v2690_v17 = vld [vmem:[#allocation2 + $0x130] sm:$0xff] }
 0x3bf   : > { %v5270_v54 = vpop.f32.mrf.mxu1  ;;  %v5510_v24 = vpop.f32.mrf.mxu0  ;;  %v3001_v33 = vld [vmem:[#allocation2 + $0xfc] sm:$0xff] }
 0x3c0   : > { %2752 = vst.msk [vmem:[#allocation2 + $0x110] sm:$0xff] %vm764_vm4, %v2719_v8  ;;  %v3034_v19 = vadd.f32 %v3001_v33, %v7140_v34 }
 0x3c1   : > { %v2625_v23 = vpop.f32.mrf.mxu1  ;;  %v7386_v5 = vpop.f32.mrf.mxu0 }
 0x3c2   : > { %v2720_v62 = vadd.f32 %v2687_v60, %v2625_v23  ;;  %3067 = vst.msk [vmem:[#allocation2 + $0xfc] sm:$0xff] %vm764_vm4, %v3034_v19  ;;  %v2691_v23 = vld [vmem:[#allocation2 + $0x138] sm:$0xff] }
 0x3c3   : > { %v5273_v47 = vpop.f32.mrf.mxu1  ;;  %v5513_v40 = vpop.f32.mrf.mxu0  ;;  %v3002_v30 = vld [vmem:[#allocation2 + $0x104] sm:$0xff] }
 0x3c4   : > { %2753 = vst.msk [vmem:[#allocation2 + $0x118] sm:$0xff] %vm764_vm4, %v2720_v62  ;;  %v3035_v15 = vadd.f32 %v3002_v30, %v7149_v7 }
 0x3c5   : > { %v2628_v35 = vpop.f32.mrf.mxu1  ;;  %v7391_v4 = vpop.f32.mrf.mxu0 }
 0x3c6   : > { %v2721_v26 = vadd.f32 %v2688_v56, %v2628_v35  ;;  %3068 = vst.msk [vmem:[#allocation2 + $0x104] sm:$0xff] %vm764_vm4, %v3035_v15  ;;  %v2692_v35 = vld [vmem:[#allocation2 + $0x140] sm:$0xff] }
 0x3c7   : > { %v5274_v34 = vpop.f32.mrf.mxu1  ;;  %v5514_v31 = vpop.f32.mrf.mxu0  ;;  %v3003_v50 = vld [vmem:[#allocation2 + $0x10c] sm:$0xff] }
 0x3c8   : > { %2754 = vst.msk [vmem:[#allocation2 + $0x120] sm:$0xff] %vm764_vm4, %v2721_v26  ;;  %v3036_v10 = vadd.f32 %v3003_v50, %v7162_v38 }
 0x3c9   : > { %v2633_v46 = vpop.f32.mrf.mxu1  ;;  %v7396_v6 = vpop.f32.mrf.mxu0 }
 0x3ca   : > { %v2722_v27 = vadd.f32 %v2689_v37, %v2633_v46  ;;  %3069 = vst.msk [vmem:[#allocation2 + $0x10c] sm:$0xff] %vm764_vm4, %v3036_v10  ;;  %v2693_v46 = vld [vmem:[#allocation2 + $0x148] sm:$0xff] }
 0x3cb   : > { %v5277_v7 = vpop.f32.mrf.mxu1  ;;  %v5517_v55 = vpop.f32.mrf.mxu0  ;;  %v3004_v57 = vld [vmem:[#allocation2 + $0x114] sm:$0xff] }
 0x3cc   : > { %2755 = vst.msk [vmem:[#allocation2 + $0x128] sm:$0xff] %vm764_vm4, %v2722_v27  ;;  %v3037_v41 = vadd.f32 %v3004_v57, %v7170_v13 }
 0x3cd   : > { %v2636_v42 = vpop.f32.mrf.mxu1  ;;  %v7401_v58 = vpop.f32.mrf.mxu0 }
 0x3ce   : > { %v2723_v8 = vadd.f32 %v2690_v17, %v2636_v42  ;;  %3070 = vst.msk [vmem:[#allocation2 + $0x114] sm:$0xff] %vm764_vm4, %v3037_v41  ;;  %v2694_v42 = vld [vmem:[#allocation2 + $0x150] sm:$0xff] }
 0x3cf   : > { %v5278_v38 = vpop.f32.mrf.mxu1  ;;  %v5518_v54 = vpop.f32.mrf.mxu0  ;;  %v3005_v24 = vld [vmem:[#allocation2 + $0x11c] sm:$0xff] }
 0x3d0   : > { %2756 = vst.msk [vmem:[#allocation2 + $0x130] sm:$0xff] %vm764_vm4, %v2723_v8  ;;  %v3038_v33 = vadd.f32 %v3005_v24, %v7179_v16 }
 0x3d1   : > { %v2641_v19 = vpop.f32.mrf.mxu1  ;;  %v7406_v60 = vpop.f32.mrf.mxu0 }
 0x3d2   : > { %v2724_v62 = vadd.f32 %v2691_v23, %v2641_v19  ;;  %3071 = vst.msk [vmem:[#allocation2 + $0x11c] sm:$0xff] %vm764_vm4, %v3038_v33  ;;  %v2695_v19 = vld [vmem:[#allocation2 + $0x158] sm:$0xff] }
 0x3d3   : > { %v5281_v13 = vpop.f32.mrf.mxu1  ;;  %v5521_v47 = vpop.f32.mrf.mxu0  ;;  %v3006_v40 = vld [vmem:[#allocation2 + $0x124] sm:$0xff] }
 0x3d4   : > { %2757 = vst.msk [vmem:[#allocation2 + $0x138] sm:$0xff] %vm764_vm4, %v2724_v62  ;;  %v3039_v30 = vadd.f32 %v3006_v40, %v7184_v44 }
 0x3d5   : > { %v2644_v15 = vpop.f32.mrf.mxu1  ;;  %v7411_v56 = vpop.f32.mrf.mxu0 }
 0x3d6   : > { %v2725_v26 = vadd.f32 %v2692_v35, %v2644_v15  ;;  %3072 = vst.msk [vmem:[#allocation2 + $0x124] sm:$0xff] %vm764_vm4, %v3039_v30 }
 0x3d7   : > { %v5282_v16 = vpop.f32.mrf.mxu1  ;;  %v5522_v34 = vpop.f32.mrf.mxu0  ;;  %v3007_v31 = vld [vmem:[#allocation2 + $0x12c] sm:$0xff] }
 0x3d8   : > { %2758 = vst.msk [vmem:[#allocation2 + $0x140] sm:$0xff] %vm764_vm4, %v2725_v26  ;;  %v3040_v50 = vadd.f32 %v3007_v31, %v7193_v1  ;;  %v3293_v26 = vld [vmem:[#allocation2 + $0x43] sm:$0xff] }
 0x3d9   : > { %v2649_v10 = vpop.f32.mrf.mxu1  ;;  %v7416_v37 = vpop.f32.mrf.mxu0 }
 0x3da   : > { %v2726_v27 = vadd.f32 %v2693_v46, %v2649_v10  ;;  %3073 = vst.msk [vmem:[#allocation2 + $0x12c] sm:$0xff] %vm764_vm4, %v3040_v50 }
 0x3db   : > { %v5285_v44 = vpop.f32.mrf.mxu1  ;;  %v5525_v7 = vpop.f32.mrf.mxu0  ;;  %v3008_v55 = vld [vmem:[#allocation2 + $0x134] sm:$0xff] }
 0x3dc   : > { %2759 = vst.msk [vmem:[#allocation2 + $0x148] sm:$0xff] %vm764_vm4, %v2726_v27  ;;  %v3041_v57 = vadd.f32 %v3008_v55, %v7198_v25  ;;  %v3294_v27 = vld [vmem:[#allocation2 + $0x4b] sm:$0xff] }
 0x3dd   : > { %v2652_v41 = vpop.f32.mrf.mxu1  ;;  %v7421_v17 = vpop.f32.mrf.mxu0 }
 0x3de   : > { %v2727_v8 = vadd.f32 %v2694_v42, %v2652_v41  ;;  %3074 = vst.msk [vmem:[#allocation2 + $0x134] sm:$0xff] %vm764_vm4, %v3041_v57  ;;  %v3295_v42 = vld [vmem:[#allocation2 + $0x53] sm:$0xff] }
 0x3df   : > { %v5286_v1 = vpop.f32.mrf.mxu1  ;;  %v5526_v38 = vpop.f32.mrf.mxu0  ;;  %v3009_v54 = vld [vmem:[#allocation2 + $0x13c] sm:$0xff] }
 0x3e0   : > { %2760 = vst.msk [vmem:[#allocation2 + $0x150] sm:$0xff] %vm764_vm4, %v2727_v8  ;;  %v3042_v24 = vadd.f32 %v3009_v54, %v7207_v9  ;;  %v7433_v9 = vld [vmem:[%s7743_s3] ss:$0 sm:$0xff] }
 0x3e1   : > { %v2657_v33 = vpop.f32.mrf.mxu1 }
 0x3e2   : > { %v2728_v23 = vadd.f32 %v2695_v19, %v2657_v33  ;;  %3075 = vst.msk [vmem:[#allocation2 + $0x13c] sm:$0xff] %vm764_vm4, %v3042_v24  ;;  %v3296_v33 = vld [vmem:[#allocation2 + $0x5b] sm:$0xff] }
 0x3e3   : > { %v5289_v25 = vpop.f32.mrf.mxu1  ;;  %v3010_v62 = vld [vmem:[#allocation2 + $0x144] sm:$0xff] }
 0x3e4   : > { %2761 = vst.msk [vmem:[#allocation2 + $0x158] sm:$0xff] %vm764_vm4, %v2728_v23  ;;  %v3043_v13 = vadd.f32 %v3010_v62, %v7212_v28 }
 0x3e5   : > { %v2660_v47 = vpop.f32.mrf.mxu1 }
 0x3e6   : > { %3076 = vst.msk [vmem:[#allocation2 + $0x144] sm:$0xff] %vm764_vm4, %v3043_v13  ;;  %v3297_v47 = vld [vmem:[#allocation2 + $0x63] sm:$0xff] }
 0x3e7   : > { %v3749_v40 = vld [vmem:[#allocation2 + $0x150] sm:$0xff]  ;;  %v5290_v30 = vpop.f32.mrf.mxu1 }
 0x3e8   : > { %v3811_v15 = vadd.f32 %v7433_v9, %v3749_v40 }
 0x3e9   : > { %v3159_v35 = vpop.f32.mrf.mxu1 }
 0x3ea   : > { %v3866_v16 = vmax.f32 %v3811_v15, 0.0  ;;  %v3326_v34 = vadd.f32 %v3293_v26, %v3159_v35  ;;  %v3298_v35 = vld [vmem:[#allocation2 + $0x6b] sm:$0xff] }
 0x3eb   : > { %v3750_v31 = vld [vmem:[#allocation2 + $0x158] sm:$0xff]  ;;  %v5385_v28 = vpop.f32.mrf.mxu1 }
 0x3ec   : > { %v4591_v50 = vpack.c.bf16 %v3866_v16, %v3866_v16  ;;  %v3812_v10 = vadd.f32 %v7433_v9, %v3750_v31  ;;  %3359 = vst.msk [vmem:[#allocation2 + $0x43] sm:$0xff] %vm764_vm4, %v3326_v34  ;;  %v3707_v34 = vld [vmem:[#allocation2] sm:$0xff]  ;;  %v3708_v31 = vld [vmem:[#allocation2 + $0x8] sm:$0xff] }
 0x3ed   : > { %v3162_v46 = vpop.f32.mrf.mxu1 }
 0x3ee   : > { %4143 = vst.msk [vmem:[%s6961_s17 + $0xa8] sm:$0xf] %vm4100_vm5, %v4591_v50  ;;  %v3867_v44 = vmax.f32 %v3812_v10, 0.0  ;;  %v3327_v7 = vadd.f32 %v3294_v27, %v3162_v46  ;;  %v3709_v50 = vld [vmem:[#allocation2 + $0x10] sm:$0xff]  ;;  %v3710_v10 = vld [vmem:[#allocation2 + $0x18] sm:$0xff]  ;;  %v3711_v46 = vld [vmem:[#allocation2 + $0x20] sm:$0xff]  ;;  %v7454_v27 = vadd.f32 %v7433_v9, %v3707_v34 }
 0x3ef   : > { %v5386_v55 = vpop.f32.mrf.mxu1  ;;  %v3758_v34 = vld [vmem:[#allocation2 + $0x198] sm:$0xff] }
 0x3f0   : > { %v4592_v57 = vpack.c.bf16 %v3867_v44, %v3867_v44  ;;  %3360 = vst.msk [vmem:[#allocation2 + $0x4b] sm:$0xff] %vm764_vm4, %v3327_v7  ;;  %v3299_v7 = vld [vmem:[#allocation2 + $0x73] sm:$0xff]  ;;  %v3712_v55 = vld [vmem:[#allocation2 + $0x28] sm:$0xff] }
 0x3f1   : > { %v3167_v41 = vpop.f32.mrf.mxu1 }
 0x3f2   : > { %4144 = vst.msk [vmem:[%s6961_s17 + $0xac] sm:$0xf] %vm4100_vm5, %v4592_v57  ;;  %v3328_v8 = vadd.f32 %v3295_v42, %v3167_v41  ;;  %v3713_v57 = vld [vmem:[#allocation2 + $0x30] sm:$0xff]  ;;  %v7457_v41 = vadd.f32 %v7433_v9, %v3708_v31  ;;  %v7460_v42 = vadd.f32 %v7433_v9, %v3709_v50  ;;  %v3759_v31 = vld [vmem:[#allocation2 + $0x1a0] sm:$0xff] }
 0x3f3   : > { %v3608_v1 = vld [vmem:[#allocation2 + $0x42] sm:$0xff]  ;;  %v5389_v38 = vpop.f32.mrf.mxu1 }
 0x3f4   : > { %v3641_v54 = vadd.f32 %v3608_v1, %v7225_v52  ;;  %3361 = vst.msk [vmem:[#allocation2 + $0x53] sm:$0xff] %vm764_vm4, %v3328_v8  ;;  %v7463_v8 = vadd.f32 %v7433_v9, %v3710_v10  ;;  %v7466_v1 = vadd.f32 %v7433_v9, %v3711_v46  ;;  %v3761_v46 = vld [vmem:[#allocation2 + $0x1b0] sm:$0xff] }
 0x3f5   : > { %v3170_v24 = vpop.f32.mrf.mxu1 }
 0x3f6   : > { %3674 = vst.msk [vmem:[#allocation2 + $0x42] sm:$0xff] %vm764_vm4, %v3641_v54  ;;  %v3329_v19 = vadd.f32 %v3296_v33, %v3170_v24  ;;  %v3714_v24 = vld [vmem:[#allocation2 + $0x38] sm:$0xff] }
 0x3f7   : > { %v3609_v23 = vld [vmem:[#allocation2 + $0x4a] sm:$0xff]  ;;  %v5390_v25 = vpop.f32.mrf.mxu1  ;;  %v3754_v33 = vld [vmem:[#allocation2 + $0x178] sm:$0xff] }
 0x3f8   : > { %v3642_v62 = vadd.f32 %v3609_v23, %v7232_v12  ;;  %3362 = vst.msk [vmem:[#allocation2 + $0x5b] sm:$0xff] %vm764_vm4, %v3329_v19  ;;  %v3755_v19 = vld [vmem:[#allocation2 + $0x180] sm:$0xff]  ;;  %v7471_v23 = vadd.f32 %v7433_v9, %v3712_v55  ;;  %v7474_v25 = vadd.f32 %v7433_v9, %v3713_v57 }
 0x3f9   : > { %v3175_v13 = vpop.f32.mrf.mxu1 }
 0x3fa   : > { %3675 = vst.msk [vmem:[#allocation2 + $0x4a] sm:$0xff] %vm764_vm4, %v3642_v62  ;;  %v3330_v40 = vadd.f32 %v3297_v47, %v3175_v13  ;;  %v3756_v47 = vld [vmem:[#allocation2 + $0x188] sm:$0xff] }
 0x3fb   : > { %v3610_v30 = vld [vmem:[#allocation2 + $0x52] sm:$0xff]  ;;  %v5393_v52 = vpop.f32.mrf.mxu1 }
 0x3fc   : > { %v3643_v15 = vadd.f32 %v3610_v30, %v7238_v63  ;;  %3363 = vst.msk [vmem:[#allocation2 + $0x63] sm:$0xff] %vm764_vm4, %v3330_v40  ;;  %v3757_v40 = vld [vmem:[#allocation2 + $0x190] sm:$0xff]  ;;  %v7477_v30 = vadd.f32 %v7433_v9, %v3714_v24  ;;  %v7483_v52 = vadd.f32 %v7433_v9, %v3755_v19  ;;  %v3300_v19 = vld [vmem:[#allocation2 + $0x7b] sm:$0xff] }
 0x3fd   : > { %v3715_v26 = vld [vmem:[#allocation2 + $0x40] sm:$0xff]  ;;  %v3178_v16 = vpop.f32.mrf.mxu1 }
 0x3fe   : > { %v3777_v12 = vadd.f32 %v7433_v9, %v3715_v26  ;;  %3676 = vst.msk [vmem:[#allocation2 + $0x52] sm:$0xff] %vm764_vm4, %v3643_v15  ;;  %v3331_v28 = vadd.f32 %v3298_v35, %v3178_v16  ;;  %v3824_v15 = vmax.f32 %v7454_v27, 0.0  ;;  %v7495_v27 = vadd.f32 %v7433_v9, %v3758_v34 }
 0x3ff   : > { %v3611_v44 = vld [vmem:[#allocation2 + $0x5a] sm:$0xff]  ;;  %v5394_v63 = vpop.f32.mrf.mxu1 }
 0x400   : > { %v3832_v38 = vmax.f32 %v3777_v12, 0.0  ;;  %v3644_v54 = vadd.f32 %v3611_v44, %v7244_v53  ;;  %3364 = vst.msk [vmem:[#allocation2 + $0x6b] sm:$0xff] %vm764_vm4, %v3331_v28  ;;  %v7480_v53 = vadd.f32 %v7433_v9, %v3754_v33  ;;  %v3760_v12 = vld [vmem:[#allocation2 + $0x1a8] sm:$0xff]  ;;  %v7489_v28 = vadd.f32 %v7433_v9, %v3756_v47 }
 0x401   : > { %v3716_v62 = vld [vmem:[#allocation2 + $0x48] sm:$0xff]  ;;  %v3183_v13 = vpop.f32.mrf.mxu1  ;;  %v7492_v44 = vadd.f32 %v7433_v9, %v3757_v40  ;;  %v7498_v63 = vadd.f32 %v7433_v9, %v3759_v31  ;;  %v3828_v47 = vmax.f32 %v7466_v1, 0.0  ;;  %v3829_v40 = vmax.f32 %v7471_v23, 0.0 }
 0x402   : > { %v4557_v35 = vpack.c.bf16 %v3832_v38, %v3832_v38  ;;  %v3778_v26 = vadd.f32 %v7433_v9, %v3716_v62  ;;  %3677 = vst.msk [vmem:[#allocation2 + $0x5a] sm:$0xff] %vm764_vm4, %v3644_v54  ;;  %v3332_v16 = vadd.f32 %v3299_v7, %v3183_v13  ;;  %v7501_v7 = vadd.f32 %v7433_v9, %v3760_v12 }
 0x403   : > { %v3612_v50 = vld [vmem:[#allocation2 + $0x62] sm:$0xff]  ;;  %v5397_v10 = vpop.f32.mrf.mxu1  ;;  %v7508_v38 = vadd.f32 %v7433_v9, %v3761_v46  ;;  %v3825_v54 = vmax.f32 %v7457_v41, 0.0  ;;  %v3826_v62 = vmax.f32 %v7460_v42, 0.0  ;;  %v3827_v13 = vmax.f32 %v7463_v8, 0.0 }
 0x404   : > { %4109 = vst.msk [vmem:[%s6961_s17 + $0x20] sm:$0xf] %vm4100_vm5, %v4557_v35  ;;  %v3833_v55 = vmax.f32 %v3778_v26, 0.0  ;;  %v3645_v57 = vadd.f32 %v3612_v50, %v7252_v39  ;;  %v3830_v41 = vmax.f32 %v7474_v25, 0.0  ;;  %v3831_v31 = vmax.f32 %v7477_v30, 0.0  ;;  %v3301_v30 = vld [vmem:[#allocation2 + $0x83] sm:$0xff] }
 0x405   : > { %3365 = vst.msk [vmem:[#allocation2 + $0x73] sm:$0xff] %vm764_vm4, %v3332_v16  ;;  %v3717_v24 = vld [vmem:[#allocation2 + $0x50] sm:$0xff]  ;;  %v3186_v33 = vpop.f32.mrf.mxu1  ;;  %v3871_v42 = vmax.f32 %v7480_v53, 0.0  ;;  %v3872_v8 = vmax.f32 %v7483_v52, 0.0  ;;  %v3873_v1 = vmax.f32 %v7489_v28, 0.0  ;;  %v3874_v50 = vmax.f32 %v7492_v44, 0.0 }
 0x406   : > { %v4558_v39 = vpack.c.bf16 %v3833_v55, %v3833_v55  ;;  %v3779_v35 = vadd.f32 %v7433_v9, %v3717_v24  ;;  %3678 = vst.msk [vmem:[#allocation2 + $0x62] sm:$0xff] %vm764_vm4, %v3645_v57  ;;  %v3333_v26 = vadd.f32 %v3300_v19, %v3186_v33  ;;  %v3875_v25 = vmax.f32 %v7495_v27, 0.0 }
 0x407   : > { %v3613_v16 = vld [vmem:[#allocation2 + $0x6a] sm:$0xff]  ;;  %v5398_v34 = vpop.f32.mrf.mxu1  ;;  %v3876_v53 = vmax.f32 %v7498_v63, 0.0  ;;  %v3877_v52 = vmax.f32 %v7501_v7, 0.0  ;;  %v3878_v28 = vmax.f32 %v7508_v38, 0.0  ;;  %v4549_v55 = vpack.c.bf16 %v3824_v15, %v3824_v15 }
 0x408   : > { %4110 = vst.msk [vmem:[%s6961_s17 + $0x24] sm:$0xf] %vm4100_vm5, %v4558_v39  ;;  %v3834_v23 = vmax.f32 %v3779_v35, 0.0  ;;  %v3646_v12 = vadd.f32 %v3613_v16, %v7261_v45  ;;  %v4550_v27 = vpack.c.bf16 %v3825_v54, %v3825_v54  ;;  %v4551_v19 = vpack.c.bf16 %v3826_v62, %v3826_v62 }
 0x409   : > { %3366 = vst.msk [vmem:[#allocation2 + $0x7b] sm:$0xff] %vm764_vm4, %v3333_v26  ;;  %v3718_v10 = vld [vmem:[#allocation2 + $0x58] sm:$0xff]  ;;  %v3191_v46 = vpop.f32.mrf.mxu1  ;;  %v4552_v39 = vpack.c.bf16 %v3827_v13, %v3827_v13  ;;  %v4553_v35 = vpack.c.bf16 %v3828_v47, %v3828_v47  ;;  %v4554_v63 = vpack.c.bf16 %v3829_v40, %v3829_v40  ;;  %v4555_v38 = vpack.c.bf16 %v3830_v41, %v3830_v41  ;;  %v3302_v47 = vld [vmem:[#allocation2 + $0x8b] sm:$0xff] }
 0x40a   : > { %v4559_v57 = vpack.c.bf16 %v3834_v23, %v3834_v23  ;;  %v3780_v45 = vadd.f32 %v7433_v9, %v3718_v10  ;;  %3679 = vst.msk [vmem:[#allocation2 + $0x6a] sm:$0xff] %vm764_vm4, %v3646_v12  ;;  %v3334_v44 = vadd.f32 %v3301_v30, %v3191_v46  ;;  %v4556_v54 = vpack.c.bf16 %v3831_v31, %v3831_v31 }
 0x40b   : > { %v5401_v33 = vpop.f32.mrf.mxu1  ;;  %4101 = vst.msk [vmem:[%s6961_s17] sm:$0xf] %vm4100_vm5, %v4549_v55  ;;  %4102 = vst.msk [vmem:[%s6961_s17 + $0x4] sm:$0xf] %vm4100_vm5, %v4550_v27  ;;  %v4596_v40 = vpack.c.bf16 %v3871_v42, %v3871_v42  ;;  %v4597_v26 = vpack.c.bf16 %v3872_v8, %v3872_v8  ;;  %v4598_v16 = vpack.c.bf16 %v3873_v1, %v3873_v1 }
 0x40c   : > { %v3614_v24 = vld [vmem:[#allocation2 + $0x72] sm:$0xff]  ;;  %4111 = vst.msk [vmem:[%s6961_s17 + $0x28] sm:$0xf] %vm4100_vm5, %v4559_v57  ;;  %v3835_v15 = vmax.f32 %v3780_v45, 0.0  ;;  %v4599_v34 = vpack.c.bf16 %v3874_v50, %v3874_v50  ;;  %4103 = vst.msk [vmem:[%s6961_s17 + $0x8] sm:$0xf] %vm4100_vm5, %v4551_v19  ;;  %v4600_v42 = vpack.c.bf16 %v3875_v25, %v3875_v25  ;;  %v4601_v23 = vpack.c.bf16 %v3876_v53, %v3876_v53 }
 0x40d   : > { %v3647_v7 = vadd.f32 %v3614_v24, %v7268_v22  ;;  %3367 = vst.msk [vmem:[#allocation2 + $0x83] sm:$0xff] %vm764_vm4, %v3334_v44  ;;  %v3719_v62 = vld [vmem:[#allocation2 + $0x60] sm:$0xff]  ;;  %v3194_v13 = vpop.f32.mrf.mxu1  ;;  %v4602_v12 = vpack.c.bf16 %v3877_v52, %v3877_v52  ;;  %v4603_v50 = vpack.c.bf16 %v3878_v28, %v3878_v28  ;;  %v3303_v53 = vld [vmem:[#allocation2 + $0x93] sm:$0xff] }
 0x40e   : > { %4104 = vst.msk [vmem:[%s6961_s17 + $0xc] sm:$0xf] %vm4100_vm5, %v4552_v39  ;;  %4105 = vst.msk [vmem:[%s6961_s17 + $0x10] sm:$0xf] %vm4100_vm5, %v4553_v35  ;;  %v4560_v22 = vpack.c.bf16 %v3835_v15, %v3835_v15  ;;  %v3781_v41 = vadd.f32 %v7433_v9, %v3719_v62  ;;  %v3335_v31 = vadd.f32 %v3302_v47, %v3194_v13  ;;  %v3304_v33 = vld [vmem:[#allocation2 + $0x9b] sm:$0xff]  ;;  %v3305_v62 = vld [vmem:[#allocation2 + $0xa3] sm:$0xff] }
 0x40f   : > { %4106 = vst.msk [vmem:[%s6961_s17 + $0x14] sm:$0xf] %vm4100_vm5, %v4554_v63  ;;  %4107 = vst.msk [vmem:[%s6961_s17 + $0x18] sm:$0xf] %vm4100_vm5, %v4555_v38  ;;  %v5402_v1 = vpop.f32.mrf.mxu1 }
 0x410   : > { %3680 = vst.msk [vmem:[#allocation2 + $0x72] sm:$0xff] %vm764_vm4, %v3647_v7  ;;  %v3615_v8 = vld [vmem:[#allocation2 + $0x7a] sm:$0xff]  ;;  %v3836_v25 = vmax.f32 %v3781_v41, 0.0  ;;  %3368 = vst.msk [vmem:[#allocation2 + $0x8b] sm:$0xff] %vm764_vm4, %v3335_v31  ;;  %v3306_v31 = vld [vmem:[#allocation2 + $0xab] sm:$0xff] }
 0x411   : > { %4108 = vst.msk [vmem:[%s6961_s17 + $0x1c] sm:$0xf] %vm4100_vm5, %v4556_v54  ;;  %4148 = vst.msk [vmem:[%s6961_s17 + $0xbc] sm:$0xf] %vm4100_vm5, %v4596_v40  ;;  %v3648_v10 = vadd.f32 %v3615_v8, %v7275_v3  ;;  %v3720_v46 = vld [vmem:[#allocation2 + $0x68] sm:$0xff]  ;;  %v3199_v30 = vpop.f32.mrf.mxu1 }
 0x412   : > { %4149 = vst.msk [vmem:[%s6961_s17 + $0xc0] sm:$0xf] %vm4100_vm5, %v4597_v26  ;;  %4150 = vst.msk [vmem:[%s6961_s17 + $0xc4] sm:$0xf] %vm4100_vm5, %v4598_v16  ;;  %v4561_v52 = vpack.c.bf16 %v3836_v25, %v3836_v25  ;;  %v3782_v28 = vadd.f32 %v7433_v9, %v3720_v46  ;;  %v3336_v55 = vadd.f32 %v3303_v53, %v3199_v30  ;;  %v3307_v46 = vld [vmem:[#allocation2 + $0xb3] sm:$0xff] }
 0x413   : > { %4151 = vst.msk [vmem:[%s6961_s17 + $0xc8] sm:$0xf] %vm4100_vm5, %v4599_v34  ;;  %4112 = vst.msk [vmem:[%s6961_s17 + $0x2c] sm:$0xf] %vm4100_vm5, %v4560_v22  ;;  %v5405_v57 = vpop.f32.mrf.mxu1 }
 0x414   : > { %4152 = vst.msk [vmem:[%s6961_s17 + $0xcc] sm:$0xf] %vm4100_vm5, %v4600_v42  ;;  %4153 = vst.msk [vmem:[%s6961_s17 + $0xd0] sm:$0xf] %vm4100_vm5, %v4601_v23  ;;  %v3616_v3 = vld [vmem:[#allocation2 + $0x82] sm:$0xff]  ;;  %v3837_v45 = vmax.f32 %v3782_v28, 0.0 }
 0x415   : > { %4154 = vst.msk [vmem:[%s6961_s17 + $0xd4] sm:$0xf] %vm4100_vm5, %v4602_v12  ;;  %4155 = vst.msk [vmem:[%s6961_s17 + $0xd8] sm:$0xf] %vm4100_vm5, %v4603_v50  ;;  %v3649_v44 = vadd.f32 %v3616_v3, %v7282_v14  ;;  %v3202_v24 = vpop.f32.mrf.mxu1 }
 0x416   : > { %3681 = vst.msk [vmem:[#allocation2 + $0x7a] sm:$0xff] %vm764_vm4, %v3648_v10  ;;  %3369 = vst.msk [vmem:[#allocation2 + $0x93] sm:$0xff] %vm764_vm4, %v3336_v55  ;;  %v4562_v19 = vpack.c.bf16 %v3837_v45, %v3837_v45  ;;  %v3337_v35 = vadd.f32 %v3304_v33, %v3202_v24 }
 0x417   : > { %4113 = vst.msk [vmem:[%s6961_s17 + $0x30] sm:$0xf] %vm4100_vm5, %v4561_v52  ;;  %v3721_v27 = vld [vmem:[#allocation2 + $0x70] sm:$0xff]  ;;  %v5406_v15 = vpop.f32.mrf.mxu1 }
 0x418   : > { %v3783_v39 = vadd.f32 %v7433_v9, %v3721_v27  ;;  %3682 = vst.msk [vmem:[#allocation2 + $0x82] sm:$0xff] %vm764_vm4, %v3649_v44  ;;  %v3617_v63 = vld [vmem:[#allocation2 + $0x8a] sm:$0xff]  ;;  %3370 = vst.msk [vmem:[#allocation2 + $0x9b] sm:$0xff] %vm764_vm4, %v3337_v35  ;;  %v3308_v44 = vld [vmem:[#allocation2 + $0xbb] sm:$0xff] }
 0x419   : > { %4114 = vst.msk [vmem:[%s6961_s17 + $0x34] sm:$0xf] %vm4100_vm5, %v4562_v19  ;;  %v3650_v38 = vadd.f32 %v3617_v63, %v7289_v20  ;;  %v3207_v54 = vpop.f32.mrf.mxu1 }
 0x41a   : > { %v3838_v7 = vmax.f32 %v3783_v39, 0.0  ;;  %v3338_v40 = vadd.f32 %v3305_v62, %v3207_v54 }
 0x41b   : > { %3683 = vst.msk [vmem:[#allocation2 + $0x8a] sm:$0xff] %vm764_vm4, %v3650_v38  ;;  %v5409_v16 = vpop.f32.mrf.mxu1 }
 0x41c   : > { %v4563_v13 = vpack.c.bf16 %v3838_v7, %v3838_v7  ;;  %3371 = vst.msk [vmem:[#allocation2 + $0xa3] sm:$0xff] %vm764_vm4, %v3338_v40  ;;  %v3309_v7 = vld [vmem:[#allocation2 + $0xc3] sm:$0xff]  ;;  %v3310_v16 = vld [vmem:[#allocation2 + $0xcb] sm:$0xff] }
 0x41d   : > { %v3722_v14 = vld [vmem:[#allocation2 + $0x78] sm:$0xff]  ;;  %v3210_v41 = vpop.f32.mrf.mxu1 }
 0x41e   : > { %v3784_v47 = vadd.f32 %v7433_v9, %v3722_v14  ;;  %v3618_v26 = vld [vmem:[#allocation2 + $0x92] sm:$0xff]  ;;  %4115 = vst.msk [vmem:[%s6961_s17 + $0x38] sm:$0xf] %vm4100_vm5, %v4563_v13  ;;  %v3339_v1 = vadd.f32 %v3306_v31, %v3210_v41 }
 0x41f   : > { %v3651_v22 = vadd.f32 %v3618_v26, %v7296_v32  ;;  %v3723_v20 = vld [vmem:[#allocation2 + $0x80] sm:$0xff]  ;;  %v5410_v12 = vpop.f32.mrf.mxu1 }
 0x420   : > { %v3839_v34 = vmax.f32 %v3784_v47, 0.0  ;;  %v3785_v8 = vadd.f32 %v7433_v9, %v3723_v20  ;;  %v3619_v23 = vld [vmem:[#allocation2 + $0x9a] sm:$0xff]  ;;  %3372 = vst.msk [vmem:[#allocation2 + $0xab] sm:$0xff] %vm764_vm4, %v3339_v1 }
 0x421   : > { %3684 = vst.msk [vmem:[#allocation2 + $0x92] sm:$0xff] %vm764_vm4, %v3651_v22  ;;  %v3652_v25 = vadd.f32 %v3619_v23, %v7303_v2  ;;  %v3215_v10 = vpop.f32.mrf.mxu1  ;;  %v3311_v23 = vld [vmem:[#allocation2 + $0xd3] sm:$0xff] }
 0x422   : > { %v4564_v42 = vpack.c.bf16 %v3839_v34, %v3839_v34  ;;  %v3840_v50 = vmax.f32 %v3785_v8, 0.0  ;;  %v3724_v32 = vld [vmem:[#allocation2 + $0x88] sm:$0xff]  ;;  %v3340_v52 = vadd.f32 %v3307_v46, %v3215_v10 }
 0x423   : > { %v3786_v53 = vadd.f32 %v7433_v9, %v3724_v32  ;;  %3685 = vst.msk [vmem:[#allocation2 + $0x9a] sm:$0xff] %vm764_vm4, %v3652_v25  ;;  %v3620_v28 = vld [vmem:[#allocation2 + $0xa2] sm:$0xff]  ;;  %v5413_v55 = vpop.f32.mrf.mxu1 }
 0x424   : > { %4116 = vst.msk [vmem:[%s6961_s17 + $0x3c] sm:$0xf] %vm4100_vm5, %v4564_v42  ;;  %v4565_v30 = vpack.c.bf16 %v3840_v50, %v3840_v50  ;;  %v3653_v57 = vadd.f32 %v3620_v28, %v7310_v48 }
 0x425   : > { %v3841_v3 = vmax.f32 %v3786_v53, 0.0  ;;  %3373 = vst.msk [vmem:[#allocation2 + $0xb3] sm:$0xff] %vm764_vm4, %v3340_v52  ;;  %v3218_v45 = vpop.f32.mrf.mxu1  ;;  %v3312_v52 = vld [vmem:[#allocation2 + $0xdb] sm:$0xff] }
 0x426   : > { %4117 = vst.msk [vmem:[%s6961_s17 + $0x40] sm:$0xf] %vm4100_vm5, %v4565_v30  ;;  %v3341_v33 = vadd.f32 %v3308_v44, %v3218_v45 }
 0x427   : > { %v4566_v27 = vpack.c.bf16 %v3841_v3, %v3841_v3  ;;  %3686 = vst.msk [vmem:[#allocation2 + $0xa2] sm:$0xff] %vm764_vm4, %v3653_v57  ;;  %v3621_v19 = vld [vmem:[#allocation2 + $0xaa] sm:$0xff]  ;;  %v5414_v39 = vpop.f32.mrf.mxu1 }
 0x428   : > { %v3725_v2 = vld [vmem:[#allocation2 + $0x90] sm:$0xff]  ;;  %v3654_v63 = vadd.f32 %v3621_v19, %v7317_v11  ;;  %3374 = vst.msk [vmem:[#allocation2 + $0xbb] sm:$0xff] %vm764_vm4, %v3341_v33 }
 0x429   : > { %v3787_v24 = vadd.f32 %v7433_v9, %v3725_v2  ;;  %4118 = vst.msk [vmem:[%s6961_s17 + $0x44] sm:$0xf] %vm4100_vm5, %v4566_v27  ;;  %v3223_v15 = vpop.f32.mrf.mxu1 }
 0x42a   : > { %v3726_v48 = vld [vmem:[#allocation2 + $0x98] sm:$0xff]  ;;  %3687 = vst.msk [vmem:[#allocation2 + $0xaa] sm:$0xff] %vm764_vm4, %v3654_v63  ;;  %v3342_v54 = vadd.f32 %v3309_v7, %v3223_v15 }
 0x42b   : > { %v3842_v35 = vmax.f32 %v3787_v24, 0.0  ;;  %v3788_v14 = vadd.f32 %v7433_v9, %v3726_v48  ;;  %v5417_v13 = vpop.f32.mrf.mxu1  ;;  %v3313_v24 = vld [vmem:[#allocation2 + $0xe3] sm:$0xff] }
 0x42c   : > { %v3622_v62 = vld [vmem:[#allocation2 + $0xb2] sm:$0xff]  ;;  %3375 = vst.msk [vmem:[#allocation2 + $0xc3] sm:$0xff] %vm764_vm4, %v3342_v54 }
 0x42d   : > { %v4567_v38 = vpack.c.bf16 %v3842_v35, %v3842_v35  ;;  %v3843_v47 = vmax.f32 %v3788_v14, 0.0  ;;  %v3655_v40 = vadd.f32 %v3622_v62, %v7324_v0  ;;  %v3226_v26 = vpop.f32.mrf.mxu1 }
 0x42e   : > { %v3727_v11 = vld [vmem:[#allocation2 + $0xa0] sm:$0xff]  ;;  %v3343_v20 = vadd.f32 %v3310_v16, %v3226_v26  ;;  %v3315_v16 = vld [vmem:[#allocation2 + $0xf3] sm:$0xff] }
 0x42f   : > { %4119 = vst.msk [vmem:[%s6961_s17 + $0x48] sm:$0xf] %vm4100_vm5, %v4567_v38  ;;  %v4568_v34 = vpack.c.bf16 %v3843_v47, %v3843_v47  ;;  %v3789_v22 = vadd.f32 %v7433_v9, %v3727_v11  ;;  %v3623_v41 = vld [vmem:[#allocation2 + $0xba] sm:$0xff]  ;;  %v5418_v31 = vpop.f32.mrf.mxu1  ;;  %v3314_v38 = vld [vmem:[#allocation2 + $0xeb] sm:$0xff] }
 0x430   : > { %3688 = vst.msk [vmem:[#allocation2 + $0xb2] sm:$0xff] %vm764_vm4, %v3655_v40  ;;  %v3656_v8 = vadd.f32 %v3623_v41, %v7331_v29  ;;  %3376 = vst.msk [vmem:[#allocation2 + $0xcb] sm:$0xff] %vm764_vm4, %v3343_v20 }
 0x431   : > { %4120 = vst.msk [vmem:[%s6961_s17 + $0x4c] sm:$0xf] %vm4100_vm5, %v4568_v34  ;;  %v3844_v42 = vmax.f32 %v3789_v22, 0.0  ;;  %v3728_v0 = vld [vmem:[#allocation2 + $0xa8] sm:$0xff]  ;;  %v3231_v1 = vpop.f32.mrf.mxu1 }
 0x432   : > { %v3790_v50 = vadd.f32 %v7433_v9, %v3728_v0  ;;  %3689 = vst.msk [vmem:[#allocation2 + $0xba] sm:$0xff] %vm764_vm4, %v3656_v8  ;;  %v3344_v25 = vadd.f32 %v3311_v23, %v3231_v1  ;;  %v3316_v1 = vld [vmem:[#allocation2 + $0xfb] sm:$0xff] }
 0x433   : > { %v4569_v12 = vpack.c.bf16 %v3844_v42, %v3844_v42  ;;  %v3624_v32 = vld [vmem:[#allocation2 + $0xc2] sm:$0xff]  ;;  %v5421_v10 = vpop.f32.mrf.mxu1 }
 0x434   : > { %v3845_v46 = vmax.f32 %v3790_v50, 0.0  ;;  %v3657_v30 = vadd.f32 %v3624_v32, %v7338_v18  ;;  %3377 = vst.msk [vmem:[#allocation2 + $0xd3] sm:$0xff] %vm764_vm4, %v3344_v25 }
 0x435   : > { %4121 = vst.msk [vmem:[%s6961_s17 + $0x50] sm:$0xf] %vm4100_vm5, %v4569_v12  ;;  %v3234_v53 = vpop.f32.mrf.mxu1 }
 0x436   : > { %v4570_v28 = vpack.c.bf16 %v3845_v46, %v3845_v46  ;;  %3690 = vst.msk [vmem:[#allocation2 + $0xc2] sm:$0xff] %vm764_vm4, %v3657_v30  ;;  %v3345_v3 = vadd.f32 %v3312_v52, %v3234_v53 }
 0x437   : > { %v3729_v29 = vld [vmem:[#allocation2 + $0xb0] sm:$0xff]  ;;  %v5422_v2 = vpop.f32.mrf.mxu1 }
 0x438   : > { %v3791_v55 = vadd.f32 %v7433_v9, %v3729_v29  ;;  %v3625_v57 = vld [vmem:[#allocation2 + $0xca] sm:$0xff]  ;;  %4122 = vst.msk [vmem:[%s6961_s17 + $0x54] sm:$0xf] %vm4100_vm5, %v4570_v28 }
 0x439   : > { %v3658_v44 = vadd.f32 %v3625_v57, %v7345_v51  ;;  %3378 = vst.msk [vmem:[#allocation2 + $0xdb] sm:$0xff] %vm764_vm4, %v3345_v3  ;;  %v3730_v18 = vld [vmem:[#allocation2 + $0xb8] sm:$0xff]  ;;  %v3239_v27 = vpop.f32.mrf.mxu1  ;;  %v3317_v29 = vld [vmem:[#allocation2 + $0x103] sm:$0xff] }
 0x43a   : > { %v3846_v45 = vmax.f32 %v3791_v55, 0.0  ;;  %v3792_v19 = vadd.f32 %v7433_v9, %v3730_v18  ;;  %v3346_v39 = vadd.f32 %v3313_v24, %v3239_v27 }
 0x43b   : > { %3691 = vst.msk [vmem:[#allocation2 + $0xca] sm:$0xff] %vm764_vm4, %v3658_v44  ;;  %v3626_v35 = vld [vmem:[#allocation2 + $0xd2] sm:$0xff]  ;;  %v5425_v63 = vpop.f32.mrf.mxu1 }
 0x43c   : > { %v4571_v33 = vpack.c.bf16 %v3846_v45, %v3846_v45  ;;  %v3847_v48 = vmax.f32 %v3792_v19, 0.0  ;;  %v3659_v15 = vadd.f32 %v3626_v35, %v7352_v36  ;;  %3379 = vst.msk [vmem:[#allocation2 + $0xe3] sm:$0xff] %vm764_vm4, %v3346_v39  ;;  %v3318_v44 = vld [vmem:[#allocation2 + $0x10b] sm:$0xff] }
 0x43d   : > { %v3731_v51 = vld [vmem:[#allocation2 + $0xc0] sm:$0xff]  ;;  %v3242_v7 = vpop.f32.mrf.mxu1 }
 0x43e   : > { %4123 = vst.msk [vmem:[%s6961_s17 + $0x58] sm:$0xf] %vm4100_vm5, %v4571_v33  ;;  %v4572_v14 = vpack.c.bf16 %v3847_v48, %v3847_v48  ;;  %v3793_v54 = vadd.f32 %v7433_v9, %v3731_v51  ;;  %v3347_v62 = vadd.f32 %v3314_v38, %v3242_v7  ;;  %v3319_v48 = vld [vmem:[#allocation2 + $0x113] sm:$0xff] }
 0x43f   : > { %3692 = vst.msk [vmem:[#allocation2 + $0xd2] sm:$0xff] %vm764_vm4, %v3659_v15  ;;  %v5426_v47 = vpop.f32.mrf.mxu1 }
 0x440   : > { %v3627_v13 = vld [vmem:[#allocation2 + $0xda] sm:$0xff]  ;;  %4124 = vst.msk [vmem:[%s6961_s17 + $0x5c] sm:$0xf] %vm4100_vm5, %v4572_v14  ;;  %v3848_v40 = vmax.f32 %v3793_v54, 0.0 }
 0x441   : > { %v3660_v11 = vadd.f32 %v3627_v13, %v7359_v59  ;;  %3380 = vst.msk [vmem:[#allocation2 + $0xeb] sm:$0xff] %vm764_vm4, %v3347_v62  ;;  %v3247_v26 = vpop.f32.mrf.mxu1  ;;  %v3320_v47 = vld [vmem:[#allocation2 + $0x11b] sm:$0xff] }
 0x442   : > { %v3732_v36 = vld [vmem:[#allocation2 + $0xc8] sm:$0xff]  ;;  %v4573_v34 = vpack.c.bf16 %v3848_v40, %v3848_v40  ;;  %v3348_v20 = vadd.f32 %v3315_v16, %v3247_v26 }
 0x443   : > { %v3794_v22 = vadd.f32 %v7433_v9, %v3732_v36  ;;  %3693 = vst.msk [vmem:[#allocation2 + $0xda] sm:$0xff] %vm764_vm4, %v3660_v11  ;;  %v3628_v41 = vld [vmem:[#allocation2 + $0xe2] sm:$0xff]  ;;  %v5429_v31 = vpop.f32.mrf.mxu1 }
 0x444   : > { %4125 = vst.msk [vmem:[%s6961_s17 + $0x60] sm:$0xf] %vm4100_vm5, %v4573_v34  ;;  %v3661_v8 = vadd.f32 %v3628_v41, %v7364_v49  ;;  %v3321_v41 = vld [vmem:[#allocation2 + $0x123] sm:$0xff] }
 0x445   : > { %v3849_v42 = vmax.f32 %v3794_v22, 0.0  ;;  %3381 = vst.msk [vmem:[#allocation2 + $0xf3] sm:$0xff] %vm764_vm4, %v3348_v20  ;;  %v3250_v0 = vpop.f32.mrf.mxu1 }
 0x446   : > { %v3733_v59 = vld [vmem:[#allocation2 + $0xd0] sm:$0xff]  ;;  %3694 = vst.msk [vmem:[#allocation2 + $0xe2] sm:$0xff] %vm764_vm4, %v3661_v8  ;;  %v3349_v50 = vadd.f32 %v3316_v1, %v3250_v0 }
 0x447   : > { %v4574_v23 = vpack.c.bf16 %v3849_v42, %v3849_v42  ;;  %v3795_v12 = vadd.f32 %v7433_v9, %v3733_v59  ;;  %v5430_v32 = vpop.f32.mrf.mxu1 }
 0x448   : > { %v3629_v25 = vld [vmem:[#allocation2 + $0xea] sm:$0xff]  ;;  %3382 = vst.msk [vmem:[#allocation2 + $0xfb] sm:$0xff] %vm764_vm4, %v3349_v50 }
 0x449   : > { %4126 = vst.msk [vmem:[%s6961_s17 + $0x64] sm:$0xf] %vm4100_vm5, %v4574_v23  ;;  %v3850_v10 = vmax.f32 %v3795_v12, 0.0  ;;  %v3662_v46 = vadd.f32 %v3629_v25, %v7371_v21  ;;  %v3255_v30 = vpop.f32.mrf.mxu1  ;;  %v3322_v50 = vld [vmem:[#allocation2 + $0x12b] sm:$0xff] }
 0x44a   : > { %v3734_v49 = vld [vmem:[#allocation2 + $0xd8] sm:$0xff]  ;;  %v3350_v28 = vadd.f32 %v3317_v29, %v3255_v30 }
 0x44b   : > { %v4575_v53 = vpack.c.bf16 %v3850_v10, %v3850_v10  ;;  %v3796_v52 = vadd.f32 %v7433_v9, %v3734_v49  ;;  %3695 = vst.msk [vmem:[#allocation2 + $0xea] sm:$0xff] %vm764_vm4, %v3662_v46  ;;  %v5433_v3 = vpop.f32.mrf.mxu1 }
 0x44c   : > { %v3630_v55 = vld [vmem:[#allocation2 + $0xf2] sm:$0xff]  ;;  %3383 = vst.msk [vmem:[#allocation2 + $0x103] sm:$0xff] %vm764_vm4, %v3350_v28 }
 0x44d   : > { %4127 = vst.msk [vmem:[%s6961_s17 + $0x68] sm:$0xf] %vm4100_vm5, %v4575_v53  ;;  %v3851_v57 = vmax.f32 %v3796_v52, 0.0  ;;  %v3663_v2 = vadd.f32 %v3630_v55, %v7376_v61  ;;  %v3735_v21 = vld [vmem:[#allocation2 + $0xe0] sm:$0xff]  ;;  %v3258_v45 = vpop.f32.mrf.mxu1  ;;  %v3323_v52 = vld [vmem:[#allocation2 + $0x133] sm:$0xff] }
 0x44e   : > { %v3797_v27 = vadd.f32 %v7433_v9, %v3735_v21  ;;  %v3351_v24 = vadd.f32 %v3318_v44, %v3258_v45 }
 0x44f   : > { %v4576_v18 = vpack.c.bf16 %v3851_v57, %v3851_v57  ;;  %3696 = vst.msk [vmem:[#allocation2 + $0xf2] sm:$0xff] %vm764_vm4, %v3663_v2  ;;  %v3631_v33 = vld [vmem:[#allocation2 + $0xfa] sm:$0xff]  ;;  %v5434_v19 = vpop.f32.mrf.mxu1 }
 0x450   : > { %v3852_v39 = vmax.f32 %v3797_v27, 0.0  ;;  %v3664_v35 = vadd.f32 %v3631_v33, %v7381_v43  ;;  %3384 = vst.msk [vmem:[#allocation2 + $0x10b] sm:$0xff] %vm764_vm4, %v3351_v24 }
 0x451   : > { %4128 = vst.msk [vmem:[%s6961_s17 + $0x6c] sm:$0xf] %vm4100_vm5, %v4576_v18  ;;  %v3263_v63 = vpop.f32.mrf.mxu1  ;;  %v3324_v18 = vld [vmem:[#allocation2 + $0x13b] sm:$0xff] }
 0x452   : > { %v3736_v61 = vld [vmem:[#allocation2 + $0xe8] sm:$0xff]  ;;  %v4577_v15 = vpack.c.bf16 %v3852_v39, %v3852_v39  ;;  %3697 = vst.msk [vmem:[#allocation2 + $0xfa] sm:$0xff] %vm764_vm4, %v3664_v35  ;;  %v3352_v7 = vadd.f32 %v3319_v48, %v3263_v63 }
 0x453   : > { %v3798_v51 = vadd.f32 %v7433_v9, %v3736_v61  ;;  %v3632_v38 = vld [vmem:[#allocation2 + $0x102] sm:$0xff]  ;;  %v5437_v14 = vpop.f32.mrf.mxu1 }
 0x454   : > { %4129 = vst.msk [vmem:[%s6961_s17 + $0x70] sm:$0xf] %vm4100_vm5, %v4577_v15  ;;  %v3665_v62 = vadd.f32 %v3632_v38, %v7386_v5  ;;  %v3325_v48 = vld [vmem:[#allocation2 + $0x143] sm:$0xff] }
 0x455   : > { %v3853_v54 = vmax.f32 %v3798_v51, 0.0  ;;  %3385 = vst.msk [vmem:[#allocation2 + $0x113] sm:$0xff] %vm764_vm4, %v3352_v7  ;;  %v3266_v13 = vpop.f32.mrf.mxu1 }
 0x456   : > { %v3737_v43 = vld [vmem:[#allocation2 + $0xf0] sm:$0xff]  ;;  %3698 = vst.msk [vmem:[#allocation2 + $0x102] sm:$0xff] %vm764_vm4, %v3665_v62  ;;  %v3353_v36 = vadd.f32 %v3320_v47, %v3266_v13 }
 0x457   : > { %v4578_v40 = vpack.c.bf16 %v3853_v54, %v3853_v54  ;;  %v3799_v11 = vadd.f32 %v7433_v9, %v3737_v43  ;;  %v3633_v26 = vld [vmem:[#allocation2 + $0x10a] sm:$0xff]  ;;  %v5438_v16 = vpop.f32.mrf.mxu1 }
 0x458   : > { %v3666_v22 = vadd.f32 %v3633_v26, %v7391_v4  ;;  %3386 = vst.msk [vmem:[#allocation2 + $0x11b] sm:$0xff] %vm764_vm4, %v3353_v36 }
 0x459   : > { %4130 = vst.msk [vmem:[%s6961_s17 + $0x74] sm:$0xf] %vm4100_vm5, %v4578_v40  ;;  %v3854_v34 = vmax.f32 %v3799_v11, 0.0  ;;  %v3738_v5 = vld [vmem:[#allocation2 + $0xf8] sm:$0xff]  ;;  %v3271_v20 = vpop.f32.mrf.mxu1 }
 0x45a   : > { %v3800_v42 = vadd.f32 %v7433_v9, %v3738_v5  ;;  %3699 = vst.msk [vmem:[#allocation2 + $0x10a] sm:$0xff] %vm764_vm4, %v3666_v22  ;;  %v3354_v8 = vadd.f32 %v3321_v41, %v3271_v20 }
 0x45b   : > { %v4579_v31 = vpack.c.bf16 %v3854_v34, %v3854_v34  ;;  %v5441_v0 = vpop.f32.mrf.mxu1 }
 0x45c   : > { %v3634_v59 = vld [vmem:[#allocation2 + $0x112] sm:$0xff]  ;;  %v3855_v1 = vmax.f32 %v3800_v42, 0.0  ;;  %3387 = vst.msk [vmem:[#allocation2 + $0x123] sm:$0xff] %vm764_vm4, %v3354_v8 }
 0x45d   : > { %4131 = vst.msk [vmem:[%s6961_s17 + $0x78] sm:$0xf] %vm4100_vm5, %v4579_v31  ;;  %v3667_v23 = vadd.f32 %v3634_v59, %v7396_v6  ;;  %v3739_v4 = vld [vmem:[#allocation2 + $0x100] sm:$0xff]  ;;  %v3274_v12 = vpop.f32.mrf.mxu1 }
 0x45e   : > { %v4580_v25 = vpack.c.bf16 %v3855_v1, %v3855_v1  ;;  %v3801_v32 = vadd.f32 %v7433_v9, %v3739_v4  ;;  %v3355_v10 = vadd.f32 %v3322_v50, %v3274_v12  ;;  %v5679_v12 = vld [vmem:[%s7743_s3] ss:$0 sm:$0xff] }
 0x45f   : > { %3700 = vst.msk [vmem:[#allocation2 + $0x112] sm:$0xff] %vm764_vm4, %v3667_v23  ;;  %v3635_v46 = vld [vmem:[#allocation2 + $0x11a] sm:$0xff]  ;;  %v5442_v49 = vpop.f32.mrf.mxu1 }
 0x460   : > { %4132 = vst.msk [vmem:[%s6961_s17 + $0x7c] sm:$0xf] %vm4100_vm5, %v4580_v25  ;;  %v3856_v30 = vmax.f32 %v3801_v32, 0.0  ;;  %v3668_v29 = vadd.f32 %v3635_v46, %v7401_v58 }
 0x461   : > { %3388 = vst.msk [vmem:[#allocation2 + $0x12b] sm:$0xff] %vm764_vm4, %v3355_v10  ;;  %v3740_v6 = vld [vmem:[#allocation2 + $0x108] sm:$0xff]  ;;  %v3279_v53 = vpop.f32.mrf.mxu1 }
 0x462   : > { %v4581_v28 = vpack.c.bf16 %v3856_v30, %v3856_v30  ;;  %v3802_v55 = vadd.f32 %v7433_v9, %v3740_v6  ;;  %3701 = vst.msk [vmem:[#allocation2 + $0x11a] sm:$0xff] %vm764_vm4, %v3668_v29  ;;  %v3356_v3 = vadd.f32 %v3323_v52, %v3279_v53 }
 0x463   : > { %v3636_v57 = vld [vmem:[#allocation2 + $0x122] sm:$0xff]  ;;  %v5445_v2 = vpop.f32.mrf.mxu1 }
 0x464   : > { %4133 = vst.msk [vmem:[%s6961_s17 + $0x80] sm:$0xf] %vm4100_vm5, %v4581_v28  ;;  %v3857_v21 = vmax.f32 %v3802_v55, 0.0  ;;  %v3669_v45 = vadd.f32 %v3636_v57, %v7406_v60 }
 0x465   : > { %3389 = vst.msk [vmem:[#allocation2 + $0x133] sm:$0xff] %vm764_vm4, %v3356_v3  ;;  %v3282_v44 = vpop.f32.mrf.mxu1 }
 0x466   : > { %v3741_v58 = vld [vmem:[#allocation2 + $0x110] sm:$0xff]  ;;  %v4582_v27 = vpack.c.bf16 %v3857_v21, %v3857_v21  ;;  %3702 = vst.msk [vmem:[#allocation2 + $0x122] sm:$0xff] %vm764_vm4, %v3669_v45  ;;  %v3357_v33 = vadd.f32 %v3324_v18, %v3282_v44 }
 0x467   : > { %v3803_v24 = vadd.f32 %v7433_v9, %v3741_v58  ;;  %v5446_v39 = vpop.f32.mrf.mxu1 }
 0x468   : > { %v3637_v19 = vld [vmem:[#allocation2 + $0x12a] sm:$0xff]  ;;  %4134 = vst.msk [vmem:[%s6961_s17 + $0x84] sm:$0xf] %vm4100_vm5, %v4582_v27 }
 0x469   : > { %v3858_v35 = vmax.f32 %v3803_v24, 0.0  ;;  %v3670_v61 = vadd.f32 %v3637_v19, %v7411_v56  ;;  %3390 = vst.msk [vmem:[#allocation2 + $0x13b] sm:$0xff] %vm764_vm4, %v3357_v33  ;;  %v3742_v60 = vld [vmem:[#allocation2 + $0x118] sm:$0xff]  ;;  %v3287_v63 = vpop.f32.mrf.mxu1 }
 0x46a   : > { %v3804_v51 = vadd.f32 %v7433_v9, %v3742_v60  ;;  %v3358_v7 = vadd.f32 %v3325_v48, %v3287_v63 }
 0x46b   : > { %v4583_v15 = vpack.c.bf16 %v3858_v35, %v3858_v35  ;;  %3703 = vst.msk [vmem:[#allocation2 + $0x12a] sm:$0xff] %vm764_vm4, %v3670_v61  ;;  %v5449_v14 = vpop.f32.mrf.mxu1 }
 0x46c   : > { %v3638_v38 = vld [vmem:[#allocation2 + $0x132] sm:$0xff]  ;;  %v3859_v54 = vmax.f32 %v3804_v51, 0.0  ;;  %3391 = vst.msk [vmem:[#allocation2 + $0x143] sm:$0xff] %vm764_vm4, %v3358_v7 }
 0x46d   : > { %4135 = vst.msk [vmem:[%s6961_s17 + $0x88] sm:$0xf] %vm4100_vm5, %v4583_v15  ;;  %v3671_v62 = vadd.f32 %v3638_v38, %v7416_v37  ;;  %v3743_v56 = vld [vmem:[#allocation2 + $0x120] sm:$0xff]  ;;  %v3290_v43 = vpop.f32.mrf.mxu1 }
 0x46e   : > { %v4584_v13 = vpack.c.bf16 %v3859_v54, %v3859_v54  ;;  %v3805_v47 = vadd.f32 %v7433_v9, %v3743_v56 }
 0x46f   : > { %3704 = vst.msk [vmem:[#allocation2 + $0x132] sm:$0xff] %vm764_vm4, %v3671_v62  ;;  %v5450_v11 = vpop.f32.mrf.mxu1 }
 0x470   : > { %v3639_v40 = vld [vmem:[#allocation2 + $0x13a] sm:$0xff]  ;;  %4136 = vst.msk [vmem:[%s6961_s17 + $0x8c] sm:$0xf] %vm4100_vm5, %v4584_v13  ;;  %v3860_v36 = vmax.f32 %v3805_v47, 0.0 }
 0x471   : > { %v3672_v26 = vadd.f32 %v3639_v40, %v7421_v17  ;;  %v3602_v37 = vpop.f32.mrf.mxu1 }
 0x472   : > { %v3744_v16 = vld [vmem:[#allocation2 + $0x128] sm:$0xff]  ;;  %v4585_v34 = vpack.c.bf16 %v3860_v36, %v3860_v36 }
 0x473   : > { %v3806_v22 = vadd.f32 %v7433_v9, %v3744_v16  ;;  %3705 = vst.msk [vmem:[#allocation2 + $0x13a] sm:$0xff] %vm764_vm4, %v3672_v26  ;;  %v3640_v5 = vld [vmem:[#allocation2 + $0x142] sm:$0xff]  ;;  %v5529_v20 = vpop.f32.mrf.mxu1 }
 0x474   : > { %4137 = vst.msk [vmem:[%s6961_s17 + $0x90] sm:$0xf] %vm4100_vm5, %v4585_v34  ;;  %v3673_v31 = vadd.f32 %v3640_v5, %v3602_v37 }
 0x475   : > { %v3861_v41 = vmax.f32 %v3806_v22, 0.0  ;;  %v3605_v8 = vpop.f32.mrf.mxu1 }
 0x476   : > { %v3745_v42 = vld [vmem:[#allocation2 + $0x130] sm:$0xff]  ;;  %3706 = vst.msk [vmem:[#allocation2 + $0x142] sm:$0xff] %vm764_vm4, %v3673_v31 }
 0x477   : > { %v4586_v59 = vpack.c.bf16 %v3861_v41, %v3861_v41  ;;  %v3807_v17 = vadd.f32 %v7433_v9, %v3745_v42  ;;  %v5530_v0 = vpop.f32.mrf.mxu1 }
 0x479   : > { %4138 = vst.msk [vmem:[%s6961_s17 + $0x94] sm:$0xf] %vm4100_vm5, %v4586_v59  ;;  %v3862_v1 = vmax.f32 %v3807_v17, 0.0 }
 0x47a   : > { %v3746_v23 = vld [vmem:[#allocation2 + $0x138] sm:$0xff] }
 0x47b   : > { %v4587_v4 = vpack.c.bf16 %v3862_v1, %v3862_v1  ;;  %v3808_v50 = vadd.f32 %v5679_v12, %v3746_v23 }
 0x47d   : > { %4139 = vst.msk [vmem:[%s6961_s17 + $0x98] sm:$0xf] %vm4100_vm5, %v4587_v4  ;;  %v3863_v25 = vmax.f32 %v3808_v50, 0.0  ;;  %v3747_v9 = vld [vmem:[#allocation2 + $0x140] sm:$0xff]  ;;  %v3748_v32 = vld [vmem:[#allocation2 + $0x148] sm:$0xff] }
 0x47e   : > { %v3809_v46 = vadd.f32 %v5679_v12, %v3747_v9  ;;  %v3810_v49 = vadd.f32 %v5679_v12, %v3748_v32 }
 0x47f   : > { %v4588_v10 = vpack.c.bf16 %v3863_v25, %v3863_v25 }
 0x480   : > { %v3864_v30 = vmax.f32 %v3809_v46, 0.0  ;;  %v3865_v29 = vmax.f32 %v3810_v49, 0.0 }
 0x481   : > { %4140 = vst.msk [vmem:[%s6961_s17 + $0x9c] sm:$0xf] %vm4100_vm5, %v4588_v10 }
 0x482   : > { %v4589_v6 = vpack.c.bf16 %v3864_v30, %v3864_v30  ;;  %v4590_v53 = vpack.c.bf16 %v3865_v29, %v3865_v29 }
 0x484   : > { %4141 = vst.msk [vmem:[%s6961_s17 + $0xa0] sm:$0xf] %vm4100_vm5, %v4589_v6  ;;  %4142 = vst.msk [vmem:[%s6961_s17 + $0xa4] sm:$0xf] %vm4100_vm5, %v4590_v53 }
 0x485 PF: > { %s14_s15 = sadd.s32 1, %s5686_s15  }
 0x486   : > { %p11_p5 = scmp.ge.s32.totalorder %s14_s15, 4  }
 0x488   :  { %13 = sbr.rel (!%p11_p5) target bundleno = 1 (0x1), region = 66 }

// kernel: _lambda_.3
= control target key start
LH: loop header
LB: loop body
LE: loop exit
PB: predicated region body
PF: predicated region fallthrough
CT: control target
= control target key end

     0   :  { %v2045_v28 = vlaneseq  ;;  %v14889_v36 = vmov 1966171168   ;;  %vm8863_vm0 = vcmask 785408   ;;  %s18227_s0 = inlined_call_operand.vmem [shape: bf16[2,15840], index: 0, kind: input, shape index: {}]   ;;  %s18228_s1 = inlined_call_operand.vmem [shape: bf16[15840,128], index: 1, kind: input, shape index: {}]   ;;  %s18229_s2 = inlined_call_operand.vmem [shape: f32[1,128], index: 2, kind: input, shape index: {}]   ;;  %s18230_s3 = inlined_call_operand.vmem [shape: bf16[128,4], index: 3, kind: input, shape index: {}]   ;;  %s18231_s4 = inlined_call_operand.vmem [shape: f32[1,4], index: 4, kind: input, shape index: {}]   ;;  %s18232_s5 = inlined_call_operand.hbm [shape: f32[2,4], index: 5, kind: output, shape index: {}]  }
   0x1   :  { %v13854_v0 = vld [vmem:[%s18228_s1 + $0x78] sm:$0xff]   ;;  %v13858_v4 = vld [vmem:[%s18228_s1 + $0x70] sm:$0xff]   ;;  %v13862_v8 = vld [vmem:[%s18228_s1 + $0x68] sm:$0xff]   ;;  %v2043_v37 = vunpack.c.l.s4 %v14889_v36 }
   0x2   :  { %v13855_v1 = vld [vmem:[%s18228_s1 + $0xf8] sm:$0xff]   ;;  %12478 = vmatprep.subr.bf16.mxu0 %v13854_v0  ;;  %v13859_v5 = vld [vmem:[%s18228_s1 + $0xf0] sm:$0xff]   ;;  %v13863_v9 = vld [vmem:[%s18228_s1 + $0xe8] sm:$0xff]   ;;  %v2046_v33 = vshrl.u32 %v2045_v28, 7 }
   0x3   :  { %v13856_v2 = vld [vmem:[%s18228_s1 + $0x38] sm:$0xff]   ;;  %12500 = vmatprep.subr.bf16.mxu1 %v13855_v1  ;;  %v13860_v6 = vld [vmem:[%s18228_s1 + $0x30] sm:$0xff]   ;;  %v13864_v10 = vld [vmem:[%s18228_s1 + $0x28] sm:$0xff]   ;;  %v2044_v40 = vunpack.c.0.s8 %v2043_v37 }
   0x4   :  { %v13857_v3 = vld [vmem:[%s18228_s1 + $0xb8] sm:$0xff]   ;;  %12479 = vmatpush3.bf16.msra.mxu0 %v13856_v2  ;;  %v13861_v7 = vld [vmem:[%s18228_s1 + $0xb0] sm:$0xff]   ;;  %v13865_v11 = vld [vmem:[%s18228_s1 + $0xa8] sm:$0xff]  }
   0x5   :  { %12501 = vmatpush3.bf16.msra.mxu1 %v13857_v3  ;;  %12480 = vmatprep.subr.bf16.mxu0 %v13858_v4  ;;  %v13866_v12 = vld [vmem:[%s18228_s1 + $0x60] sm:$0xff]   ;;  %v13870_v16 = vld [vmem:[%s18228_s1 + $0x58] sm:$0xff]   ;;  %v13874_v20 = vld [vmem:[%s18228_s1 + $0x50] sm:$0xff]   ;;  %v15029_v41 = vsub.s32 %v2044_v40, %v2046_v33 }
   0x6   :  { %12502 = vmatprep.subr.bf16.mxu1 %v13859_v5  ;;  %v13867_v13 = vld [vmem:[%s18228_s1 + $0xe0] sm:$0xff]   ;;  %v13871_v17 = vld [vmem:[%s18228_s1 + $0xd8] sm:$0xff]   ;;  %v13875_v21 = vld [vmem:[%s18228_s1 + $0xd0] sm:$0xff]  }
   0x7   :  { %v13868_v14 = vld [vmem:[%s18228_s1 + $0x20] sm:$0xff]   ;;  %v13872_v18 = vld [vmem:[%s18228_s1 + $0x18] sm:$0xff]   ;;  %v13876_v22 = vld [vmem:[%s18228_s1 + $0x10] sm:$0xff]  }
   0x8   :  { %12481 = vmatpush3.bf16.msra.mxu0 %v13860_v6  ;;  %v13869_v15 = vld [vmem:[%s18228_s1 + $0xa0] sm:$0xff]   ;;  %v13873_v19 = vld [vmem:[%s18228_s1 + $0x98] sm:$0xff]   ;;  %v13877_v23 = vld [vmem:[%s18228_s1 + $0x90] sm:$0xff]  }
   0x9   :  { %12503 = vmatpush3.bf16.msra.mxu1 %v13861_v7  ;;  %12482 = vmatprep.subr.bf16.mxu0 %v13862_v8  ;;  %v13878_v24 = vld [vmem:[%s18228_s1 + $0x48] sm:$0xff]   ;;  %v13882_v29 = vld [vmem:[%s18228_s1 + $0x40] sm:$0xff]   ;;  %v13887_v35 = vld [vmem:[%s18228_s1 + $0x178] sm:$0xff]  }
   0xa   :  { %12504 = vmatprep.subr.bf16.mxu1 %v13863_v9  ;;  %v13879_v25 = vld [vmem:[%s18228_s1 + $0xc8] sm:$0xff]   ;;  %v13883_v30 = vld [vmem:[%s18228_s1 + $0xc0] sm:$0xff]   ;;  %v13888_v38 = vld [vmem:[%s18228_s1 + $0x1f8] sm:$0xff]  }
   0xb   :  { %v13880_v26 = vld [vmem:[%s18228_s1 + $0x8] sm:$0xff]   ;;  %v13884_v31 = vld [vmem:[%s18228_s1] sm:$0xff]   ;;  %v13889_v47 = vld [vmem:[%s18228_s1 + $0x138] sm:$0xff]  }
   0xc   :  { %12483 = vmatpush3.bf16.msra.mxu0 %v13864_v10  ;;  %v13881_v27 = vld [vmem:[%s18228_s1 + $0x88] sm:$0xff]   ;;  %v13885_v32 = vld [vmem:[%s18228_s1 + $0x80] sm:$0xff]   ;;  %v13890_v49 = vld [vmem:[%s18228_s1 + $0x1b8] sm:$0xff]  }
   0xd   :  { %12505 = vmatpush3.bf16.msra.mxu1 %v13865_v11  ;;  %12484 = vmatprep.subr.bf16.mxu0 %v13866_v12  ;;  %v22_v34 = vld [vmem:[%s18227_s0] sm:$0xff]  ;;  %v13891_v52 = vld [vmem:[%s18228_s1 + $0x170] sm:$0xff]   ;;  %v13895_v58 = vld [vmem:[%s18228_s1 + $0x168] sm:$0xff]  }
   0xe   :  { %12506 = vmatprep.subr.bf16.mxu1 %v13867_v13  ;;  %v2041_v39 = vcombine.high %v22_v34, %v22_v34  ;;  %v2048_v42 = vrot.slane %v22_v34, %v15029_v41  ;;  %v13892_v54 = vld [vmem:[%s18228_s1 + $0x1f0] sm:$0xff]   ;;  %v13896_v59 = vld [vmem:[%s18228_s1 + $0x1e8] sm:$0xff]   ;;  %v13899_v62 = vld [vmem:[%s18228_s1 + $0x160] sm:$0xff]  }
   0xf   :  { %v13893_v55 = vld [vmem:[%s18228_s1 + $0x130] sm:$0xff]   ;;  %v13897_v60 = vld [vmem:[%s18228_s1 + $0x128] sm:$0xff]   ;;  %v13900_v63 = vld [vmem:[%s18228_s1 + $0x1e0] sm:$0xff]  }
  0x10   :  { %12485 = vmatpush3.bf16.msra.mxu0 %v13868_v14  ;;  %v15033_v43 = vrot.slane %v2041_v39, %v15029_v41  ;;  %v2056_v44 = vcombine.high %v2048_v42, %v2048_v42  ;;  %v2064_v45 = vrot.slane %v2048_v42, %v15029_v41  ;;  %v13894_v57 = vld [vmem:[%s18228_s1 + $0x1b0] sm:$0xff]   ;;  %v13898_v61 = vld [vmem:[%s18228_s1 + $0x1a8] sm:$0xff]   ;;  %v13901_v0 = vld [vmem:[%s18228_s1 + $0x120] sm:$0xff]  }
  0x11   :  { %12507 = vmatpush3.bf16.msra.mxu1 %v13869_v15  ;;  %12486 = vmatprep.subr.bf16.mxu0 %v13870_v16  ;;  %v13902_v1 = vld [vmem:[%s18228_s1 + $0x1a0] sm:$0xff]   ;;  %v13903_v2 = vld [vmem:[%s18228_s1 + $0x158] sm:$0xff]   ;;  %v13907_v6 = vld [vmem:[%s18228_s1 + $0x150] sm:$0xff]  }
  0x12   :  { %12508 = vmatprep.subr.bf16.mxu1 %v13871_v17  ;;  %v2057_v46 = vcombine.high %v15033_v43, %v15033_v43  ;;  %v2078_v48 = vrot.slane %v2056_v44, %v15029_v41  ;;  %v2086_v51 = vcombine.high %v2064_v45, %v2064_v45  ;;  %v13904_v3 = vld [vmem:[%s18228_s1 + $0x1d8] sm:$0xff]   ;;  %v13908_v7 = vld [vmem:[%s18228_s1 + $0x1d0] sm:$0xff]   ;;  %v13911_v10 = vld [vmem:[%s18228_s1 + $0x148] sm:$0xff]  }
  0x13   :  { %v13905_v4 = vld [vmem:[%s18228_s1 + $0x118] sm:$0xff]   ;;  %v13909_v8 = vld [vmem:[%s18228_s1 + $0x110] sm:$0xff]   ;;  %v13912_v11 = vld [vmem:[%s18228_s1 + $0x1c8] sm:$0xff]  }
  0x14   :  { %12487 = vmatpush3.bf16.msra.mxu0 %v13872_v18  ;;  %v2085_v50 = vrot.slane %v2057_v46, %v15029_v41  ;;  %8899 = vmatprep.mubr.bf16.mxu0 %v2078_v48  ;;  %v2088_v53 = vcombine.high %v2078_v48, %v2078_v48  ;;  %v13906_v5 = vld [vmem:[%s18228_s1 + $0x198] sm:$0xff]   ;;  %v13910_v9 = vld [vmem:[%s18228_s1 + $0x190] sm:$0xff]   ;;  %v13913_v12 = vld [vmem:[%s18228_s1 + $0x108] sm:$0xff]   ;;  %v2071_v18 = vrot.slane %v15033_v43, %v15029_v41 }
  0x15   :  { %12509 = vmatpush3.bf16.msra.mxu1 %v13873_v19  ;;  %12488 = vmatprep.subr.bf16.mxu0 %v13874_v20  ;;  %v13914_v13 = vld [vmem:[%s18228_s1 + $0x188] sm:$0xff]   ;;  %v13915_v14 = vld [vmem:[%s18228_s1 + $0x140] sm:$0xff]   ;;  %v13919_v19 = vld [vmem:[%s18228_s1 + $0x278] sm:$0xff]  }
  0x16   :  { %12510 = vmatprep.subr.bf16.mxu1 %v13875_v21  ;;  %v2089_v56 = vcombine.high %v2085_v50, %v2085_v50  ;;  %8939 = vmatprep.mubr.bf16.mxu1 %v2088_v53  ;;  %v13916_v15 = vld [vmem:[%s18228_s1 + $0x1c0] sm:$0xff]   ;;  %v13920_v20 = vld [vmem:[%s18228_s1 + $0x2f8] sm:$0xff]   ;;  %v13927_v28 = vld [vmem:[%s18228_s1 + $0x268] sm:$0xff]  }
  0x17   :  { %v13917_v16 = vld [vmem:[%s18228_s1 + $0x100] sm:$0xff]   ;;  %v13921_v21 = vld [vmem:[%s18228_s1 + $0x238] sm:$0xff]   ;;  %v13939_v40 = vld [vmem:[%s18228_s1 + $0x250] sm:$0xff]  }
  0x18   :  { %12489 = vmatpush3.bf16.msra.mxu0 %v13876_v22  ;;  %v13918_v17 = vld [vmem:[%s18228_s1 + $0x180] sm:$0xff]   ;;  %v13922_v22 = vld [vmem:[%s18228_s1 + $0x2b8] sm:$0xff]   ;;  %v13940_v42 = vld [vmem:[%s18228_s1 + $0x2d0] sm:$0xff]  }
  0x19   :  { %12511 = vmatpush3.bf16.msra.mxu1 %v13877_v23  ;;  %12490 = vmatprep.subr.bf16.mxu0 %v13878_v24  ;;  %v2087_v23 = vcombine.high %v2071_v18, %v2071_v18  ;;  %v13923_v24 = vld [vmem:[%s18228_s1 + $0x270] sm:$0xff]   ;;  %v13932_v33 = vld [vmem:[%s18228_s1 + $0x2e0] sm:$0xff]   ;;  %v13935_v36 = vld [vmem:[%s18228_s1 + $0x258] sm:$0xff]  }
  0x1a   :  { %12512 = vmatprep.subr.bf16.mxu1 %v13879_v25  ;;  %v13924_v25 = vld [vmem:[%s18228_s1 + $0x2f0] sm:$0xff]   ;;  %v13933_v34 = vld [vmem:[%s18228_s1 + $0x220] sm:$0xff]   ;;  %v13936_v37 = vld [vmem:[%s18228_s1 + $0x2d8] sm:$0xff]  }
  0x1b   :  { %v13938_v39 = vld [vmem:[%s18228_s1 + $0x298] sm:$0xff]   ;;  %v13941_v43 = vld [vmem:[%s18228_s1 + $0x210] sm:$0xff]   ;;  %v23_v46 = vld [vmem:[%s18227_s0 + $0x8] sm:$0xff] }
  0x1c   :  { %12491 = vmatpush3.bf16.msra.mxu0 %v13880_v26  ;;  %v13925_v26 = vld [vmem:[%s18228_s1 + $0x230] sm:$0xff]   ;;  %v2097_v48 = vrot.slane %v23_v46, %v15029_v41 }
  0x1d   :  { %12513 = vmatpush3.bf16.msra.mxu1 %v13881_v27  ;;  %12492 = vmatprep.subr.bf16.mxu0 %v13882_v29  ;;  %v13926_v27 = vld [vmem:[%s18228_s1 + $0x2b0] sm:$0xff]   ;;  %v13928_v29 = vld [vmem:[%s18228_s1 + $0x2e8] sm:$0xff]  }
  0x1e   :  { %12514 = vmatprep.subr.bf16.mxu1 %v13883_v30  ;;  %v13929_v30 = vld [vmem:[%s18228_s1 + $0x228] sm:$0xff]   ;;  %v13942_v44 = vld [vmem:[%s18228_s1 + $0x290] sm:$0xff]  }
  0x20   :  { %12493 = vmatpush3.bf16.msra.mxu0 %v13884_v31  ;;  %v13930_v31 = vld [vmem:[%s18228_s1 + $0x2a8] sm:$0xff]  }
  0x21   :  { %12515 = vmatpush3.bf16.msra.mxu1 %v13885_v32  ;;  %12522 = vmatprep.subr.bf16.mxu0 %v13887_v35  ;;  %v13931_v32 = vld [vmem:[%s18228_s1 + $0x260] sm:$0xff]  }
  0x22   :  { %12544 = vmatprep.subr.bf16.mxu1 %v13888_v38  ;;  %v13934_v35 = vld [vmem:[%s18228_s1 + $0x2a0] sm:$0xff]   ;;  %v13937_v38 = vld [vmem:[%s18228_s1 + $0x218] sm:$0xff]  }
  0x23   :  { %8900 = vmatmul.mubr.bf16.vlgmr.msra.gmra.mxu0 %v2064_v45  ;;  %v13943_v45 = vld [vmem:[%s18228_s1 + $0x248] sm:$0xff]  }
  0x24   :  { %12523 = vmatpush3.bf16.msra.mxu0 %v13889_v47  ;;  %8940 = vmatmul.mubr.bf16.vlgmr.msra.gmra.mxu1 %v2086_v51  ;;  %v13944_v47 = vld [vmem:[%s18228_s1 + $0x2c8] sm:$0xff]  }
  0x25   :  { %12524 = vmatprep.subr.bf16.mxu0 %v13891_v52  ;;  %12545 = vmatpush3.bf16.msra.mxu1 %v13890_v49  ;;  %v2090_v49 = vcombine.high %v23_v46, %v23_v46  ;;  %v13946_v51 = vld [vmem:[%s18228_s1 + $0x288] sm:$0xff]   ;;  %v2105_v52 = vcombine.high %v2097_v48, %v2097_v48 }
  0x26   :  { %8979 = vmatprep.mubr.bf16.mxu0 %v2085_v50  ;;  %12546 = vmatprep.subr.bf16.mxu1 %v13892_v54  ;;  %v13945_v50 = vld [vmem:[%s18228_s1 + $0x208] sm:$0xff]   ;;  %v13947_v54 = vld [vmem:[%s18228_s1 + $0x240] sm:$0xff]  }
  0x27   :  { %9019 = vmatprep.mubr.bf16.mxu1 %v2089_v56  ;;  %v15221_v53 = vrot.slane %v2090_v49, %v15029_v41  ;;  %v2127_v56 = vrot.slane %v2105_v52, %v15029_v41  ;;  %v13994_v46 = vld [vmem:[%s18228_s1 + $0x428] sm:$0xff]   ;;  %v13997_v49 = vld [vmem:[%s18228_s1 + $0x4e0] sm:$0xff]   ;;  %v14000_v52 = vld [vmem:[%s18228_s1 + $0x458] sm:$0xff]  }
  0x28   :  { %12525 = vmatpush3.bf16.msra.mxu0 %v13893_v55  ;;  %v13948_v55 = vld [vmem:[%s18228_s1 + $0x2c0] sm:$0xff]  }
  0x29   :  { %12526 = vmatprep.subr.bf16.mxu0 %v13895_v58  ;;  %12547 = vmatpush3.bf16.msra.mxu1 %v13894_v57  ;;  %v2106_v57 = vcombine.high %v15221_v53, %v15221_v53  ;;  %v13949_v58 = vld [vmem:[%s18228_s1 + $0x200] sm:$0xff]  }
  0x2a   :  { %12548 = vmatprep.subr.bf16.mxu1 %v13896_v59  ;;  %v13950_v59 = vld [vmem:[%s18228_s1 + $0x280] sm:$0xff]  }
  0x2c   :  { %12527 = vmatpush3.bf16.msra.mxu0 %v13897_v60  ;;  %v2137_v60 = vcombine.high %v2127_v56, %v2127_v56 }
  0x2d   :  { %12528 = vmatprep.subr.bf16.mxu0 %v13899_v62  ;;  %12549 = vmatpush3.bf16.msra.mxu1 %v13898_v61  ;;  %v2113_v61 = vrot.slane %v2097_v48, %v15029_v41  ;;  %v13951_v62 = vld [vmem:[%s18228_s1 + $0x378] sm:$0xff]   ;;  %v13996_v48 = vld [vmem:[%s18228_s1 + $0x460] sm:$0xff]  }
  0x2e   :  { %12550 = vmatprep.subr.bf16.mxu1 %v13900_v63  ;;  %v13952_v63 = vld [vmem:[%s18228_s1 + $0x3f8] sm:$0xff]  }
  0x30   :  { %12529 = vmatpush3.bf16.msra.mxu0 %v13901_v0  ;;  %v2134_v0 = vrot.slane %v2106_v57, %v15029_v41  ;;  %v14005_v57 = vld [vmem:[%s18228_s1 + $0x4d0] sm:$0xff]  }
  0x31   :  { %12530 = vmatprep.subr.bf16.mxu0 %v13903_v2  ;;  %12551 = vmatpush3.bf16.msra.mxu1 %v13902_v1  ;;  %v13953_v1 = vld [vmem:[%s18228_s1 + $0x338] sm:$0xff]  }
  0x32   :  { %12552 = vmatprep.subr.bf16.mxu1 %v13904_v3  ;;  %v13954_v2 = vld [vmem:[%s18228_s1 + $0x3b8] sm:$0xff]   ;;  %v2135_v3 = vcombine.high %v2113_v61, %v2113_v61 }
  0x34   :  { %12531 = vmatpush3.bf16.msra.mxu0 %v13905_v4  ;;  %v13955_v4 = vld [vmem:[%s18228_s1 + $0x370] sm:$0xff]  }
  0x35   :  { %12532 = vmatprep.subr.bf16.mxu0 %v13907_v6  ;;  %12553 = vmatpush3.bf16.msra.mxu1 %v13906_v5  ;;  %v13956_v5 = vld [vmem:[%s18228_s1 + $0x3f0] sm:$0xff]   ;;  %v2138_v6 = vcombine.high %v2134_v0, %v2134_v0 }
  0x36   :  { %12554 = vmatprep.subr.bf16.mxu1 %v13908_v7  ;;  %v13957_v7 = vld [vmem:[%s18228_s1 + $0x330] sm:$0xff]  }
  0x38   :  { %12533 = vmatpush3.bf16.msra.mxu0 %v13909_v8  ;;  %v13958_v8 = vld [vmem:[%s18228_s1 + $0x3b0] sm:$0xff]  }
  0x39   :  { %12534 = vmatprep.subr.bf16.mxu0 %v13911_v10  ;;  %12555 = vmatpush3.bf16.msra.mxu1 %v13910_v9  ;;  %v13959_v9 = vld [vmem:[%s18228_s1 + $0x368] sm:$0xff]  }
  0x3a   :  { %12556 = vmatprep.subr.bf16.mxu1 %v13912_v11  ;;  %v13960_v10 = vld [vmem:[%s18228_s1 + $0x3e8] sm:$0xff]  }
  0x3b   :  { %v13961_v11 = vld [vmem:[%s18228_s1 + $0x328] sm:$0xff]  }
  0x3c   :  { %12535 = vmatpush3.bf16.msra.mxu0 %v13913_v12  ;;  %v13962_v12 = vld [vmem:[%s18228_s1 + $0x3a8] sm:$0xff]  }
  0x3d   :  { %12536 = vmatprep.subr.bf16.mxu0 %v13915_v14  ;;  %12557 = vmatpush3.bf16.msra.mxu1 %v13914_v13  ;;  %v13963_v13 = vld [vmem:[%s18228_s1 + $0x360] sm:$0xff]  }
  0x3e   :  { %12558 = vmatprep.subr.bf16.mxu1 %v13916_v15  ;;  %v13964_v14 = vld [vmem:[%s18228_s1 + $0x3e0] sm:$0xff]  }
  0x3f   :  { %v13965_v15 = vld [vmem:[%s18228_s1 + $0x320] sm:$0xff]  }
  0x40   :  { %12537 = vmatpush3.bf16.msra.mxu0 %v13917_v16  ;;  %v13966_v16 = vld [vmem:[%s18228_s1 + $0x3a0] sm:$0xff]  }
  0x41   :  { %12566 = vmatprep.subr.bf16.mxu0 %v13919_v19  ;;  %12559 = vmatpush3.bf16.msra.mxu1 %v13918_v17  ;;  %v13967_v17 = vld [vmem:[%s18228_s1 + $0x358] sm:$0xff]  }
  0x42   :  { %12588 = vmatprep.subr.bf16.mxu1 %v13920_v20  ;;  %v13969_v19 = vld [vmem:[%s18228_s1 + $0x318] sm:$0xff]  }
  0x43   :  { %8980 = vmatmul.mubr.bf16.vlgmr.msra.gmra.mxu0 %v2071_v18  ;;  %v13968_v18 = vld [vmem:[%s18228_s1 + $0x3d8] sm:$0xff]  }
  0x44   :  { %12567 = vmatpush3.bf16.msra.mxu0 %v13921_v21  ;;  %9020 = vmatmul.mubr.bf16.vlgmr.msra.gmra.mxu1 %v2087_v23  ;;  %v13970_v20 = vld [vmem:[%s18228_s1 + $0x398] sm:$0xff]   ;;  %v13971_v21 = vld [vmem:[%s18228_s1 + $0x350] sm:$0xff]  }
  0x45   :  { %12568 = vmatprep.subr.bf16.mxu0 %v13923_v24  ;;  %12589 = vmatpush3.bf16.msra.mxu1 %v13922_v22  ;;  %v13972_v22 = vld [vmem:[%s18228_s1 + $0x3d0] sm:$0xff]  }
  0x46   :  { %12590 = vmatprep.subr.bf16.mxu1 %v13924_v25  ;;  %9059 = vmatprep.mubr.bf16.mxu0 %v2127_v56  ;;  %v13973_v23 = vld [vmem:[%s18228_s1 + $0x310] sm:$0xff]   ;;  %v13975_v25 = vld [vmem:[%s18228_s1 + $0x348] sm:$0xff]  }
  0x47   :  { %9099 = vmatprep.mubr.bf16.mxu1 %v2137_v60  ;;  %v13974_v24 = vld [vmem:[%s18228_s1 + $0x390] sm:$0xff]   ;;  %v14008_v60 = vld [vmem:[%s18228_s1 + $0x448] sm:$0xff]  }
  0x48   :  { %12569 = vmatpush3.bf16.msra.mxu0 %v13925_v26  ;;  %v13976_v26 = vld [vmem:[%s18228_s1 + $0x3c8] sm:$0xff]   ;;  %v14004_v56 = vld [vmem:[%s18228_s1 + $0x450] sm:$0xff]  }
  0x49   :  { %12570 = vmatprep.subr.bf16.mxu0 %v13927_v28  ;;  %12591 = vmatpush3.bf16.msra.mxu1 %v13926_v27  ;;  %v13977_v27 = vld [vmem:[%s18228_s1 + $0x308] sm:$0xff]  }
  0x4a   :  { %12592 = vmatprep.subr.bf16.mxu1 %v13928_v29  ;;  %v13978_v28 = vld [vmem:[%s18228_s1 + $0x388] sm:$0xff]   ;;  %v13979_v29 = vld [vmem:[%s18228_s1 + $0x340] sm:$0xff]  }
  0x4c   :  { %12571 = vmatpush3.bf16.msra.mxu0 %v13929_v30  ;;  %v13980_v30 = vld [vmem:[%s18228_s1 + $0x3c0] sm:$0xff]  }
  0x4d   :  { %12572 = vmatprep.subr.bf16.mxu0 %v13931_v32  ;;  %12593 = vmatpush3.bf16.msra.mxu1 %v13930_v31  ;;  %v13981_v31 = vld [vmem:[%s18228_s1 + $0x300] sm:$0xff]  }
  0x4e   :  { %12594 = vmatprep.subr.bf16.mxu1 %v13932_v33  ;;  %v13982_v32 = vld [vmem:[%s18228_s1 + $0x380] sm:$0xff]   ;;  %v2120_v33 = vrot.slane %v15221_v53, %v15029_v41  ;;  %v14001_v53 = vld [vmem:[%s18228_s1 + $0x4d8] sm:$0xff]  }
  0x50   :  { %12573 = vmatpush3.bf16.msra.mxu0 %v13933_v34  ;;  %v13984_v34 = vld [vmem:[%s18228_s1 + $0x478] sm:$0xff]  }
  0x51   :  { %12574 = vmatprep.subr.bf16.mxu0 %v13935_v36  ;;  %12595 = vmatpush3.bf16.msra.mxu1 %v13934_v35  ;;  %v13985_v35 = vld [vmem:[%s18228_s1 + $0x4f8] sm:$0xff]  }
  0x52   :  { %12596 = vmatprep.subr.bf16.mxu1 %v13936_v37  ;;  %v13986_v36 = vld [vmem:[%s18228_s1 + $0x438] sm:$0xff]  }
  0x53   :  { %v13987_v37 = vld [vmem:[%s18228_s1 + $0x4b8] sm:$0xff]  }
  0x54   :  { %12575 = vmatpush3.bf16.msra.mxu0 %v13937_v38  ;;  %v2136_v38 = vcombine.high %v2120_v33, %v2120_v33 }
  0x55   :  { %12576 = vmatprep.subr.bf16.mxu0 %v13939_v40  ;;  %12597 = vmatpush3.bf16.msra.mxu1 %v13938_v39  ;;  %v13988_v39 = vld [vmem:[%s18228_s1 + $0x470] sm:$0xff]  }
  0x56   :  { %12598 = vmatprep.subr.bf16.mxu1 %v13940_v42  ;;  %v13989_v40 = vld [vmem:[%s18228_s1 + $0x4f0] sm:$0xff]  }
  0x57   :  { %v13990_v42 = vld [vmem:[%s18228_s1 + $0x430] sm:$0xff]  }
  0x58   :  { %12577 = vmatpush3.bf16.msra.mxu0 %v13941_v43  ;;  %v13991_v43 = vld [vmem:[%s18228_s1 + $0x4b0] sm:$0xff]  }
  0x59   :  { %12578 = vmatprep.subr.bf16.mxu0 %v13943_v45  ;;  %12599 = vmatpush3.bf16.msra.mxu1 %v13942_v44  ;;  %v13992_v44 = vld [vmem:[%s18228_s1 + $0x468] sm:$0xff]  }
  0x5a   :  { %12600 = vmatprep.subr.bf16.mxu1 %v13944_v47  ;;  %v13993_v45 = vld [vmem:[%s18228_s1 + $0x4e8] sm:$0xff]  }
  0x5b   :  { %v13995_v47 = vld [vmem:[%s18228_s1 + $0x4a8] sm:$0xff]  }
  0x5c   :  { %12579 = vmatpush3.bf16.msra.mxu0 %v13945_v50  ;;  %v13998_v50 = vld [vmem:[%s18228_s1 + $0x420] sm:$0xff]  }
  0x5d   :  { %12580 = vmatprep.subr.bf16.mxu0 %v13947_v54  ;;  %12601 = vmatpush3.bf16.msra.mxu1 %v13946_v51  ;;  %v13999_v51 = vld [vmem:[%s18228_s1 + $0x4a0] sm:$0xff]   ;;  %v14002_v54 = vld [vmem:[%s18228_s1 + $0x418] sm:$0xff]  }
  0x5e   :  { %12602 = vmatprep.subr.bf16.mxu1 %v13948_v55  ;;  %v14003_v55 = vld [vmem:[%s18228_s1 + $0x498] sm:$0xff]  }
  0x60   :  { %12581 = vmatpush3.bf16.msra.mxu0 %v13949_v58  ;;  %v14006_v58 = vld [vmem:[%s18228_s1 + $0x410] sm:$0xff]  }
  0x61   :  { %12610 = vmatprep.subr.bf16.mxu0 %v13951_v62  ;;  %12603 = vmatpush3.bf16.msra.mxu1 %v13950_v59  ;;  %v14007_v59 = vld [vmem:[%s18228_s1 + $0x490] sm:$0xff]   ;;  %v14009_v62 = vld [vmem:[%s18228_s1 + $0x4c8] sm:$0xff]  }
  0x62   :  { %12632 = vmatprep.subr.bf16.mxu1 %v13952_v63 }
  0x63   :  { %9060 = vmatmul.mubr.bf16.vlgmr.msra.gmra.mxu0 %v2113_v61  ;;  %v24_v61 = vld [vmem:[%s18227_s0 + $0x10] sm:$0xff] }
  0x64   :  { %12611 = vmatpush3.bf16.msra.mxu0 %v13953_v1  ;;  %9139 = vmatprep.mubr.bf16.mxu0 %v2134_v0  ;;  %v2146_v63 = vrot.slane %v24_v61, %v15029_v41  ;;  %v2139_v0 = vcombine.high %v24_v61, %v24_v61  ;;  %v14010_v1 = vld [vmem:[%s18228_s1 + $0x408] sm:$0xff]  }
  0x65   :  { %9100 = vmatmul.mubr.bf16.vlgmr.msra.gmra.mxu1 %v2135_v3  ;;  %12612 = vmatprep.subr.bf16.mxu0 %v13955_v4  ;;  %v14059_v61 = vld [vmem:[%s18228_s1 + $0x628] sm:$0xff]  }
  0x66   :  { %12633 = vmatpush3.bf16.msra.mxu1 %v13954_v2  ;;  %9179 = vmatprep.mubr.bf16.mxu1 %v2138_v6  ;;  %v14011_v2 = vld [vmem:[%s18228_s1 + $0x488] sm:$0xff]   ;;  %v2154_v3 = vcombine.high %v2146_v63, %v2146_v63  ;;  %v15427_v4 = vrot.slane %v2139_v0, %v15029_v41  ;;  %v14013_v6 = vld [vmem:[%s18228_s1 + $0x4c0] sm:$0xff]  }
  0x67   :  { %12634 = vmatprep.subr.bf16.mxu1 %v13956_v5  ;;  %v14012_v5 = vld [vmem:[%s18228_s1 + $0x440] sm:$0xff]  }
  0x68   :  { %12613 = vmatpush3.bf16.msra.mxu0 %v13957_v7  ;;  %v2176_v7 = vrot.slane %v2154_v3, %v15029_v41  ;;  %v14062_v0 = vld [vmem:[%s18228_s1 + $0x6e0] sm:$0xff]   ;;  %v14065_v3 = vld [vmem:[%s18228_s1 + $0x658] sm:$0xff]  }
  0x69   :  { %12614 = vmatprep.subr.bf16.mxu0 %v13959_v9  ;;  %v14014_v9 = vld [vmem:[%s18228_s1 + $0x400] sm:$0xff]  }
  0x6a   :  { %12635 = vmatpush3.bf16.msra.mxu1 %v13958_v8  ;;  %v2155_v8 = vcombine.high %v15427_v4, %v15427_v4 }
  0x6b   :  { %12636 = vmatprep.subr.bf16.mxu1 %v13960_v10  ;;  %v14015_v10 = vld [vmem:[%s18228_s1 + $0x480] sm:$0xff]  }
  0x6c   :  { %12615 = vmatpush3.bf16.msra.mxu0 %v13961_v11  ;;  %v2186_v11 = vcombine.high %v2176_v7, %v2176_v7 }
  0x6d   :  { %12616 = vmatprep.subr.bf16.mxu0 %v13963_v13  ;;  %v14016_v13 = vld [vmem:[%s18228_s1 + $0x578] sm:$0xff]  }
  0x6e   :  { %12637 = vmatpush3.bf16.msra.mxu1 %v13962_v12  ;;  %v2162_v12 = vrot.slane %v2146_v63, %v15029_v41  ;;  %v14061_v63 = vld [vmem:[%s18228_s1 + $0x660] sm:$0xff]  }
  0x6f   :  { %12638 = vmatprep.subr.bf16.mxu1 %v13964_v14  ;;  %v14017_v14 = vld [vmem:[%s18228_s1 + $0x5f8] sm:$0xff]  }
  0x70   :  { %12617 = vmatpush3.bf16.msra.mxu0 %v13965_v15  ;;  %v2183_v15 = vrot.slane %v2155_v8, %v15029_v41  ;;  %v14070_v8 = vld [vmem:[%s18228_s1 + $0x6d0] sm:$0xff]  }
  0x71   :  { %12618 = vmatprep.subr.bf16.mxu0 %v13967_v17  ;;  %v14019_v17 = vld [vmem:[%s18228_s1 + $0x5b8] sm:$0xff]  }
  0x72   :  { %12639 = vmatpush3.bf16.msra.mxu1 %v13966_v16  ;;  %v14018_v16 = vld [vmem:[%s18228_s1 + $0x538] sm:$0xff]  }
  0x73   :  { %12640 = vmatprep.subr.bf16.mxu1 %v13968_v18  ;;  %v2184_v18 = vcombine.high %v2162_v12, %v2162_v12 }
  0x74   :  { %12619 = vmatpush3.bf16.msra.mxu0 %v13969_v19  ;;  %v14020_v19 = vld [vmem:[%s18228_s1 + $0x570] sm:$0xff]  }
  0x75   :  { %12620 = vmatprep.subr.bf16.mxu0 %v13971_v21  ;;  %v2187_v21 = vcombine.high %v2183_v15, %v2183_v15 }
  0x76   :  { %12641 = vmatpush3.bf16.msra.mxu1 %v13970_v20  ;;  %v14021_v20 = vld [vmem:[%s18228_s1 + $0x5f0] sm:$0xff]  }
  0x77   :  { %12642 = vmatprep.subr.bf16.mxu1 %v13972_v22  ;;  %v14022_v22 = vld [vmem:[%s18228_s1 + $0x530] sm:$0xff]  }
  0x78   :  { %12621 = vmatpush3.bf16.msra.mxu0 %v13973_v23  ;;  %v14023_v23 = vld [vmem:[%s18228_s1 + $0x5b0] sm:$0xff]  }
  0x79   :  { %12622 = vmatprep.subr.bf16.mxu0 %v13975_v25  ;;  %v14025_v25 = vld [vmem:[%s18228_s1 + $0x5e8] sm:$0xff]  }
  0x7a   :  { %12643 = vmatpush3.bf16.msra.mxu1 %v13974_v24  ;;  %v14024_v24 = vld [vmem:[%s18228_s1 + $0x568] sm:$0xff]  }
  0x7b   :  { %12644 = vmatprep.subr.bf16.mxu1 %v13976_v26  ;;  %v14026_v26 = vld [vmem:[%s18228_s1 + $0x528] sm:$0xff]  }
  0x7c   :  { %12623 = vmatpush3.bf16.msra.mxu0 %v13977_v27  ;;  %v14027_v27 = vld [vmem:[%s18228_s1 + $0x5a8] sm:$0xff]  }
  0x7d   :  { %12624 = vmatprep.subr.bf16.mxu0 %v13979_v29  ;;  %v14029_v29 = vld [vmem:[%s18228_s1 + $0x5e0] sm:$0xff]  }
  0x7e   :  { %12645 = vmatpush3.bf16.msra.mxu1 %v13978_v28  ;;  %v14028_v28 = vld [vmem:[%s18228_s1 + $0x560] sm:$0xff]  }
  0x7f   :  { %12646 = vmatprep.subr.bf16.mxu1 %v13980_v30  ;;  %v14030_v30 = vld [vmem:[%s18228_s1 + $0x520] sm:$0xff]  }
  0x80   :  { %12625 = vmatpush3.bf16.msra.mxu0 %v13981_v31  ;;  %v14031_v31 = vld [vmem:[%s18228_s1 + $0x5a0] sm:$0xff]  }
  0x81   :  { %12654 = vmatprep.subr.bf16.mxu0 %v13984_v34  ;;  %v14034_v34 = vld [vmem:[%s18228_s1 + $0x518] sm:$0xff]  }
  0x82   :  { %12647 = vmatpush3.bf16.msra.mxu1 %v13982_v32  ;;  %v14032_v32 = vld [vmem:[%s18228_s1 + $0x558] sm:$0xff]  }
  0x83   :  { %9140 = vmatmul.mubr.bf16.vlgmr.msra.gmra.mxu0 %v2120_v33  ;;  %12676 = vmatprep.subr.bf16.mxu1 %v13985_v35  ;;  %v14033_v33 = vld [vmem:[%s18228_s1 + $0x5d8] sm:$0xff]  }
  0x84   :  { %12655 = vmatpush3.bf16.msra.mxu0 %v13986_v36  ;;  %9219 = vmatprep.mubr.bf16.mxu0 %v2176_v7  ;;  %v14035_v35 = vld [vmem:[%s18228_s1 + $0x598] sm:$0xff]   ;;  %v14036_v36 = vld [vmem:[%s18228_s1 + $0x550] sm:$0xff]  }
  0x85   :  { %9180 = vmatmul.mubr.bf16.vlgmr.msra.gmra.mxu1 %v2136_v38  ;;  %12656 = vmatprep.subr.bf16.mxu0 %v13988_v39  ;;  %v14038_v38 = vld [vmem:[%s18228_s1 + $0x510] sm:$0xff]  }
  0x86   :  { %12677 = vmatpush3.bf16.msra.mxu1 %v13987_v37  ;;  %9259 = vmatprep.mubr.bf16.mxu1 %v2186_v11  ;;  %v14037_v37 = vld [vmem:[%s18228_s1 + $0x5d0] sm:$0xff]   ;;  %v14073_v11 = vld [vmem:[%s18228_s1 + $0x648] sm:$0xff]  }
  0x87   :  { %12678 = vmatprep.subr.bf16.mxu1 %v13989_v40  ;;  %v14039_v39 = vld [vmem:[%s18228_s1 + $0x590] sm:$0xff]   ;;  %v14040_v40 = vld [vmem:[%s18228_s1 + $0x548] sm:$0xff]  }
  0x88   :  { %12657 = vmatpush3.bf16.msra.mxu0 %v13990_v42  ;;  %v14041_v42 = vld [vmem:[%s18228_s1 + $0x5c8] sm:$0xff]   ;;  %v14069_v7 = vld [vmem:[%s18228_s1 + $0x650] sm:$0xff]  }
  0x89   :  { %12658 = vmatprep.subr.bf16.mxu0 %v13992_v44  ;;  %v14043_v44 = vld [vmem:[%s18228_s1 + $0x588] sm:$0xff]  }
  0x8a   :  { %12679 = vmatpush3.bf16.msra.mxu1 %v13991_v43  ;;  %v14042_v43 = vld [vmem:[%s18228_s1 + $0x508] sm:$0xff]  }
  0x8b   :  { %12680 = vmatprep.subr.bf16.mxu1 %v13993_v45  ;;  %v14044_v45 = vld [vmem:[%s18228_s1 + $0x540] sm:$0xff]  }
  0x8c   :  { %12659 = vmatpush3.bf16.msra.mxu0 %v13994_v46  ;;  %v14045_v46 = vld [vmem:[%s18228_s1 + $0x5c0] sm:$0xff]  }
  0x8d   :  { %12660 = vmatprep.subr.bf16.mxu0 %v13996_v48  ;;  %v14047_v48 = vld [vmem:[%s18228_s1 + $0x580] sm:$0xff]  }
  0x8e   :  { %12681 = vmatpush3.bf16.msra.mxu1 %v13995_v47  ;;  %v14046_v47 = vld [vmem:[%s18228_s1 + $0x500] sm:$0xff]  }
  0x8f   :  { %12682 = vmatprep.subr.bf16.mxu1 %v13997_v49  ;;  %v2169_v49 = vrot.slane %v15427_v4, %v15029_v41  ;;  %v14066_v4 = vld [vmem:[%s18228_s1 + $0x6d8] sm:$0xff]  }
  0x90   :  { %12661 = vmatpush3.bf16.msra.mxu0 %v13998_v50  ;;  %v14049_v50 = vld [vmem:[%s18228_s1 + $0x678] sm:$0xff]  }
  0x91   :  { %12662 = vmatprep.subr.bf16.mxu0 %v14000_v52  ;;  %v14051_v52 = vld [vmem:[%s18228_s1 + $0x638] sm:$0xff]  }
  0x92   :  { %12683 = vmatpush3.bf16.msra.mxu1 %v13999_v51  ;;  %v14050_v51 = vld [vmem:[%s18228_s1 + $0x6f8] sm:$0xff]  }
  0x93   :  { %12684 = vmatprep.subr.bf16.mxu1 %v14001_v53  ;;  %v14052_v53 = vld [vmem:[%s18228_s1 + $0x6b8] sm:$0xff]  }
  0x94   :  { %12663 = vmatpush3.bf16.msra.mxu0 %v14002_v54  ;;  %v2185_v54 = vcombine.high %v2169_v49, %v2169_v49 }
  0x95   :  { %12664 = vmatprep.subr.bf16.mxu0 %v14004_v56  ;;  %v14054_v56 = vld [vmem:[%s18228_s1 + $0x6f0] sm:$0xff]  }
  0x96   :  { %12685 = vmatpush3.bf16.msra.mxu1 %v14003_v55  ;;  %v14053_v55 = vld [vmem:[%s18228_s1 + $0x670] sm:$0xff]  }
  0x97   :  { %12686 = vmatprep.subr.bf16.mxu1 %v14005_v57  ;;  %v14055_v57 = vld [vmem:[%s18228_s1 + $0x630] sm:$0xff]  }
  0x98   :  { %12665 = vmatpush3.bf16.msra.mxu0 %v14006_v58  ;;  %v14056_v58 = vld [vmem:[%s18228_s1 + $0x6b0] sm:$0xff]  }
  0x99   :  { %12666 = vmatprep.subr.bf16.mxu0 %v14008_v60  ;;  %v14058_v60 = vld [vmem:[%s18228_s1 + $0x6e8] sm:$0xff]  }
  0x9a   :  { %12687 = vmatpush3.bf16.msra.mxu1 %v14007_v59  ;;  %v14057_v59 = vld [vmem:[%s18228_s1 + $0x668] sm:$0xff]  }
  0x9b   :  { %12688 = vmatprep.subr.bf16.mxu1 %v14009_v62  ;;  %v14060_v62 = vld [vmem:[%s18228_s1 + $0x6a8] sm:$0xff]  }
  0x9c   :  { %12667 = vmatpush3.bf16.msra.mxu0 %v14010_v1  ;;  %v14063_v1 = vld [vmem:[%s18228_s1 + $0x620] sm:$0xff]  }
  0x9d   :  { %12668 = vmatprep.subr.bf16.mxu0 %v14012_v5  ;;  %v14067_v5 = vld [vmem:[%s18228_s1 + $0x618] sm:$0xff]  }
  0x9e   :  { %12689 = vmatpush3.bf16.msra.mxu1 %v14011_v2  ;;  %v14064_v2 = vld [vmem:[%s18228_s1 + $0x6a0] sm:$0xff]  }
  0x9f   :  { %12690 = vmatprep.subr.bf16.mxu1 %v14013_v6  ;;  %v14068_v6 = vld [vmem:[%s18228_s1 + $0x698] sm:$0xff]  }
  0xa0   :  { %12669 = vmatpush3.bf16.msra.mxu0 %v14014_v9  ;;  %v14071_v9 = vld [vmem:[%s18228_s1 + $0x610] sm:$0xff]  }
  0xa1   :  { %12698 = vmatprep.subr.bf16.mxu0 %v14016_v13  ;;  %v14074_v13 = vld [vmem:[%s18228_s1 + $0x6c8] sm:$0xff]  }
  0xa2   :  { %12691 = vmatpush3.bf16.msra.mxu1 %v14015_v10  ;;  %v14072_v10 = vld [vmem:[%s18228_s1 + $0x690] sm:$0xff]  }
  0xa3   :  { %9220 = vmatmul.mubr.bf16.vlgmr.msra.gmra.mxu0 %v2162_v12  ;;  %12720 = vmatprep.subr.bf16.mxu1 %v14017_v14  ;;  %v25_v12 = vld [vmem:[%s18227_s0 + $0x18] sm:$0xff] }
  0xa4   :  { %12699 = vmatpush3.bf16.msra.mxu0 %v14018_v16  ;;  %9299 = vmatprep.mubr.bf16.mxu0 %v2183_v15  ;;  %v2195_v14 = vrot.slane %v25_v12, %v15029_v41  ;;  %v2188_v15 = vcombine.high %v25_v12, %v25_v12  ;;  %v14075_v16 = vld [vmem:[%s18228_s1 + $0x608] sm:$0xff]   ;;  %v14112_v12 = vld [vmem:[%s18228_s1 + $0x780] sm:$0xff]  }
  0xa5   :  { %9260 = vmatmul.mubr.bf16.vlgmr.msra.gmra.mxu1 %v2184_v18  ;;  %12700 = vmatprep.subr.bf16.mxu0 %v14020_v19 }
  0xa6   :  { %12721 = vmatpush3.bf16.msra.mxu1 %v14019_v17  ;;  %9339 = vmatprep.mubr.bf16.mxu1 %v2187_v21  ;;  %v14077_v17 = vld [vmem:[%s18228_s1 + $0x640] sm:$0xff]   ;;  %v2203_v18 = vcombine.high %v2195_v14, %v2195_v14  ;;  %v15633_v19 = vrot.slane %v2188_v15, %v15029_v41  ;;  %v14115_v15 = vld [vmem:[%s18228_s1 + $0x8f8] sm:$0xff]  }
  0xa7   :  { %12722 = vmatprep.subr.bf16.mxu1 %v14021_v20  ;;  %v14076_v20 = vld [vmem:[%s18228_s1 + $0x688] sm:$0xff]   ;;  %v14078_v21 = vld [vmem:[%s18228_s1 + $0x6c0] sm:$0xff]  }
  0xa8   :  { %12701 = vmatpush3.bf16.msra.mxu0 %v14022_v22  ;;  %v14079_v22 = vld [vmem:[%s18228_s1 + $0x600] sm:$0xff]  }
  0xa9   :  { %12702 = vmatprep.subr.bf16.mxu0 %v14024_v24  ;;  %v2204_v24 = vcombine.high %v15633_v19, %v15633_v19 }
  0xaa   :  { %12723 = vmatpush3.bf16.msra.mxu1 %v14023_v23  ;;  %v2225_v23 = vrot.slane %v2203_v18, %v15029_v41 }
  0xab   :  { %12724 = vmatprep.subr.bf16.mxu1 %v14025_v25  ;;  %v14080_v25 = vld [vmem:[%s18228_s1 + $0x680] sm:$0xff]  }
  0xac   :  { %12703 = vmatpush3.bf16.msra.mxu0 %v14026_v26  ;;  %v2235_v26 = vcombine.high %v2225_v23, %v2225_v23 }
  0xad   :  { %12704 = vmatprep.subr.bf16.mxu0 %v14028_v28  ;;  %v14081_v28 = vld [vmem:[%s18228_s1 + $0x778] sm:$0xff]  }
  0xae   :  { %12725 = vmatpush3.bf16.msra.mxu1 %v14027_v27  ;;  %v2211_v27 = vrot.slane %v2195_v14, %v15029_v41  ;;  %v14114_v14 = vld [vmem:[%s18228_s1 + $0x878] sm:$0xff]  }
  0xaf   :  { %12726 = vmatprep.subr.bf16.mxu1 %v14029_v29  ;;  %v14082_v29 = vld [vmem:[%s18228_s1 + $0x7f8] sm:$0xff]  }
  0xb0   :  { %12705 = vmatpush3.bf16.msra.mxu0 %v14030_v30  ;;  %v2232_v30 = vrot.slane %v2204_v24, %v15029_v41 }
  0xb1   :  { %12706 = vmatprep.subr.bf16.mxu0 %v14032_v32  ;;  %v14084_v32 = vld [vmem:[%s18228_s1 + $0x7b8] sm:$0xff]  }
  0xb2   :  { %12727 = vmatpush3.bf16.msra.mxu1 %v14031_v31  ;;  %v14083_v31 = vld [vmem:[%s18228_s1 + $0x738] sm:$0xff]  }
  0xb3   :  { %12728 = vmatprep.subr.bf16.mxu1 %v14033_v33  ;;  %v2233_v33 = vcombine.high %v2211_v27, %v2211_v27 }
  0xb4   :  { %12707 = vmatpush3.bf16.msra.mxu0 %v14034_v34  ;;  %v14085_v34 = vld [vmem:[%s18228_s1 + $0x770] sm:$0xff]  }
  0xb5   :  { %12708 = vmatprep.subr.bf16.mxu0 %v14036_v36  ;;  %v2236_v36 = vcombine.high %v2232_v30, %v2232_v30 }
  0xb6   :  { %12729 = vmatpush3.bf16.msra.mxu1 %v14035_v35  ;;  %v14086_v35 = vld [vmem:[%s18228_s1 + $0x7f0] sm:$0xff]  }
  0xb7   :  { %12730 = vmatprep.subr.bf16.mxu1 %v14037_v37 }
  0xb8   :  { %12709 = vmatpush3.bf16.msra.mxu0 %v14038_v38  ;;  %v11476_v38 = vld [vmem:[%s18229_s2] ss:$0 sm:$0xff] }
  0xb9   :  { %12710 = vmatprep.subr.bf16.mxu0 %v14040_v40  ;;  %v14088_v40 = vld [vmem:[%s18228_s1 + $0x7b0] sm:$0xff]  }
  0xba   :  { %12731 = vmatpush3.bf16.msra.mxu1 %v14039_v39  ;;  %v14087_v39 = vld [vmem:[%s18228_s1 + $0x730] sm:$0xff]  }
  0xbb   :  { %12732 = vmatprep.subr.bf16.mxu1 %v14041_v42 }
  0xbc   :  { %12711 = vmatpush3.bf16.msra.mxu0 %v14042_v43 }
  0xbd   :  { %12712 = vmatprep.subr.bf16.mxu0 %v14044_v45 }
  0xbe   :  { %12733 = vmatpush3.bf16.msra.mxu1 %v14043_v44  ;;  %v14089_v44 = vld [vmem:[%s18228_s1 + $0x768] sm:$0xff]  }
  0xbf   :  { %12734 = vmatprep.subr.bf16.mxu1 %v14045_v46  ;;  %v14090_v46 = vld [vmem:[%s18228_s1 + $0x7e8] sm:$0xff]  }
  0xc0   :  { %12713 = vmatpush3.bf16.msra.mxu0 %v14046_v47 }
  0xc1   :  { %12742 = vmatprep.subr.bf16.mxu0 %v14049_v50 }
  0xc2   :  { %12735 = vmatpush3.bf16.msra.mxu1 %v14047_v48  ;;  %v14091_v48 = vld [vmem:[%s18228_s1 + $0x728] sm:$0xff]  }
  0xc3   :  { %9300 = vmatmul.mubr.bf16.vlgmr.msra.gmra.mxu0 %v2169_v49  ;;  %12764 = vmatprep.subr.bf16.mxu1 %v14050_v51 }
  0xc4   :  { %12743 = vmatpush3.bf16.msra.mxu0 %v14051_v52  ;;  %9379 = vmatprep.mubr.bf16.mxu0 %v2225_v23  ;;  %v14092_v52 = vld [vmem:[%s18228_s1 + $0x7a8] sm:$0xff]   ;;  %v14121_v23 = vld [vmem:[%s18228_s1 + $0x8b0] sm:$0xff]  }
  0xc5   :  { %9340 = vmatmul.mubr.bf16.vlgmr.msra.gmra.mxu1 %v2185_v54  ;;  %12744 = vmatprep.subr.bf16.mxu0 %v14053_v55  ;;  %v14093_v54 = vld [vmem:[%s18228_s1 + $0x760] sm:$0xff]  }
  0xc6   :  { %12765 = vmatpush3.bf16.msra.mxu1 %v14052_v53  ;;  %9419 = vmatprep.mubr.bf16.mxu1 %v2235_v26  ;;  %v14122_v26 = vld [vmem:[%s18228_s1 + $0x868] sm:$0xff]  }
  0xc7   :  { %12766 = vmatprep.subr.bf16.mxu1 %v14054_v56 }
  0xc8   :  { %12745 = vmatpush3.bf16.msra.mxu0 %v14055_v57  ;;  %v14094_v57 = vld [vmem:[%s18228_s1 + $0x7e0] sm:$0xff]  }
  0xc9   :  { %12746 = vmatprep.subr.bf16.mxu0 %v14057_v59  ;;  %v14095_v59 = vld [vmem:[%s18228_s1 + $0x720] sm:$0xff]  }
  0xca   :  { %12767 = vmatpush3.bf16.msra.mxu1 %v14056_v58 }
  0xcb   :  { %12768 = vmatprep.subr.bf16.mxu1 %v14058_v60  ;;  %v14096_v60 = vld [vmem:[%s18228_s1 + $0x7a0] sm:$0xff]  }
  0xcc   :  { %12747 = vmatpush3.bf16.msra.mxu0 %v14059_v61  ;;  %v14097_v61 = vld [vmem:[%s18228_s1 + $0x758] sm:$0xff]  }
  0xcd   :  { %12748 = vmatprep.subr.bf16.mxu0 %v14061_v63  ;;  %v14099_v63 = vld [vmem:[%s18228_s1 + $0x718] sm:$0xff]  }
  0xce   :  { %12769 = vmatpush3.bf16.msra.mxu1 %v14060_v62  ;;  %v14098_v62 = vld [vmem:[%s18228_s1 + $0x7d8] sm:$0xff]  }
  0xcf   :  { %12770 = vmatprep.subr.bf16.mxu1 %v14062_v0  ;;  %v14100_v0 = vld [vmem:[%s18228_s1 + $0x798] sm:$0xff]  }
  0xd0   :  { %12749 = vmatpush3.bf16.msra.mxu0 %v14063_v1  ;;  %v14101_v1 = vld [vmem:[%s18228_s1 + $0x750] sm:$0xff]  }
  0xd1   :  { %12750 = vmatprep.subr.bf16.mxu0 %v14065_v3  ;;  %v14103_v3 = vld [vmem:[%s18228_s1 + $0x710] sm:$0xff]  }
  0xd2   :  { %12771 = vmatpush3.bf16.msra.mxu1 %v14064_v2  ;;  %v14102_v2 = vld [vmem:[%s18228_s1 + $0x7d0] sm:$0xff]  }
  0xd3   :  { %12772 = vmatprep.subr.bf16.mxu1 %v14066_v4  ;;  %v14104_v4 = vld [vmem:[%s18228_s1 + $0x790] sm:$0xff]  }
  0xd4   :  { %12751 = vmatpush3.bf16.msra.mxu0 %v14067_v5  ;;  %v14105_v5 = vld [vmem:[%s18228_s1 + $0x748] sm:$0xff]  }
  0xd5   :  { %12752 = vmatprep.subr.bf16.mxu0 %v14069_v7  ;;  %v14107_v7 = vld [vmem:[%s18228_s1 + $0x708] sm:$0xff]  }
  0xd6   :  { %12773 = vmatpush3.bf16.msra.mxu1 %v14068_v6  ;;  %v14106_v6 = vld [vmem:[%s18228_s1 + $0x7c8] sm:$0xff]  }
  0xd7   :  { %12774 = vmatprep.subr.bf16.mxu1 %v14070_v8  ;;  %v14108_v8 = vld [vmem:[%s18228_s1 + $0x788] sm:$0xff]  }
  0xd8   :  { %12753 = vmatpush3.bf16.msra.mxu0 %v14071_v9  ;;  %v14109_v9 = vld [vmem:[%s18228_s1 + $0x740] sm:$0xff]  }
  0xd9   :  { %12754 = vmatprep.subr.bf16.mxu0 %v14073_v11  ;;  %v14111_v11 = vld [vmem:[%s18228_s1 + $0x700] sm:$0xff]  }
  0xda   :  { %12775 = vmatpush3.bf16.msra.mxu1 %v14072_v10  ;;  %v14110_v10 = vld [vmem:[%s18228_s1 + $0x7c0] sm:$0xff]  }
  0xdb   :  { %12776 = vmatprep.subr.bf16.mxu1 %v14074_v13  ;;  %v2218_v13 = vrot.slane %v15633_v19, %v15029_v41  ;;  %v14118_v19 = vld [vmem:[%s18228_s1 + $0x870] sm:$0xff]  }
  0xdc   :  { %12755 = vmatpush3.bf16.msra.mxu0 %v14075_v16  ;;  %v14116_v16 = vld [vmem:[%s18228_s1 + $0x838] sm:$0xff]  }
  0xdd   :  { %12756 = vmatprep.subr.bf16.mxu0 %v14077_v17  ;;  %v14117_v17 = vld [vmem:[%s18228_s1 + $0x8b8] sm:$0xff]   ;;  %v2234_v18 = vcombine.high %v2218_v13, %v2218_v13 }
  0xde   :  { %12777 = vmatpush3.bf16.msra.mxu1 %v14076_v20  ;;  %v14119_v20 = vld [vmem:[%s18228_s1 + $0x8f0] sm:$0xff]  }
  0xdf   :  { %12778 = vmatprep.subr.bf16.mxu1 %v14078_v21 }
  0xe0   :  { %12757 = vmatpush3.bf16.msra.mxu0 %v14079_v22  ;;  %v14120_v22 = vld [vmem:[%s18228_s1 + $0x830] sm:$0xff]  }
  0xe1   :  { %12786 = vmatprep.subr.bf16.mxu0 %v14081_v28  ;;  %v14123_v28 = vld [vmem:[%s18228_s1 + $0x8e8] sm:$0xff]  }
  0xe2   :  { %12779 = vmatpush3.bf16.msra.mxu1 %v14080_v25 }
  0xe3   :  { %v12494_v37 = vpop.f32.mrf.mxu0  ;;  %9380 = vmatmul.mubr.bf16.vlgmr.msra.gmra.mxu0 %v2211_v27  ;;  %12808 = vmatprep.subr.bf16.mxu1 %v14082_v29 }
  0xe4   :  { %12787 = vmatpush3.bf16.msra.mxu0 %v14083_v31  ;;  %9459 = vmatprep.mubr.bf16.mxu0 %v2232_v30  ;;  %v12516_v42 = vpop.f32.mrf.mxu1  ;;  %v14124_v30 = vld [vmem:[%s18228_s1 + $0x828] sm:$0xff]  }
  0xe5   :  { %9420 = vmatmul.mubr.bf16.vlgmr.msra.gmra.mxu1 %v2233_v33  ;;  %v12495_v43 = vpop.f32.mrf.mxu0  ;;  %12788 = vmatprep.subr.bf16.mxu0 %v14085_v34  ;;  %v14125_v34 = vld [vmem:[%s18228_s1 + $0x8a8] sm:$0xff]  }
  0xe6   :  { %12809 = vmatpush3.bf16.msra.mxu1 %v14084_v32  ;;  %v12496_v45 = vadd.f32 %v12495_v43, %v12494_v37  ;;  %9499 = vmatprep.mubr.bf16.mxu1 %v2236_v36  ;;  %v12517_v47 = vpop.f32.mrf.mxu1  ;;  %v14126_v36 = vld [vmem:[%s18228_s1 + $0x860] sm:$0xff]  }
  0xe7   :  { %12810 = vmatprep.subr.bf16.mxu1 %v14086_v35  ;;  %v12497_v49 = vpop.f32.mrf.mxu0  ;;  %v12518_v51 = vadd.f32 %v12517_v47, %v12516_v42  ;;  %v14128_v42 = vld [vmem:[%s18228_s1 + $0x820] sm:$0xff]   ;;  %v14133_v47 = vld [vmem:[%s18228_s1 + $0x898] sm:$0xff]  }
  0xe8   :  { %v8902_v50 = vadd.f32 %v12496_v45, %v11476_v38  ;;  %12789 = vmatpush3.bf16.msra.mxu0 %v14087_v39  ;;  %v12519_v53 = vpop.f32.mrf.mxu1  ;;  %v14127_v39 = vld [vmem:[%s18228_s1 + $0x8e0] sm:$0xff]   ;;  %v14131_v45 = vld [vmem:[%s18228_s1 + $0x8d8] sm:$0xff]   ;;  %v14135_v49 = vld [vmem:[%s18228_s1 + $0x8d0] sm:$0xff]  }
  0xe9   :  { %12790 = vmatprep.subr.bf16.mxu0 %v14089_v44  ;;  %v12498_v55 = vpop.f32.mrf.mxu0  ;;  %v14129_v43 = vld [vmem:[%s18228_s1 + $0x8a0] sm:$0xff]   ;;  %v14130_v44 = vld [vmem:[%s18228_s1 + $0x858] sm:$0xff]   ;;  %v14139_v53 = vld [vmem:[%s18228_s1 + $0x8c8] sm:$0xff]  }
  0xea   :  { %v15694_v56 = vadd.f32 %v12518_v51, %v8902_v50  ;;  %12811 = vmatpush3.bf16.msra.mxu1 %v14088_v40  ;;  %v12520_v58 = vpop.f32.mrf.mxu1  ;;  %v14136_v50 = vld [vmem:[%s18228_s1 + $0x810] sm:$0xff]   ;;  %v14140_v55 = vld [vmem:[%s18228_s1 + $0x808] sm:$0xff]  }
  0xeb   :  { %12812 = vmatprep.subr.bf16.mxu1 %v14090_v46  ;;  %v14132_v46 = vld [vmem:[%s18228_s1 + $0x818] sm:$0xff]   ;;  %v14137_v51 = vld [vmem:[%s18228_s1 + $0x890] sm:$0xff]   ;;  %v14141_v58 = vld [vmem:[%s18228_s1 + $0x888] sm:$0xff]  }
  0xec   :  { %12791 = vmatpush3.bf16.msra.mxu0 %v14091_v48  ;;  %v14134_v48 = vld [vmem:[%s18228_s1 + $0x850] sm:$0xff]  }
  0xed   :  { %12792 = vmatprep.subr.bf16.mxu0 %v14093_v54  ;;  %v26_v54 = vld [vmem:[%s18227_s0 + $0x20] sm:$0xff] }
  0xee   :  { %12813 = vmatpush3.bf16.msra.mxu1 %v14092_v52  ;;  %v14138_v52 = vld [vmem:[%s18228_s1 + $0x848] sm:$0xff]  }
  0xef   :  { %12814 = vmatprep.subr.bf16.mxu1 %v14094_v57  ;;  %v2237_v57 = vcombine.high %v26_v54, %v26_v54 }
  0xf0   :  { %12793 = vmatpush3.bf16.msra.mxu0 %v14095_v59  ;;  %v14142_v59 = vld [vmem:[%s18228_s1 + $0x840] sm:$0xff]  }
  0xf1   :  { %12794 = vmatprep.subr.bf16.mxu0 %v14097_v61  ;;  %v15850_v61 = vrot.slane %v2237_v57, %v15029_v41  ;;  %v14182_v57 = vld [vmem:[%s18228_s1 + $0xab8] sm:$0xff]  }
  0xf2   :  { %12815 = vmatpush3.bf16.msra.mxu1 %v14096_v60 }
  0xf3   :  { %12816 = vmatprep.subr.bf16.mxu1 %v14098_v62  ;;  %v14143_v62 = vld [vmem:[%s18228_s1 + $0x8c0] sm:$0xff]  }
  0xf4   :  { %12795 = vmatpush3.bf16.msra.mxu0 %v14099_v63  ;;  %v14144_v63 = vld [vmem:[%s18228_s1 + $0x800] sm:$0xff]  }
  0xf5   :  { %12796 = vmatprep.subr.bf16.mxu0 %v14101_v1  ;;  %v2253_v1 = vcombine.high %v15850_v61, %v15850_v61 }
  0xf6   :  { %12817 = vmatpush3.bf16.msra.mxu1 %v14100_v0 }
  0xf7   :  { %12818 = vmatprep.subr.bf16.mxu1 %v14102_v2  ;;  %v14145_v2 = vld [vmem:[%s18228_s1 + $0x880] sm:$0xff]  }
  0xf8   :  { %12797 = vmatpush3.bf16.msra.mxu0 %v14103_v3 }
  0xf9   :  { %12798 = vmatprep.subr.bf16.mxu0 %v14105_v5  ;;  %v14146_v5 = vld [vmem:[%s18228_s1 + $0x978] sm:$0xff]  }
  0xfa   :  { %12819 = vmatpush3.bf16.msra.mxu1 %v14104_v4 }
  0xfb   :  { %12820 = vmatprep.subr.bf16.mxu1 %v14106_v6  ;;  %v14147_v6 = vld [vmem:[%s18228_s1 + $0x9f8] sm:$0xff]  }
  0xfc   :  { %12799 = vmatpush3.bf16.msra.mxu0 %v14107_v7  ;;  %v2281_v7 = vrot.slane %v2253_v1, %v15029_v41 }
  0xfd   :  { %12800 = vmatprep.subr.bf16.mxu0 %v14109_v9  ;;  %v14149_v9 = vld [vmem:[%s18228_s1 + $0x9b8] sm:$0xff]  }
  0xfe   :  { %12821 = vmatpush3.bf16.msra.mxu1 %v14108_v8  ;;  %v14148_v8 = vld [vmem:[%s18228_s1 + $0x938] sm:$0xff]  }
  0xff   :  { %12822 = vmatprep.subr.bf16.mxu1 %v14110_v10 }
 0x100   :  { %12801 = vmatpush3.bf16.msra.mxu0 %v14111_v11  ;;  %v14150_v11 = vld [vmem:[%s18228_s1 + $0x970] sm:$0xff]  }
 0x101   :  { %12830 = vmatprep.subr.bf16.mxu0 %v14114_v14 }
 0x102   :  { %12823 = vmatpush3.bf16.msra.mxu1 %v14112_v12  ;;  %v14151_v12 = vld [vmem:[%s18228_s1 + $0x9f0] sm:$0xff]  }
 0x103   :  { %v12538_v21 = vpop.f32.mrf.mxu0  ;;  %9460 = vmatmul.mubr.bf16.vlgmr.msra.gmra.mxu0 %v2218_v13  ;;  %12852 = vmatprep.subr.bf16.mxu1 %v14115_v15  ;;  %v2285_v13 = vcombine.high %v2281_v7, %v2281_v7  ;;  %v14152_v15 = vld [vmem:[%s18228_s1 + $0x930] sm:$0xff]  }
 0x104   :  { %12831 = vmatpush3.bf16.msra.mxu0 %v14116_v16  ;;  %v12560_v24 = vpop.f32.mrf.mxu1  ;;  %v14153_v16 = vld [vmem:[%s18228_s1 + $0x9b0] sm:$0xff]  }
 0x105   :  { %9500 = vmatmul.mubr.bf16.vlgmr.msra.gmra.mxu1 %v2234_v18  ;;  %v12539_v25 = vpop.f32.mrf.mxu0  ;;  %12832 = vmatprep.subr.bf16.mxu0 %v14118_v19  ;;  %v14154_v19 = vld [vmem:[%s18228_s1 + $0x968] sm:$0xff]  }
 0x106   :  { %12853 = vmatpush3.bf16.msra.mxu1 %v14117_v17  ;;  %v12540_v27 = vadd.f32 %v12539_v25, %v12538_v21  ;;  %v12561_v29 = vpop.f32.mrf.mxu1  ;;  %v14155_v21 = vld [vmem:[%s18228_s1 + $0x9e8] sm:$0xff]  }
 0x107   :  { %12854 = vmatprep.subr.bf16.mxu1 %v14119_v20  ;;  %v12541_v31 = vpop.f32.mrf.mxu0  ;;  %v12562_v33 = vadd.f32 %v12561_v29, %v12560_v24  ;;  %v14158_v29 = vld [vmem:[%s18228_s1 + $0x960] sm:$0xff]  }
 0x108   :  { %v8982_v32 = vadd.f32 %v12540_v27, %v15694_v56  ;;  %12833 = vmatpush3.bf16.msra.mxu0 %v14120_v22  ;;  %v12563_v35 = vpop.f32.mrf.mxu1  ;;  %v2244_v56 = vrot.slane %v26_v54, %v15029_v41  ;;  %v14157_v27 = vld [vmem:[%s18228_s1 + $0x9a8] sm:$0xff]   ;;  %v14179_v54 = vld [vmem:[%s18228_s1 + $0xa78] sm:$0xff]  }
 0x109   :  { %12834 = vmatprep.subr.bf16.mxu0 %v14122_v26  ;;  %v12542_v37 = vpop.f32.mrf.mxu0  ;;  %v14161_v35 = vld [vmem:[%s18228_s1 + $0x9a0] sm:$0xff]  }
 0x10a   :  { %v15795_v38 = vadd.f32 %v12562_v33, %v8982_v32  ;;  %12855 = vmatpush3.bf16.msra.mxu1 %v14121_v23  ;;  %v12564_v40 = vpop.f32.mrf.mxu1  ;;  %v2252_v60 = vcombine.high %v2244_v56, %v2244_v56  ;;  %v2260_v4 = vrot.slane %v2244_v56, %v15029_v41  ;;  %v14156_v23 = vld [vmem:[%s18228_s1 + $0x928] sm:$0xff]   ;;  %v14159_v32 = vld [vmem:[%s18228_s1 + $0x9e0] sm:$0xff]   ;;  %v14163_v37 = vld [vmem:[%s18228_s1 + $0x9d8] sm:$0xff]  }
 0x10b   :  { %12856 = vmatprep.subr.bf16.mxu1 %v14123_v28  ;;  %v14166_v40 = vld [vmem:[%s18228_s1 + $0x950] sm:$0xff]   ;;  %v14181_v56 = vld [vmem:[%s18228_s1 + $0xa38] sm:$0xff]  }
 0x10c   :  { %12835 = vmatpush3.bf16.msra.mxu0 %v14124_v30  ;;  %v2274_v0 = vrot.slane %v2252_v60, %v15029_v41  ;;  %v2282_v10 = vcombine.high %v2260_v4, %v2260_v4  ;;  %v14184_v60 = vld [vmem:[%s18228_s1 + $0xaf0] sm:$0xff]  }
 0x10d   :  { %12836 = vmatprep.subr.bf16.mxu0 %v14126_v36  ;;  %v14162_v36 = vld [vmem:[%s18228_s1 + $0x958] sm:$0xff]  }
 0x10e   :  { %12857 = vmatpush3.bf16.msra.mxu1 %v14125_v34  ;;  %9539 = vmatprep.mubr.bf16.mxu0 %v2274_v0  ;;  %v2284_v3 = vcombine.high %v2274_v0, %v2274_v0  ;;  %v14160_v34 = vld [vmem:[%s18228_s1 + $0x920] sm:$0xff]  }
 0x10f   :  { %12858 = vmatprep.subr.bf16.mxu1 %v14127_v39  ;;  %v14165_v39 = vld [vmem:[%s18228_s1 + $0x998] sm:$0xff]  }
 0x110   :  { %12837 = vmatpush3.bf16.msra.mxu0 %v14128_v42  ;;  %9579 = vmatprep.mubr.bf16.mxu1 %v2284_v3  ;;  %v14167_v42 = vld [vmem:[%s18228_s1 + $0x9d0] sm:$0xff]  }
 0x111   :  { %12838 = vmatprep.subr.bf16.mxu0 %v14130_v44  ;;  %v14169_v44 = vld [vmem:[%s18228_s1 + $0x990] sm:$0xff]  }
 0x112   :  { %12859 = vmatpush3.bf16.msra.mxu1 %v14129_v43  ;;  %v14168_v43 = vld [vmem:[%s18228_s1 + $0x910] sm:$0xff]  }
 0x113   :  { %12860 = vmatprep.subr.bf16.mxu1 %v14131_v45  ;;  %v14170_v45 = vld [vmem:[%s18228_s1 + $0x948] sm:$0xff]  }
 0x114   :  { %12839 = vmatpush3.bf16.msra.mxu0 %v14132_v46  ;;  %v14171_v46 = vld [vmem:[%s18228_s1 + $0x9c8] sm:$0xff]  }
 0x115   :  { %12840 = vmatprep.subr.bf16.mxu0 %v14134_v48  ;;  %v14173_v48 = vld [vmem:[%s18228_s1 + $0x988] sm:$0xff]  }
 0x116   :  { %12861 = vmatpush3.bf16.msra.mxu1 %v14133_v47  ;;  %v14172_v47 = vld [vmem:[%s18228_s1 + $0x908] sm:$0xff]  }
 0x117   :  { %12862 = vmatprep.subr.bf16.mxu1 %v14135_v49  ;;  %v14174_v49 = vld [vmem:[%s18228_s1 + $0x940] sm:$0xff]  }
 0x118   :  { %12841 = vmatpush3.bf16.msra.mxu0 %v14136_v50  ;;  %v14175_v50 = vld [vmem:[%s18228_s1 + $0x9c0] sm:$0xff]  }
 0x119   :  { %12842 = vmatprep.subr.bf16.mxu0 %v14138_v52  ;;  %v14177_v52 = vld [vmem:[%s18228_s1 + $0x980] sm:$0xff]  }
 0x11a   :  { %12863 = vmatpush3.bf16.msra.mxu1 %v14137_v51  ;;  %v14176_v51 = vld [vmem:[%s18228_s1 + $0x900] sm:$0xff]  }
 0x11b   :  { %12864 = vmatprep.subr.bf16.mxu1 %v14139_v53  ;;  %v2267_v53 = vrot.slane %v15850_v61, %v15029_v41 }
 0x11c   :  { %12843 = vmatpush3.bf16.msra.mxu0 %v14140_v55  ;;  %v14180_v55 = vld [vmem:[%s18228_s1 + $0xaf8] sm:$0xff]  }
 0x11d   :  { %12844 = vmatprep.subr.bf16.mxu0 %v14142_v59  ;;  %v14183_v59 = vld [vmem:[%s18228_s1 + $0xa70] sm:$0xff]  }
 0x11e   :  { %12865 = vmatpush3.bf16.msra.mxu1 %v14141_v58  ;;  %v2283_v58 = vcombine.high %v2267_v53, %v2267_v53 }
 0x11f   :  { %12866 = vmatprep.subr.bf16.mxu1 %v14143_v62  ;;  %v14185_v62 = vld [vmem:[%s18228_s1 + $0xa30] sm:$0xff]  }
 0x120   :  { %12845 = vmatpush3.bf16.msra.mxu0 %v14144_v63  ;;  %v14186_v63 = vld [vmem:[%s18228_s1 + $0xab0] sm:$0xff]  }
 0x121   :  { %12874 = vmatprep.subr.bf16.mxu0 %v14146_v5 }
 0x122   :  { %12867 = vmatpush3.bf16.msra.mxu1 %v14145_v2  ;;  %v14187_v2 = vld [vmem:[%s18228_s1 + $0xa68] sm:$0xff]  }
 0x123   :  { %v12582_v14 = vpop.f32.mrf.mxu0  ;;  %9540 = vmatmul.mubr.bf16.vlgmr.msra.gmra.mxu0 %v2260_v4  ;;  %12896 = vmatprep.subr.bf16.mxu1 %v14147_v6  ;;  %v14188_v4 = vld [vmem:[%s18228_s1 + $0xae8] sm:$0xff]  }
 0x124   :  { %12875 = vmatpush3.bf16.msra.mxu0 %v14148_v8  ;;  %9619 = vmatprep.mubr.bf16.mxu0 %v2281_v7  ;;  %v14189_v6 = vld [vmem:[%s18228_s1 + $0xa28] sm:$0xff]  }
 0x125   :  { %v12604_v17 = vpop.f32.mrf.mxu1  ;;  %9580 = vmatmul.mubr.bf16.vlgmr.msra.gmra.mxu1 %v2282_v10  ;;  %v12583_v18 = vpop.f32.mrf.mxu0  ;;  %12876 = vmatprep.subr.bf16.mxu0 %v14150_v11  ;;  %v14190_v10 = vld [vmem:[%s18228_s1 + $0xaa8] sm:$0xff]  }
 0x126   :  { %12897 = vmatpush3.bf16.msra.mxu1 %v14149_v9  ;;  %v12584_v20 = vadd.f32 %v12583_v18, %v12582_v14  ;;  %9659 = vmatprep.mubr.bf16.mxu1 %v2285_v13  ;;  %v14194_v18 = vld [vmem:[%s18228_s1 + $0xaa0] sm:$0xff]  }
 0x127   :  { %v12605_v22 = vpop.f32.mrf.mxu1  ;;  %12898 = vmatprep.subr.bf16.mxu1 %v14151_v12  ;;  %v12585_v24 = vpop.f32.mrf.mxu0  ;;  %v14191_v12 = vld [vmem:[%s18228_s1 + $0xa60] sm:$0xff]  }
 0x128   :  { %v9062_v25 = vadd.f32 %v12584_v20, %v15795_v38  ;;  %v12606_v26 = vadd.f32 %v12605_v22, %v12604_v17  ;;  %12877 = vmatpush3.bf16.msra.mxu0 %v14152_v15  ;;  %v14164_v38 = vld [vmem:[%s18228_s1 + $0x918] sm:$0xff]   ;;  %v14192_v15 = vld [vmem:[%s18228_s1 + $0xae0] sm:$0xff]   ;;  %v14200_v24 = vld [vmem:[%s18228_s1 + $0xad0] sm:$0xff]  }
 0x129   :  { %v12607_v28 = vpop.f32.mrf.mxu1  ;;  %12878 = vmatprep.subr.bf16.mxu0 %v14154_v19  ;;  %v12586_v30 = vpop.f32.mrf.mxu0  ;;  %v14193_v17 = vld [vmem:[%s18228_s1 + $0xa20] sm:$0xff]   ;;  %v14195_v19 = vld [vmem:[%s18228_s1 + $0xa58] sm:$0xff]  }
 0x12a   :  { %v15906_v31 = vadd.f32 %v12606_v26, %v9062_v25  ;;  %12899 = vmatpush3.bf16.msra.mxu1 %v14153_v16  ;;  %v14196_v20 = vld [vmem:[%s18228_s1 + $0xad8] sm:$0xff]   ;;  %v14201_v25 = vld [vmem:[%s18228_s1 + $0xa10] sm:$0xff]   ;;  %v14204_v28 = vld [vmem:[%s18228_s1 + $0xac8] sm:$0xff]  }
 0x12b   :  { %v12608_v33 = vpop.f32.mrf.mxu1  ;;  %12900 = vmatprep.subr.bf16.mxu1 %v14155_v21  ;;  %v14197_v21 = vld [vmem:[%s18228_s1 + $0xa18] sm:$0xff]   ;;  %v14202_v26 = vld [vmem:[%s18228_s1 + $0xa90] sm:$0xff]   ;;  %v27_v30 = vld [vmem:[%s18227_s0 + $0x28] sm:$0xff] }
 0x12c   :  { %12879 = vmatpush3.bf16.msra.mxu0 %v14156_v23  ;;  %v14198_v22 = vld [vmem:[%s18228_s1 + $0xa98] sm:$0xff]   ;;  %v14199_v23 = vld [vmem:[%s18228_s1 + $0xa50] sm:$0xff]   ;;  %v2286_v33 = vcombine.high %v27_v30, %v27_v30 }
 0x12d   :  { %12880 = vmatprep.subr.bf16.mxu0 %v14158_v29  ;;  %v14205_v29 = vld [vmem:[%s18228_s1 + $0xa08] sm:$0xff]  }
 0x12e   :  { %12901 = vmatpush3.bf16.msra.mxu1 %v14157_v27  ;;  %v14203_v27 = vld [vmem:[%s18228_s1 + $0xa48] sm:$0xff]  }
 0x12f   :  { %12902 = vmatprep.subr.bf16.mxu1 %v14159_v32  ;;  %v2293_v32 = vrot.slane %v27_v30, %v15029_v41  ;;  %v14245_v30 = vld [vmem:[%s18228_s1 + $0xcf8] sm:$0xff]  }
 0x130   :  { %12881 = vmatpush3.bf16.msra.mxu0 %v14160_v34  ;;  %v14207_v34 = vld [vmem:[%s18228_s1 + $0xa40] sm:$0xff]  }
 0x131   :  { %12882 = vmatprep.subr.bf16.mxu0 %v14162_v36  ;;  %v2301_v36 = vcombine.high %v2293_v32, %v2293_v32 }
 0x132   :  { %12903 = vmatpush3.bf16.msra.mxu1 %v14161_v35  ;;  %v14208_v35 = vld [vmem:[%s18228_s1 + $0xac0] sm:$0xff]  }
 0x133   :  { %12904 = vmatprep.subr.bf16.mxu1 %v14163_v37  ;;  %v16065_v37 = vrot.slane %v2286_v33, %v15029_v41 }
 0x134   :  { %12883 = vmatpush3.bf16.msra.mxu0 %v14164_v38  ;;  %v14209_v38 = vld [vmem:[%s18228_s1 + $0xa00] sm:$0xff]  }
 0x135   :  { %12884 = vmatprep.subr.bf16.mxu0 %v14166_v40  ;;  %v2323_v40 = vrot.slane %v2301_v36, %v15029_v41 }
 0x136   :  { %12905 = vmatpush3.bf16.msra.mxu1 %v14165_v39  ;;  %v14210_v39 = vld [vmem:[%s18228_s1 + $0xa80] sm:$0xff]  }
 0x137   :  { %12906 = vmatprep.subr.bf16.mxu1 %v14167_v42  ;;  %v2302_v42 = vcombine.high %v16065_v37, %v16065_v37 }
 0x138   :  { %12885 = vmatpush3.bf16.msra.mxu0 %v14168_v43  ;;  %v2309_v43 = vrot.slane %v2293_v32, %v15029_v41  ;;  %v14247_v32 = vld [vmem:[%s18228_s1 + $0xcb8] sm:$0xff]  }
 0x139   :  { %12886 = vmatprep.subr.bf16.mxu0 %v14170_v45  ;;  %v2333_v45 = vcombine.high %v2323_v40, %v2323_v40 }
 0x13a   :  { %12907 = vmatpush3.bf16.msra.mxu1 %v14169_v44  ;;  %v14211_v44 = vld [vmem:[%s18228_s1 + $0xb78] sm:$0xff]  }
 0x13b   :  { %12908 = vmatprep.subr.bf16.mxu1 %v14171_v46  ;;  %v14212_v46 = vld [vmem:[%s18228_s1 + $0xbf8] sm:$0xff]  }
 0x13c   :  { %12887 = vmatpush3.bf16.msra.mxu0 %v14172_v47  ;;  %v2330_v47 = vrot.slane %v2302_v42, %v15029_v41  ;;  %v14252_v42 = vld [vmem:[%s18228_s1 + $0xc68] sm:$0xff]  }
 0x13d   :  { %12888 = vmatprep.subr.bf16.mxu0 %v14174_v49  ;;  %v14214_v49 = vld [vmem:[%s18228_s1 + $0xbb8] sm:$0xff]  }
 0x13e   :  { %12909 = vmatpush3.bf16.msra.mxu1 %v14173_v48  ;;  %v14213_v48 = vld [vmem:[%s18228_s1 + $0xb38] sm:$0xff]  }
 0x13f   :  { %12910 = vmatprep.subr.bf16.mxu1 %v14175_v50  ;;  %v2331_v50 = vcombine.high %v2309_v43, %v2309_v43 }
 0x140   :  { %12889 = vmatpush3.bf16.msra.mxu0 %v14176_v51  ;;  %v14215_v51 = vld [vmem:[%s18228_s1 + $0xb70] sm:$0xff]  }
 0x141   :  { %12918 = vmatprep.subr.bf16.mxu0 %v14179_v54 }
 0x142   :  { %12911 = vmatpush3.bf16.msra.mxu1 %v14177_v52  ;;  %v14216_v52 = vld [vmem:[%s18228_s1 + $0xbf0] sm:$0xff]  }
 0x143   :  { %v12626_v61 = vpop.f32.mrf.mxu0  ;;  %9620 = vmatmul.mubr.bf16.vlgmr.msra.gmra.mxu0 %v2267_v53  ;;  %12940 = vmatprep.subr.bf16.mxu1 %v14180_v55  ;;  %v2334_v53 = vcombine.high %v2330_v47, %v2330_v47  ;;  %v14217_v55 = vld [vmem:[%s18228_s1 + $0xb30] sm:$0xff]  }
 0x144   :  { %12919 = vmatpush3.bf16.msra.mxu0 %v14181_v56  ;;  %9699 = vmatprep.mubr.bf16.mxu0 %v2323_v40  ;;  %v14218_v56 = vld [vmem:[%s18228_s1 + $0xbb0] sm:$0xff]  }
 0x145   :  { %v12648_v0 = vpop.f32.mrf.mxu1  ;;  %9660 = vmatmul.mubr.bf16.vlgmr.msra.gmra.mxu1 %v2283_v58  ;;  %v12627_v1 = vpop.f32.mrf.mxu0  ;;  %12920 = vmatprep.subr.bf16.mxu0 %v14183_v59  ;;  %v14219_v59 = vld [vmem:[%s18228_s1 + $0xb68] sm:$0xff]  }
 0x146   :  { %12941 = vmatpush3.bf16.msra.mxu1 %v14182_v57  ;;  %v12628_v3 = vadd.f32 %v12627_v1, %v12626_v61  ;;  %9739 = vmatprep.mubr.bf16.mxu1 %v2333_v45  ;;  %v14220_v61 = vld [vmem:[%s18228_s1 + $0xbe8] sm:$0xff]  }
 0x147   :  { %v12649_v5 = vpop.f32.mrf.mxu1  ;;  %12942 = vmatprep.subr.bf16.mxu1 %v14184_v60  ;;  %v12629_v7 = vpop.f32.mrf.mxu0 }
 0x148   :  { %v9142_v8 = vadd.f32 %v12628_v3, %v15906_v31  ;;  %v12650_v9 = vadd.f32 %v12649_v5, %v12648_v0  ;;  %12921 = vmatpush3.bf16.msra.mxu0 %v14185_v62  ;;  %v14206_v31 = vld [vmem:[%s18228_s1 + $0xa88] sm:$0xff]   ;;  %v14223_v5 = vld [vmem:[%s18228_s1 + $0xb60] sm:$0xff]  }
 0x149   :  { %v12651_v11 = vpop.f32.mrf.mxu1  ;;  %12922 = vmatprep.subr.bf16.mxu0 %v14187_v2  ;;  %v12630_v13 = vpop.f32.mrf.mxu0  ;;  %v14222_v3 = vld [vmem:[%s18228_s1 + $0xba8] sm:$0xff]  }
 0x14a   :  { %v16007_v14 = vadd.f32 %v12650_v9, %v9142_v8  ;;  %12943 = vmatpush3.bf16.msra.mxu1 %v14186_v63  ;;  %v14221_v63 = vld [vmem:[%s18228_s1 + $0xb28] sm:$0xff]   ;;  %v14224_v8 = vld [vmem:[%s18228_s1 + $0xbe0] sm:$0xff]   ;;  %v14228_v13 = vld [vmem:[%s18228_s1 + $0xbd8] sm:$0xff]  }
 0x14b   :  { %v12652_v16 = vpop.f32.mrf.mxu1  ;;  %12944 = vmatprep.subr.bf16.mxu1 %v14188_v4  ;;  %v14226_v11 = vld [vmem:[%s18228_s1 + $0xba0] sm:$0xff]  }
 0x14c   :  { %12923 = vmatpush3.bf16.msra.mxu0 %v14189_v6  ;;  %v14231_v16 = vld [vmem:[%s18228_s1 + $0xb50] sm:$0xff]  }
 0x14d   :  { %12924 = vmatprep.subr.bf16.mxu0 %v14191_v12  ;;  %v14227_v12 = vld [vmem:[%s18228_s1 + $0xb58] sm:$0xff]  }
 0x14e   :  { %12945 = vmatpush3.bf16.msra.mxu1 %v14190_v10  ;;  %v14225_v10 = vld [vmem:[%s18228_s1 + $0xb20] sm:$0xff]  }
 0x14f   :  { %12946 = vmatprep.subr.bf16.mxu1 %v14192_v15  ;;  %v14230_v15 = vld [vmem:[%s18228_s1 + $0xb98] sm:$0xff]  }
 0x150   :  { %12925 = vmatpush3.bf16.msra.mxu0 %v14193_v17  ;;  %v14232_v17 = vld [vmem:[%s18228_s1 + $0xbd0] sm:$0xff]  }
 0x151   :  { %12926 = vmatprep.subr.bf16.mxu0 %v14195_v19  ;;  %v14234_v19 = vld [vmem:[%s18228_s1 + $0xb90] sm:$0xff]  }
 0x152   :  { %12947 = vmatpush3.bf16.msra.mxu1 %v14194_v18  ;;  %v14233_v18 = vld [vmem:[%s18228_s1 + $0xb10] sm:$0xff]  }
 0x153   :  { %12948 = vmatprep.subr.bf16.mxu1 %v14196_v20  ;;  %v14235_v20 = vld [vmem:[%s18228_s1 + $0xb48] sm:$0xff]  }
 0x154   :  { %12927 = vmatpush3.bf16.msra.mxu0 %v14197_v21  ;;  %v14236_v21 = vld [vmem:[%s18228_s1 + $0xbc8] sm:$0xff]  }
 0x155   :  { %12928 = vmatprep.subr.bf16.mxu0 %v14199_v23  ;;  %v14238_v23 = vld [vmem:[%s18228_s1 + $0xb88] sm:$0xff]  }
 0x156   :  { %12949 = vmatpush3.bf16.msra.mxu1 %v14198_v22  ;;  %v14237_v22 = vld [vmem:[%s18228_s1 + $0xb08] sm:$0xff]  }
 0x157   :  { %12950 = vmatprep.subr.bf16.mxu1 %v14200_v24  ;;  %v14239_v24 = vld [vmem:[%s18228_s1 + $0xb40] sm:$0xff]  }
 0x158   :  { %12929 = vmatpush3.bf16.msra.mxu0 %v14201_v25  ;;  %v14240_v25 = vld [vmem:[%s18228_s1 + $0xbc0] sm:$0xff]  }
 0x159   :  { %12930 = vmatprep.subr.bf16.mxu0 %v14203_v27  ;;  %v14242_v27 = vld [vmem:[%s18228_s1 + $0xb80] sm:$0xff]  }
 0x15a   :  { %12951 = vmatpush3.bf16.msra.mxu1 %v14202_v26  ;;  %v14241_v26 = vld [vmem:[%s18228_s1 + $0xb00] sm:$0xff]  }
 0x15b   :  { %12952 = vmatprep.subr.bf16.mxu1 %v14204_v28  ;;  %v2316_v28 = vrot.slane %v16065_v37, %v15029_v41  ;;  %v14250_v37 = vld [vmem:[%s18228_s1 + $0xc30] sm:$0xff]  }
 0x15c   :  { %12931 = vmatpush3.bf16.msra.mxu0 %v14205_v29  ;;  %v14244_v29 = vld [vmem:[%s18228_s1 + $0xc78] sm:$0xff]  }
 0x15d   :  { %12932 = vmatprep.subr.bf16.mxu0 %v14207_v34  ;;  %v2332_v33 = vcombine.high %v2316_v28, %v2316_v28  ;;  %v14248_v34 = vld [vmem:[%s18228_s1 + $0xc70] sm:$0xff]  }
 0x15e   :  { %12953 = vmatpush3.bf16.msra.mxu1 %v14206_v31  ;;  %v14246_v31 = vld [vmem:[%s18228_s1 + $0xc38] sm:$0xff]  }
 0x15f   :  { %12954 = vmatprep.subr.bf16.mxu1 %v14208_v35  ;;  %v14249_v35 = vld [vmem:[%s18228_s1 + $0xcf0] sm:$0xff]  }
 0x160   :  { %12933 = vmatpush3.bf16.msra.mxu0 %v14209_v38  ;;  %v14251_v38 = vld [vmem:[%s18228_s1 + $0xcb0] sm:$0xff]  }
 0x161   :  { %12962 = vmatprep.subr.bf16.mxu0 %v14211_v44  ;;  %v14253_v44 = vld [vmem:[%s18228_s1 + $0xce8] sm:$0xff]  }
 0x162   :  { %12955 = vmatpush3.bf16.msra.mxu1 %v14210_v39 }
 0x163   :  { %v12670_v54 = vpop.f32.mrf.mxu0  ;;  %9700 = vmatmul.mubr.bf16.vlgmr.msra.gmra.mxu0 %v2309_v43  ;;  %12984 = vmatprep.subr.bf16.mxu1 %v14212_v46  ;;  %v14254_v46 = vld [vmem:[%s18228_s1 + $0xc28] sm:$0xff]  }
 0x164   :  { %12963 = vmatpush3.bf16.msra.mxu0 %v14213_v48  ;;  %9779 = vmatprep.mubr.bf16.mxu0 %v2330_v47 }
 0x165   :  { %v12692_v57 = vpop.f32.mrf.mxu1  ;;  %9740 = vmatmul.mubr.bf16.vlgmr.msra.gmra.mxu1 %v2331_v50  ;;  %v12671_v58 = vpop.f32.mrf.mxu0  ;;  %12964 = vmatprep.subr.bf16.mxu0 %v14215_v51  ;;  %v14255_v50 = vld [vmem:[%s18228_s1 + $0xca8] sm:$0xff]  }
 0x166   :  { %12985 = vmatpush3.bf16.msra.mxu1 %v14214_v49  ;;  %v12672_v60 = vadd.f32 %v12671_v58, %v12670_v54  ;;  %9819 = vmatprep.mubr.bf16.mxu1 %v2334_v53  ;;  %v14259_v58 = vld [vmem:[%s18228_s1 + $0xca0] sm:$0xff]  }
 0x167   :  { %v12693_v62 = vpop.f32.mrf.mxu1  ;;  %12986 = vmatprep.subr.bf16.mxu1 %v14216_v52  ;;  %v12673_v0 = vpop.f32.mrf.mxu0  ;;  %v14256_v52 = vld [vmem:[%s18228_s1 + $0xc60] sm:$0xff]  }
 0x168   :  { %v9222_v1 = vadd.f32 %v12672_v60, %v16007_v14  ;;  %v12694_v2 = vadd.f32 %v12693_v62, %v12692_v57  ;;  %12965 = vmatpush3.bf16.msra.mxu0 %v14217_v55  ;;  %v14229_v14 = vld [vmem:[%s18228_s1 + $0xb18] sm:$0xff]   ;;  %v14257_v55 = vld [vmem:[%s18228_s1 + $0xce0] sm:$0xff]   ;;  %v14265_v0 = vld [vmem:[%s18228_s1 + $0xcd0] sm:$0xff]  }
 0x169   :  { %v12695_v4 = vpop.f32.mrf.mxu1  ;;  %12966 = vmatprep.subr.bf16.mxu0 %v14219_v59  ;;  %v12674_v6 = vpop.f32.mrf.mxu0  ;;  %v14258_v57 = vld [vmem:[%s18228_s1 + $0xc20] sm:$0xff]   ;;  %v14260_v59 = vld [vmem:[%s18228_s1 + $0xc58] sm:$0xff]  }
 0x16a   :  { %v16118_v7 = vadd.f32 %v12694_v2, %v9222_v1  ;;  %12987 = vmatpush3.bf16.msra.mxu1 %v14218_v56  ;;  %v14261_v60 = vld [vmem:[%s18228_s1 + $0xcd8] sm:$0xff]   ;;  %v14266_v1 = vld [vmem:[%s18228_s1 + $0xc10] sm:$0xff]   ;;  %v14269_v4 = vld [vmem:[%s18228_s1 + $0xcc8] sm:$0xff]  }
 0x16b   :  { %v12696_v9 = vpop.f32.mrf.mxu1  ;;  %12988 = vmatprep.subr.bf16.mxu1 %v14220_v61  ;;  %v14262_v61 = vld [vmem:[%s18228_s1 + $0xc18] sm:$0xff]   ;;  %v14267_v2 = vld [vmem:[%s18228_s1 + $0xc90] sm:$0xff]  }
 0x16c   :  { %12967 = vmatpush3.bf16.msra.mxu0 %v14221_v63  ;;  %v14263_v62 = vld [vmem:[%s18228_s1 + $0xc98] sm:$0xff]   ;;  %v14264_v63 = vld [vmem:[%s18228_s1 + $0xc50] sm:$0xff]  }
 0x16d   :  { %12968 = vmatprep.subr.bf16.mxu0 %v14223_v5  ;;  %v14270_v5 = vld [vmem:[%s18228_s1 + $0xc08] sm:$0xff]   ;;  %v28_v6 = vld [vmem:[%s18227_s0 + $0x30] sm:$0xff] }
 0x16e   :  { %12989 = vmatpush3.bf16.msra.mxu1 %v14222_v3  ;;  %v14268_v3 = vld [vmem:[%s18228_s1 + $0xc48] sm:$0xff]   ;;  %v2335_v9 = vcombine.high %v28_v6, %v28_v6 }
 0x16f   :  { %12990 = vmatprep.subr.bf16.mxu1 %v14224_v8  ;;  %v2342_v8 = vrot.slane %v28_v6, %v15029_v41  ;;  %v14310_v6 = vld [vmem:[%s18228_s1 + $0xef8] sm:$0xff]  }
 0x170   :  { %12969 = vmatpush3.bf16.msra.mxu0 %v14225_v10  ;;  %v14272_v10 = vld [vmem:[%s18228_s1 + $0xc40] sm:$0xff]  }
 0x171   :  { %12970 = vmatprep.subr.bf16.mxu0 %v14227_v12  ;;  %v2350_v12 = vcombine.high %v2342_v8, %v2342_v8 }
 0x172   :  { %12991 = vmatpush3.bf16.msra.mxu1 %v14226_v11  ;;  %v14273_v11 = vld [vmem:[%s18228_s1 + $0xcc0] sm:$0xff]  }
 0x173   :  { %12992 = vmatprep.subr.bf16.mxu1 %v14228_v13  ;;  %v16277_v13 = vrot.slane %v2335_v9, %v15029_v41 }
 0x174   :  { %12971 = vmatpush3.bf16.msra.mxu0 %v14229_v14  ;;  %v14274_v14 = vld [vmem:[%s18228_s1 + $0xc00] sm:$0xff]  }
 0x175   :  { %12972 = vmatprep.subr.bf16.mxu0 %v14231_v16  ;;  %v2372_v16 = vrot.slane %v2350_v12, %v15029_v41 }
 0x176   :  { %12993 = vmatpush3.bf16.msra.mxu1 %v14230_v15  ;;  %v14275_v15 = vld [vmem:[%s18228_s1 + $0xc80] sm:$0xff]  }
 0x177   :  { %12994 = vmatprep.subr.bf16.mxu1 %v14232_v17  ;;  %v2351_v17 = vcombine.high %v16277_v13, %v16277_v13 }
 0x178   :  { %12973 = vmatpush3.bf16.msra.mxu0 %v14233_v18  ;;  %v2358_v18 = vrot.slane %v2342_v8, %v15029_v41  ;;  %v14312_v8 = vld [vmem:[%s18228_s1 + $0xeb8] sm:$0xff]  }
 0x179   :  { %12974 = vmatprep.subr.bf16.mxu0 %v14235_v20  ;;  %v2382_v20 = vcombine.high %v2372_v16, %v2372_v16 }
 0x17a   :  { %12995 = vmatpush3.bf16.msra.mxu1 %v14234_v19  ;;  %v14276_v19 = vld [vmem:[%s18228_s1 + $0xd78] sm:$0xff]  }
 0x17b   :  { %12996 = vmatprep.subr.bf16.mxu1 %v14236_v21  ;;  %v14277_v21 = vld [vmem:[%s18228_s1 + $0xdf8] sm:$0xff]  }
 0x17c   :  { %12975 = vmatpush3.bf16.msra.mxu0 %v14237_v22  ;;  %v2379_v22 = vrot.slane %v2351_v17, %v15029_v41  ;;  %v14317_v17 = vld [vmem:[%s18228_s1 + $0xe68] sm:$0xff]  }
 0x17d   :  { %12976 = vmatprep.subr.bf16.mxu0 %v14239_v24  ;;  %v14279_v24 = vld [vmem:[%s18228_s1 + $0xdb8] sm:$0xff]  }
 0x17e   :  { %12997 = vmatpush3.bf16.msra.mxu1 %v14238_v23  ;;  %v14278_v23 = vld [vmem:[%s18228_s1 + $0xd38] sm:$0xff]  }
 0x17f   :  { %12998 = vmatprep.subr.bf16.mxu1 %v14240_v25  ;;  %v2380_v25 = vcombine.high %v2358_v18, %v2358_v18 }
 0x180   :  { %12977 = vmatpush3.bf16.msra.mxu0 %v14241_v26  ;;  %v14280_v26 = vld [vmem:[%s18228_s1 + $0xd70] sm:$0xff]  }
 0x181   :  { %13006 = vmatprep.subr.bf16.mxu0 %v14244_v29 }
 0x182   :  { %12999 = vmatpush3.bf16.msra.mxu1 %v14242_v27  ;;  %v14281_v27 = vld [vmem:[%s18228_s1 + $0xdf0] sm:$0xff]  }
 0x183   :  { %v12714_v36 = vpop.f32.mrf.mxu0  ;;  %9780 = vmatmul.mubr.bf16.vlgmr.msra.gmra.mxu0 %v2316_v28  ;;  %13028 = vmatprep.subr.bf16.mxu1 %v14245_v30  ;;  %v2383_v28 = vcombine.high %v2379_v22, %v2379_v22  ;;  %v14282_v30 = vld [vmem:[%s18228_s1 + $0xd30] sm:$0xff]  }
 0x184   :  { %13007 = vmatpush3.bf16.msra.mxu0 %v14246_v31  ;;  %9859 = vmatprep.mubr.bf16.mxu0 %v2372_v16  ;;  %v14283_v31 = vld [vmem:[%s18228_s1 + $0xdb0] sm:$0xff]  }
 0x185   :  { %v12736_v39 = vpop.f32.mrf.mxu1  ;;  %9820 = vmatmul.mubr.bf16.vlgmr.msra.gmra.mxu1 %v2332_v33  ;;  %v12715_v40 = vpop.f32.mrf.mxu0  ;;  %13008 = vmatprep.subr.bf16.mxu0 %v14248_v34  ;;  %v14284_v34 = vld [vmem:[%s18228_s1 + $0xd68] sm:$0xff]  }
 0x186   :  { %13029 = vmatpush3.bf16.msra.mxu1 %v14247_v32  ;;  %v12716_v43 = vadd.f32 %v12715_v40, %v12714_v36  ;;  %9899 = vmatprep.mubr.bf16.mxu1 %v2382_v20  ;;  %v14285_v36 = vld [vmem:[%s18228_s1 + $0xde8] sm:$0xff]  }
 0x187   :  { %v12737_v45 = vpop.f32.mrf.mxu1  ;;  %13030 = vmatprep.subr.bf16.mxu1 %v14249_v35  ;;  %v12717_v47 = vpop.f32.mrf.mxu0 }
 0x188   :  { %v9302_v48 = vadd.f32 %v12716_v43, %v16118_v7  ;;  %v12738_v49 = vadd.f32 %v12737_v45, %v12736_v39  ;;  %13009 = vmatpush3.bf16.msra.mxu0 %v14250_v37  ;;  %v14271_v7 = vld [vmem:[%s18228_s1 + $0xc88] sm:$0xff]   ;;  %v14288_v45 = vld [vmem:[%s18228_s1 + $0xd60] sm:$0xff]  }
 0x189   :  { %v12739_v51 = vpop.f32.mrf.mxu1  ;;  %13010 = vmatprep.subr.bf16.mxu0 %v14252_v42  ;;  %v12718_v53 = vpop.f32.mrf.mxu0  ;;  %v14287_v43 = vld [vmem:[%s18228_s1 + $0xda8] sm:$0xff]  }
 0x18a   :  { %v16219_v54 = vadd.f32 %v12738_v49, %v9302_v48  ;;  %13031 = vmatpush3.bf16.msra.mxu1 %v14251_v38  ;;  %v14286_v38 = vld [vmem:[%s18228_s1 + $0xd28] sm:$0xff]   ;;  %v14289_v48 = vld [vmem:[%s18228_s1 + $0xde0] sm:$0xff]   ;;  %v14293_v53 = vld [vmem:[%s18228_s1 + $0xdd8] sm:$0xff]  }
 0x18b   :  { %v12740_v56 = vpop.f32.mrf.mxu1  ;;  %13032 = vmatprep.subr.bf16.mxu1 %v14253_v44  ;;  %v14291_v51 = vld [vmem:[%s18228_s1 + $0xda0] sm:$0xff]  }
 0x18c   :  { %13011 = vmatpush3.bf16.msra.mxu0 %v14254_v46  ;;  %v14296_v56 = vld [vmem:[%s18228_s1 + $0xd50] sm:$0xff]  }
 0x18d   :  { %13012 = vmatprep.subr.bf16.mxu0 %v14256_v52  ;;  %v14292_v52 = vld [vmem:[%s18228_s1 + $0xd58] sm:$0xff]  }
 0x18e   :  { %13033 = vmatpush3.bf16.msra.mxu1 %v14255_v50  ;;  %v14290_v50 = vld [vmem:[%s18228_s1 + $0xd20] sm:$0xff]  }
 0x18f   :  { %13034 = vmatprep.subr.bf16.mxu1 %v14257_v55  ;;  %v14295_v55 = vld [vmem:[%s18228_s1 + $0xd98] sm:$0xff]  }
 0x190   :  { %13013 = vmatpush3.bf16.msra.mxu0 %v14258_v57  ;;  %v14297_v57 = vld [vmem:[%s18228_s1 + $0xdd0] sm:$0xff]  }
 0x191   :  { %13014 = vmatprep.subr.bf16.mxu0 %v14260_v59  ;;  %v14299_v59 = vld [vmem:[%s18228_s1 + $0xd90] sm:$0xff]  }
 0x192   :  { %13035 = vmatpush3.bf16.msra.mxu1 %v14259_v58  ;;  %v14298_v58 = vld [vmem:[%s18228_s1 + $0xd10] sm:$0xff]  }
 0x193   :  { %13036 = vmatprep.subr.bf16.mxu1 %v14261_v60  ;;  %v14300_v60 = vld [vmem:[%s18228_s1 + $0xd48] sm:$0xff]  }
 0x194   :  { %13015 = vmatpush3.bf16.msra.mxu0 %v14262_v61  ;;  %v14301_v61 = vld [vmem:[%s18228_s1 + $0xdc8] sm:$0xff]  }
 0x195   :  { %13016 = vmatprep.subr.bf16.mxu0 %v14264_v63  ;;  %v14303_v63 = vld [vmem:[%s18228_s1 + $0xd88] sm:$0xff]  }
 0x196   :  { %13037 = vmatpush3.bf16.msra.mxu1 %v14263_v62  ;;  %v14302_v62 = vld [vmem:[%s18228_s1 + $0xd08] sm:$0xff]  }
 0x197   :  { %13038 = vmatprep.subr.bf16.mxu1 %v14265_v0  ;;  %v14304_v0 = vld [vmem:[%s18228_s1 + $0xd40] sm:$0xff]  }
 0x198   :  { %13017 = vmatpush3.bf16.msra.mxu0 %v14266_v1  ;;  %v14305_v1 = vld [vmem:[%s18228_s1 + $0xdc0] sm:$0xff]  }
 0x199   :  { %13018 = vmatprep.subr.bf16.mxu0 %v14268_v3  ;;  %v14307_v3 = vld [vmem:[%s18228_s1 + $0xd80] sm:$0xff]  }
 0x19a   :  { %13039 = vmatpush3.bf16.msra.mxu1 %v14267_v2  ;;  %v14306_v2 = vld [vmem:[%s18228_s1 + $0xd00] sm:$0xff]  }
 0x19b   :  { %13040 = vmatprep.subr.bf16.mxu1 %v14269_v4  ;;  %v2365_v4 = vrot.slane %v16277_v13, %v15029_v41  ;;  %v14315_v13 = vld [vmem:[%s18228_s1 + $0xe30] sm:$0xff]  }
 0x19c   :  { %13019 = vmatpush3.bf16.msra.mxu0 %v14270_v5  ;;  %v14309_v5 = vld [vmem:[%s18228_s1 + $0xe78] sm:$0xff]  }
 0x19d   :  { %13020 = vmatprep.subr.bf16.mxu0 %v14272_v10  ;;  %v2381_v9 = vcombine.high %v2365_v4, %v2365_v4  ;;  %v14313_v10 = vld [vmem:[%s18228_s1 + $0xe70] sm:$0xff]  }
 0x19e   :  { %13041 = vmatpush3.bf16.msra.mxu1 %v14271_v7  ;;  %v14311_v7 = vld [vmem:[%s18228_s1 + $0xe38] sm:$0xff]  }
 0x19f   :  { %13042 = vmatprep.subr.bf16.mxu1 %v14273_v11  ;;  %v14314_v11 = vld [vmem:[%s18228_s1 + $0xef0] sm:$0xff]  }
 0x1a0   :  { %13021 = vmatpush3.bf16.msra.mxu0 %v14274_v14  ;;  %v14316_v14 = vld [vmem:[%s18228_s1 + $0xeb0] sm:$0xff]  }
 0x1a1   :  { %13050 = vmatprep.subr.bf16.mxu0 %v14276_v19  ;;  %v14318_v19 = vld [vmem:[%s18228_s1 + $0xee8] sm:$0xff]  }
 0x1a2   :  { %13043 = vmatpush3.bf16.msra.mxu1 %v14275_v15 }
 0x1a3   :  { %v12758_v29 = vpop.f32.mrf.mxu0  ;;  %9860 = vmatmul.mubr.bf16.vlgmr.msra.gmra.mxu0 %v2358_v18  ;;  %13072 = vmatprep.subr.bf16.mxu1 %v14277_v21  ;;  %v14319_v21 = vld [vmem:[%s18228_s1 + $0xe28] sm:$0xff]  }
 0x1a4   :  { %13051 = vmatpush3.bf16.msra.mxu0 %v14278_v23  ;;  %9939 = vmatprep.mubr.bf16.mxu0 %v2379_v22 }
 0x1a5   :  { %v12780_v32 = vpop.f32.mrf.mxu1  ;;  %9900 = vmatmul.mubr.bf16.vlgmr.msra.gmra.mxu1 %v2380_v25  ;;  %v12759_v33 = vpop.f32.mrf.mxu0  ;;  %13052 = vmatprep.subr.bf16.mxu0 %v14280_v26  ;;  %v14320_v25 = vld [vmem:[%s18228_s1 + $0xea8] sm:$0xff]  }
 0x1a6   :  { %13073 = vmatpush3.bf16.msra.mxu1 %v14279_v24  ;;  %v12760_v35 = vadd.f32 %v12759_v33, %v12758_v29  ;;  %9979 = vmatprep.mubr.bf16.mxu1 %v2383_v28  ;;  %v14324_v33 = vld [vmem:[%s18228_s1 + $0xea0] sm:$0xff]  }
 0x1a7   :  { %v12781_v37 = vpop.f32.mrf.mxu1  ;;  %13074 = vmatprep.subr.bf16.mxu1 %v14281_v27  ;;  %v12761_v39 = vpop.f32.mrf.mxu0  ;;  %v14321_v27 = vld [vmem:[%s18228_s1 + $0xe60] sm:$0xff]  }
 0x1a8   :  { %v9382_v40 = vadd.f32 %v12760_v35, %v16219_v54  ;;  %v12782_v42 = vadd.f32 %v12781_v37, %v12780_v32  ;;  %13053 = vmatpush3.bf16.msra.mxu0 %v14282_v30  ;;  %v14294_v54 = vld [vmem:[%s18228_s1 + $0xd18] sm:$0xff]   ;;  %v14322_v30 = vld [vmem:[%s18228_s1 + $0xee0] sm:$0xff]   ;;  %v14330_v39 = vld [vmem:[%s18228_s1 + $0xed0] sm:$0xff]  }
 0x1a9   :  { %v12783_v44 = vpop.f32.mrf.mxu1  ;;  %13054 = vmatprep.subr.bf16.mxu0 %v14284_v34  ;;  %v12762_v46 = vpop.f32.mrf.mxu0  ;;  %v14323_v32 = vld [vmem:[%s18228_s1 + $0xe20] sm:$0xff]   ;;  %v14325_v34 = vld [vmem:[%s18228_s1 + $0xe58] sm:$0xff]  }
 0x1aa   :  { %v16330_v47 = vadd.f32 %v12782_v42, %v9382_v40  ;;  %13075 = vmatpush3.bf16.msra.mxu1 %v14283_v31  ;;  %v14326_v35 = vld [vmem:[%s18228_s1 + $0xed8] sm:$0xff]   ;;  %v14331_v40 = vld [vmem:[%s18228_s1 + $0xe10] sm:$0xff]   ;;  %v14334_v44 = vld [vmem:[%s18228_s1 + $0xec8] sm:$0xff]  }
 0x1ab   :  { %v12784_v49 = vpop.f32.mrf.mxu1  ;;  %13076 = vmatprep.subr.bf16.mxu1 %v14285_v36  ;;  %v14327_v36 = vld [vmem:[%s18228_s1 + $0xe18] sm:$0xff]   ;;  %v14332_v42 = vld [vmem:[%s18228_s1 + $0xe90] sm:$0xff]  }
 0x1ac   :  { %13055 = vmatpush3.bf16.msra.mxu0 %v14286_v38  ;;  %v14328_v37 = vld [vmem:[%s18228_s1 + $0xe98] sm:$0xff]   ;;  %v14329_v38 = vld [vmem:[%s18228_s1 + $0xe50] sm:$0xff]  }
 0x1ad   :  { %13056 = vmatprep.subr.bf16.mxu0 %v14288_v45  ;;  %v14335_v45 = vld [vmem:[%s18228_s1 + $0xe08] sm:$0xff]   ;;  %v29_v46 = vld [vmem:[%s18227_s0 + $0x38] sm:$0xff] }
 0x1ae   :  { %13077 = vmatpush3.bf16.msra.mxu1 %v14287_v43  ;;  %v14333_v43 = vld [vmem:[%s18228_s1 + $0xe48] sm:$0xff]   ;;  %v2384_v49 = vcombine.high %v29_v46, %v29_v46 }
 0x1af   :  { %13078 = vmatprep.subr.bf16.mxu1 %v14289_v48  ;;  %v2391_v48 = vrot.slane %v29_v46, %v15029_v41  ;;  %v14375_v46 = vld [vmem:[%s18228_s1 + $0x10f8] sm:$0xff]  }
 0x1b0   :  { %13057 = vmatpush3.bf16.msra.mxu0 %v14290_v50  ;;  %v14337_v50 = vld [vmem:[%s18228_s1 + $0xe40] sm:$0xff]  }
 0x1b1   :  { %13058 = vmatprep.subr.bf16.mxu0 %v14292_v52  ;;  %v2399_v52 = vcombine.high %v2391_v48, %v2391_v48 }
 0x1b2   :  { %13079 = vmatpush3.bf16.msra.mxu1 %v14291_v51  ;;  %v14338_v51 = vld [vmem:[%s18228_s1 + $0xec0] sm:$0xff]  }
 0x1b3   :  { %13080 = vmatprep.subr.bf16.mxu1 %v14293_v53  ;;  %v16489_v53 = vrot.slane %v2384_v49, %v15029_v41 }
 0x1b4   :  { %13059 = vmatpush3.bf16.msra.mxu0 %v14294_v54  ;;  %v14339_v54 = vld [vmem:[%s18228_s1 + $0xe00] sm:$0xff]  }
 0x1b5   :  { %13060 = vmatprep.subr.bf16.mxu0 %v14296_v56  ;;  %v2421_v56 = vrot.slane %v2399_v52, %v15029_v41 }
 0x1b6   :  { %13081 = vmatpush3.bf16.msra.mxu1 %v14295_v55  ;;  %v14340_v55 = vld [vmem:[%s18228_s1 + $0xe80] sm:$0xff]  }
 0x1b7   :  { %13082 = vmatprep.subr.bf16.mxu1 %v14297_v57  ;;  %v2400_v57 = vcombine.high %v16489_v53, %v16489_v53 }
 0x1b8   :  { %13061 = vmatpush3.bf16.msra.mxu0 %v14298_v58  ;;  %v2407_v58 = vrot.slane %v2391_v48, %v15029_v41  ;;  %v14377_v48 = vld [vmem:[%s18228_s1 + $0x10b8] sm:$0xff]  }
 0x1b9   :  { %13062 = vmatprep.subr.bf16.mxu0 %v14300_v60  ;;  %v2431_v60 = vcombine.high %v2421_v56, %v2421_v56 }
 0x1ba   :  { %13083 = vmatpush3.bf16.msra.mxu1 %v14299_v59  ;;  %v14341_v59 = vld [vmem:[%s18228_s1 + $0xf78] sm:$0xff]  }
 0x1bb   :  { %13084 = vmatprep.subr.bf16.mxu1 %v14301_v61  ;;  %v14342_v61 = vld [vmem:[%s18228_s1 + $0xff8] sm:$0xff]  }
 0x1bc   :  { %13063 = vmatpush3.bf16.msra.mxu0 %v14302_v62  ;;  %v2428_v62 = vrot.slane %v2400_v57, %v15029_v41  ;;  %v14382_v57 = vld [vmem:[%s18228_s1 + $0x1068] sm:$0xff]  }
 0x1bd   :  { %13064 = vmatprep.subr.bf16.mxu0 %v14304_v0  ;;  %v14344_v0 = vld [vmem:[%s18228_s1 + $0xfb8] sm:$0xff]  }
 0x1be   :  { %13085 = vmatpush3.bf16.msra.mxu1 %v14303_v63  ;;  %v14343_v63 = vld [vmem:[%s18228_s1 + $0xf38] sm:$0xff]  }
 0x1bf   :  { %13086 = vmatprep.subr.bf16.mxu1 %v14305_v1  ;;  %v2429_v1 = vcombine.high %v2407_v58, %v2407_v58 }
 0x1c0   :  { %13065 = vmatpush3.bf16.msra.mxu0 %v14306_v2  ;;  %v14345_v2 = vld [vmem:[%s18228_s1 + $0xf70] sm:$0xff]  }
 0x1c1   :  { %13094 = vmatprep.subr.bf16.mxu0 %v14309_v5 }
 0x1c2   :  { %13087 = vmatpush3.bf16.msra.mxu1 %v14307_v3  ;;  %v14346_v3 = vld [vmem:[%s18228_s1 + $0xff0] sm:$0xff]  }
 0x1c3   :  { %v12802_v12 = vpop.f32.mrf.mxu0  ;;  %9940 = vmatmul.mubr.bf16.vlgmr.msra.gmra.mxu0 %v2365_v4  ;;  %13116 = vmatprep.subr.bf16.mxu1 %v14310_v6  ;;  %v2432_v4 = vcombine.high %v2428_v62, %v2428_v62  ;;  %v14347_v6 = vld [vmem:[%s18228_s1 + $0xf30] sm:$0xff]  }
 0x1c4   :  { %13095 = vmatpush3.bf16.msra.mxu0 %v14311_v7  ;;  %10019 = vmatprep.mubr.bf16.mxu0 %v2421_v56  ;;  %v14348_v7 = vld [vmem:[%s18228_s1 + $0xfb0] sm:$0xff]  }
 0x1c5   :  { %v12824_v15 = vpop.f32.mrf.mxu1  ;;  %9980 = vmatmul.mubr.bf16.vlgmr.msra.gmra.mxu1 %v2381_v9  ;;  %v12803_v16 = vpop.f32.mrf.mxu0  ;;  %13096 = vmatprep.subr.bf16.mxu0 %v14313_v10  ;;  %v14349_v10 = vld [vmem:[%s18228_s1 + $0xf68] sm:$0xff]  }
 0x1c6   :  { %13117 = vmatpush3.bf16.msra.mxu1 %v14312_v8  ;;  %v12804_v18 = vadd.f32 %v12803_v16, %v12802_v12  ;;  %10059 = vmatprep.mubr.bf16.mxu1 %v2431_v60  ;;  %v14350_v12 = vld [vmem:[%s18228_s1 + $0xfe8] sm:$0xff]  }
 0x1c7   :  { %v12825_v20 = vpop.f32.mrf.mxu1  ;;  %13118 = vmatprep.subr.bf16.mxu1 %v14314_v11  ;;  %v12805_v22 = vpop.f32.mrf.mxu0 }
 0x1c8   :  { %v9462_v23 = vadd.f32 %v12804_v18, %v16330_v47  ;;  %v12826_v24 = vadd.f32 %v12825_v20, %v12824_v15  ;;  %13097 = vmatpush3.bf16.msra.mxu0 %v14315_v13  ;;  %v14336_v47 = vld [vmem:[%s18228_s1 + $0xe88] sm:$0xff]   ;;  %v14353_v20 = vld [vmem:[%s18228_s1 + $0xf60] sm:$0xff]  }
 0x1c9   :  { %v12827_v26 = vpop.f32.mrf.mxu1  ;;  %13098 = vmatprep.subr.bf16.mxu0 %v14317_v17  ;;  %v12806_v28 = vpop.f32.mrf.mxu0  ;;  %v14352_v18 = vld [vmem:[%s18228_s1 + $0xfa8] sm:$0xff]  }
 0x1ca   :  { %v16431_v29 = vadd.f32 %v12826_v24, %v9462_v23  ;;  %13119 = vmatpush3.bf16.msra.mxu1 %v14316_v14  ;;  %v14351_v14 = vld [vmem:[%s18228_s1 + $0xf28] sm:$0xff]   ;;  %v14354_v23 = vld [vmem:[%s18228_s1 + $0xfe0] sm:$0xff]   ;;  %v14358_v28 = vld [vmem:[%s18228_s1 + $0xfd8] sm:$0xff]  }
 0x1cb   :  { %v12828_v31 = vpop.f32.mrf.mxu1  ;;  %13120 = vmatprep.subr.bf16.mxu1 %v14318_v19  ;;  %v14356_v26 = vld [vmem:[%s18228_s1 + $0xfa0] sm:$0xff]  }
 0x1cc   :  { %13099 = vmatpush3.bf16.msra.mxu0 %v14319_v21  ;;  %v14361_v31 = vld [vmem:[%s18228_s1 + $0xf50] sm:$0xff]  }
 0x1cd   :  { %13100 = vmatprep.subr.bf16.mxu0 %v14321_v27  ;;  %v14357_v27 = vld [vmem:[%s18228_s1 + $0xf58] sm:$0xff]  }
 0x1ce   :  { %13121 = vmatpush3.bf16.msra.mxu1 %v14320_v25  ;;  %v14355_v25 = vld [vmem:[%s18228_s1 + $0xf20] sm:$0xff]  }
 0x1cf   :  { %13122 = vmatprep.subr.bf16.mxu1 %v14322_v30  ;;  %v14360_v30 = vld [vmem:[%s18228_s1 + $0xf98] sm:$0xff]  }
 0x1d0   :  { %13101 = vmatpush3.bf16.msra.mxu0 %v14323_v32  ;;  %v14362_v32 = vld [vmem:[%s18228_s1 + $0xfd0] sm:$0xff]  }
 0x1d1   :  { %13102 = vmatprep.subr.bf16.mxu0 %v14325_v34  ;;  %v14364_v34 = vld [vmem:[%s18228_s1 + $0xf90] sm:$0xff]  }
 0x1d2   :  { %13123 = vmatpush3.bf16.msra.mxu1 %v14324_v33  ;;  %v14363_v33 = vld [vmem:[%s18228_s1 + $0xf10] sm:$0xff]  }
 0x1d3   :  { %13124 = vmatprep.subr.bf16.mxu1 %v14326_v35  ;;  %v14365_v35 = vld [vmem:[%s18228_s1 + $0xf48] sm:$0xff]  }
 0x1d4   :  { %13103 = vmatpush3.bf16.msra.mxu0 %v14327_v36  ;;  %v14366_v36 = vld [vmem:[%s18228_s1 + $0xfc8] sm:$0xff]  }
 0x1d5   :  { %13104 = vmatprep.subr.bf16.mxu0 %v14329_v38  ;;  %v14368_v38 = vld [vmem:[%s18228_s1 + $0xf88] sm:$0xff]  }
 0x1d6   :  { %13125 = vmatpush3.bf16.msra.mxu1 %v14328_v37  ;;  %v14367_v37 = vld [vmem:[%s18228_s1 + $0xf08] sm:$0xff]  }
 0x1d7   :  { %13126 = vmatprep.subr.bf16.mxu1 %v14330_v39  ;;  %v14369_v39 = vld [vmem:[%s18228_s1 + $0xf40] sm:$0xff]  }
 0x1d8   :  { %13105 = vmatpush3.bf16.msra.mxu0 %v14331_v40  ;;  %v14370_v40 = vld [vmem:[%s18228_s1 + $0xfc0] sm:$0xff]  }
 0x1d9   :  { %13106 = vmatprep.subr.bf16.mxu0 %v14333_v43  ;;  %v14372_v43 = vld [vmem:[%s18228_s1 + $0xf80] sm:$0xff]  }
 0x1da   :  { %13127 = vmatpush3.bf16.msra.mxu1 %v14332_v42  ;;  %v14371_v42 = vld [vmem:[%s18228_s1 + $0xf00] sm:$0xff]  }
 0x1db   :  { %13128 = vmatprep.subr.bf16.mxu1 %v14334_v44  ;;  %v2414_v44 = vrot.slane %v16489_v53, %v15029_v41  ;;  %v14380_v53 = vld [vmem:[%s18228_s1 + $0x1030] sm:$0xff]  }
 0x1dc   :  { %13107 = vmatpush3.bf16.msra.mxu0 %v14335_v45  ;;  %v14374_v45 = vld [vmem:[%s18228_s1 + $0x1078] sm:$0xff]  }
 0x1dd   :  { %13108 = vmatprep.subr.bf16.mxu0 %v14337_v50  ;;  %v2430_v49 = vcombine.high %v2414_v44, %v2414_v44  ;;  %v14378_v50 = vld [vmem:[%s18228_s1 + $0x1070] sm:$0xff]  }
 0x1de   :  { %13129 = vmatpush3.bf16.msra.mxu1 %v14336_v47  ;;  %v14376_v47 = vld [vmem:[%s18228_s1 + $0x1038] sm:$0xff]  }
 0x1df   :  { %13130 = vmatprep.subr.bf16.mxu1 %v14338_v51  ;;  %v14379_v51 = vld [vmem:[%s18228_s1 + $0x10f0] sm:$0xff]  }
 0x1e0   :  { %13109 = vmatpush3.bf16.msra.mxu0 %v14339_v54  ;;  %v14381_v54 = vld [vmem:[%s18228_s1 + $0x10b0] sm:$0xff]  }
 0x1e1   :  { %13138 = vmatprep.subr.bf16.mxu0 %v14341_v59  ;;  %v14383_v59 = vld [vmem:[%s18228_s1 + $0x10e8] sm:$0xff]  }
 0x1e2   :  { %13131 = vmatpush3.bf16.msra.mxu1 %v14340_v55 }
 0x1e3   :  { %v12846_v5 = vpop.f32.mrf.mxu0  ;;  %10020 = vmatmul.mubr.bf16.vlgmr.msra.gmra.mxu0 %v2407_v58  ;;  %13160 = vmatprep.subr.bf16.mxu1 %v14342_v61  ;;  %v14384_v61 = vld [vmem:[%s18228_s1 + $0x1028] sm:$0xff]  }
 0x1e4   :  { %13139 = vmatpush3.bf16.msra.mxu0 %v14343_v63  ;;  %10099 = vmatprep.mubr.bf16.mxu0 %v2428_v62 }
 0x1e5   :  { %v12868_v8 = vpop.f32.mrf.mxu1  ;;  %10060 = vmatmul.mubr.bf16.vlgmr.msra.gmra.mxu1 %v2429_v1  ;;  %v12847_v9 = vpop.f32.mrf.mxu0  ;;  %13140 = vmatprep.subr.bf16.mxu0 %v14345_v2  ;;  %v14385_v1 = vld [vmem:[%s18228_s1 + $0x10a8] sm:$0xff]  }
 0x1e6   :  { %13161 = vmatpush3.bf16.msra.mxu1 %v14344_v0  ;;  %v12848_v11 = vadd.f32 %v12847_v9, %v12846_v5  ;;  %10139 = vmatprep.mubr.bf16.mxu1 %v2432_v4  ;;  %v14389_v9 = vld [vmem:[%s18228_s1 + $0x10a0] sm:$0xff]  }
 0x1e7   :  { %v12869_v13 = vpop.f32.mrf.mxu1  ;;  %13162 = vmatprep.subr.bf16.mxu1 %v14346_v3  ;;  %v12849_v15 = vpop.f32.mrf.mxu0  ;;  %v14386_v3 = vld [vmem:[%s18228_s1 + $0x1060] sm:$0xff]  }
 0x1e8   :  { %v9542_v16 = vadd.f32 %v12848_v11, %v16431_v29  ;;  %v12870_v17 = vadd.f32 %v12869_v13, %v12868_v8  ;;  %13141 = vmatpush3.bf16.msra.mxu0 %v14347_v6  ;;  %v14359_v29 = vld [vmem:[%s18228_s1 + $0xf18] sm:$0xff]   ;;  %v14387_v6 = vld [vmem:[%s18228_s1 + $0x10e0] sm:$0xff]   ;;  %v14395_v15 = vld [vmem:[%s18228_s1 + $0x10d0] sm:$0xff]  }
 0x1e9   :  { %v12871_v19 = vpop.f32.mrf.mxu1  ;;  %13142 = vmatprep.subr.bf16.mxu0 %v14349_v10  ;;  %v12850_v21 = vpop.f32.mrf.mxu0  ;;  %v14388_v8 = vld [vmem:[%s18228_s1 + $0x1020] sm:$0xff]   ;;  %v14390_v10 = vld [vmem:[%s18228_s1 + $0x1058] sm:$0xff]  }
 0x1ea   :  { %v16542_v22 = vadd.f32 %v12870_v17, %v9542_v16  ;;  %13163 = vmatpush3.bf16.msra.mxu1 %v14348_v7  ;;  %v14391_v11 = vld [vmem:[%s18228_s1 + $0x10d8] sm:$0xff]   ;;  %v14396_v16 = vld [vmem:[%s18228_s1 + $0x1010] sm:$0xff]   ;;  %v14399_v19 = vld [vmem:[%s18228_s1 + $0x10c8] sm:$0xff]  }
 0x1eb   :  { %v12872_v24 = vpop.f32.mrf.mxu1  ;;  %13164 = vmatprep.subr.bf16.mxu1 %v14350_v12  ;;  %v14392_v12 = vld [vmem:[%s18228_s1 + $0x1018] sm:$0xff]   ;;  %v14397_v17 = vld [vmem:[%s18228_s1 + $0x1090] sm:$0xff]   ;;  %v14401_v21 = vld [vmem:[%s18228_s1 + $0x1088] sm:$0xff]  }
 0x1ec   :  { %13143 = vmatpush3.bf16.msra.mxu0 %v14351_v14  ;;  %v14393_v13 = vld [vmem:[%s18228_s1 + $0x1098] sm:$0xff]   ;;  %v14394_v14 = vld [vmem:[%s18228_s1 + $0x1050] sm:$0xff]  }
 0x1ed   :  { %13144 = vmatprep.subr.bf16.mxu0 %v14353_v20  ;;  %v14400_v20 = vld [vmem:[%s18228_s1 + $0x1008] sm:$0xff]  }
 0x1ee   :  { %13165 = vmatpush3.bf16.msra.mxu1 %v14352_v18  ;;  %v14398_v18 = vld [vmem:[%s18228_s1 + $0x1048] sm:$0xff]  }
 0x1ef   :  { %13166 = vmatprep.subr.bf16.mxu1 %v14354_v23  ;;  %v14402_v23 = vld [vmem:[%s18228_s1 + $0x1040] sm:$0xff]  }
 0x1f0   :  { %13145 = vmatpush3.bf16.msra.mxu0 %v14355_v25 }
 0x1f1   :  { %13146 = vmatprep.subr.bf16.mxu0 %v14357_v27  ;;  %v14404_v27 = vld [vmem:[%s18228_s1 + $0x1000] sm:$0xff]  }
 0x1f2   :  { %13167 = vmatpush3.bf16.msra.mxu1 %v14356_v26  ;;  %v14403_v26 = vld [vmem:[%s18228_s1 + $0x10c0] sm:$0xff]  }
 0x1f3   :  { %13168 = vmatprep.subr.bf16.mxu1 %v14358_v28 }
 0x1f4   :  { %13147 = vmatpush3.bf16.msra.mxu0 %v14359_v29 }
 0x1f5   :  { %13148 = vmatprep.subr.bf16.mxu0 %v14361_v31 }
 0x1f6   :  { %13169 = vmatpush3.bf16.msra.mxu1 %v14360_v30  ;;  %v14405_v30 = vld [vmem:[%s18228_s1 + $0x1080] sm:$0xff]  }
 0x1f7   :  { %13170 = vmatprep.subr.bf16.mxu1 %v14362_v32 }
 0x1f8   :  { %13149 = vmatpush3.bf16.msra.mxu0 %v14363_v33  ;;  %v14406_v33 = vld [vmem:[%s18228_s1 + $0x1178] sm:$0xff]  }
 0x1f9   :  { %13150 = vmatprep.subr.bf16.mxu0 %v14365_v35  ;;  %v14407_v35 = vld [vmem:[%s18228_s1 + $0x11f8] sm:$0xff]  }
 0x1fa   :  { %13171 = vmatpush3.bf16.msra.mxu1 %v14364_v34 }
 0x1fb   :  { %13172 = vmatprep.subr.bf16.mxu1 %v14366_v36 }
 0x1fc   :  { %13151 = vmatpush3.bf16.msra.mxu0 %v14367_v37  ;;  %v14408_v37 = vld [vmem:[%s18228_s1 + $0x1138] sm:$0xff]  }
 0x1fd   :  { %13152 = vmatprep.subr.bf16.mxu0 %v14369_v39  ;;  %v14409_v39 = vld [vmem:[%s18228_s1 + $0x11b8] sm:$0xff]  }
 0x1fe   :  { %13173 = vmatpush3.bf16.msra.mxu1 %v14368_v38 }
 0x1ff   :  { %13174 = vmatprep.subr.bf16.mxu1 %v14370_v40 }
 0x200   :  { %13153 = vmatpush3.bf16.msra.mxu0 %v14371_v42  ;;  %v14410_v42 = vld [vmem:[%s18228_s1 + $0x1170] sm:$0xff]  }
 0x201   :  { %13182 = vmatprep.subr.bf16.mxu0 %v14374_v45 }
 0x202   :  { %13175 = vmatpush3.bf16.msra.mxu1 %v14372_v43  ;;  %v14411_v43 = vld [vmem:[%s18228_s1 + $0x11f0] sm:$0xff]  }
 0x203   :  { %v12890_v52 = vpop.f32.mrf.mxu0  ;;  %10100 = vmatmul.mubr.bf16.vlgmr.msra.gmra.mxu0 %v2414_v44  ;;  %13204 = vmatprep.subr.bf16.mxu1 %v14375_v46  ;;  %v14412_v46 = vld [vmem:[%s18228_s1 + $0x1130] sm:$0xff]  }
 0x204   :  { %13183 = vmatpush3.bf16.msra.mxu0 %v14376_v47  ;;  %v14413_v47 = vld [vmem:[%s18228_s1 + $0x11b0] sm:$0xff]  }
 0x205   :  { %v12912_v55 = vpop.f32.mrf.mxu1  ;;  %10140 = vmatmul.mubr.bf16.vlgmr.msra.gmra.mxu1 %v2430_v49  ;;  %v12891_v56 = vpop.f32.mrf.mxu0  ;;  %13184 = vmatprep.subr.bf16.mxu0 %v14378_v50  ;;  %v14414_v50 = vld [vmem:[%s18228_s1 + $0x1168] sm:$0xff]  }
 0x206   :  { %13205 = vmatpush3.bf16.msra.mxu1 %v14377_v48  ;;  %v12892_v58 = vadd.f32 %v12891_v56, %v12890_v52  ;;  %v14415_v52 = vld [vmem:[%s18228_s1 + $0x11e8] sm:$0xff]  }
 0x207   :  { %v12913_v60 = vpop.f32.mrf.mxu1  ;;  %13206 = vmatprep.subr.bf16.mxu1 %v14379_v51  ;;  %v12893_v62 = vpop.f32.mrf.mxu0 }
 0x208   :  { %v9622_v63 = vadd.f32 %v12892_v58, %v16542_v22  ;;  %v12914_v0 = vadd.f32 %v12913_v60, %v12912_v55  ;;  %13185 = vmatpush3.bf16.msra.mxu0 %v14380_v53  ;;  %v30_v22 = vld [vmem:[%s18227_s0 + $0x40] sm:$0xff]  ;;  %v14417_v58 = vld [vmem:[%s18228_s1 + $0x11a8] sm:$0xff]  }
 0x209   :  { %v12915_v2 = vpop.f32.mrf.mxu1  ;;  %13186 = vmatprep.subr.bf16.mxu0 %v14382_v57  ;;  %v12894_v4 = vpop.f32.mrf.mxu0  ;;  %v2440_v24 = vrot.slane %v30_v22, %v15029_v41  ;;  %v2433_v25 = vcombine.high %v30_v22, %v30_v22  ;;  %v14418_v60 = vld [vmem:[%s18228_s1 + $0x1160] sm:$0xff]   ;;  %v14441_v22 = vld [vmem:[%s18228_s1 + $0x1238] sm:$0xff]  }
 0x20a   :  { %v16643_v5 = vadd.f32 %v12914_v0, %v9622_v63  ;;  %13207 = vmatpush3.bf16.msra.mxu1 %v14381_v54  ;;  %v14416_v54 = vld [vmem:[%s18228_s1 + $0x1128] sm:$0xff]   ;;  %v14419_v63 = vld [vmem:[%s18228_s1 + $0x11e0] sm:$0xff]   ;;  %v14423_v4 = vld [vmem:[%s18228_s1 + $0x11d8] sm:$0xff]  }
 0x20b   :  { %v12916_v7 = vpop.f32.mrf.mxu1  ;;  %13208 = vmatprep.subr.bf16.mxu1 %v14383_v59  ;;  %v2448_v28 = vcombine.high %v2440_v24, %v2440_v24  ;;  %v16704_v29 = vrot.slane %v2433_v25, %v15029_v41  ;;  %v2456_v32 = vrot.slane %v2440_v24, %v15029_v41  ;;  %v14421_v2 = vld [vmem:[%s18228_s1 + $0x11a0] sm:$0xff]   ;;  %v14443_v25 = vld [vmem:[%s18228_s1 + $0x1270] sm:$0xff]  }
 0x20c   :  { %13187 = vmatpush3.bf16.msra.mxu0 %v14384_v61  ;;  %v14426_v7 = vld [vmem:[%s18228_s1 + $0x1150] sm:$0xff]  }
 0x20d   :  { %13188 = vmatprep.subr.bf16.mxu0 %v14386_v3  ;;  %v2470_v31 = vrot.slane %v2448_v28, %v15029_v41  ;;  %v2449_v34 = vcombine.high %v16704_v29, %v16704_v29  ;;  %v2478_v40 = vcombine.high %v2456_v32, %v2456_v32  ;;  %v14422_v3 = vld [vmem:[%s18228_s1 + $0x1158] sm:$0xff]   ;;  %v14445_v28 = vld [vmem:[%s18228_s1 + $0x1230] sm:$0xff]  }
 0x20e   :  { %13209 = vmatpush3.bf16.msra.mxu1 %v14385_v1  ;;  %v14420_v1 = vld [vmem:[%s18228_s1 + $0x1120] sm:$0xff]  }
 0x20f   :  { %13210 = vmatprep.subr.bf16.mxu1 %v14387_v6  ;;  %10179 = vmatprep.mubr.bf16.mxu0 %v2470_v31  ;;  %v2480_v36 = vcombine.high %v2470_v31, %v2470_v31  ;;  %v2477_v38 = vrot.slane %v2449_v34, %v15029_v41  ;;  %v14425_v6 = vld [vmem:[%s18228_s1 + $0x1198] sm:$0xff]   ;;  %v14448_v34 = vld [vmem:[%s18228_s1 + $0x12e8] sm:$0xff]  }
 0x210   :  { %13189 = vmatpush3.bf16.msra.mxu0 %v14388_v8  ;;  %v14427_v8 = vld [vmem:[%s18228_s1 + $0x11d0] sm:$0xff]  }
 0x211   :  { %13190 = vmatprep.subr.bf16.mxu0 %v14390_v10  ;;  %10219 = vmatprep.mubr.bf16.mxu1 %v2480_v36  ;;  %v2481_v44 = vcombine.high %v2477_v38, %v2477_v38  ;;  %v14429_v10 = vld [vmem:[%s18228_s1 + $0x1190] sm:$0xff]   ;;  %v14449_v36 = vld [vmem:[%s18228_s1 + $0x1228] sm:$0xff]  }
 0x212   :  { %13211 = vmatpush3.bf16.msra.mxu1 %v14389_v9  ;;  %v14428_v9 = vld [vmem:[%s18228_s1 + $0x1110] sm:$0xff]  }
 0x213   :  { %13212 = vmatprep.subr.bf16.mxu1 %v14391_v11  ;;  %v14430_v11 = vld [vmem:[%s18228_s1 + $0x1148] sm:$0xff]  }
 0x214   :  { %13191 = vmatpush3.bf16.msra.mxu0 %v14392_v12  ;;  %v14431_v12 = vld [vmem:[%s18228_s1 + $0x11c8] sm:$0xff]  }
 0x215   :  { %13192 = vmatprep.subr.bf16.mxu0 %v14394_v14  ;;  %v14433_v14 = vld [vmem:[%s18228_s1 + $0x1188] sm:$0xff]  }
 0x216   :  { %13213 = vmatpush3.bf16.msra.mxu1 %v14393_v13  ;;  %v14432_v13 = vld [vmem:[%s18228_s1 + $0x1108] sm:$0xff]  }
 0x217   :  { %13214 = vmatprep.subr.bf16.mxu1 %v14395_v15  ;;  %v14434_v15 = vld [vmem:[%s18228_s1 + $0x1140] sm:$0xff]  }
 0x218   :  { %13193 = vmatpush3.bf16.msra.mxu0 %v14396_v16  ;;  %v14435_v16 = vld [vmem:[%s18228_s1 + $0x11c0] sm:$0xff]  }
 0x219   :  { %13194 = vmatprep.subr.bf16.mxu0 %v14398_v18  ;;  %v14437_v18 = vld [vmem:[%s18228_s1 + $0x1180] sm:$0xff]  }
 0x21a   :  { %13215 = vmatpush3.bf16.msra.mxu1 %v14397_v17  ;;  %v14436_v17 = vld [vmem:[%s18228_s1 + $0x1100] sm:$0xff]  }
 0x21b   :  { %13216 = vmatprep.subr.bf16.mxu1 %v14399_v19  ;;  %v2463_v19 = vrot.slane %v16704_v29, %v15029_v41  ;;  %v14446_v29 = vld [vmem:[%s18228_s1 + $0x12b0] sm:$0xff]  }
 0x21c   :  { %13195 = vmatpush3.bf16.msra.mxu0 %v14400_v20  ;;  %v14439_v20 = vld [vmem:[%s18228_s1 + $0x1278] sm:$0xff]  }
 0x21d   :  { %13196 = vmatprep.subr.bf16.mxu0 %v14402_v23  ;;  %v14442_v23 = vld [vmem:[%s18228_s1 + $0x12b8] sm:$0xff]   ;;  %v2479_v24 = vcombine.high %v2463_v19, %v2463_v19 }
 0x21e   :  { %13217 = vmatpush3.bf16.msra.mxu1 %v14401_v21  ;;  %v14440_v21 = vld [vmem:[%s18228_s1 + $0x12f8] sm:$0xff]  }
 0x21f   :  { %13218 = vmatprep.subr.bf16.mxu1 %v14403_v26  ;;  %v14444_v26 = vld [vmem:[%s18228_s1 + $0x12f0] sm:$0xff]  }
 0x220   :  { %13197 = vmatpush3.bf16.msra.mxu0 %v14404_v27 }
 0x221   :  { %13226 = vmatprep.subr.bf16.mxu0 %v14406_v33 }
 0x222   :  { %13219 = vmatpush3.bf16.msra.mxu1 %v14405_v30 }
 0x223   :  { %v12934_v45 = vpop.f32.mrf.mxu0  ;;  %10180 = vmatmul.mubr.bf16.vlgmr.msra.gmra.mxu0 %v2456_v32  ;;  %13248 = vmatprep.subr.bf16.mxu1 %v14407_v35  ;;  %v14447_v32 = vld [vmem:[%s18228_s1 + $0x1268] sm:$0xff]  }
 0x224   :  { %13227 = vmatpush3.bf16.msra.mxu0 %v14408_v37  ;;  %10259 = vmatprep.mubr.bf16.mxu0 %v2477_v38 }
 0x225   :  { %v12956_v48 = vpop.f32.mrf.mxu1  ;;  %10220 = vmatmul.mubr.bf16.vlgmr.msra.gmra.mxu1 %v2478_v40  ;;  %v12935_v49 = vpop.f32.mrf.mxu0  ;;  %13228 = vmatprep.subr.bf16.mxu0 %v14410_v42  ;;  %v14450_v40 = vld [vmem:[%s18228_s1 + $0x12a8] sm:$0xff]  }
 0x226   :  { %13249 = vmatpush3.bf16.msra.mxu1 %v14409_v39  ;;  %v12936_v51 = vadd.f32 %v12935_v49, %v12934_v45  ;;  %10299 = vmatprep.mubr.bf16.mxu1 %v2481_v44  ;;  %v14454_v49 = vld [vmem:[%s18228_s1 + $0x12a0] sm:$0xff]  }
 0x227   :  { %v12957_v53 = vpop.f32.mrf.mxu1  ;;  %13250 = vmatprep.subr.bf16.mxu1 %v14411_v43  ;;  %v12937_v55 = vpop.f32.mrf.mxu0  ;;  %v14451_v43 = vld [vmem:[%s18228_s1 + $0x1260] sm:$0xff]  }
 0x228   :  { %v9702_v56 = vadd.f32 %v12936_v51, %v16643_v5  ;;  %v12958_v57 = vadd.f32 %v12957_v53, %v12956_v48  ;;  %13229 = vmatpush3.bf16.msra.mxu0 %v14412_v46  ;;  %v14424_v5 = vld [vmem:[%s18228_s1 + $0x1118] sm:$0xff]   ;;  %v14452_v46 = vld [vmem:[%s18228_s1 + $0x12e0] sm:$0xff]   ;;  %v14460_v55 = vld [vmem:[%s18228_s1 + $0x12d0] sm:$0xff]  }
 0x229   :  { %v12959_v59 = vpop.f32.mrf.mxu1  ;;  %13230 = vmatprep.subr.bf16.mxu0 %v14414_v50  ;;  %v12938_v61 = vpop.f32.mrf.mxu0  ;;  %v14453_v48 = vld [vmem:[%s18228_s1 + $0x1220] sm:$0xff]   ;;  %v14455_v50 = vld [vmem:[%s18228_s1 + $0x1258] sm:$0xff]  }
 0x22a   :  { %v16754_v62 = vadd.f32 %v12958_v57, %v9702_v56  ;;  %13251 = vmatpush3.bf16.msra.mxu1 %v14413_v47  ;;  %v14456_v51 = vld [vmem:[%s18228_s1 + $0x12d8] sm:$0xff]   ;;  %v14461_v56 = vld [vmem:[%s18228_s1 + $0x1210] sm:$0xff]   ;;  %v14464_v59 = vld [vmem:[%s18228_s1 + $0x12c8] sm:$0xff]  }
 0x22b   :  { %v12960_v0 = vpop.f32.mrf.mxu1  ;;  %13252 = vmatprep.subr.bf16.mxu1 %v14415_v52  ;;  %v14457_v52 = vld [vmem:[%s18228_s1 + $0x1218] sm:$0xff]   ;;  %v14462_v57 = vld [vmem:[%s18228_s1 + $0x1290] sm:$0xff]   ;;  %v14466_v61 = vld [vmem:[%s18228_s1 + $0x1288] sm:$0xff]  }
 0x22c   :  { %13231 = vmatpush3.bf16.msra.mxu0 %v14416_v54  ;;  %v14458_v53 = vld [vmem:[%s18228_s1 + $0x1298] sm:$0xff]   ;;  %v14459_v54 = vld [vmem:[%s18228_s1 + $0x1250] sm:$0xff]  }
 0x22d   :  { %13232 = vmatprep.subr.bf16.mxu0 %v14418_v60  ;;  %v14465_v60 = vld [vmem:[%s18228_s1 + $0x1208] sm:$0xff]  }
 0x22e   :  { %13253 = vmatpush3.bf16.msra.mxu1 %v14417_v58  ;;  %v14463_v58 = vld [vmem:[%s18228_s1 + $0x1248] sm:$0xff]  }
 0x22f   :  { %13254 = vmatprep.subr.bf16.mxu1 %v14419_v63  ;;  %v14467_v63 = vld [vmem:[%s18228_s1 + $0x1240] sm:$0xff]  }
 0x230   :  { %13233 = vmatpush3.bf16.msra.mxu0 %v14420_v1 }
 0x231   :  { %13234 = vmatprep.subr.bf16.mxu0 %v14422_v3  ;;  %v14469_v3 = vld [vmem:[%s18228_s1 + $0x1200] sm:$0xff]  }
 0x232   :  { %13255 = vmatpush3.bf16.msra.mxu1 %v14421_v2  ;;  %v14468_v2 = vld [vmem:[%s18228_s1 + $0x12c0] sm:$0xff]  }
 0x233   :  { %13256 = vmatprep.subr.bf16.mxu1 %v14423_v4 }
 0x234   :  { %13235 = vmatpush3.bf16.msra.mxu0 %v14424_v5 }
 0x235   :  { %13236 = vmatprep.subr.bf16.mxu0 %v14426_v7 }
 0x236   :  { %13257 = vmatpush3.bf16.msra.mxu1 %v14425_v6  ;;  %v14470_v6 = vld [vmem:[%s18228_s1 + $0x1280] sm:$0xff]  }
 0x237   :  { %13258 = vmatprep.subr.bf16.mxu1 %v14427_v8 }
 0x238   :  { %13237 = vmatpush3.bf16.msra.mxu0 %v14428_v9  ;;  %v14471_v9 = vld [vmem:[%s18228_s1 + $0x1378] sm:$0xff]  }
 0x239   :  { %13238 = vmatprep.subr.bf16.mxu0 %v14430_v11  ;;  %v14472_v11 = vld [vmem:[%s18228_s1 + $0x13f8] sm:$0xff]  }
 0x23a   :  { %13259 = vmatpush3.bf16.msra.mxu1 %v14429_v10 }
 0x23b   :  { %13260 = vmatprep.subr.bf16.mxu1 %v14431_v12 }
 0x23c   :  { %13239 = vmatpush3.bf16.msra.mxu0 %v14432_v13  ;;  %v14473_v13 = vld [vmem:[%s18228_s1 + $0x1338] sm:$0xff]  }
 0x23d   :  { %13240 = vmatprep.subr.bf16.mxu0 %v14434_v15  ;;  %v14474_v15 = vld [vmem:[%s18228_s1 + $0x13b8] sm:$0xff]  }
 0x23e   :  { %13261 = vmatpush3.bf16.msra.mxu1 %v14433_v14 }
 0x23f   :  { %13262 = vmatprep.subr.bf16.mxu1 %v14435_v16 }
 0x240   :  { %13241 = vmatpush3.bf16.msra.mxu0 %v14436_v17  ;;  %v14475_v17 = vld [vmem:[%s18228_s1 + $0x1370] sm:$0xff]  }
 0x241   :  { %13270 = vmatprep.subr.bf16.mxu0 %v14439_v20 }
 0x242   :  { %13263 = vmatpush3.bf16.msra.mxu1 %v14437_v18  ;;  %v14476_v18 = vld [vmem:[%s18228_s1 + $0x13f0] sm:$0xff]  }
 0x243   :  { %v12978_v27 = vpop.f32.mrf.mxu0  ;;  %10260 = vmatmul.mubr.bf16.vlgmr.msra.gmra.mxu0 %v2463_v19  ;;  %13292 = vmatprep.subr.bf16.mxu1 %v14440_v21  ;;  %v14477_v21 = vld [vmem:[%s18228_s1 + $0x1330] sm:$0xff]  }
 0x244   :  { %13271 = vmatpush3.bf16.msra.mxu0 %v14441_v22  ;;  %v14478_v22 = vld [vmem:[%s18228_s1 + $0x13b0] sm:$0xff]  }
 0x245   :  { %v13000_v30 = vpop.f32.mrf.mxu1  ;;  %10300 = vmatmul.mubr.bf16.vlgmr.msra.gmra.mxu1 %v2479_v24  ;;  %v12979_v31 = vpop.f32.mrf.mxu0  ;;  %13272 = vmatprep.subr.bf16.mxu0 %v14443_v25  ;;  %v14479_v25 = vld [vmem:[%s18228_s1 + $0x1368] sm:$0xff]  }
 0x246   :  { %13293 = vmatpush3.bf16.msra.mxu1 %v14442_v23  ;;  %v12980_v33 = vadd.f32 %v12979_v31, %v12978_v27  ;;  %v14480_v27 = vld [vmem:[%s18228_s1 + $0x13e8] sm:$0xff]  }
 0x247   :  { %v13001_v35 = vpop.f32.mrf.mxu1  ;;  %13294 = vmatprep.subr.bf16.mxu1 %v14444_v26  ;;  %v12981_v37 = vpop.f32.mrf.mxu0 }
 0x248   :  { %v9782_v38 = vadd.f32 %v12980_v33, %v16754_v62  ;;  %v13002_v39 = vadd.f32 %v13001_v35, %v13000_v30  ;;  %13273 = vmatpush3.bf16.msra.mxu0 %v14445_v28  ;;  %v31_v62 = vld [vmem:[%s18227_s0 + $0x48] sm:$0xff]  ;;  %v14483_v35 = vld [vmem:[%s18228_s1 + $0x1360] sm:$0xff]  }
 0x249   :  { %v13003_v42 = vpop.f32.mrf.mxu1  ;;  %13274 = vmatprep.subr.bf16.mxu0 %v14447_v32  ;;  %v12982_v44 = vpop.f32.mrf.mxu0  ;;  %v2489_v0 = vrot.slane %v31_v62, %v15029_v41  ;;  %v2482_v1 = vcombine.high %v31_v62, %v31_v62  ;;  %v14482_v33 = vld [vmem:[%s18228_s1 + $0x13a8] sm:$0xff]   ;;  %v14506_v62 = vld [vmem:[%s18228_s1 + $0x1438] sm:$0xff]  }
 0x24a   :  { %v16855_v45 = vadd.f32 %v13002_v39, %v9782_v38  ;;  %13295 = vmatpush3.bf16.msra.mxu1 %v14446_v29  ;;  %v14481_v29 = vld [vmem:[%s18228_s1 + $0x1328] sm:$0xff]   ;;  %v14484_v38 = vld [vmem:[%s18228_s1 + $0x13e0] sm:$0xff]   ;;  %v14488_v44 = vld [vmem:[%s18228_s1 + $0x13d8] sm:$0xff]  }
 0x24b   :  { %v13004_v47 = vpop.f32.mrf.mxu1  ;;  %13296 = vmatprep.subr.bf16.mxu1 %v14448_v34  ;;  %v2497_v4 = vcombine.high %v2489_v0, %v2489_v0  ;;  %v16916_v5 = vrot.slane %v2482_v1, %v15029_v41  ;;  %v2505_v8 = vrot.slane %v2489_v0, %v15029_v41  ;;  %v14486_v42 = vld [vmem:[%s18228_s1 + $0x13a0] sm:$0xff]   ;;  %v14508_v1 = vld [vmem:[%s18228_s1 + $0x1470] sm:$0xff]  }
 0x24c   :  { %13275 = vmatpush3.bf16.msra.mxu0 %v14449_v36  ;;  %v14491_v47 = vld [vmem:[%s18228_s1 + $0x1350] sm:$0xff]  }
 0x24d   :  { %13276 = vmatprep.subr.bf16.mxu0 %v14451_v43  ;;  %v2519_v7 = vrot.slane %v2497_v4, %v15029_v41  ;;  %v2498_v10 = vcombine.high %v16916_v5, %v16916_v5  ;;  %v2527_v16 = vcombine.high %v2505_v8, %v2505_v8  ;;  %v14487_v43 = vld [vmem:[%s18228_s1 + $0x1358] sm:$0xff]   ;;  %v14510_v4 = vld [vmem:[%s18228_s1 + $0x1430] sm:$0xff]  }
 0x24e   :  { %13297 = vmatpush3.bf16.msra.mxu1 %v14450_v40  ;;  %v14485_v40 = vld [vmem:[%s18228_s1 + $0x1320] sm:$0xff]  }
 0x24f   :  { %13298 = vmatprep.subr.bf16.mxu1 %v14452_v46  ;;  %10339 = vmatprep.mubr.bf16.mxu0 %v2519_v7  ;;  %v2529_v12 = vcombine.high %v2519_v7, %v2519_v7  ;;  %v2526_v14 = vrot.slane %v2498_v10, %v15029_v41  ;;  %v14490_v46 = vld [vmem:[%s18228_s1 + $0x1398] sm:$0xff]   ;;  %v14513_v10 = vld [vmem:[%s18228_s1 + $0x14e8] sm:$0xff]  }
 0x250   :  { %13277 = vmatpush3.bf16.msra.mxu0 %v14453_v48  ;;  %v14492_v48 = vld [vmem:[%s18228_s1 + $0x13d0] sm:$0xff]  }
 0x251   :  { %13278 = vmatprep.subr.bf16.mxu0 %v14455_v50  ;;  %10379 = vmatprep.mubr.bf16.mxu1 %v2529_v12  ;;  %v2530_v19 = vcombine.high %v2526_v14, %v2526_v14  ;;  %v14494_v50 = vld [vmem:[%s18228_s1 + $0x1390] sm:$0xff]   ;;  %v14514_v12 = vld [vmem:[%s18228_s1 + $0x1428] sm:$0xff]  }
 0x252   :  { %13299 = vmatpush3.bf16.msra.mxu1 %v14454_v49  ;;  %v14493_v49 = vld [vmem:[%s18228_s1 + $0x1310] sm:$0xff]  }
 0x253   :  { %13300 = vmatprep.subr.bf16.mxu1 %v14456_v51  ;;  %v14495_v51 = vld [vmem:[%s18228_s1 + $0x1348] sm:$0xff]  }
 0x254   :  { %13279 = vmatpush3.bf16.msra.mxu0 %v14457_v52  ;;  %v14496_v52 = vld [vmem:[%s18228_s1 + $0x13c8] sm:$0xff]  }
 0x255   :  { %13280 = vmatprep.subr.bf16.mxu0 %v14459_v54  ;;  %v14498_v54 = vld [vmem:[%s18228_s1 + $0x1388] sm:$0xff]  }
 0x256   :  { %13301 = vmatpush3.bf16.msra.mxu1 %v14458_v53  ;;  %v14497_v53 = vld [vmem:[%s18228_s1 + $0x1308] sm:$0xff]  }
 0x257   :  { %13302 = vmatprep.subr.bf16.mxu1 %v14460_v55  ;;  %v14499_v55 = vld [vmem:[%s18228_s1 + $0x1340] sm:$0xff]  }
 0x258   :  { %13281 = vmatpush3.bf16.msra.mxu0 %v14461_v56  ;;  %v14500_v56 = vld [vmem:[%s18228_s1 + $0x13c0] sm:$0xff]  }
 0x259   :  { %13282 = vmatprep.subr.bf16.mxu0 %v14463_v58  ;;  %v14502_v58 = vld [vmem:[%s18228_s1 + $0x1380] sm:$0xff]  }
 0x25a   :  { %13303 = vmatpush3.bf16.msra.mxu1 %v14462_v57  ;;  %v14501_v57 = vld [vmem:[%s18228_s1 + $0x1300] sm:$0xff]  }
 0x25b   :  { %13304 = vmatprep.subr.bf16.mxu1 %v14464_v59  ;;  %v2512_v59 = vrot.slane %v16916_v5, %v15029_v41  ;;  %v14511_v5 = vld [vmem:[%s18228_s1 + $0x14b0] sm:$0xff]  }
 0x25c   :  { %13283 = vmatpush3.bf16.msra.mxu0 %v14465_v60  ;;  %v14504_v60 = vld [vmem:[%s18228_s1 + $0x1478] sm:$0xff]  }
 0x25d   :  { %13284 = vmatprep.subr.bf16.mxu0 %v14467_v63  ;;  %v14507_v63 = vld [vmem:[%s18228_s1 + $0x14b8] sm:$0xff]   ;;  %v2528_v0 = vcombine.high %v2512_v59, %v2512_v59 }
 0x25e   :  { %13305 = vmatpush3.bf16.msra.mxu1 %v14466_v61  ;;  %v14505_v61 = vld [vmem:[%s18228_s1 + $0x14f8] sm:$0xff]  }
 0x25f   :  { %13306 = vmatprep.subr.bf16.mxu1 %v14468_v2  ;;  %v14509_v2 = vld [vmem:[%s18228_s1 + $0x14f0] sm:$0xff]  }
 0x260   :  { %13285 = vmatpush3.bf16.msra.mxu0 %v14469_v3 }
 0x261   :  { %13314 = vmatprep.subr.bf16.mxu0 %v14471_v9 }
 0x262   :  { %13307 = vmatpush3.bf16.msra.mxu1 %v14470_v6 }
 0x263   :  { %v13022_v20 = vpop.f32.mrf.mxu0  ;;  %10340 = vmatmul.mubr.bf16.vlgmr.msra.gmra.mxu0 %v2505_v8  ;;  %13336 = vmatprep.subr.bf16.mxu1 %v14472_v11  ;;  %v14512_v8 = vld [vmem:[%s18228_s1 + $0x1468] sm:$0xff]  }
 0x264   :  { %13315 = vmatpush3.bf16.msra.mxu0 %v14473_v13  ;;  %10419 = vmatprep.mubr.bf16.mxu0 %v2526_v14 }
 0x265   :  { %v13044_v23 = vpop.f32.mrf.mxu1  ;;  %10380 = vmatmul.mubr.bf16.vlgmr.msra.gmra.mxu1 %v2527_v16  ;;  %v13023_v24 = vpop.f32.mrf.mxu0  ;;  %13316 = vmatprep.subr.bf16.mxu0 %v14475_v17  ;;  %v14515_v16 = vld [vmem:[%s18228_s1 + $0x14a8] sm:$0xff]  }
 0x266   :  { %13337 = vmatpush3.bf16.msra.mxu1 %v14474_v15  ;;  %v13024_v26 = vadd.f32 %v13023_v24, %v13022_v20  ;;  %10459 = vmatprep.mubr.bf16.mxu1 %v2530_v19  ;;  %v14519_v24 = vld [vmem:[%s18228_s1 + $0x14a0] sm:$0xff]  }
 0x267   :  { %v13045_v28 = vpop.f32.mrf.mxu1  ;;  %13338 = vmatprep.subr.bf16.mxu1 %v14476_v18  ;;  %v13025_v30 = vpop.f32.mrf.mxu0  ;;  %v14516_v18 = vld [vmem:[%s18228_s1 + $0x1460] sm:$0xff]  }
 0x268   :  { %v9862_v31 = vadd.f32 %v13024_v26, %v16855_v45  ;;  %v13046_v32 = vadd.f32 %v13045_v28, %v13044_v23  ;;  %13317 = vmatpush3.bf16.msra.mxu0 %v14477_v21  ;;  %v14489_v45 = vld [vmem:[%s18228_s1 + $0x1318] sm:$0xff]   ;;  %v14517_v21 = vld [vmem:[%s18228_s1 + $0x14e0] sm:$0xff]   ;;  %v14525_v30 = vld [vmem:[%s18228_s1 + $0x14d0] sm:$0xff]  }
 0x269   :  { %v13047_v34 = vpop.f32.mrf.mxu1  ;;  %13318 = vmatprep.subr.bf16.mxu0 %v14479_v25  ;;  %v13026_v36 = vpop.f32.mrf.mxu0  ;;  %v14518_v23 = vld [vmem:[%s18228_s1 + $0x1420] sm:$0xff]   ;;  %v14520_v25 = vld [vmem:[%s18228_s1 + $0x1458] sm:$0xff]  }
 0x26a   :  { %v16966_v37 = vadd.f32 %v13046_v32, %v9862_v31  ;;  %13339 = vmatpush3.bf16.msra.mxu1 %v14478_v22  ;;  %v14521_v26 = vld [vmem:[%s18228_s1 + $0x14d8] sm:$0xff]   ;;  %v14526_v31 = vld [vmem:[%s18228_s1 + $0x1410] sm:$0xff]   ;;  %v14529_v34 = vld [vmem:[%s18228_s1 + $0x14c8] sm:$0xff]  }
 0x26b   :  { %v13048_v39 = vpop.f32.mrf.mxu1  ;;  %13340 = vmatprep.subr.bf16.mxu1 %v14480_v27  ;;  %v14522_v27 = vld [vmem:[%s18228_s1 + $0x1418] sm:$0xff]   ;;  %v14527_v32 = vld [vmem:[%s18228_s1 + $0x1490] sm:$0xff]   ;;  %v14531_v36 = vld [vmem:[%s18228_s1 + $0x1488] sm:$0xff]  }
 0x26c   :  { %13319 = vmatpush3.bf16.msra.mxu0 %v14481_v29  ;;  %v14523_v28 = vld [vmem:[%s18228_s1 + $0x1498] sm:$0xff]   ;;  %v14524_v29 = vld [vmem:[%s18228_s1 + $0x1450] sm:$0xff]  }
 0x26d   :  { %13320 = vmatprep.subr.bf16.mxu0 %v14483_v35  ;;  %v14530_v35 = vld [vmem:[%s18228_s1 + $0x1408] sm:$0xff]  }
 0x26e   :  { %13341 = vmatpush3.bf16.msra.mxu1 %v14482_v33  ;;  %v14528_v33 = vld [vmem:[%s18228_s1 + $0x1448] sm:$0xff]  }
 0x26f   :  { %13342 = vmatprep.subr.bf16.mxu1 %v14484_v38  ;;  %v14532_v38 = vld [vmem:[%s18228_s1 + $0x1440] sm:$0xff]  }
 0x270   :  { %13321 = vmatpush3.bf16.msra.mxu0 %v14485_v40 }
 0x271   :  { %13322 = vmatprep.subr.bf16.mxu0 %v14487_v43  ;;  %v14534_v43 = vld [vmem:[%s18228_s1 + $0x1400] sm:$0xff]  }
 0x272   :  { %13343 = vmatpush3.bf16.msra.mxu1 %v14486_v42  ;;  %v14533_v42 = vld [vmem:[%s18228_s1 + $0x14c0] sm:$0xff]  }
 0x273   :  { %13344 = vmatprep.subr.bf16.mxu1 %v14488_v44 }
 0x274   :  { %13323 = vmatpush3.bf16.msra.mxu0 %v14489_v45 }
 0x275   :  { %13324 = vmatprep.subr.bf16.mxu0 %v14491_v47 }
 0x276   :  { %13345 = vmatpush3.bf16.msra.mxu1 %v14490_v46  ;;  %v14535_v46 = vld [vmem:[%s18228_s1 + $0x1480] sm:$0xff]  }
 0x277   :  { %13346 = vmatprep.subr.bf16.mxu1 %v14492_v48 }
 0x278   :  { %13325 = vmatpush3.bf16.msra.mxu0 %v14493_v49  ;;  %v14536_v49 = vld [vmem:[%s18228_s1 + $0x1578] sm:$0xff]  }
 0x279   :  { %13326 = vmatprep.subr.bf16.mxu0 %v14495_v51  ;;  %v14537_v51 = vld [vmem:[%s18228_s1 + $0x15f8] sm:$0xff]  }
 0x27a   :  { %13347 = vmatpush3.bf16.msra.mxu1 %v14494_v50 }
 0x27b   :  { %13348 = vmatprep.subr.bf16.mxu1 %v14496_v52 }
 0x27c   :  { %13327 = vmatpush3.bf16.msra.mxu0 %v14497_v53  ;;  %v14538_v53 = vld [vmem:[%s18228_s1 + $0x1538] sm:$0xff]  }
 0x27d   :  { %13328 = vmatprep.subr.bf16.mxu0 %v14499_v55  ;;  %v14539_v55 = vld [vmem:[%s18228_s1 + $0x15b8] sm:$0xff]  }
 0x27e   :  { %13349 = vmatpush3.bf16.msra.mxu1 %v14498_v54 }
 0x27f   :  { %13350 = vmatprep.subr.bf16.mxu1 %v14500_v56 }
 0x280   :  { %13329 = vmatpush3.bf16.msra.mxu0 %v14501_v57  ;;  %v14540_v57 = vld [vmem:[%s18228_s1 + $0x1570] sm:$0xff]  }
 0x281   :  { %13358 = vmatprep.subr.bf16.mxu0 %v14504_v60 }
 0x282   :  { %13351 = vmatpush3.bf16.msra.mxu1 %v14502_v58  ;;  %v14541_v58 = vld [vmem:[%s18228_s1 + $0x15f0] sm:$0xff]  }
 0x283   :  { %v13066_v3 = vpop.f32.mrf.mxu0  ;;  %10420 = vmatmul.mubr.bf16.vlgmr.msra.gmra.mxu0 %v2512_v59  ;;  %13380 = vmatprep.subr.bf16.mxu1 %v14505_v61  ;;  %v14542_v61 = vld [vmem:[%s18228_s1 + $0x1530] sm:$0xff]  }
 0x284   :  { %13359 = vmatpush3.bf16.msra.mxu0 %v14506_v62  ;;  %v14543_v62 = vld [vmem:[%s18228_s1 + $0x15b0] sm:$0xff]  }
 0x285   :  { %v13088_v6 = vpop.f32.mrf.mxu1  ;;  %10460 = vmatmul.mubr.bf16.vlgmr.msra.gmra.mxu1 %v2528_v0  ;;  %v13067_v7 = vpop.f32.mrf.mxu0  ;;  %13360 = vmatprep.subr.bf16.mxu0 %v14508_v1  ;;  %v14544_v1 = vld [vmem:[%s18228_s1 + $0x1568] sm:$0xff]  }
 0x286   :  { %13381 = vmatpush3.bf16.msra.mxu1 %v14507_v63  ;;  %v13068_v9 = vadd.f32 %v13067_v7, %v13066_v3  ;;  %v14545_v3 = vld [vmem:[%s18228_s1 + $0x15e8] sm:$0xff]  }
 0x287   :  { %v13089_v11 = vpop.f32.mrf.mxu1  ;;  %13382 = vmatprep.subr.bf16.mxu1 %v14509_v2  ;;  %v13069_v13 = vpop.f32.mrf.mxu0 }
 0x288   :  { %v9942_v14 = vadd.f32 %v13068_v9, %v16966_v37  ;;  %v13090_v15 = vadd.f32 %v13089_v11, %v13088_v6  ;;  %13361 = vmatpush3.bf16.msra.mxu0 %v14510_v4  ;;  %v32_v37 = vld [vmem:[%s18227_s0 + $0x50] sm:$0xff]  ;;  %v14547_v9 = vld [vmem:[%s18228_s1 + $0x15a8] sm:$0xff]   ;;  %v14548_v11 = vld [vmem:[%s18228_s1 + $0x1560] sm:$0xff]  }
 0x289   :  { %v13091_v17 = vpop.f32.mrf.mxu1  ;;  %13362 = vmatprep.subr.bf16.mxu0 %v14512_v8  ;;  %v13070_v19 = vpop.f32.mrf.mxu0  ;;  %v2538_v39 = vrot.slane %v32_v37, %v15029_v41  ;;  %v2531_v40 = vcombine.high %v32_v37, %v32_v37  ;;  %v14571_v37 = vld [vmem:[%s18228_s1 + $0x1638] sm:$0xff]  }
 0x28a   :  { %v17067_v20 = vadd.f32 %v13090_v15, %v9942_v14  ;;  %13383 = vmatpush3.bf16.msra.mxu1 %v14511_v5  ;;  %v14546_v5 = vld [vmem:[%s18228_s1 + $0x1528] sm:$0xff]   ;;  %v14549_v14 = vld [vmem:[%s18228_s1 + $0x15e0] sm:$0xff]   ;;  %v14553_v19 = vld [vmem:[%s18228_s1 + $0x15d8] sm:$0xff]  }
 0x28b   :  { %v13092_v22 = vpop.f32.mrf.mxu1  ;;  %13384 = vmatprep.subr.bf16.mxu1 %v14513_v10  ;;  %v2546_v44 = vcombine.high %v2538_v39, %v2538_v39  ;;  %v17128_v45 = vrot.slane %v2531_v40, %v15029_v41  ;;  %v2554_v48 = vrot.slane %v2538_v39, %v15029_v41  ;;  %v14551_v17 = vld [vmem:[%s18228_s1 + $0x15a0] sm:$0xff]   ;;  %v14573_v40 = vld [vmem:[%s18228_s1 + $0x1670] sm:$0xff]  }
 0x28c   :  { %13363 = vmatpush3.bf16.msra.mxu0 %v14514_v12  ;;  %v14556_v22 = vld [vmem:[%s18228_s1 + $0x1550] sm:$0xff]  }
 0x28d   :  { %13364 = vmatprep.subr.bf16.mxu0 %v14516_v18  ;;  %v2568_v47 = vrot.slane %v2546_v44, %v15029_v41  ;;  %v2547_v50 = vcombine.high %v17128_v45, %v17128_v45  ;;  %v2576_v56 = vcombine.high %v2554_v48, %v2554_v48  ;;  %v14552_v18 = vld [vmem:[%s18228_s1 + $0x1558] sm:$0xff]   ;;  %v14575_v44 = vld [vmem:[%s18228_s1 + $0x1630] sm:$0xff]  }
 0x28e   :  { %13385 = vmatpush3.bf16.msra.mxu1 %v14515_v16  ;;  %v14550_v16 = vld [vmem:[%s18228_s1 + $0x1520] sm:$0xff]  }
 0x28f   :  { %13386 = vmatprep.subr.bf16.mxu1 %v14517_v21  ;;  %10499 = vmatprep.mubr.bf16.mxu0 %v2568_v47  ;;  %v2578_v52 = vcombine.high %v2568_v47, %v2568_v47  ;;  %v2575_v54 = vrot.slane %v2547_v50, %v15029_v41  ;;  %v14555_v21 = vld [vmem:[%s18228_s1 + $0x1598] sm:$0xff]   ;;  %v14578_v50 = vld [vmem:[%s18228_s1 + $0x16e8] sm:$0xff]  }
 0x290   :  { %13365 = vmatpush3.bf16.msra.mxu0 %v14518_v23  ;;  %v14557_v23 = vld [vmem:[%s18228_s1 + $0x15d0] sm:$0xff]  }
 0x291   :  { %13366 = vmatprep.subr.bf16.mxu0 %v14520_v25  ;;  %10539 = vmatprep.mubr.bf16.mxu1 %v2578_v52  ;;  %v2579_v59 = vcombine.high %v2575_v54, %v2575_v54  ;;  %v14559_v25 = vld [vmem:[%s18228_s1 + $0x1590] sm:$0xff]   ;;  %v14579_v52 = vld [vmem:[%s18228_s1 + $0x1628] sm:$0xff]  }
 0x292   :  { %13387 = vmatpush3.bf16.msra.mxu1 %v14519_v24  ;;  %v14558_v24 = vld [vmem:[%s18228_s1 + $0x1510] sm:$0xff]  }
 0x293   :  { %13388 = vmatprep.subr.bf16.mxu1 %v14521_v26  ;;  %v14560_v26 = vld [vmem:[%s18228_s1 + $0x1548] sm:$0xff]  }
 0x294   :  { %13367 = vmatpush3.bf16.msra.mxu0 %v14522_v27  ;;  %v14561_v27 = vld [vmem:[%s18228_s1 + $0x15c8] sm:$0xff]  }
 0x295   :  { %13368 = vmatprep.subr.bf16.mxu0 %v14524_v29  ;;  %v14563_v29 = vld [vmem:[%s18228_s1 + $0x1588] sm:$0xff]  }
 0x296   :  { %13389 = vmatpush3.bf16.msra.mxu1 %v14523_v28  ;;  %v14562_v28 = vld [vmem:[%s18228_s1 + $0x1508] sm:$0xff]  }
 0x297   :  { %13390 = vmatprep.subr.bf16.mxu1 %v14525_v30  ;;  %v14564_v30 = vld [vmem:[%s18228_s1 + $0x1540] sm:$0xff]  }
 0x298   :  { %13369 = vmatpush3.bf16.msra.mxu0 %v14526_v31  ;;  %v14565_v31 = vld [vmem:[%s18228_s1 + $0x15c0] sm:$0xff]  }
 0x299   :  { %13370 = vmatprep.subr.bf16.mxu0 %v14528_v33  ;;  %v14567_v33 = vld [vmem:[%s18228_s1 + $0x1580] sm:$0xff]  }
 0x29a   :  { %13391 = vmatpush3.bf16.msra.mxu1 %v14527_v32  ;;  %v14566_v32 = vld [vmem:[%s18228_s1 + $0x1500] sm:$0xff]  }
 0x29b   :  { %13392 = vmatprep.subr.bf16.mxu1 %v14529_v34  ;;  %v2561_v34 = vrot.slane %v17128_v45, %v15029_v41  ;;  %v14576_v45 = vld [vmem:[%s18228_s1 + $0x16b0] sm:$0xff]  }
 0x29c   :  { %13371 = vmatpush3.bf16.msra.mxu0 %v14530_v35  ;;  %v14569_v35 = vld [vmem:[%s18228_s1 + $0x1678] sm:$0xff]  }
 0x29d   :  { %13372 = vmatprep.subr.bf16.mxu0 %v14532_v38  ;;  %v14572_v38 = vld [vmem:[%s18228_s1 + $0x16b8] sm:$0xff]   ;;  %v2577_v39 = vcombine.high %v2561_v34, %v2561_v34 }
 0x29e   :  { %13393 = vmatpush3.bf16.msra.mxu1 %v14531_v36  ;;  %v14570_v36 = vld [vmem:[%s18228_s1 + $0x16f8] sm:$0xff]  }
 0x29f   :  { %13394 = vmatprep.subr.bf16.mxu1 %v14533_v42  ;;  %v14574_v42 = vld [vmem:[%s18228_s1 + $0x16f0] sm:$0xff]  }
 0x2a0   :  { %13373 = vmatpush3.bf16.msra.mxu0 %v14534_v43 }
 0x2a1   :  { %13402 = vmatprep.subr.bf16.mxu0 %v14536_v49 }
 0x2a2   :  { %13395 = vmatpush3.bf16.msra.mxu1 %v14535_v46 }
 0x2a3   :  { %v13110_v60 = vpop.f32.mrf.mxu0  ;;  %10500 = vmatmul.mubr.bf16.vlgmr.msra.gmra.mxu0 %v2554_v48  ;;  %13424 = vmatprep.subr.bf16.mxu1 %v14537_v51  ;;  %v14577_v48 = vld [vmem:[%s18228_s1 + $0x1668] sm:$0xff]  }
 0x2a4   :  { %13403 = vmatpush3.bf16.msra.mxu0 %v14538_v53  ;;  %10579 = vmatprep.mubr.bf16.mxu0 %v2575_v54 }
 0x2a5   :  { %v13132_v63 = vpop.f32.mrf.mxu1  ;;  %10540 = vmatmul.mubr.bf16.vlgmr.msra.gmra.mxu1 %v2576_v56  ;;  %v13111_v0 = vpop.f32.mrf.mxu0  ;;  %13404 = vmatprep.subr.bf16.mxu0 %v14540_v57  ;;  %v14580_v56 = vld [vmem:[%s18228_s1 + $0x16a8] sm:$0xff]  }
 0x2a6   :  { %13425 = vmatpush3.bf16.msra.mxu1 %v14539_v55  ;;  %v13112_v2 = vadd.f32 %v13111_v0, %v13110_v60  ;;  %10619 = vmatprep.mubr.bf16.mxu1 %v2579_v59  ;;  %v14584_v0 = vld [vmem:[%s18228_s1 + $0x16a0] sm:$0xff]  }
 0x2a7   :  { %v13133_v4 = vpop.f32.mrf.mxu1  ;;  %13426 = vmatprep.subr.bf16.mxu1 %v14541_v58  ;;  %v13113_v6 = vpop.f32.mrf.mxu0  ;;  %v14581_v58 = vld [vmem:[%s18228_s1 + $0x1660] sm:$0xff]  }
 0x2a8   :  { %v10022_v7 = vadd.f32 %v13112_v2, %v17067_v20  ;;  %v13134_v8 = vadd.f32 %v13133_v4, %v13132_v63  ;;  %13405 = vmatpush3.bf16.msra.mxu0 %v14542_v61  ;;  %v14554_v20 = vld [vmem:[%s18228_s1 + $0x1518] sm:$0xff]   ;;  %v14582_v61 = vld [vmem:[%s18228_s1 + $0x16e0] sm:$0xff]   ;;  %v14590_v6 = vld [vmem:[%s18228_s1 + $0x16d0] sm:$0xff]  }
 0x2a9   :  { %v13135_v10 = vpop.f32.mrf.mxu1  ;;  %13406 = vmatprep.subr.bf16.mxu0 %v14544_v1  ;;  %v13114_v12 = vpop.f32.mrf.mxu0  ;;  %v14583_v63 = vld [vmem:[%s18228_s1 + $0x1620] sm:$0xff]   ;;  %v14585_v1 = vld [vmem:[%s18228_s1 + $0x1658] sm:$0xff]  }
 0x2aa   :  { %v17178_v13 = vadd.f32 %v13134_v8, %v10022_v7  ;;  %13427 = vmatpush3.bf16.msra.mxu1 %v14543_v62  ;;  %v14586_v2 = vld [vmem:[%s18228_s1 + $0x16d8] sm:$0xff]   ;;  %v14591_v7 = vld [vmem:[%s18228_s1 + $0x1610] sm:$0xff]   ;;  %v14594_v10 = vld [vmem:[%s18228_s1 + $0x16c8] sm:$0xff]  }
 0x2ab   :  { %v13136_v15 = vpop.f32.mrf.mxu1  ;;  %13428 = vmatprep.subr.bf16.mxu1 %v14545_v3  ;;  %v14587_v3 = vld [vmem:[%s18228_s1 + $0x1618] sm:$0xff]   ;;  %v14592_v8 = vld [vmem:[%s18228_s1 + $0x1690] sm:$0xff]   ;;  %v14596_v12 = vld [vmem:[%s18228_s1 + $0x1688] sm:$0xff]  }
 0x2ac   :  { %13407 = vmatpush3.bf16.msra.mxu0 %v14546_v5  ;;  %v14588_v4 = vld [vmem:[%s18228_s1 + $0x1698] sm:$0xff]   ;;  %v14589_v5 = vld [vmem:[%s18228_s1 + $0x1650] sm:$0xff]   ;;  %v14598_v15 = vld [vmem:[%s18228_s1 + $0x16c0] sm:$0xff]  }
 0x2ad   :  { %13408 = vmatprep.subr.bf16.mxu0 %v14548_v11  ;;  %v14595_v11 = vld [vmem:[%s18228_s1 + $0x1608] sm:$0xff]  }
 0x2ae   :  { %13429 = vmatpush3.bf16.msra.mxu1 %v14547_v9  ;;  %v14593_v9 = vld [vmem:[%s18228_s1 + $0x1648] sm:$0xff]  }
 0x2af   :  { %13430 = vmatprep.subr.bf16.mxu1 %v14549_v14  ;;  %v33_v14 = vld [vmem:[%s18227_s0 + $0x58] sm:$0xff] }
 0x2b0   :  { %13409 = vmatpush3.bf16.msra.mxu0 %v14550_v16  ;;  %v2587_v16 = vrot.slane %v33_v14, %v15029_v41 }
 0x2b1   :  { %13410 = vmatprep.subr.bf16.mxu0 %v14552_v18  ;;  %v14599_v18 = vld [vmem:[%s18228_s1 + $0x1600] sm:$0xff]  }
 0x2b2   :  { %13431 = vmatpush3.bf16.msra.mxu1 %v14551_v17  ;;  %v2580_v17 = vcombine.high %v33_v14, %v33_v14  ;;  %v14637_v14 = vld [vmem:[%s18228_s1 + $0x18b8] sm:$0xff]  }
 0x2b3   :  { %13432 = vmatprep.subr.bf16.mxu1 %v14553_v19  ;;  %v14600_v19 = vld [vmem:[%s18228_s1 + $0x1680] sm:$0xff]  }
 0x2b4   :  { %13411 = vmatpush3.bf16.msra.mxu0 %v14554_v20  ;;  %v2595_v20 = vcombine.high %v2587_v16, %v2587_v16 }
 0x2b5   :  { %13412 = vmatprep.subr.bf16.mxu0 %v14556_v22  ;;  %v2603_v22 = vrot.slane %v2587_v16, %v15029_v41  ;;  %v14638_v16 = vld [vmem:[%s18228_s1 + $0x1870] sm:$0xff]  }
 0x2b6   :  { %13433 = vmatpush3.bf16.msra.mxu1 %v14555_v21  ;;  %v17343_v21 = vrot.slane %v2580_v17, %v15029_v41  ;;  %v14639_v17 = vld [vmem:[%s18228_s1 + $0x18f0] sm:$0xff]  }
 0x2b7   :  { %13434 = vmatprep.subr.bf16.mxu1 %v14557_v23  ;;  %v14601_v23 = vld [vmem:[%s18228_s1 + $0x1778] sm:$0xff]  }
 0x2b8   :  { %13413 = vmatpush3.bf16.msra.mxu0 %v14558_v24  ;;  %v2617_v24 = vrot.slane %v2595_v20, %v15029_v41  ;;  %v14641_v20 = vld [vmem:[%s18228_s1 + $0x18b0] sm:$0xff]  }
 0x2b9   :  { %13414 = vmatprep.subr.bf16.mxu0 %v14560_v26  ;;  %v2596_v26 = vcombine.high %v17343_v21, %v17343_v21 }
 0x2ba   :  { %13435 = vmatpush3.bf16.msra.mxu1 %v14559_v25  ;;  %v14602_v25 = vld [vmem:[%s18228_s1 + $0x17f8] sm:$0xff]  }
 0x2bb   :  { %13436 = vmatprep.subr.bf16.mxu1 %v14561_v27  ;;  %v14603_v27 = vld [vmem:[%s18228_s1 + $0x1738] sm:$0xff]  }
 0x2bc   :  { %13415 = vmatpush3.bf16.msra.mxu0 %v14562_v28  ;;  %v2627_v28 = vcombine.high %v2617_v24, %v2617_v24 }
 0x2bd   :  { %13416 = vmatprep.subr.bf16.mxu0 %v14564_v30  ;;  %v2624_v30 = vrot.slane %v2596_v26, %v15029_v41 }
 0x2be   :  { %13437 = vmatpush3.bf16.msra.mxu1 %v14563_v29  ;;  %v14604_v29 = vld [vmem:[%s18228_s1 + $0x17b8] sm:$0xff]  }
 0x2bf   :  { %13438 = vmatprep.subr.bf16.mxu1 %v14565_v31  ;;  %v2625_v31 = vcombine.high %v2603_v22, %v2603_v22 }
 0x2c0   :  { %13417 = vmatpush3.bf16.msra.mxu0 %v14566_v32  ;;  %v14605_v32 = vld [vmem:[%s18228_s1 + $0x1770] sm:$0xff]  }
 0x2c1   :  { %13446 = vmatprep.subr.bf16.mxu0 %v14569_v35 }
 0x2c2   :  { %13439 = vmatpush3.bf16.msra.mxu1 %v14567_v33  ;;  %v14606_v33 = vld [vmem:[%s18228_s1 + $0x17f0] sm:$0xff]  }
 0x2c3   :  { %v13154_v43 = vpop.f32.mrf.mxu0  ;;  %10580 = vmatmul.mubr.bf16.vlgmr.msra.gmra.mxu0 %v2561_v34  ;;  %13468 = vmatprep.subr.bf16.mxu1 %v14570_v36  ;;  %v2628_v34 = vcombine.high %v2624_v30, %v2624_v30  ;;  %v14607_v36 = vld [vmem:[%s18228_s1 + $0x1730] sm:$0xff]  }
 0x2c4   :  { %13447 = vmatpush3.bf16.msra.mxu0 %v14571_v37  ;;  %10659 = vmatprep.mubr.bf16.mxu0 %v2617_v24  ;;  %v14608_v37 = vld [vmem:[%s18228_s1 + $0x17b0] sm:$0xff]  }
 0x2c5   :  { %v13176_v46 = vpop.f32.mrf.mxu1  ;;  %10620 = vmatmul.mubr.bf16.vlgmr.msra.gmra.mxu1 %v2577_v39  ;;  %v13155_v47 = vpop.f32.mrf.mxu0  ;;  %13448 = vmatprep.subr.bf16.mxu0 %v14573_v40  ;;  %v14609_v40 = vld [vmem:[%s18228_s1 + $0x1768] sm:$0xff]  }
 0x2c6   :  { %13469 = vmatpush3.bf16.msra.mxu1 %v14572_v38  ;;  %v13156_v49 = vadd.f32 %v13155_v47, %v13154_v43  ;;  %10699 = vmatprep.mubr.bf16.mxu1 %v2627_v28  ;;  %v14610_v43 = vld [vmem:[%s18228_s1 + $0x17e8] sm:$0xff]  }
 0x2c7   :  { %v13177_v51 = vpop.f32.mrf.mxu1  ;;  %13470 = vmatprep.subr.bf16.mxu1 %v14574_v42  ;;  %v13157_v53 = vpop.f32.mrf.mxu0 }
 0x2c8   :  { %v10102_v54 = vadd.f32 %v13156_v49, %v17178_v13  ;;  %v13178_v55 = vadd.f32 %v13177_v51, %v13176_v46  ;;  %13449 = vmatpush3.bf16.msra.mxu0 %v14575_v44  ;;  %v14597_v13 = vld [vmem:[%s18228_s1 + $0x1640] sm:$0xff]   ;;  %v14612_v49 = vld [vmem:[%s18228_s1 + $0x17a8] sm:$0xff]  }
 0x2c9   :  { %v13179_v57 = vpop.f32.mrf.mxu1  ;;  %13450 = vmatprep.subr.bf16.mxu0 %v14577_v48  ;;  %v13158_v59 = vpop.f32.mrf.mxu0  ;;  %v14613_v51 = vld [vmem:[%s18228_s1 + $0x1760] sm:$0xff]  }
 0x2ca   :  { %v17279_v60 = vadd.f32 %v13178_v55, %v10102_v54  ;;  %13471 = vmatpush3.bf16.msra.mxu1 %v14576_v45  ;;  %v14611_v45 = vld [vmem:[%s18228_s1 + $0x1728] sm:$0xff]   ;;  %v14614_v54 = vld [vmem:[%s18228_s1 + $0x17e0] sm:$0xff]   ;;  %v14618_v59 = vld [vmem:[%s18228_s1 + $0x17d8] sm:$0xff]  }
 0x2cb   :  { %v13180_v62 = vpop.f32.mrf.mxu1  ;;  %13472 = vmatprep.subr.bf16.mxu1 %v14578_v50  ;;  %v14616_v57 = vld [vmem:[%s18228_s1 + $0x17a0] sm:$0xff]  }
 0x2cc   :  { %13451 = vmatpush3.bf16.msra.mxu0 %v14579_v52  ;;  %v14621_v62 = vld [vmem:[%s18228_s1 + $0x1750] sm:$0xff]  }
 0x2cd   :  { %13452 = vmatprep.subr.bf16.mxu0 %v14581_v58  ;;  %v14617_v58 = vld [vmem:[%s18228_s1 + $0x1758] sm:$0xff]  }
 0x2ce   :  { %13473 = vmatpush3.bf16.msra.mxu1 %v14580_v56  ;;  %v14615_v56 = vld [vmem:[%s18228_s1 + $0x1720] sm:$0xff]  }
 0x2cf   :  { %13474 = vmatprep.subr.bf16.mxu1 %v14582_v61  ;;  %v14620_v61 = vld [vmem:[%s18228_s1 + $0x1798] sm:$0xff]  }
 0x2d0   :  { %13453 = vmatpush3.bf16.msra.mxu0 %v14583_v63  ;;  %v14622_v63 = vld [vmem:[%s18228_s1 + $0x17d0] sm:$0xff]  }
 0x2d1   :  { %13454 = vmatprep.subr.bf16.mxu0 %v14585_v1  ;;  %v14624_v1 = vld [vmem:[%s18228_s1 + $0x1790] sm:$0xff]  }
 0x2d2   :  { %13475 = vmatpush3.bf16.msra.mxu1 %v14584_v0  ;;  %v14623_v0 = vld [vmem:[%s18228_s1 + $0x1710] sm:$0xff]  }
 0x2d3   :  { %13476 = vmatprep.subr.bf16.mxu1 %v14586_v2  ;;  %v14625_v2 = vld [vmem:[%s18228_s1 + $0x1748] sm:$0xff]  }
 0x2d4   :  { %13455 = vmatpush3.bf16.msra.mxu0 %v14587_v3  ;;  %v14626_v3 = vld [vmem:[%s18228_s1 + $0x17c8] sm:$0xff]  }
 0x2d5   :  { %13456 = vmatprep.subr.bf16.mxu0 %v14589_v5  ;;  %v14628_v5 = vld [vmem:[%s18228_s1 + $0x1788] sm:$0xff]  }
 0x2d6   :  { %13477 = vmatpush3.bf16.msra.mxu1 %v14588_v4  ;;  %v14627_v4 = vld [vmem:[%s18228_s1 + $0x1708] sm:$0xff]  }
 0x2d7   :  { %13478 = vmatprep.subr.bf16.mxu1 %v14590_v6  ;;  %v14629_v6 = vld [vmem:[%s18228_s1 + $0x1740] sm:$0xff]  }
 0x2d8   :  { %13457 = vmatpush3.bf16.msra.mxu0 %v14591_v7  ;;  %v14630_v7 = vld [vmem:[%s18228_s1 + $0x17c0] sm:$0xff]  }
 0x2d9   :  { %13458 = vmatprep.subr.bf16.mxu0 %v14593_v9  ;;  %v14632_v9 = vld [vmem:[%s18228_s1 + $0x1780] sm:$0xff]  }
 0x2da   :  { %13479 = vmatpush3.bf16.msra.mxu1 %v14592_v8  ;;  %v14631_v8 = vld [vmem:[%s18228_s1 + $0x1700] sm:$0xff]  }
 0x2db   :  { %13480 = vmatprep.subr.bf16.mxu1 %v14594_v10  ;;  %v2610_v10 = vrot.slane %v17343_v21, %v15029_v41 }
 0x2dc   :  { %13459 = vmatpush3.bf16.msra.mxu0 %v14595_v11  ;;  %v14634_v11 = vld [vmem:[%s18228_s1 + $0x1878] sm:$0xff]  }
 0x2dd   :  { %13460 = vmatprep.subr.bf16.mxu0 %v14597_v13  ;;  %v14636_v13 = vld [vmem:[%s18228_s1 + $0x1838] sm:$0xff]  }
 0x2de   :  { %13481 = vmatpush3.bf16.msra.mxu1 %v14596_v12  ;;  %v14635_v12 = vld [vmem:[%s18228_s1 + $0x18f8] sm:$0xff]  }
 0x2df   :  { %13482 = vmatprep.subr.bf16.mxu1 %v14598_v15  ;;  %v2626_v15 = vcombine.high %v2610_v10, %v2610_v10 }
 0x2e0   :  { %13461 = vmatpush3.bf16.msra.mxu0 %v14599_v18 }
 0x2e1   :  { %13490 = vmatprep.subr.bf16.mxu0 %v14601_v23  ;;  %v14642_v23 = vld [vmem:[%s18228_s1 + $0x1868] sm:$0xff]  }
 0x2e2   :  { %13483 = vmatpush3.bf16.msra.mxu1 %v14600_v19  ;;  %v14640_v19 = vld [vmem:[%s18228_s1 + $0x1830] sm:$0xff]  }
 0x2e3   :  { %v13198_v35 = vpop.f32.mrf.mxu0  ;;  %10660 = vmatmul.mubr.bf16.vlgmr.msra.gmra.mxu0 %v2603_v22  ;;  %13512 = vmatprep.subr.bf16.mxu1 %v14602_v25  ;;  %v14643_v25 = vld [vmem:[%s18228_s1 + $0x18e8] sm:$0xff]  }
 0x2e4   :  { %13491 = vmatpush3.bf16.msra.mxu0 %v14603_v27  ;;  %10739 = vmatprep.mubr.bf16.mxu0 %v2624_v30  ;;  %v14644_v27 = vld [vmem:[%s18228_s1 + $0x1828] sm:$0xff]  }
 0x2e5   :  { %v13220_v38 = vpop.f32.mrf.mxu1  ;;  %10700 = vmatmul.mubr.bf16.vlgmr.msra.gmra.mxu1 %v2625_v31  ;;  %v13199_v39 = vpop.f32.mrf.mxu0  ;;  %13492 = vmatprep.subr.bf16.mxu0 %v14605_v32  ;;  %v14645_v31 = vld [vmem:[%s18228_s1 + $0x18a8] sm:$0xff]  }
 0x2e6   :  { %13513 = vmatpush3.bf16.msra.mxu1 %v14604_v29  ;;  %v13200_v42 = vadd.f32 %v13199_v39, %v13198_v35  ;;  %10779 = vmatprep.mubr.bf16.mxu1 %v2628_v34  ;;  %v14649_v39 = vld [vmem:[%s18228_s1 + $0x18a0] sm:$0xff]  }
 0x2e7   :  { %v13221_v44 = vpop.f32.mrf.mxu1  ;;  %13514 = vmatprep.subr.bf16.mxu1 %v14606_v33  ;;  %v13201_v46 = vpop.f32.mrf.mxu0  ;;  %v14646_v33 = vld [vmem:[%s18228_s1 + $0x1860] sm:$0xff]  }
 0x2e8   :  { %v10182_v47 = vadd.f32 %v13200_v42, %v17279_v60  ;;  %v13222_v48 = vadd.f32 %v13221_v44, %v13220_v38  ;;  %13493 = vmatpush3.bf16.msra.mxu0 %v14607_v36  ;;  %v14619_v60 = vld [vmem:[%s18228_s1 + $0x1718] sm:$0xff]   ;;  %v14647_v36 = vld [vmem:[%s18228_s1 + $0x18e0] sm:$0xff]   ;;  %v14655_v46 = vld [vmem:[%s18228_s1 + $0x18d0] sm:$0xff]  }
 0x2e9   :  { %v13223_v50 = vpop.f32.mrf.mxu1  ;;  %13494 = vmatprep.subr.bf16.mxu0 %v14609_v40  ;;  %v13202_v52 = vpop.f32.mrf.mxu0  ;;  %v14648_v38 = vld [vmem:[%s18228_s1 + $0x1820] sm:$0xff]   ;;  %v14650_v40 = vld [vmem:[%s18228_s1 + $0x1858] sm:$0xff]  }
 0x2ea   :  { %v17390_v53 = vadd.f32 %v13222_v48, %v10182_v47  ;;  %13515 = vmatpush3.bf16.msra.mxu1 %v14608_v37  ;;  %v14651_v42 = vld [vmem:[%s18228_s1 + $0x18d8] sm:$0xff]   ;;  %v14656_v47 = vld [vmem:[%s18228_s1 + $0x1810] sm:$0xff]   ;;  %v14659_v50 = vld [vmem:[%s18228_s1 + $0x18c8] sm:$0xff]  }
 0x2eb   :  { %v13224_v55 = vpop.f32.mrf.mxu1  ;;  %13516 = vmatprep.subr.bf16.mxu1 %v14610_v43  ;;  %v14652_v43 = vld [vmem:[%s18228_s1 + $0x1818] sm:$0xff]   ;;  %v14657_v48 = vld [vmem:[%s18228_s1 + $0x1890] sm:$0xff]   ;;  %v14661_v52 = vld [vmem:[%s18228_s1 + $0x1888] sm:$0xff]  }
 0x2ec   :  { %13495 = vmatpush3.bf16.msra.mxu0 %v14611_v45  ;;  %v14653_v44 = vld [vmem:[%s18228_s1 + $0x1898] sm:$0xff]   ;;  %v14654_v45 = vld [vmem:[%s18228_s1 + $0x1850] sm:$0xff]   ;;  %v14663_v55 = vld [vmem:[%s18228_s1 + $0x18c0] sm:$0xff]  }
 0x2ed   :  { %13496 = vmatprep.subr.bf16.mxu0 %v14613_v51  ;;  %v14660_v51 = vld [vmem:[%s18228_s1 + $0x1808] sm:$0xff]  }
 0x2ee   :  { %13517 = vmatpush3.bf16.msra.mxu1 %v14612_v49  ;;  %v14658_v49 = vld [vmem:[%s18228_s1 + $0x1848] sm:$0xff]  }
 0x2ef   :  { %13518 = vmatprep.subr.bf16.mxu1 %v14614_v54  ;;  %v34_v54 = vld [vmem:[%s18227_s0 + $0x60] sm:$0xff] }
 0x2f0   :  { %13497 = vmatpush3.bf16.msra.mxu0 %v14615_v56  ;;  %v2636_v56 = vrot.slane %v34_v54, %v15029_v41 }
 0x2f1   :  { %13498 = vmatprep.subr.bf16.mxu0 %v14617_v58  ;;  %v14664_v58 = vld [vmem:[%s18228_s1 + $0x1800] sm:$0xff]  }
 0x2f2   :  { %13519 = vmatpush3.bf16.msra.mxu1 %v14616_v57  ;;  %v2629_v57 = vcombine.high %v34_v54, %v34_v54  ;;  %v14702_v54 = vld [vmem:[%s18228_s1 + $0x1ab8] sm:$0xff]  }
 0x2f3   :  { %13520 = vmatprep.subr.bf16.mxu1 %v14618_v59  ;;  %v14665_v59 = vld [vmem:[%s18228_s1 + $0x1880] sm:$0xff]  }
 0x2f4   :  { %13499 = vmatpush3.bf16.msra.mxu0 %v14619_v60  ;;  %v2644_v60 = vcombine.high %v2636_v56, %v2636_v56 }
 0x2f5   :  { %13500 = vmatprep.subr.bf16.mxu0 %v14621_v62  ;;  %v2652_v62 = vrot.slane %v2636_v56, %v15029_v41  ;;  %v14703_v56 = vld [vmem:[%s18228_s1 + $0x1a70] sm:$0xff]  }
 0x2f6   :  { %13521 = vmatpush3.bf16.msra.mxu1 %v14620_v61  ;;  %v17555_v61 = vrot.slane %v2629_v57, %v15029_v41  ;;  %v14704_v57 = vld [vmem:[%s18228_s1 + $0x1af0] sm:$0xff]  }
 0x2f7   :  { %13522 = vmatprep.subr.bf16.mxu1 %v14622_v63  ;;  %v14666_v63 = vld [vmem:[%s18228_s1 + $0x1978] sm:$0xff]  }
 0x2f8   :  { %13501 = vmatpush3.bf16.msra.mxu0 %v14623_v0  ;;  %v2666_v0 = vrot.slane %v2644_v60, %v15029_v41  ;;  %v14706_v60 = vld [vmem:[%s18228_s1 + $0x1ab0] sm:$0xff]  }
 0x2f9   :  { %13502 = vmatprep.subr.bf16.mxu0 %v14625_v2  ;;  %v2645_v2 = vcombine.high %v17555_v61, %v17555_v61 }
 0x2fa   :  { %13523 = vmatpush3.bf16.msra.mxu1 %v14624_v1  ;;  %v14667_v1 = vld [vmem:[%s18228_s1 + $0x19f8] sm:$0xff]  }
 0x2fb   :  { %13524 = vmatprep.subr.bf16.mxu1 %v14626_v3  ;;  %v14668_v3 = vld [vmem:[%s18228_s1 + $0x1938] sm:$0xff]  }
 0x2fc   :  { %13503 = vmatpush3.bf16.msra.mxu0 %v14627_v4  ;;  %v2676_v4 = vcombine.high %v2666_v0, %v2666_v0 }
 0x2fd   :  { %13504 = vmatprep.subr.bf16.mxu0 %v14629_v6  ;;  %v2673_v6 = vrot.slane %v2645_v2, %v15029_v41 }
 0x2fe   :  { %13525 = vmatpush3.bf16.msra.mxu1 %v14628_v5  ;;  %v14669_v5 = vld [vmem:[%s18228_s1 + $0x19b8] sm:$0xff]  }
 0x2ff   :  { %13526 = vmatprep.subr.bf16.mxu1 %v14630_v7  ;;  %v2674_v7 = vcombine.high %v2652_v62, %v2652_v62 }
 0x300   :  { %13505 = vmatpush3.bf16.msra.mxu0 %v14631_v8  ;;  %v14670_v8 = vld [vmem:[%s18228_s1 + $0x1970] sm:$0xff]  }
 0x301   :  { %13534 = vmatprep.subr.bf16.mxu0 %v14634_v11 }
 0x302   :  { %13527 = vmatpush3.bf16.msra.mxu1 %v14632_v9  ;;  %v14671_v9 = vld [vmem:[%s18228_s1 + $0x19f0] sm:$0xff]  }
 0x303   :  { %v13242_v18 = vpop.f32.mrf.mxu0  ;;  %10740 = vmatmul.mubr.bf16.vlgmr.msra.gmra.mxu0 %v2610_v10  ;;  %13556 = vmatprep.subr.bf16.mxu1 %v14635_v12  ;;  %v2677_v10 = vcombine.high %v2673_v6, %v2673_v6  ;;  %v14672_v12 = vld [vmem:[%s18228_s1 + $0x1930] sm:$0xff]  }
 0x304   :  { %13535 = vmatpush3.bf16.msra.mxu0 %v14636_v13  ;;  %10819 = vmatprep.mubr.bf16.mxu0 %v2666_v0  ;;  %v14673_v13 = vld [vmem:[%s18228_s1 + $0x19b0] sm:$0xff]  }
 0x305   :  { %v13264_v21 = vpop.f32.mrf.mxu1  ;;  %10780 = vmatmul.mubr.bf16.vlgmr.msra.gmra.mxu1 %v2626_v15  ;;  %v13243_v22 = vpop.f32.mrf.mxu0  ;;  %13536 = vmatprep.subr.bf16.mxu0 %v14638_v16  ;;  %v14674_v16 = vld [vmem:[%s18228_s1 + $0x1968] sm:$0xff]  }
 0x306   :  { %13557 = vmatpush3.bf16.msra.mxu1 %v14637_v14  ;;  %v13244_v24 = vadd.f32 %v13243_v22, %v13242_v18  ;;  %10859 = vmatprep.mubr.bf16.mxu1 %v2676_v4  ;;  %v14675_v18 = vld [vmem:[%s18228_s1 + $0x19e8] sm:$0xff]  }
 0x307   :  { %v13265_v26 = vpop.f32.mrf.mxu1  ;;  %13558 = vmatprep.subr.bf16.mxu1 %v14639_v17  ;;  %v13245_v28 = vpop.f32.mrf.mxu0 }
 0x308   :  { %v10262_v29 = vadd.f32 %v13244_v24, %v17390_v53  ;;  %v13266_v30 = vadd.f32 %v13265_v26, %v13264_v21  ;;  %13537 = vmatpush3.bf16.msra.mxu0 %v14640_v19  ;;  %v14662_v53 = vld [vmem:[%s18228_s1 + $0x1840] sm:$0xff]   ;;  %v14677_v24 = vld [vmem:[%s18228_s1 + $0x19a8] sm:$0xff]  }
 0x309   :  { %v13267_v32 = vpop.f32.mrf.mxu1  ;;  %13538 = vmatprep.subr.bf16.mxu0 %v14642_v23  ;;  %v13246_v34 = vpop.f32.mrf.mxu0  ;;  %v14678_v26 = vld [vmem:[%s18228_s1 + $0x1960] sm:$0xff]  }
 0x30a   :  { %v17491_v35 = vadd.f32 %v13266_v30, %v10262_v29  ;;  %13559 = vmatpush3.bf16.msra.mxu1 %v14641_v20  ;;  %v14676_v20 = vld [vmem:[%s18228_s1 + $0x1928] sm:$0xff]   ;;  %v14679_v29 = vld [vmem:[%s18228_s1 + $0x19e0] sm:$0xff]   ;;  %v14683_v34 = vld [vmem:[%s18228_s1 + $0x19d8] sm:$0xff]  }
 0x30b   :  { %v13268_v37 = vpop.f32.mrf.mxu1  ;;  %13560 = vmatprep.subr.bf16.mxu1 %v14643_v25  ;;  %v14681_v32 = vld [vmem:[%s18228_s1 + $0x19a0] sm:$0xff]  }
 0x30c   :  { %13539 = vmatpush3.bf16.msra.mxu0 %v14644_v27  ;;  %v14686_v37 = vld [vmem:[%s18228_s1 + $0x1950] sm:$0xff]  }
 0x30d   :  { %13540 = vmatprep.subr.bf16.mxu0 %v14646_v33  ;;  %v14682_v33 = vld [vmem:[%s18228_s1 + $0x1958] sm:$0xff]  }
 0x30e   :  { %13561 = vmatpush3.bf16.msra.mxu1 %v14645_v31  ;;  %v14680_v31 = vld [vmem:[%s18228_s1 + $0x1920] sm:$0xff]  }
 0x30f   :  { %13562 = vmatprep.subr.bf16.mxu1 %v14647_v36  ;;  %v14685_v36 = vld [vmem:[%s18228_s1 + $0x1998] sm:$0xff]  }
 0x310   :  { %13541 = vmatpush3.bf16.msra.mxu0 %v14648_v38  ;;  %v14687_v38 = vld [vmem:[%s18228_s1 + $0x19d0] sm:$0xff]  }
 0x311   :  { %13542 = vmatprep.subr.bf16.mxu0 %v14650_v40  ;;  %v14689_v40 = vld [vmem:[%s18228_s1 + $0x1990] sm:$0xff]  }
 0x312   :  { %13563 = vmatpush3.bf16.msra.mxu1 %v14649_v39  ;;  %v14688_v39 = vld [vmem:[%s18228_s1 + $0x1910] sm:$0xff]  }
 0x313   :  { %13564 = vmatprep.subr.bf16.mxu1 %v14651_v42  ;;  %v14690_v42 = vld [vmem:[%s18228_s1 + $0x1948] sm:$0xff]  }
 0x314   :  { %13543 = vmatpush3.bf16.msra.mxu0 %v14652_v43  ;;  %v14691_v43 = vld [vmem:[%s18228_s1 + $0x19c8] sm:$0xff]  }
 0x315   :  { %13544 = vmatprep.subr.bf16.mxu0 %v14654_v45  ;;  %v14693_v45 = vld [vmem:[%s18228_s1 + $0x1988] sm:$0xff]  }
 0x316   :  { %13565 = vmatpush3.bf16.msra.mxu1 %v14653_v44  ;;  %v14692_v44 = vld [vmem:[%s18228_s1 + $0x1908] sm:$0xff]  }
 0x317   :  { %13566 = vmatprep.subr.bf16.mxu1 %v14655_v46  ;;  %v14694_v46 = vld [vmem:[%s18228_s1 + $0x1940] sm:$0xff]  }
 0x318   :  { %13545 = vmatpush3.bf16.msra.mxu0 %v14656_v47  ;;  %v14695_v47 = vld [vmem:[%s18228_s1 + $0x19c0] sm:$0xff]  }
 0x319   :  { %13546 = vmatprep.subr.bf16.mxu0 %v14658_v49  ;;  %v14697_v49 = vld [vmem:[%s18228_s1 + $0x1980] sm:$0xff]  }
 0x31a   :  { %13567 = vmatpush3.bf16.msra.mxu1 %v14657_v48  ;;  %v14696_v48 = vld [vmem:[%s18228_s1 + $0x1900] sm:$0xff]  }
 0x31b   :  { %13568 = vmatprep.subr.bf16.mxu1 %v14659_v50  ;;  %v2659_v50 = vrot.slane %v17555_v61, %v15029_v41 }
 0x31c   :  { %13547 = vmatpush3.bf16.msra.mxu0 %v14660_v51  ;;  %v14699_v51 = vld [vmem:[%s18228_s1 + $0x1a78] sm:$0xff]  }
 0x31d   :  { %13548 = vmatprep.subr.bf16.mxu0 %v14662_v53  ;;  %v14701_v53 = vld [vmem:[%s18228_s1 + $0x1a38] sm:$0xff]  }
 0x31e   :  { %13569 = vmatpush3.bf16.msra.mxu1 %v14661_v52  ;;  %v14700_v52 = vld [vmem:[%s18228_s1 + $0x1af8] sm:$0xff]  }
 0x31f   :  { %13570 = vmatprep.subr.bf16.mxu1 %v14663_v55  ;;  %v2675_v55 = vcombine.high %v2659_v50, %v2659_v50 }
 0x320   :  { %13549 = vmatpush3.bf16.msra.mxu0 %v14664_v58 }
 0x321   :  { %13578 = vmatprep.subr.bf16.mxu0 %v14666_v63  ;;  %v14707_v63 = vld [vmem:[%s18228_s1 + $0x1a68] sm:$0xff]  }
 0x322   :  { %13571 = vmatpush3.bf16.msra.mxu1 %v14665_v59  ;;  %v14705_v59 = vld [vmem:[%s18228_s1 + $0x1a30] sm:$0xff]  }
 0x323   :  { %v13286_v11 = vpop.f32.mrf.mxu0  ;;  %10820 = vmatmul.mubr.bf16.vlgmr.msra.gmra.mxu0 %v2652_v62  ;;  %13600 = vmatprep.subr.bf16.mxu1 %v14667_v1  ;;  %v14708_v1 = vld [vmem:[%s18228_s1 + $0x1ae8] sm:$0xff]  }
 0x324   :  { %13579 = vmatpush3.bf16.msra.mxu0 %v14668_v3  ;;  %10899 = vmatprep.mubr.bf16.mxu0 %v2673_v6  ;;  %v14709_v3 = vld [vmem:[%s18228_s1 + $0x1a28] sm:$0xff]  }
 0x325   :  { %v13308_v14 = vpop.f32.mrf.mxu1  ;;  %10860 = vmatmul.mubr.bf16.vlgmr.msra.gmra.mxu1 %v2674_v7  ;;  %v13287_v15 = vpop.f32.mrf.mxu0  ;;  %13580 = vmatprep.subr.bf16.mxu0 %v14670_v8  ;;  %v14710_v7 = vld [vmem:[%s18228_s1 + $0x1aa8] sm:$0xff]  }
 0x326   :  { %13601 = vmatpush3.bf16.msra.mxu1 %v14669_v5  ;;  %v13288_v17 = vadd.f32 %v13287_v15, %v13286_v11  ;;  %10939 = vmatprep.mubr.bf16.mxu1 %v2677_v10  ;;  %v14714_v15 = vld [vmem:[%s18228_s1 + $0x1aa0] sm:$0xff]  }
 0x327   :  { %v13309_v19 = vpop.f32.mrf.mxu1  ;;  %13602 = vmatprep.subr.bf16.mxu1 %v14671_v9  ;;  %v13289_v21 = vpop.f32.mrf.mxu0  ;;  %v14711_v9 = vld [vmem:[%s18228_s1 + $0x1a60] sm:$0xff]  }
 0x328   :  { %v10342_v22 = vadd.f32 %v13288_v17, %v17491_v35  ;;  %v13310_v23 = vadd.f32 %v13309_v19, %v13308_v14  ;;  %13581 = vmatpush3.bf16.msra.mxu0 %v14672_v12  ;;  %v14684_v35 = vld [vmem:[%s18228_s1 + $0x1918] sm:$0xff]   ;;  %v14712_v12 = vld [vmem:[%s18228_s1 + $0x1ae0] sm:$0xff]   ;;  %v14720_v21 = vld [vmem:[%s18228_s1 + $0x1ad0] sm:$0xff]  }
 0x329   :  { %v13311_v25 = vpop.f32.mrf.mxu1  ;;  %13582 = vmatprep.subr.bf16.mxu0 %v14674_v16  ;;  %v13290_v27 = vpop.f32.mrf.mxu0  ;;  %v14713_v14 = vld [vmem:[%s18228_s1 + $0x1a20] sm:$0xff]   ;;  %v14715_v16 = vld [vmem:[%s18228_s1 + $0x1a58] sm:$0xff]  }
 0x32a   :  { %v17602_v28 = vadd.f32 %v13310_v23, %v10342_v22  ;;  %13603 = vmatpush3.bf16.msra.mxu1 %v14673_v13  ;;  %v14716_v17 = vld [vmem:[%s18228_s1 + $0x1ad8] sm:$0xff]   ;;  %v14721_v22 = vld [vmem:[%s18228_s1 + $0x1a10] sm:$0xff]   ;;  %v14724_v25 = vld [vmem:[%s18228_s1 + $0x1ac8] sm:$0xff]  }
 0x32b   :  { %v13312_v30 = vpop.f32.mrf.mxu1  ;;  %13604 = vmatprep.subr.bf16.mxu1 %v14675_v18  ;;  %v14717_v18 = vld [vmem:[%s18228_s1 + $0x1a18] sm:$0xff]   ;;  %v14722_v23 = vld [vmem:[%s18228_s1 + $0x1a90] sm:$0xff]   ;;  %v14726_v27 = vld [vmem:[%s18228_s1 + $0x1a88] sm:$0xff]  }
 0x32c   :  { %13583 = vmatpush3.bf16.msra.mxu0 %v14676_v20  ;;  %v14718_v19 = vld [vmem:[%s18228_s1 + $0x1a98] sm:$0xff]   ;;  %v14719_v20 = vld [vmem:[%s18228_s1 + $0x1a50] sm:$0xff]   ;;  %v14728_v30 = vld [vmem:[%s18228_s1 + $0x1ac0] sm:$0xff]  }
 0x32d   :  { %13584 = vmatprep.subr.bf16.mxu0 %v14678_v26  ;;  %v14725_v26 = vld [vmem:[%s18228_s1 + $0x1a08] sm:$0xff]  }
 0x32e   :  { %13605 = vmatpush3.bf16.msra.mxu1 %v14677_v24  ;;  %v14723_v24 = vld [vmem:[%s18228_s1 + $0x1a48] sm:$0xff]  }
 0x32f   :  { %13606 = vmatprep.subr.bf16.mxu1 %v14679_v29  ;;  %v35_v29 = vld [vmem:[%s18227_s0 + $0x68] sm:$0xff] }
 0x330   :  { %13585 = vmatpush3.bf16.msra.mxu0 %v14680_v31  ;;  %v2685_v31 = vrot.slane %v35_v29, %v15029_v41 }
 0x331   :  { %13586 = vmatprep.subr.bf16.mxu0 %v14682_v33  ;;  %v14729_v33 = vld [vmem:[%s18228_s1 + $0x1a00] sm:$0xff]  }
 0x332   :  { %13607 = vmatpush3.bf16.msra.mxu1 %v14681_v32  ;;  %v2678_v32 = vcombine.high %v35_v29, %v35_v29  ;;  %v14767_v29 = vld [vmem:[%s18228_s1 + $0x1cb8] sm:$0xff]  }
 0x333   :  { %13608 = vmatprep.subr.bf16.mxu1 %v14683_v34  ;;  %v14730_v34 = vld [vmem:[%s18228_s1 + $0x1a80] sm:$0xff]  }
 0x334   :  { %13587 = vmatpush3.bf16.msra.mxu0 %v14684_v35  ;;  %v2693_v35 = vcombine.high %v2685_v31, %v2685_v31 }
 0x335   :  { %13588 = vmatprep.subr.bf16.mxu0 %v14686_v37  ;;  %v2701_v37 = vrot.slane %v2685_v31, %v15029_v41  ;;  %v14768_v31 = vld [vmem:[%s18228_s1 + $0x1c70] sm:$0xff]  }
 0x336   :  { %13609 = vmatpush3.bf16.msra.mxu1 %v14685_v36  ;;  %v17767_v36 = vrot.slane %v2678_v32, %v15029_v41  ;;  %v14769_v32 = vld [vmem:[%s18228_s1 + $0x1cf0] sm:$0xff]  }
 0x337   :  { %13610 = vmatprep.subr.bf16.mxu1 %v14687_v38  ;;  %v14731_v38 = vld [vmem:[%s18228_s1 + $0x1b78] sm:$0xff]  }
 0x338   :  { %13589 = vmatpush3.bf16.msra.mxu0 %v14688_v39  ;;  %v2715_v39 = vrot.slane %v2693_v35, %v15029_v41  ;;  %v14771_v35 = vld [vmem:[%s18228_s1 + $0x1cb0] sm:$0xff]  }
 0x339   :  { %13590 = vmatprep.subr.bf16.mxu0 %v14690_v42  ;;  %v2694_v42 = vcombine.high %v17767_v36, %v17767_v36 }
 0x33a   :  { %13611 = vmatpush3.bf16.msra.mxu1 %v14689_v40  ;;  %v14732_v40 = vld [vmem:[%s18228_s1 + $0x1bf8] sm:$0xff]  }
 0x33b   :  { %13612 = vmatprep.subr.bf16.mxu1 %v14691_v43  ;;  %v14733_v43 = vld [vmem:[%s18228_s1 + $0x1b38] sm:$0xff]  }
 0x33c   :  { %13591 = vmatpush3.bf16.msra.mxu0 %v14692_v44  ;;  %v2725_v44 = vcombine.high %v2715_v39, %v2715_v39 }
 0x33d   :  { %13592 = vmatprep.subr.bf16.mxu0 %v14694_v46  ;;  %v2722_v46 = vrot.slane %v2694_v42, %v15029_v41 }
 0x33e   :  { %13613 = vmatpush3.bf16.msra.mxu1 %v14693_v45  ;;  %v14734_v45 = vld [vmem:[%s18228_s1 + $0x1bb8] sm:$0xff]  }
 0x33f   :  { %13614 = vmatprep.subr.bf16.mxu1 %v14695_v47  ;;  %v2723_v47 = vcombine.high %v2701_v37, %v2701_v37 }
 0x340   :  { %13593 = vmatpush3.bf16.msra.mxu0 %v14696_v48  ;;  %v14735_v48 = vld [vmem:[%s18228_s1 + $0x1b70] sm:$0xff]  }
 0x341   :  { %13622 = vmatprep.subr.bf16.mxu0 %v14699_v51 }
 0x342   :  { %13615 = vmatpush3.bf16.msra.mxu1 %v14697_v49  ;;  %v14736_v49 = vld [vmem:[%s18228_s1 + $0x1bf0] sm:$0xff]  }
 0x343   :  { %v13330_v58 = vpop.f32.mrf.mxu0  ;;  %10900 = vmatmul.mubr.bf16.vlgmr.msra.gmra.mxu0 %v2659_v50  ;;  %13644 = vmatprep.subr.bf16.mxu1 %v14700_v52  ;;  %v2726_v50 = vcombine.high %v2722_v46, %v2722_v46  ;;  %v14737_v52 = vld [vmem:[%s18228_s1 + $0x1b30] sm:$0xff]  }
 0x344   :  { %13623 = vmatpush3.bf16.msra.mxu0 %v14701_v53  ;;  %10979 = vmatprep.mubr.bf16.mxu0 %v2715_v39  ;;  %v14738_v53 = vld [vmem:[%s18228_s1 + $0x1bb0] sm:$0xff]  }
 0x345   :  { %v13352_v61 = vpop.f32.mrf.mxu1  ;;  %10940 = vmatmul.mubr.bf16.vlgmr.msra.gmra.mxu1 %v2675_v55  ;;  %v13331_v62 = vpop.f32.mrf.mxu0  ;;  %13624 = vmatprep.subr.bf16.mxu0 %v14703_v56  ;;  %v14739_v56 = vld [vmem:[%s18228_s1 + $0x1b68] sm:$0xff]  }
 0x346   :  { %13645 = vmatpush3.bf16.msra.mxu1 %v14702_v54  ;;  %v13332_v0 = vadd.f32 %v13331_v62, %v13330_v58  ;;  %11019 = vmatprep.mubr.bf16.mxu1 %v2725_v44  ;;  %v14740_v58 = vld [vmem:[%s18228_s1 + $0x1be8] sm:$0xff]  }
 0x347   :  { %v13353_v2 = vpop.f32.mrf.mxu1  ;;  %13646 = vmatprep.subr.bf16.mxu1 %v14704_v57  ;;  %v13333_v4 = vpop.f32.mrf.mxu0 }
 0x348   :  { %v10422_v5 = vadd.f32 %v13332_v0, %v17602_v28  ;;  %v13354_v6 = vadd.f32 %v13353_v2, %v13352_v61  ;;  %13625 = vmatpush3.bf16.msra.mxu0 %v14705_v59  ;;  %v14727_v28 = vld [vmem:[%s18228_s1 + $0x1a40] sm:$0xff]   ;;  %v14742_v0 = vld [vmem:[%s18228_s1 + $0x1ba8] sm:$0xff]  }
 0x349   :  { %v13355_v8 = vpop.f32.mrf.mxu1  ;;  %13626 = vmatprep.subr.bf16.mxu0 %v14707_v63  ;;  %v13334_v10 = vpop.f32.mrf.mxu0  ;;  %v14743_v2 = vld [vmem:[%s18228_s1 + $0x1b60] sm:$0xff]  }
 0x34a   :  { %v17703_v11 = vadd.f32 %v13354_v6, %v10422_v5  ;;  %13647 = vmatpush3.bf16.msra.mxu1 %v14706_v60  ;;  %v14741_v60 = vld [vmem:[%s18228_s1 + $0x1b28] sm:$0xff]   ;;  %v14744_v5 = vld [vmem:[%s18228_s1 + $0x1be0] sm:$0xff]   ;;  %v14748_v10 = vld [vmem:[%s18228_s1 + $0x1bd8] sm:$0xff]  }
 0x34b   :  { %v13356_v13 = vpop.f32.mrf.mxu1  ;;  %13648 = vmatprep.subr.bf16.mxu1 %v14708_v1  ;;  %v14746_v8 = vld [vmem:[%s18228_s1 + $0x1ba0] sm:$0xff]  }
 0x34c   :  { %13627 = vmatpush3.bf16.msra.mxu0 %v14709_v3  ;;  %v14751_v13 = vld [vmem:[%s18228_s1 + $0x1b50] sm:$0xff]  }
 0x34d   :  { %13628 = vmatprep.subr.bf16.mxu0 %v14711_v9  ;;  %v14747_v9 = vld [vmem:[%s18228_s1 + $0x1b58] sm:$0xff]  }
 0x34e   :  { %13649 = vmatpush3.bf16.msra.mxu1 %v14710_v7  ;;  %v14745_v7 = vld [vmem:[%s18228_s1 + $0x1b20] sm:$0xff]  }
 0x34f   :  { %13650 = vmatprep.subr.bf16.mxu1 %v14712_v12  ;;  %v14750_v12 = vld [vmem:[%s18228_s1 + $0x1b98] sm:$0xff]  }
 0x350   :  { %13629 = vmatpush3.bf16.msra.mxu0 %v14713_v14  ;;  %v14752_v14 = vld [vmem:[%s18228_s1 + $0x1bd0] sm:$0xff]  }
 0x351   :  { %13630 = vmatprep.subr.bf16.mxu0 %v14715_v16  ;;  %v14754_v16 = vld [vmem:[%s18228_s1 + $0x1b90] sm:$0xff]  }
 0x352   :  { %13651 = vmatpush3.bf16.msra.mxu1 %v14714_v15  ;;  %v14753_v15 = vld [vmem:[%s18228_s1 + $0x1b10] sm:$0xff]  }
 0x353   :  { %13652 = vmatprep.subr.bf16.mxu1 %v14716_v17  ;;  %v14755_v17 = vld [vmem:[%s18228_s1 + $0x1b48] sm:$0xff]  }
 0x354   :  { %13631 = vmatpush3.bf16.msra.mxu0 %v14717_v18  ;;  %v14756_v18 = vld [vmem:[%s18228_s1 + $0x1bc8] sm:$0xff]  }
 0x355   :  { %13632 = vmatprep.subr.bf16.mxu0 %v14719_v20  ;;  %v14758_v20 = vld [vmem:[%s18228_s1 + $0x1b88] sm:$0xff]  }
 0x356   :  { %13653 = vmatpush3.bf16.msra.mxu1 %v14718_v19  ;;  %v14757_v19 = vld [vmem:[%s18228_s1 + $0x1b08] sm:$0xff]  }
 0x357   :  { %13654 = vmatprep.subr.bf16.mxu1 %v14720_v21  ;;  %v14759_v21 = vld [vmem:[%s18228_s1 + $0x1b40] sm:$0xff]  }
 0x358   :  { %13633 = vmatpush3.bf16.msra.mxu0 %v14721_v22  ;;  %v14760_v22 = vld [vmem:[%s18228_s1 + $0x1bc0] sm:$0xff]  }
 0x359   :  { %13634 = vmatprep.subr.bf16.mxu0 %v14723_v24  ;;  %v14762_v24 = vld [vmem:[%s18228_s1 + $0x1b80] sm:$0xff]  }
 0x35a   :  { %13655 = vmatpush3.bf16.msra.mxu1 %v14722_v23  ;;  %v14761_v23 = vld [vmem:[%s18228_s1 + $0x1b00] sm:$0xff]  }
 0x35b   :  { %13656 = vmatprep.subr.bf16.mxu1 %v14724_v25  ;;  %v2708_v25 = vrot.slane %v17767_v36, %v15029_v41 }
 0x35c   :  { %13635 = vmatpush3.bf16.msra.mxu0 %v14725_v26  ;;  %v14764_v26 = vld [vmem:[%s18228_s1 + $0x1c78] sm:$0xff]  }
 0x35d   :  { %13636 = vmatprep.subr.bf16.mxu0 %v14727_v28  ;;  %v14766_v28 = vld [vmem:[%s18228_s1 + $0x1c38] sm:$0xff]  }
 0x35e   :  { %13657 = vmatpush3.bf16.msra.mxu1 %v14726_v27  ;;  %v14765_v27 = vld [vmem:[%s18228_s1 + $0x1cf8] sm:$0xff]  }
 0x35f   :  { %13658 = vmatprep.subr.bf16.mxu1 %v14728_v30  ;;  %v2724_v30 = vcombine.high %v2708_v25, %v2708_v25 }
 0x360   :  { %13637 = vmatpush3.bf16.msra.mxu0 %v14729_v33 }
 0x361   :  { %13666 = vmatprep.subr.bf16.mxu0 %v14731_v38  ;;  %v14772_v38 = vld [vmem:[%s18228_s1 + $0x1c68] sm:$0xff]  }
 0x362   :  { %13659 = vmatpush3.bf16.msra.mxu1 %v14730_v34  ;;  %v14770_v34 = vld [vmem:[%s18228_s1 + $0x1c30] sm:$0xff]  }
 0x363   :  { %v13374_v51 = vpop.f32.mrf.mxu0  ;;  %10980 = vmatmul.mubr.bf16.vlgmr.msra.gmra.mxu0 %v2701_v37  ;;  %13688 = vmatprep.subr.bf16.mxu1 %v14732_v40  ;;  %v14773_v40 = vld [vmem:[%s18228_s1 + $0x1ce8] sm:$0xff]  }
 0x364   :  { %13667 = vmatpush3.bf16.msra.mxu0 %v14733_v43  ;;  %11059 = vmatprep.mubr.bf16.mxu0 %v2722_v46  ;;  %v14774_v43 = vld [vmem:[%s18228_s1 + $0x1c28] sm:$0xff]  }
 0x365   :  { %v13396_v54 = vpop.f32.mrf.mxu1  ;;  %11020 = vmatmul.mubr.bf16.vlgmr.msra.gmra.mxu1 %v2723_v47  ;;  %v13375_v55 = vpop.f32.mrf.mxu0  ;;  %13668 = vmatprep.subr.bf16.mxu0 %v14735_v48  ;;  %v14775_v47 = vld [vmem:[%s18228_s1 + $0x1ca8] sm:$0xff]  }
 0x366   :  { %13689 = vmatpush3.bf16.msra.mxu1 %v14734_v45  ;;  %v13376_v57 = vadd.f32 %v13375_v55, %v13374_v51  ;;  %11099 = vmatprep.mubr.bf16.mxu1 %v2726_v50  ;;  %v14779_v55 = vld [vmem:[%s18228_s1 + $0x1ca0] sm:$0xff]  }
 0x367   :  { %v13397_v59 = vpop.f32.mrf.mxu1  ;;  %13690 = vmatprep.subr.bf16.mxu1 %v14736_v49  ;;  %v13377_v61 = vpop.f32.mrf.mxu0  ;;  %v14776_v49 = vld [vmem:[%s18228_s1 + $0x1c60] sm:$0xff]  }
 0x368   :  { %v10502_v62 = vadd.f32 %v13376_v57, %v17703_v11  ;;  %v13398_v63 = vadd.f32 %v13397_v59, %v13396_v54  ;;  %13669 = vmatpush3.bf16.msra.mxu0 %v14737_v52  ;;  %v14749_v11 = vld [vmem:[%s18228_s1 + $0x1b18] sm:$0xff]   ;;  %v14777_v52 = vld [vmem:[%s18228_s1 + $0x1ce0] sm:$0xff]   ;;  %v14785_v61 = vld [vmem:[%s18228_s1 + $0x1cd0] sm:$0xff]  }
 0x369   :  { %v13399_v1 = vpop.f32.mrf.mxu1  ;;  %13670 = vmatprep.subr.bf16.mxu0 %v14739_v56  ;;  %v13378_v3 = vpop.f32.mrf.mxu0  ;;  %v14778_v54 = vld [vmem:[%s18228_s1 + $0x1c20] sm:$0xff]   ;;  %v14780_v56 = vld [vmem:[%s18228_s1 + $0x1c58] sm:$0xff]  }
 0x36a   :  { %v17814_v4 = vadd.f32 %v13398_v63, %v10502_v62  ;;  %13691 = vmatpush3.bf16.msra.mxu1 %v14738_v53  ;;  %v14781_v57 = vld [vmem:[%s18228_s1 + $0x1cd8] sm:$0xff]   ;;  %v14786_v62 = vld [vmem:[%s18228_s1 + $0x1c10] sm:$0xff]   ;;  %v14789_v1 = vld [vmem:[%s18228_s1 + $0x1cc8] sm:$0xff]  }
 0x36b   :  { %v13400_v6 = vpop.f32.mrf.mxu1  ;;  %13692 = vmatprep.subr.bf16.mxu1 %v14740_v58  ;;  %v14782_v58 = vld [vmem:[%s18228_s1 + $0x1c18] sm:$0xff]   ;;  %v14787_v63 = vld [vmem:[%s18228_s1 + $0x1c90] sm:$0xff]   ;;  %v14791_v3 = vld [vmem:[%s18228_s1 + $0x1c88] sm:$0xff]  }
 0x36c   :  { %13671 = vmatpush3.bf16.msra.mxu0 %v14741_v60  ;;  %v14783_v59 = vld [vmem:[%s18228_s1 + $0x1c98] sm:$0xff]   ;;  %v14784_v60 = vld [vmem:[%s18228_s1 + $0x1c50] sm:$0xff]   ;;  %v14793_v6 = vld [vmem:[%s18228_s1 + $0x1cc0] sm:$0xff]  }
 0x36d   :  { %13672 = vmatprep.subr.bf16.mxu0 %v14743_v2  ;;  %v14790_v2 = vld [vmem:[%s18228_s1 + $0x1c08] sm:$0xff]  }
 0x36e   :  { %13693 = vmatpush3.bf16.msra.mxu1 %v14742_v0  ;;  %v14788_v0 = vld [vmem:[%s18228_s1 + $0x1c48] sm:$0xff]  }
 0x36f   :  { %13694 = vmatprep.subr.bf16.mxu1 %v14744_v5  ;;  %v36_v5 = vld [vmem:[%s18227_s0 + $0x70] sm:$0xff] }
 0x370   :  { %13673 = vmatpush3.bf16.msra.mxu0 %v14745_v7  ;;  %v2734_v7 = vrot.slane %v36_v5, %v15029_v41 }
 0x371   :  { %13674 = vmatprep.subr.bf16.mxu0 %v14747_v9  ;;  %v14794_v9 = vld [vmem:[%s18228_s1 + $0x1c00] sm:$0xff]  }
 0x372   :  { %13695 = vmatpush3.bf16.msra.mxu1 %v14746_v8  ;;  %v2727_v8 = vcombine.high %v36_v5, %v36_v5  ;;  %v14832_v5 = vld [vmem:[%s18228_s1 + $0x1e70] sm:$0xff]  }
 0x373   :  { %13696 = vmatprep.subr.bf16.mxu1 %v14748_v10  ;;  %v2742_v10 = vcombine.high %v2734_v7, %v2734_v7 }
 0x374   :  { %13675 = vmatpush3.bf16.msra.mxu0 %v14749_v11  ;;  %v2750_v11 = vrot.slane %v2734_v7, %v15029_v41 }
 0x375   :  { %13676 = vmatprep.subr.bf16.mxu0 %v14751_v13  ;;  %v17980_v13 = vrot.slane %v2727_v8, %v15029_v41  ;;  %v14890_v8 = vmov 0  }
 0x376   :  { %13697 = vmatpush3.bf16.msra.mxu1 %v14750_v12  ;;  %v14796_v12 = vld [vmem:[%s18228_s1 + $0x1d78] sm:$0xff]  }
 0x377   :  { %13698 = vmatprep.subr.bf16.mxu1 %v14752_v14  ;;  %v14795_v14 = vld [vmem:[%s18228_s1 + $0x1c80] sm:$0xff]  }
 0x378   :  { %13677 = vmatpush3.bf16.msra.mxu0 %v14753_v15  ;;  %v2764_v15 = vrot.slane %v2742_v10, %v15029_v41 }
 0x379   :  { %13678 = vmatprep.subr.bf16.mxu0 %v14755_v17  ;;  %v2743_v17 = vcombine.high %v17980_v13, %v17980_v13 }
 0x37a   :  { %13699 = vmatpush3.bf16.msra.mxu1 %v14754_v16  ;;  %v14797_v16 = vld [vmem:[%s18228_s1 + $0x1df8] sm:$0xff]  }
 0x37b   :  { %13700 = vmatprep.subr.bf16.mxu1 %v14756_v18  ;;  %v14798_v18 = vld [vmem:[%s18228_s1 + $0x1d38] sm:$0xff]  }
 0x37c   :  { %13679 = vmatpush3.bf16.msra.mxu0 %v14757_v19  ;;  %v2774_v19 = vcombine.high %v2764_v15, %v2764_v15 }
 0x37d   :  { %13680 = vmatprep.subr.bf16.mxu0 %v14759_v21  ;;  %v14800_v21 = vld [vmem:[%s18228_s1 + $0x1d70] sm:$0xff]  }
 0x37e   :  { %13701 = vmatpush3.bf16.msra.mxu1 %v14758_v20  ;;  %v2772_v20 = vcombine.high %v2750_v11, %v2750_v11 }
 0x37f   :  { %13702 = vmatprep.subr.bf16.mxu1 %v14760_v22  ;;  %v2771_v22 = vrot.slane %v2743_v17, %v15029_v41 }
 0x380   :  { %13681 = vmatpush3.bf16.msra.mxu0 %v14761_v23  ;;  %v14799_v23 = vld [vmem:[%s18228_s1 + $0x1db8] sm:$0xff]  }
 0x381   :  { %13710 = vmatprep.subr.bf16.mxu0 %v14764_v26  ;;  %v2775_v26 = vcombine.high %v2771_v22, %v2771_v22 }
 0x382   :  { %13703 = vmatpush3.bf16.msra.mxu1 %v14762_v24 }
 0x383   :  { %v13418_v33 = vpop.f32.mrf.mxu0  ;;  %11060 = vmatmul.mubr.bf16.vlgmr.msra.gmra.mxu0 %v2708_v25  ;;  %13732 = vmatprep.subr.bf16.mxu1 %v14765_v27  ;;  %v14801_v25 = vld [vmem:[%s18228_s1 + $0x1df0] sm:$0xff]  }
 0x384   :  { %13711 = vmatpush3.bf16.msra.mxu0 %v14766_v28  ;;  %11139 = vmatprep.mubr.bf16.mxu0 %v2764_v15  ;;  %v14802_v27 = vld [vmem:[%s18228_s1 + $0x1d30] sm:$0xff]  }
 0x385   :  { %v13440_v36 = vpop.f32.mrf.mxu1  ;;  %11100 = vmatmul.mubr.bf16.vlgmr.msra.gmra.mxu1 %v2724_v30  ;;  %v13419_v37 = vpop.f32.mrf.mxu0  ;;  %13712 = vmatprep.subr.bf16.mxu0 %v14768_v31  ;;  %v14804_v30 = vld [vmem:[%s18228_s1 + $0x1d68] sm:$0xff]  }
 0x386   :  { %13733 = vmatpush3.bf16.msra.mxu1 %v14767_v29  ;;  %v13420_v39 = vadd.f32 %v13419_v37, %v13418_v33  ;;  %11179 = vmatprep.mubr.bf16.mxu1 %v2774_v19  ;;  %v14836_v19 = vld [vmem:[%s18228_s1 + $0x1e28] sm:$0xff]  }
 0x387   :  { %v13441_v42 = vpop.f32.mrf.mxu1  ;;  %13734 = vmatprep.subr.bf16.mxu1 %v14769_v32  ;;  %v13421_v44 = vpop.f32.mrf.mxu0  ;;  %v14803_v32 = vld [vmem:[%s18228_s1 + $0x1db0] sm:$0xff]  }
 0x388   :  { %v10582_v45 = vadd.f32 %v13420_v39, %v17814_v4  ;;  %v13442_v46 = vadd.f32 %v13441_v42, %v13440_v36  ;;  %13713 = vmatpush3.bf16.msra.mxu0 %v14770_v34  ;;  %v14792_v4 = vld [vmem:[%s18228_s1 + $0x1c40] sm:$0xff]   ;;  %v14805_v34 = vld [vmem:[%s18228_s1 + $0x1de8] sm:$0xff]  }
 0x389   :  { %v13443_v48 = vpop.f32.mrf.mxu1  ;;  %13714 = vmatprep.subr.bf16.mxu0 %v14772_v38  ;;  %v13422_v50 = vpop.f32.mrf.mxu0  ;;  %v14806_v38 = vld [vmem:[%s18228_s1 + $0x1d28] sm:$0xff]  }
 0x38a   :  { %v17915_v51 = vadd.f32 %v13442_v46, %v10582_v45  ;;  %13735 = vmatpush3.bf16.msra.mxu1 %v14771_v35  ;;  %v14807_v44 = vld [vmem:[%s18228_s1 + $0x1da8] sm:$0xff]   ;;  %v14809_v46 = vld [vmem:[%s18228_s1 + $0x1de0] sm:$0xff]   ;;  %v14812_v48 = vld [vmem:[%s18228_s1 + $0x1d58] sm:$0xff]  }
 0x38b   :  { %v13444_v53 = vpop.f32.mrf.mxu1  ;;  %13736 = vmatprep.subr.bf16.mxu1 %v14773_v40  ;;  %v14808_v40 = vld [vmem:[%s18228_s1 + $0x1d60] sm:$0xff]   ;;  %v14813_v50 = vld [vmem:[%s18228_s1 + $0x1dd8] sm:$0xff]  }
 0x38c   :  { %13715 = vmatpush3.bf16.msra.mxu0 %v14774_v43  ;;  %v14815_v53 = vld [vmem:[%s18228_s1 + $0x1d98] sm:$0xff]  }
 0x38d   :  { %13716 = vmatprep.subr.bf16.mxu0 %v14776_v49  ;;  %v14811_v49 = vld [vmem:[%s18228_s1 + $0x1da0] sm:$0xff]  }
 0x38e   :  { %13737 = vmatpush3.bf16.msra.mxu1 %v14775_v47  ;;  %v14810_v47 = vld [vmem:[%s18228_s1 + $0x1d20] sm:$0xff]  }
 0x38f   :  { %13738 = vmatprep.subr.bf16.mxu1 %v14777_v52  ;;  %v14816_v52 = vld [vmem:[%s18228_s1 + $0x1d50] sm:$0xff]  }
 0x390   :  { %13717 = vmatpush3.bf16.msra.mxu0 %v14778_v54  ;;  %v14817_v54 = vld [vmem:[%s18228_s1 + $0x1dd0] sm:$0xff]  }
 0x391   :  { %13718 = vmatprep.subr.bf16.mxu0 %v14780_v56  ;;  %v14820_v56 = vld [vmem:[%s18228_s1 + $0x1d48] sm:$0xff]  }
 0x392   :  { %13739 = vmatpush3.bf16.msra.mxu1 %v14779_v55  ;;  %v14818_v55 = vld [vmem:[%s18228_s1 + $0x1d10] sm:$0xff]  }
 0x393   :  { %13740 = vmatprep.subr.bf16.mxu1 %v14781_v57  ;;  %v14819_v57 = vld [vmem:[%s18228_s1 + $0x1d90] sm:$0xff]  }
 0x394   :  { %13719 = vmatpush3.bf16.msra.mxu0 %v14782_v58  ;;  %v14821_v58 = vld [vmem:[%s18228_s1 + $0x1dc8] sm:$0xff]  }
 0x395   :  { %13720 = vmatprep.subr.bf16.mxu0 %v14784_v60  ;;  %v14824_v60 = vld [vmem:[%s18228_s1 + $0x1d40] sm:$0xff]  }
 0x396   :  { %13741 = vmatpush3.bf16.msra.mxu1 %v14783_v59  ;;  %v14822_v59 = vld [vmem:[%s18228_s1 + $0x1d08] sm:$0xff]  }
 0x397   :  { %13742 = vmatprep.subr.bf16.mxu1 %v14785_v61  ;;  %v14823_v61 = vld [vmem:[%s18228_s1 + $0x1d88] sm:$0xff]  }
 0x398   :  { %13721 = vmatpush3.bf16.msra.mxu0 %v14786_v62  ;;  %v14825_v62 = vld [vmem:[%s18228_s1 + $0x1dc0] sm:$0xff]  }
 0x399   :  { %13722 = vmatprep.subr.bf16.mxu0 %v14788_v0  ;;  %v2757_v0 = vrot.slane %v17980_v13, %v15029_v41 }
 0x39a   :  { %13743 = vmatpush3.bf16.msra.mxu1 %v14787_v63  ;;  %v14826_v63 = vld [vmem:[%s18228_s1 + $0x1d00] sm:$0xff]  }
 0x39b   :  { %13744 = vmatprep.subr.bf16.mxu1 %v14789_v1  ;;  %v14829_v1 = vld [vmem:[%s18228_s1 + $0x1e78] sm:$0xff]  }
 0x39c   :  { %13723 = vmatpush3.bf16.msra.mxu0 %v14790_v2  ;;  %v14827_v2 = vld [vmem:[%s18228_s1 + $0x1d80] sm:$0xff]  }
 0x39d   :  { %13724 = vmatprep.subr.bf16.mxu0 %v14792_v4  ;;  %v2773_v4 = vcombine.high %v2757_v0, %v2757_v0 }
 0x39e   :  { %13745 = vmatpush3.bf16.msra.mxu1 %v14791_v3  ;;  %v14830_v3 = vld [vmem:[%s18228_s1 + $0x1e38] sm:$0xff]  }
 0x39f   :  { %13746 = vmatprep.subr.bf16.mxu1 %v14793_v6  ;;  %v14831_v6 = vld [vmem:[%s18228_s1 + $0x1eb8] sm:$0xff]  }
 0x3a0   :  { %13725 = vmatpush3.bf16.msra.mxu0 %v14794_v9  ;;  %v14833_v9 = vld [vmem:[%s18228_s1 + $0x1e30] sm:$0xff]  }
 0x3a1   :  { %13754 = vmatprep.subr.bf16.mxu0 %v14796_v12  ;;  %v14835_v12 = vld [vmem:[%s18228_s1 + $0x1e68] sm:$0xff]  }
 0x3a2   :  { %13747 = vmatpush3.bf16.msra.mxu1 %v14795_v14  ;;  %v14834_v14 = vld [vmem:[%s18228_s1 + $0x1eb0] sm:$0xff]  }
 0x3a3   :  { %v13462_v24 = vpop.f32.mrf.mxu0  ;;  %11140 = vmatmul.mubr.bf16.vlgmr.msra.gmra.mxu0 %v2750_v11  ;;  %13776 = vmatprep.subr.bf16.mxu1 %v14797_v16 }
 0x3a4   :  { %13755 = vmatpush3.bf16.msra.mxu0 %v14798_v18  ;;  %11219 = vmatprep.mubr.bf16.mxu0 %v2771_v22 }
 0x3a5   :  { %v13484_v28 = vpop.f32.mrf.mxu1  ;;  %11180 = vmatmul.mubr.bf16.vlgmr.msra.gmra.mxu1 %v2772_v20  ;;  %v13463_v29 = vpop.f32.mrf.mxu0  ;;  %13756 = vmatprep.subr.bf16.mxu0 %v14800_v21  ;;  %v14838_v21 = vld [vmem:[%s18228_s1 + $0x1e60] sm:$0xff]  }
 0x3a6   :  { %13777 = vmatpush3.bf16.msra.mxu1 %v14799_v23  ;;  %v13464_v31 = vadd.f32 %v13463_v29, %v13462_v24  ;;  %11259 = vmatprep.mubr.bf16.mxu1 %v2775_v26  ;;  %v14837_v24 = vld [vmem:[%s18228_s1 + $0x1ea8] sm:$0xff]   ;;  %v14839_v26 = vld [vmem:[%s18228_s1 + $0x1e20] sm:$0xff]   ;;  %v14842_v29 = vld [vmem:[%s18228_s1 + $0x1e18] sm:$0xff]  }
 0x3a7   :  { %v13485_v33 = vpop.f32.mrf.mxu1  ;;  %13778 = vmatprep.subr.bf16.mxu1 %v14801_v25  ;;  %v13465_v35 = vpop.f32.mrf.mxu0 }
 0x3a8   :  { %v10662_v36 = vadd.f32 %v13464_v31, %v17915_v51  ;;  %v13486_v37 = vadd.f32 %v13485_v33, %v13484_v28  ;;  %13757 = vmatpush3.bf16.msra.mxu0 %v14802_v27  ;;  %v14814_v51 = vld [vmem:[%s18228_s1 + $0x1d18] sm:$0xff]   ;;  %v14840_v28 = vld [vmem:[%s18228_s1 + $0x1ea0] sm:$0xff]   ;;  %v14847_v35 = vld [vmem:[%s18228_s1 + $0x1e48] sm:$0xff]  }
 0x3a9   :  { %v13487_v39 = vpop.f32.mrf.mxu1  ;;  %13758 = vmatprep.subr.bf16.mxu0 %v14804_v30  ;;  %v13466_v42 = vpop.f32.mrf.mxu0  ;;  %v14841_v27 = vld [vmem:[%s18228_s1 + $0x1e58] sm:$0xff]   ;;  %v14844_v30 = vld [vmem:[%s18228_s1 + $0x1e50] sm:$0xff]  }
 0x3aa   :  { %v18023_v43 = vadd.f32 %v13486_v37, %v10662_v36  ;;  %13779 = vmatpush3.bf16.msra.mxu1 %v14803_v32  ;;  %v14843_v31 = vld [vmem:[%s18228_s1 + $0x1e98] sm:$0xff]   ;;  %v14846_v37 = vld [vmem:[%s18228_s1 + $0x1e90] sm:$0xff]   ;;  %v14850_v42 = vld [vmem:[%s18228_s1 + $0x1e40] sm:$0xff]  }
 0x3ab   :  { %v13488_v45 = vpop.f32.mrf.mxu1  ;;  %13780 = vmatprep.subr.bf16.mxu1 %v14805_v34  ;;  %v11477_v32 = vld.sshfl [vmem:[%s18227_s0 + $0x78] sm:$0x33 pattern:$0x75316420]  ;;  %v14845_v34 = vld [vmem:[%s18228_s1 + $0x1e10] sm:$0xff]  }
 0x3ac   :  { %13759 = vmatpush3.bf16.msra.mxu0 %v14806_v38  ;;  %v2783_v33 = vcombine.high %v11477_v32, %v11477_v32  ;;  %v14848_v38 = vld [vmem:[%s18228_s1 + $0x1e08] sm:$0xff]  }
 0x3ad   :  { %13760 = vmatprep.subr.bf16.mxu0 %v14808_v40  ;;  %v14849_v40 = vld [vmem:[%s18228_s1 + $0x1e88] sm:$0xff]  }
 0x3ae   :  { %13781 = vmatpush3.bf16.msra.mxu1 %v14807_v44  ;;  %v2797_v36 = vrot.slane %v2783_v33, %v15029_v41  ;;  %v14852_v44 = vld [vmem:[%s18228_s1 + $0x1e80] sm:$0xff]  }
 0x3af   :  { %13782 = vmatprep.subr.bf16.mxu1 %v14809_v46 }
 0x3b0   :  { %13761 = vmatpush3.bf16.msra.mxu0 %v14810_v47  ;;  %v2799_v39 = vcombine.high %v2797_v36, %v2797_v36 }
 0x3b1   :  { %13762 = vmatprep.subr.bf16.mxu0 %v14812_v48 }
 0x3b2   :  { %13783 = vmatpush3.bf16.msra.mxu1 %v14811_v49 }
 0x3b3   :  { %13784 = vmatprep.subr.bf16.mxu1 %v14813_v50 }
 0x3b4   :  { %13763 = vmatpush3.bf16.msra.mxu0 %v14814_v51 }
 0x3b5   :  { %13764 = vmatprep.subr.bf16.mxu0 %v14816_v52 }
 0x3b6   :  { %13785 = vmatpush3.bf16.msra.mxu1 %v14815_v53 }
 0x3b7   :  { %13786 = vmatprep.subr.bf16.mxu1 %v14817_v54 }
 0x3b8   :  { %13765 = vmatpush3.bf16.msra.mxu0 %v14818_v55 }
 0x3b9   :  { %13766 = vmatprep.subr.bf16.mxu0 %v14820_v56 }
 0x3ba   :  { %13787 = vmatpush3.bf16.msra.mxu1 %v14819_v57 }
 0x3bb   :  { %13788 = vmatprep.subr.bf16.mxu1 %v14821_v58 }
 0x3bc   :  { %13767 = vmatpush3.bf16.msra.mxu0 %v14822_v59 }
 0x3bd   :  { %13768 = vmatprep.subr.bf16.mxu0 %v14824_v60 }
 0x3be   :  { %13789 = vmatpush3.bf16.msra.mxu1 %v14823_v61 }
 0x3bf   :  { %13790 = vmatprep.subr.bf16.mxu1 %v14825_v62 }
 0x3c0   :  { %13769 = vmatpush3.bf16.msra.mxu0 %v14826_v63 }
 0x3c1   :  { %13798 = vmatprep.subr.bf16.mxu0 %v14829_v1 }
 0x3c2   :  { %13791 = vmatpush3.bf16.msra.mxu1 %v14827_v2 }
 0x3c3   :  { %v13506_v7 = vpop.f32.mrf.mxu0  ;;  %11220 = vmatmul.mubr.bf16.vlgmr.msra.gmra.mxu0 %v2757_v0  ;;  %11307 = vmatprep.subr.bf16.mxu1 %v14890_v8 }
 0x3c4   :  { %13799 = vmatpush3.bf16.msra.mxu0 %v14830_v3  ;;  %11299 = vmatprep.mubr.bf16.mxu0 %v2797_v36 }
 0x3c5   :  { %v13528_v10 = vpop.f32.mrf.mxu1  ;;  %11260 = vmatmul.mubr.bf16.vlgmr.msra.gmra.mxu1 %v2773_v4  ;;  %v13507_v11 = vpop.f32.mrf.mxu0  ;;  %13800 = vmatprep.subr.bf16.mxu0 %v14832_v5 }
 0x3c6   :  { %11308 = vmatpush1.bf16.msra.mxu1 %v14831_v6  ;;  %v13508_v13 = vadd.f32 %v13507_v11, %v13506_v7  ;;  %12468 = vmatprep.mubr.msk.bf16.mxu1 %vm8863_vm0, %v2799_v39 }
 0x3c7   :  { %v13529_v15 = vpop.f32.mrf.mxu1  ;;  %11309 = vmatprep.subr.bf16.mxu1 %v14890_v8  ;;  %v13509_v16 = vpop.f32.mrf.mxu0 }
 0x3c8   :  { %v10742_v17 = vadd.f32 %v13508_v13, %v18023_v43  ;;  %v13530_v18 = vadd.f32 %v13529_v15, %v13528_v10  ;;  %13801 = vmatpush3.bf16.msra.mxu0 %v14833_v9  ;;  %v14851_v43 = vld [vmem:[%s18228_s1 + $0x1e00] sm:$0xff]  }
 0x3c9   :  { %v13531_v20 = vpop.f32.mrf.mxu1  ;;  %13802 = vmatprep.subr.bf16.mxu0 %v14835_v12  ;;  %v13510_v22 = vpop.f32.mrf.mxu0 }
 0x3ca   :  { %v10782_v23 = vadd.f32 %v13530_v18, %v10742_v17  ;;  %11310 = vmatpush1.bf16.msra.mxu1 %v14834_v14 }
 0x3cb   :  { %v13532_v25 = vpop.f32.mrf.mxu1  ;;  %11311 = vmatprep.subr.bf16.mxu1 %v14890_v8 }
 0x3cc   :  { %13803 = vmatpush3.bf16.msra.mxu0 %v14836_v19 }
 0x3cd   :  { %13804 = vmatprep.subr.bf16.mxu0 %v14838_v21 }
 0x3ce   :  { %11312 = vmatpush1.bf16.msra.mxu1 %v14837_v24 }
 0x3cf   :  { %11313 = vmatprep.subr.bf16.mxu1 %v14890_v8 }
 0x3d0   :  { %13805 = vmatpush3.bf16.msra.mxu0 %v14839_v26 }
 0x3d1   :  { %13806 = vmatprep.subr.bf16.mxu0 %v14841_v27 }
 0x3d2   :  { %11314 = vmatpush1.bf16.msra.mxu1 %v14840_v28 }
 0x3d3   :  { %11315 = vmatprep.subr.bf16.mxu1 %v14890_v8 }
 0x3d4   :  { %13807 = vmatpush3.bf16.msra.mxu0 %v14842_v29 }
 0x3d5   :  { %13808 = vmatprep.subr.bf16.mxu0 %v14844_v30 }
 0x3d6   :  { %11316 = vmatpush1.bf16.msra.mxu1 %v14843_v31 }
 0x3d7   :  { %11317 = vmatprep.subr.bf16.mxu1 %v14890_v8 }
 0x3d8   :  { %13809 = vmatpush3.bf16.msra.mxu0 %v14845_v34 }
 0x3d9   :  { %13810 = vmatprep.subr.bf16.mxu0 %v14847_v35 }
 0x3da   :  { %11318 = vmatpush1.bf16.msra.mxu1 %v14846_v37 }
 0x3db   :  { %11319 = vmatprep.subr.bf16.mxu1 %v14890_v8 }
 0x3dc   :  { %13811 = vmatpush3.bf16.msra.mxu0 %v14848_v38 }
 0x3dd   :  { %13812 = vmatprep.subr.bf16.mxu0 %v14850_v42 }
 0x3de   :  { %11320 = vmatpush1.bf16.msra.mxu1 %v14849_v40 }
 0x3df   :  { %10 = vsyncpa [#allocation3], 0  ;;  %11321 = vmatprep.subr.bf16.mxu1 %v14890_v8  ;;  %v2790_v45 = vrot.slane %v11477_v32, %v15029_v41  ;;  %v14853_v46 = vld [vmem:[%s18228_s1 + $0x1ee8] sm:$0xff]   ;;  %v14854_v51 = vld [vmem:[%s18228_s1 + $0x1ee0] sm:$0xff]   ;;  %v14891_v13 = vmov 0.0   ;;  %vm14892_vm1 = vmmov 0  }
 0x3e0   :  { %13813 = vmatpush3.bf16.msra.mxu0 %v14851_v43  ;;  %v14855_v58 = vld [vmem:[%s18228_s1 + $0x1ed8] sm:$0xff]   ;;  %v14856_v60 = vld [vmem:[%s18228_s1 + $0x1ed0] sm:$0xff]   ;;  %v14857_v61 = vld [vmem:[%s18228_s1 + $0x1ec8] sm:$0xff]   ;;  %s14893_s11 = smov [#allocation2]   ;;  %vm11460_vm2 = vcmask 25600  }
 0x3e1   :  { %v14858_v62 = vld [vmem:[%s18228_s1 + $0x1ec0] sm:$0xff]   ;;  %v2798_v63 = vcombine.high %v2790_v45, %v2790_v45  ;;  %13829 = vmatprep.subr.bf16.mxu0 %v14891_v13  ;;  %v14860_v18 = vld [vmem:[%s18230_s3 + $0x30] sm:$0xff]   ;;  %v14861_v25 = vld [vmem:[%s18230_s3 + $0x28] sm:$0xff]   ;;  %s11468_s12 = sshll.u32 %s14893_s11, 4  ;;  %s11469_s12 = int_to_ptr.vmem [resolvable:$true] %s11468_s12 }
 0x3e2   :  { %11322 = vmatpush1.bf16.msra.mxu1 %v14852_v44  ;;  %v14862_v28 = vld [vmem:[%s18230_s3 + $0x20] sm:$0xff]   ;;  %v14863_v29 = vld [vmem:[%s18230_s3 + $0x18] sm:$0xff]   ;;  %v14864_v30 = vld [vmem:[%s18230_s3 + $0x10] sm:$0xff]   ;;  %s14867_s13 = scalar_lea.vmem %s11469_s12, 32  ;;  %p14872_p1 = scmp.lt.s32.totalorder %s11469_s12, %s11469_s12 }
 0x3e3   :  { %v13550_v47 = vpop.f32.mrf.mxu0  ;;  %11300 = vmatmul.mubr.bf16.vlgmr.msra.gmra.mxu0 %v2790_v45  ;;  %11327 = vmatprep.subr.bf16.mxu1 %v14890_v8  ;;  %v14865_v31 = vld [vmem:[%s18230_s3 + $0x8] sm:$0xff]   ;;  %v14866_v32 = vld [vmem:[%s18230_s3] sm:$0xff]   ;;  %p14868_p0 = scmp.ne.s32.totalorder %s11469_s12, %s14867_s13  ;;  %p14873_p2 = scmp.lt.s32.totalorder %s14867_s13, %s14867_s13 }
 0x3e4   :  { %13845 = vmatprep.mubr.msk.bf16.mxu0 %vm14892_vm1, %v14891_v13 }
 0x3e5   :  { %v13572_v48 = vpop.f32.mrf.mxu1  ;;  %v13551_v49 = vpop.f32.mrf.mxu0  ;;  %p14874_p3 = por %p14873_p2, %p14872_p1 }
 0x3e6   :  { %11328 = vmatpush2.bf16.msra.mxu1 %v14853_v46  ;;  %v13552_v50 = vadd.f32 %v13551_v49, %v13550_v47 }
 0x3e7   :  { %v13573_v52 = vpop.f32.mrf.mxu1  ;;  %11329 = vmatprep.subr.bf16.mxu1 %v14890_v8  ;;  %v13553_v41 = vpop.f32.mrf.mxu0  ;;  %p14875_p4 = pnand %p14874_p3, %p14868_p0 }
 0x3e8   :  { %v10822_v53 = vadd.f32 %v13552_v50, %v10782_v23  ;;  %v13574_v54 = vadd.f32 %v13573_v52, %v13572_v48 }
 0x3e9   :  { %v13575_v55 = vpop.f32.mrf.mxu1  ;;  %v13554_v56 = vpop.f32.mrf.mxu0 }
 0x3ea   :  { %v10862_v57 = vadd.f32 %v13574_v54, %v10822_v53  ;;  %11330 = vmatpush2.bf16.msra.mxu1 %v14854_v51 }
 0x3eb   :  { %v13576_v59 = vpop.f32.mrf.mxu1  ;;  %11331 = vmatprep.subr.bf16.mxu1 %v14890_v8 }
 0x3ee   :  { %11332 = vmatpush2.bf16.msra.mxu1 %v14855_v58 }
 0x3ef   :  { %11333 = vmatprep.subr.bf16.mxu1 %v14890_v8 }
 0x3f2   :  { %11334 = vmatpush2.bf16.msra.mxu1 %v14856_v60 }
 0x3f3   :  { %11335 = vmatprep.subr.bf16.mxu1 %v14890_v8 }
 0x3f6   :  { %11336 = vmatpush2.bf16.msra.mxu1 %v14857_v61 }
 0x3f7   :  { %11337 = vmatprep.subr.bf16.mxu1 %v14890_v8  ;;  %v14859_v8 = vld [vmem:[%s18230_s3 + $0x38] sm:$0xff]  }
 0x3f8   :  { %13830 = vmatpush3.bf16.msra.mxu0 %v14859_v8 }
 0x3f9   :  { %13831 = vmatprep.subr.bf16.mxu0 %v14891_v13 }
 0x3fa   :  { %11338 = vmatpush2.bf16.msra.mxu1 %v14858_v62 }
 0x3fc   :  { %13832 = vmatpush3.bf16.msra.mxu0 %v14860_v18  ;;  %v12469_v18 = vld [vmem:[%s18231_s4] ss:$0 sm:$0xff] }
 0x3fd   :  { %11340 = vmatmul.mubr.bf16.vlgmr.msra.gmra.mxu1 %v2798_v63  ;;  %13833 = vmatprep.subr.bf16.mxu0 %v14891_v13 }
 0x400   :  { %13834 = vmatpush3.bf16.msra.mxu0 %v14861_v25 }
 0x401   :  { %13835 = vmatprep.subr.bf16.mxu0 %v14891_v13 }
 0x403   :  { %v13594_v0 = vpop.f32.mrf.mxu0 }
 0x404   :  { %13836 = vmatpush3.bf16.msra.mxu0 %v14862_v28 }
 0x405   :  { %v13616_v1 = vpop.f32.mrf.mxu1  ;;  %v13595_v2 = vpop.f32.mrf.mxu0  ;;  %13837 = vmatprep.subr.bf16.mxu0 %v14891_v13 }
 0x406   :  { %v13596_v3 = vadd.f32 %v13595_v2, %v13594_v0 }
 0x407   :  { %v13617_v4 = vpop.f32.mrf.mxu1  ;;  %v13597_v5 = vpop.f32.mrf.mxu0 }
 0x408   :  { %v10902_v6 = vadd.f32 %v13596_v3, %v10862_v57  ;;  %v13618_v7 = vadd.f32 %v13617_v4, %v13616_v1  ;;  %13838 = vmatpush3.bf16.msra.mxu0 %v14863_v29 }
 0x409   :  { %v13619_v9 = vpop.f32.mrf.mxu1  ;;  %v13598_v10 = vpop.f32.mrf.mxu0  ;;  %13839 = vmatprep.subr.bf16.mxu0 %v14891_v13 }
 0x40a   :  { %v10942_v11 = vadd.f32 %v13618_v7, %v10902_v6 }
 0x40b   :  { %v13620_v12 = vpop.f32.mrf.mxu1 }
 0x40c   :  { %13840 = vmatpush3.bf16.msra.mxu0 %v14864_v30 }
 0x40d   :  { %13841 = vmatprep.subr.bf16.mxu0 %v14891_v13 }
 0x410   :  { %13842 = vmatpush3.bf16.msra.mxu0 %v14865_v31 }
 0x411   :  { %13843 = vmatprep.subr.bf16.mxu0 %v14891_v13 }
 0x414   :  { %13844 = vmatpush3.bf16.msra.mxu0 %v14866_v32 }
 0x423   :  { %v13638_v14 = vpop.f32.mrf.mxu0 }
 0x425   :  { %v13660_v15 = vpop.f32.mrf.mxu1  ;;  %v13639_v16 = vpop.f32.mrf.mxu0 }
 0x426   :  { %v13640_v17 = vadd.f32 %v13639_v16, %v13638_v14 }
 0x427   :  { %v13661_v19 = vpop.f32.mrf.mxu1  ;;  %v13641_v20 = vpop.f32.mrf.mxu0 }
 0x428   :  { %v10982_v21 = vadd.f32 %v13640_v17, %v10942_v11  ;;  %v13662_v22 = vadd.f32 %v13661_v19, %v13660_v15 }
 0x429   :  { %v13663_v23 = vpop.f32.mrf.mxu1  ;;  %v13642_v24 = vpop.f32.mrf.mxu0 }
 0x42a   :  { %v11022_v26 = vadd.f32 %v13662_v22, %v10982_v21 }
 0x42b   :  { %v13664_v27 = vpop.f32.mrf.mxu1 }
 0x443   :  { %v13682_v33 = vpop.f32.mrf.mxu0 }
 0x445   :  { %v13704_v34 = vpop.f32.mrf.mxu1  ;;  %v13683_v35 = vpop.f32.mrf.mxu0 }
 0x446   :  { %v13684_v36 = vadd.f32 %v13683_v35, %v13682_v33 }
 0x447   :  { %v13705_v37 = vpop.f32.mrf.mxu1  ;;  %v13685_v38 = vpop.f32.mrf.mxu0 }
 0x448   :  { %v11062_v39 = vadd.f32 %v13684_v36, %v11022_v26  ;;  %v13706_v40 = vadd.f32 %v13705_v37, %v13704_v34 }
 0x449   :  { %v13707_v42 = vpop.f32.mrf.mxu1  ;;  %v13686_v43 = vpop.f32.mrf.mxu0 }
 0x44a   :  { %v11102_v44 = vadd.f32 %v13706_v40, %v11062_v39 }
 0x44b   :  { %v13708_v45 = vpop.f32.mrf.mxu1 }
 0x463   :  { %v13726_v46 = vpop.f32.mrf.mxu0 }
 0x465   :  { %v13748_v47 = vpop.f32.mrf.mxu1  ;;  %v13727_v48 = vpop.f32.mrf.mxu0 }
 0x466   :  { %v13728_v49 = vadd.f32 %v13727_v48, %v13726_v46 }
 0x467   :  { %v13749_v50 = vpop.f32.mrf.mxu1  ;;  %v13729_v51 = vpop.f32.mrf.mxu0 }
 0x468   :  { %v11142_v52 = vadd.f32 %v13728_v49, %v11102_v44  ;;  %v13750_v41 = vadd.f32 %v13749_v50, %v13748_v47 }
 0x469   :  { %v13751_v53 = vpop.f32.mrf.mxu1  ;;  %v13730_v54 = vpop.f32.mrf.mxu0 }
 0x46a   :  { %v11182_v55 = vadd.f32 %v13750_v41, %v11142_v52 }
 0x46b   :  { %v13752_v56 = vpop.f32.mrf.mxu1 }
 0x483   :  { %v13770_v57 = vpop.f32.mrf.mxu0 }
 0x485   :  { %v13792_v58 = vpop.f32.mrf.mxu1  ;;  %v13771_v59 = vpop.f32.mrf.mxu0 }
 0x486   :  { %v13772_v5 = vadd.f32 %v13771_v59, %v13770_v57 }
 0x487   :  { %v13793_v60 = vpop.f32.mrf.mxu1  ;;  %v13773_v61 = vpop.f32.mrf.mxu0 }
 0x488   :  { %v11222_v6 = vadd.f32 %v13772_v5, %v11182_v55  ;;  %v13794_v7 = vadd.f32 %v13793_v60, %v13792_v58 }
 0x489   :  { %v13795_v62 = vpop.f32.mrf.mxu1  ;;  %v13774_v63 = vpop.f32.mrf.mxu0 }
 0x48a   :  { %v11262_v10 = vadd.f32 %v13794_v7, %v11222_v6 }
 0x48b   :  { %v13796_v0 = vpop.f32.mrf.mxu1 }
 0x4a3   :  { %v13814_v1 = vpop.f32.mrf.mxu0 }
 0x4a5   :  { %v13815_v2 = vpop.f32.mrf.mxu0 }
 0x4a6   :  { %v13816_v9 = vadd.f32 %v13815_v2, %v13814_v1 }
 0x4a7   :  { %v13817_v3 = vpop.f32.mrf.mxu0 }
 0x4a8   :  { %v11302_v11 = vadd.f32 %v13816_v9, %v11262_v10 }
 0x4a9   :  { %v13818_v4 = vpop.f32.mrf.mxu0 }
 0x4bd   :  { %v11341_v12 = vpop.f32.mrf.mxu1 }
 0x4be   :  { %v11342_v13 = vadd.f32 %v11341_v12, %v11302_v11 }
 0x4bf   :  { %v11343_v14 = vpop.f32.mrf.mxu1 }
 0x4c0   :  { %v11347_v8 = vmax.f32 %v11342_v13, 0.0 }
 0x4c1   :  { %v11344_v15 = vpop.f32.mrf.mxu1 }
 0x4c2   :  { %v11348_v16 = vpack.c.bf16 %v11347_v8, %v11347_v8 }
 0x4c3   :  { %v11345_v17 = vpop.f32.mrf.mxu1 }
 0x4c4   :  { %13846 = vmatmul.mubr.bf16.vlgmr.msra.gmra.mxu0 %v11348_v16 }
 0x584   :  { %v11454_v19 = vpop.f32.mrf.mxu0 }
 0x585   :  { %v11455_v20 = vadd.f32 %v12469_v18, %v11454_v19 }
 0x586   :  { %v13847_v21 = vpop.f32.mrf.mxu0 }
 0x587   :  { %11461 = vst.msk [vmem:[#allocation2] sm:$0x3] %vm11460_vm2, %v11455_v20 }
 0x588   :  { %v11457_v22 = vpop.f32.mrf.mxu0 }
 0x589   :  { %14878 = shalt.err (!%p14875_p4)
}
 0x58a   :  { %11471 = dma.vmem_to_hbm [thread:$0]  %s11469_s12, 32, %s18232_s5, [#allocation3]   ;;  %v13848_v23 = vpop.f32.mrf.mxu0 }
 0x58b   :  { %14887 = dma.done.wait [#allocation3], 32  }
 0x58c   :  { %14888 = vsyncadd [#allocation3], 4294967264 }
 0x58d   :  { %11475 = vsyncpa [#allocation3], 1 }

</bundles_post_ra>
